<compile_context>
chip_gen: v7x
topology: tpu7x:2x2x1
jax: 0.10.0
libtpu: 0.0.40
codegen_flags: <defaults>
</compile_context>

<pallas_src>
import jax
import jax.numpy as jnp
from jax.experimental import pallas as pl
from jax.experimental.pallas import tpu as pltpu

# ----------------------- scaled-down ImageReward config -----------------------
B = 2              # number of generations (batch)
IMG = 16           # image size   (stand-in for 224)
PATCH = 8          # patch size   (stand-in for 16)  -> 2x2 = 4 patches
C_IN = 3
D_V = 32           # vision width (stand-in for 1024)
H_V = 4            # vision heads
L_V = 2            # vision transformer layers
D_T = 32           # text width   (stand-in for 768)
H_T = 4
L_T = 2
SEQ_T = 8          # text sequence length (multiple of 8 already)
VOCAB = 30
MLP_DIMS = (64, 16, 8, 4, 1)   # stand-in for ImageReward MLP 768->1024->128->64->16->1
MEAN = 0.16717362830052426
STD = 1.0333394966054072

N_PATCH = (IMG // PATCH) ** 2       # 4 patches
N_V_TOK = N_PATCH + 1               # + CLS = 5 real vision tokens
N_V_PAD = 8                         # padded to a sublane-aligned row count


# --------------------------- in-kernel math helpers ----------------------------
_SQRT_HALF = 0.7071067811865476


def _erf_approx(x):
    # Abramowitz & Stegun 7.1.26 polynomial, |err| < 1.5e-7: exact-GELU parity at f32
    # without relying on a lax.erf lowering inside Mosaic.
    a1, a2, a3, a4, a5 = 0.254829592, -0.284496736, 1.421413741, -1.453152027, 1.061405429
    p = 0.3275911
    ax = jnp.abs(x)
    t = 1.0 / (1.0 + p * ax)
    poly = ((((a5 * t + a4) * t + a3) * t + a2) * t + a1) * t
    y = 1.0 - poly * jnp.exp(-ax * ax)
    return jnp.where(x < 0, -y, y)


def _gelu_exact(x):
    # PyTorch nn.GELU default (erf form), not the tanh approximation.
    return 0.5 * x * (1.0 + _erf_approx(x * _SQRT_HALF))


def _layernorm(x, g, b, eps):
    mu = jnp.mean(x, axis=-1, keepdims=True)
    var = jnp.mean(jnp.square(x - mu), axis=-1, keepdims=True)
    return (x - mu) * jax.lax.rsqrt(var + eps) * g + b


def _mha_heads(x2, enc2, wq, bq, wk, bk, wv, bv, wo, bo, kbias3, n_batch, nq, nk):
    """Multi-head attention with per-head weights stacked on a leading axis.

    x2:   (n_batch*nq, D_q)   query residual stream (already LayerNormed if pre-norm)
    enc2: (n_batch*nk, D_kv)  key/value source (== x2 for self-attention)
    wq/wk/wv: (H, D, dh); bq/bk/bv: (H, 1, dh); wo: (H, dh, D_out); bo: (1, D_out)
    kbias3: (n_batch, 1, nk)  additive key bias (padding / attention mask)

    The 1/sqrt(dh) scale is pre-folded into wq/bq.  Every matmul operand is
    lane-dense (weights sliced only on the leading head axis), the batch dimension
    is handled by batched einsums (no per-sample Python loop), and only a short
    unrolled head loop remains.
    """
    n_heads = wq.shape[0]
    d_out = wo.shape[-1]
    acc = jnp.zeros((n_batch * nq, d_out), jnp.float32)
    # TODO(synk): at real dims, assemble per-head contexts into one lane-contiguous
    # (nq, D) buffer and run a single K=D output projection instead of H accumulated
    # (nq, dh)@(dh, D) dots, and switch this loop to lax.fori_loop(..., unroll=True).
    for h in range(n_heads):
        qh = (jnp.dot(x2, wq[h], preferred_element_type=jnp.float32) + bq[h]
              ).reshape(n_batch, nq, -1)
        kh = (jnp.dot(enc2, wk[h], preferred_element_type=jnp.float32) + bk[h]
              ).reshape(n_batch, nk, -1)
        vh = (jnp.dot(enc2, wv[h], preferred_element_type=jnp.float32) + bv[h]
              ).reshape(n_batch, nk, -1)
        s = jnp.einsum('bqe,bke->bqk', qh, kh,
                       preferred_element_type=jnp.float32) + kbias3
        s = s - jnp.max(s, axis=-1, keepdims=True)
        p = jnp.exp(s)
        p = p * pl.reciprocal(jnp.sum(p, axis=-1, keepdims=True), approx=True)
        ctx = jnp.einsum('bqk,bke->bqe', p, vh,
                         preferred_element_type=jnp.float32).reshape(n_batch * nq, -1)
        acc = acc + jnp.dot(ctx, wo[h], preferred_element_type=jnp.float32)
    return acc + bo


# ------------------------------- Pallas kernels --------------------------------
def _vision_encoder_kernel(
        patches_ref, patch_w_ref, patch_b_ref, scatter_ref, tok_base_ref, kbias_ref,
        ln1_g, ln1_b, wq, bq, wk, bk, wv, bv, wo, bo,
        ln2_g, ln2_b, fc1_w, fc1_b, fc2_w, fc2_b,
        lnf_g, lnf_b,
        o_ref, x_sc):
    layer = pl.program_id(0)
    nb = kbias_ref.shape[0]
    nv = kbias_ref.shape[2]

    @pl.when(layer == 0)
    def _():
        # Patch-embed linear (Conv2d k=stride=PATCH == matmul over flattened patches)
        # fused into the first grid step.  `scatter` (constant 0/1 matrix) drops each
        # embedded patch into its token row; CLS+pos rows and zero pad rows come from
        # tok_base.  Pad rows only ever act as (masked) attention keys.
        pe = jnp.dot(patches_ref[...], patch_w_ref[...],
                     preferred_element_type=jnp.float32) + patch_b_ref[...]
        x_sc[...] = tok_base_ref[...] + jnp.dot(scatter_ref[...], pe,
                                                preferred_element_type=jnp.float32)

    x = x_sc[...]                               # (B*N_V_PAD, D_V) residual stream

    # --- pre-LN multi-head self-attention (BLIP ViT LayerNorm eps = 1e-6) ---
    hx = _layernorm(x, ln1_g[...], ln1_b[...], 1e-6)
    attn = _mha_heads(hx, hx, wq[...], bq[...], wk[...], bk[...], wv[...], bv[...],
                      wo[...], bo[...], kbias_ref[...], nb, nv, nv)
    x = x + attn

    # --- pre-LN MLP (exact erf GELU) ---
    hm = _layernorm(x, ln2_g[...], ln2_b[...], 1e-6)
    hm = _gelu_exact(jnp.dot(hm, fc1_w[...],
                             preferred_element_type=jnp.float32) + fc1_b[...])
    hm = jnp.dot(hm, fc2_w[...], preferred_element_type=jnp.float32) + fc2_b[...]
    x = x + hm

    x_sc[...] = x

    @pl.when(layer == pl.num_programs(0) - 1)
    def _():
        o_ref[...] = _layernorm(x, lnf_g[...], lnf_b[...], 1e-6)


def _text_encoder_kernel(
        x_in_ref, emb_ln_g, emb_ln_b, img_ref, tbias_ref, ibias_ref,
        cls_gather_ref, head_w_ref, head_b_ref,
        sa_wq, sa_bq, sa_wk, sa_bk, sa_wv, sa_bv, sa_wo, sa_bo, ln_sa_g, ln_sa_b,
        ca_wq, ca_bq, ca_wk, ca_bk, ca_wv, ca_bv, ca_wo, ca_bo, ln_ca_g, ln_ca_b,
        fc1_w, fc1_b, fc2_w, fc2_b, ln_ffn_g, ln_ffn_b,
        o_ref, x_sc):
    layer = pl.program_id(0)
    nb = tbias_ref.shape[0]
    n_txt = tbias_ref.shape[2]
    n_img = ibias_ref.shape[2]

    @pl.when(layer == 0)
    def _():
        # BERT embedding LayerNorm (eps 1e-12) fused into step 0.
        x_sc[...] = _layernorm(x_in_ref[...], emb_ln_g[...], emb_ln_b[...], 1e-12)

    x = x_sc[...]                               # (B*SEQ_T, D_T)
    img = img_ref[...]                          # (B*N_V_PAD, D_V)

    # --- self-attention (BERT post-norm) ---
    a = _mha_heads(x, x, sa_wq[...], sa_bq[...], sa_wk[...], sa_bk[...],
                   sa_wv[...], sa_bv[...], sa_wo[...], sa_bo[...],
                   tbias_ref[...], nb, n_txt, n_txt)
    x = _layernorm(x + a, ln_sa_g[...], ln_sa_b[...], 1e-12)

    # --- cross-attention to image embeds (padded vision rows masked via ibias) ---
    c = _mha_heads(x, img, ca_wq[...], ca_bq[...], ca_wk[...], ca_bk[...],
                   ca_wv[...], ca_bv[...], ca_wo[...], ca_bo[...],
                   ibias_ref[...], nb, n_txt, n_img)
    x = _layernorm(x + c, ln_ca_g[...], ln_ca_b[...], 1e-12)

    # --- FFN (exact erf GELU, post-norm) ---
    f = _gelu_exact(jnp.dot(x, fc1_w[...],
                            preferred_element_type=jnp.float32) + fc1_b[...])
    f = jnp.dot(f, fc2_w[...], preferred_element_type=jnp.float32) + fc2_b[...]
    x = _layernorm(x + f, ln_ffn_g[...], ln_ffn_b[...], 1e-12)

    x_sc[...] = x

    @pl.when(layer == pl.num_programs(0) - 1)
    def _():
        # CLS extraction (one tiny matmul via a constant gather matrix) + the folded
        # purely-linear 5-layer MLP head with (r-mean)/std baked into head_w/head_b.
        cls = jnp.dot(cls_gather_ref[...], x, preferred_element_type=jnp.float32)
        o_ref[...] = jnp.dot(cls, head_w_ref[...],
                             preferred_element_type=jnp.float32) + head_b_ref[...]


# ------------------------------ pallas_call wrappers ----------------------------
def _const_spec(a):
    # Whole array every grid step (weights / activations that are layer-invariant).
    return pl.BlockSpec(a.shape, lambda layer, _z=(0,) * a.ndim: _z)


def _layer_spec(a):
    # Per-layer slice of a (L, ...) stacked weight; leading layer dim squeezed away.
    tail = tuple(a.shape[1:])
    zeros = (0,) * (a.ndim - 1)
    return pl.BlockSpec((pl.Squeezed(),) + tail, lambda layer, _z=zeros: (layer,) + _z)


_VIS_STACKED = ("ln1_g", "ln1_b", "wq", "bq", "wk", "bk", "wv", "bv", "wo", "bo",
                "ln2_g", "ln2_b", "fc1_w", "fc1_b", "fc2_w", "fc2_b")

_TXT_STACKED = ("sa_wq", "sa_bq", "sa_wk", "sa_bk", "sa_wv", "sa_bv", "sa_wo", "sa_bo",
                "ln_sa_g", "ln_sa_b",
                "ca_wq", "ca_bq", "ca_wk", "ca_bk", "ca_wv", "ca_bv", "ca_wo", "ca_bo",
                "ln_ca_g", "ln_ca_b",
                "fc1_w", "fc1_b", "fc2_w", "fc2_b", "ln_ffn_g", "ln_ffn_b")


def vision_encoder_call(patches, tok_base, scatter, kbias, pv):
    N = tok_base.shape[0]
    consts = [patches, pv["patch_w"], pv["patch_b"], scatter, tok_base, kbias]
    stacked = [pv[k] for k in _VIS_STACKED]
    tail = [pv["ln_f_g"], pv["ln_f_b"]]
    in_specs = ([_const_spec(a) for a in consts]
                + [_layer_spec(a) for a in stacked]
                + [_const_spec(a) for a in tail])
    # TODO(synk): at real dims add a leading 'parallel' batch grid axis (v7x megacore),
    # bf16 weights and an explicit vmem_limit_bytes here.
    return pl.pallas_call(
        _vision_encoder_kernel,
        out_shape=jax.ShapeDtypeStruct((N, D_V), jnp.float32),
        grid=(L_V,),
        in_specs=in_specs,
        out_specs=pl.BlockSpec((N, D_V), lambda layer: (0, 0)),
        scratch_shapes=[pltpu.VMEM((N, D_V), jnp.float32)],
        compiler_params=pltpu.CompilerParams(dimension_semantics=("arbitrary",)),
    )(*consts, *stacked, *tail)


def text_encoder_call(x_emb, image_embeds, txt_kbias, img_kbias, cls_gather,
                      head_w, head_b, pt):
    Bq = cls_gather.shape[0]
    consts = [x_emb, pt["emb_ln_g"], pt["emb_ln_b"], image_embeds, txt_kbias, img_kbias,
              cls_gather, head_w, head_b]
    stacked = [pt[k] for k in _TXT_STACKED]
    in_specs = [_const_spec(a) for a in consts] + [_layer_spec(a) for a in stacked]
    return pl.pallas_call(
        _text_encoder_kernel,
        out_shape=jax.ShapeDtypeStruct((Bq, 1), jnp.float32),
        grid=(L_T,),
        in_specs=in_specs,
        out_specs=pl.BlockSpec((Bq, 1), lambda layer: (0, 0)),
        scratch_shapes=[pltpu.VMEM((x_emb.shape[0], D_T), jnp.float32)],
        compiler_params=pltpu.CompilerParams(dimension_semantics=("arbitrary",)),
    )(*consts, *stacked)


# ------------------------------- forward pass -----------------------------------
def _fold_mlp_head(mlp):
    # ImageReward MLP is a purely linear chain (its ReLUs are commented out; dropout
    # is identity in eval), so the 5 layers collapse exactly into one (D_T, 1) matvec;
    # (r - mean) / std is folded in as well.
    w = mlp[0]["w"]
    bvec = mlp[0]["b"]
    for lyr in mlp[1:]:
        w = w @ lyr["w"]
        bvec = bvec @ lyr["w"] + lyr["b"]
    return w / STD, (bvec - MEAN) / STD        # (D_T, 1), (1, 1)


def image_reward_forward(params, input_ids, attention_mask, images):
    pv, pt = params["visual"], params["text"]
    Bq, C, H, W = images.shape
    nH, nW = H // PATCH, W // PATCH
    npatch = nH * nW

    # ---- layout-only glue: flatten patches (Conv2d k=stride=PATCH == linear) ----
    patches = images.reshape(Bq, C, nH, PATCH, nW, PATCH)
    patches = patches.transpose(0, 2, 4, 1, 3, 5).reshape(Bq * npatch, C * PATCH * PATCH)

    # Token template: row 0 = CLS + pos[0], rows 1..4 = pos[1:], rows 5..7 = 0 (pads).
    tok = jnp.concatenate([pv["cls_token"] + pv["pos_embed"][0:1],
                           pv["pos_embed"][1:]], axis=0)
    tok = jnp.pad(tok, ((0, N_V_PAD - N_V_TOK), (0, 0)))
    tok_base = jnp.tile(tok, (Bq, 1))                               # (B*8, D_V)

    # Constant scatter matrix: (B*N_V_PAD, B*npatch), drops patch i of batch b into
    # token row b*8 + 1 + i inside the vision kernel (one tiny MXU matmul).
    rows = jnp.arange(Bq * N_V_PAD)
    cols = jnp.arange(Bq * npatch)
    r_in = rows % N_V_PAD
    tgt = (rows // N_V_PAD) * npatch + (r_in - 1)
    scatter = ((cols[None, :] == tgt[:, None])
               & (r_in[:, None] >= 1) & (r_in[:, None] <= npatch)).astype(jnp.float32)

    # Padded vision tokens are masked as attention keys everywhere (real tokens keep
    # bias 0, matching image_atts = ones in the reference).
    pad_bias = jnp.where(jnp.arange(N_V_PAD) < N_V_TOK, 0.0, -1e9).astype(jnp.float32)
    vis_kbias = jnp.broadcast_to(pad_bias[None, None, :], (Bq, 1, N_V_PAD))

    image_embeds = vision_encoder_call(patches, tok_base, scatter, vis_kbias, pv)

    # ---- text encoder (BERT-med with cross-attention to image embeds) ----
    L = input_ids.shape[1]
    xt = (jnp.take(pt["word_emb"], input_ids, axis=0)
          + pt["pos_emb"][None, :L, :]).reshape(Bq * L, D_T).astype(jnp.float32)
    txt_kbias = ((1.0 - attention_mask.astype(jnp.float32)) * -10000.0)[:, None, :]

    # Constant CLS-gather matrix (B, B*SEQ_T): picks row b*SEQ_T per sample.
    cls_gather = (jnp.arange(Bq * L)[None, :]
                  == (jnp.arange(Bq) * L)[:, None]).astype(jnp.float32)

    head_w, head_b = _fold_mlp_head(params["mlp"])

    rewards = text_encoder_call(xt, image_embeds, txt_kbias, vis_kbias, cls_gather,
                                head_w, head_b, pt)                 # (B, 1)
    # (The reference also computes a rank via torch.sort but never returns it; the
    #  dead argsort has been dropped here.)
    return rewards[:, 0]


# ------------------------------- parameter init ---------------------------------
def init_params(key):
    # TODO(synk): real ImageReward loads BLIP-pretrained weights + a tokenizer; here
    # parameters are deterministic synthetic values in the final (per-head stacked,
    # scale-folded) layout.  The split_* helpers document how real nn.Linear weights
    # (transposed to (D_in, D_out)) map into this layout.
    keys = iter(jax.random.split(key, 512))

    def nrm(shape):
        return 0.02 * jax.random.normal(next(keys), shape, jnp.float32)

    def ones(shape):
        return jnp.ones(shape, jnp.float32)

    def zeros(shape):
        return jnp.zeros(shape, jnp.float32)

    def split_w(w, nh):            # (D_in, D_out) -> (H, D_in, dh): heads leading
        d_in, d_out = w.shape
        return jnp.transpose(w.reshape(d_in, nh, d_out // nh), (1, 0, 2))

    def split_b(b, nh):            # (1, D_out) -> (H, 1, dh)
        d_out = b.shape[-1]
        return jnp.transpose(b.reshape(1, nh, d_out // nh), (1, 0, 2))

    def split_wo(w, nh):           # (D_in, D_out) -> (H, dh, D_out): rows per head
        d_in, d_out = w.shape
        return w.reshape(nh, d_in // nh, d_out)

    # --- vision layers: attention scale folded into the Q projection ---
    v_scale = (D_V // H_V) ** -0.5
    vis_layers = []
    for _ in range(L_V):
        vis_layers.append({
            "ln1_g": ones((1, D_V)), "ln1_b": zeros((1, D_V)),
            "wq": split_w(nrm((D_V, D_V)), H_V) * v_scale,
            "bq": split_b(zeros((1, D_V)), H_V) * v_scale,
            "wk": split_w(nrm((D_V, D_V)), H_V), "bk": split_b(zeros((1, D_V)), H_V),
            "wv": split_w(nrm((D_V, D_V)), H_V), "bv": split_b(zeros((1, D_V)), H_V),
            "wo": split_wo(nrm((D_V, D_V)), H_V), "bo": zeros((1, D_V)),
            "ln2_g": ones((1, D_V)), "ln2_b": zeros((1, D_V)),
            "fc1_w": nrm((D_V, 4 * D_V)), "fc1_b": zeros((1, 4 * D_V)),
            "fc2_w": nrm((4 * D_V, D_V)), "fc2_b": zeros((1, D_V)),
        })
    visual = {k: jnp.stack([lyr[k] for lyr in vis_layers]) for k in vis_layers[0]}
    visual.update({
        "patch_w": nrm((C_IN * PATCH * PATCH, D_V)), "patch_b": zeros((1, D_V)),
        "cls_token": nrm((1, D_V)), "pos_embed": nrm((N_V_TOK, D_V)),
        "ln_f_g": ones((1, D_V)), "ln_f_b": zeros((1, D_V)),
    })

    t_scale = (D_T // H_T) ** -0.5
    txt_layers = []
    for _ in range(L_T):
        txt_layers.append({
            "sa_wq": split_w(nrm((D_T, D_T)), H_T) * t_scale,
            "sa_bq": split_b(zeros((1, D_T)), H_T) * t_scale,
            "sa_wk": split_w(nrm((D_T, D_T)), H_T), "sa_bk": split_b(zeros((1, D_T)), H_T),
            "sa_wv": split_w(nrm((D_T, D_T)), H_T), "sa_bv": split_b(zeros((1, D_T)), H_T),
            "sa_wo": split_wo(nrm((D_T, D_T)), H_T), "sa_bo": zeros((1, D_T)),
            "ln_sa_g": ones((1, D_T)), "ln_sa_b": zeros((1, D_T)),
            "ca_wq": split_w(nrm((D_T, D_T)), H_T) * t_scale,
            "ca_bq": split_b(zeros((1, D_T)), H_T) * t_scale,
            "ca_wk": split_w(nrm((D_V, D_T)), H_T), "ca_bk": split_b(zeros((1, D_T)), H_T),
            "ca_wv": split_w(nrm((D_V, D_T)), H_T), "ca_bv": split_b(zeros((1, D_T)), H_T),
            "ca_wo": split_wo(nrm((D_T, D_T)), H_T), "ca_bo": zeros((1, D_T)),
            "ln_ca_g": ones((1, D_T)), "ln_ca_b": zeros((1, D_T)),
            "fc1_w": nrm((D_T, 4 * D_T)), "fc1_b": zeros((1, 4 * D_T)),
            "fc2_w": nrm((4 * D_T, D_T)), "fc2_b": zeros((1, D_T)),
            "ln_ffn_g": ones((1, D_T)), "ln_ffn_b": zeros((1, D_T)),
        })
    text = {k: jnp.stack([lyr[k] for lyr in txt_layers]) for k in txt_layers[0]}
    text.update({
        "word_emb": nrm((VOCAB, D_T)), "pos_emb": nrm((SEQ_T, D_T)),
        "emb_ln_g": ones((1, D_T)), "emb_ln_b": zeros((1, D_T)),
    })

    mlp = []
    dims = (D_T,) + MLP_DIMS
    for i in range(len(MLP_DIMS)):
        mlp.append({"w": nrm((dims[i], dims[i + 1])), "b": zeros((1, dims[i + 1]))})

    return {"visual": visual, "text": text, "mlp": mlp}


# ------------------------------------ main ---------------------------------------
if __name__ == "__main__":
    key = jax.random.PRNGKey(0)
    k_img, k_ids, k_params = jax.random.split(key, 3)

    # images NCHW, matching the PyTorch module's input convention.
    images = jax.random.normal(k_img, (B, C_IN, IMG, IMG), jnp.float32)
    input_ids = jax.random.randint(k_ids, (B, SEQ_T), 0, VOCAB, dtype=jnp.int32)
    attention_mask = jnp.concatenate(
        [jnp.ones((B, SEQ_T - 2), jnp.float32),
         jnp.array([[1.0, 1.0], [0.0, 0.0]], jnp.float32)], axis=1)   # pad tail of sample 1

    params = init_params(k_params)

    fwd = jax.jit(image_reward_forward)
    rewards = fwd(params, input_ids, attention_mask, images)
    jax.block_until_ready(rewards)

    assert rewards.shape == (B,)
    assert bool(jnp.all(jnp.isfinite(rewards)))
    _rewards_list = [float(v) for v in rewards]   # mirrors .cpu().numpy().tolist()
    print("KERNEL_OK")
</pallas_src>

<mosaic_0001>
module attributes {stable_mosaic.version = 11 : i64} {
  func.func @_vision_encoder_kernel(%arg0: i32, %arg1: memref<8x192xf32, #tpu.memory_space<vmem>>, %arg2: memref<192x32xf32, #tpu.memory_space<vmem>>, %arg3: memref<1x32xf32, #tpu.memory_space<vmem>>, %arg4: memref<16x8xf32, #tpu.memory_space<vmem>>, %arg5: memref<16x32xf32, #tpu.memory_space<vmem>>, %arg6: memref<2x1x8xf32, #tpu.memory_space<vmem>>, %arg7: memref<1x1x32xf32, #tpu.memory_space<vmem>>, %arg8: memref<1x1x32xf32, #tpu.memory_space<vmem>>, %arg9: memref<1x4x32x8xf32, #tpu.memory_space<vmem>>, %arg10: memref<1x4x1x8xf32, #tpu.memory_space<vmem>>, %arg11: memref<1x4x32x8xf32, #tpu.memory_space<vmem>>, %arg12: memref<1x4x1x8xf32, #tpu.memory_space<vmem>>, %arg13: memref<1x4x32x8xf32, #tpu.memory_space<vmem>>, %arg14: memref<1x4x1x8xf32, #tpu.memory_space<vmem>>, %arg15: memref<1x4x8x32xf32, #tpu.memory_space<vmem>>, %arg16: memref<1x1x32xf32, #tpu.memory_space<vmem>>, %arg17: memref<1x1x32xf32, #tpu.memory_space<vmem>>, %arg18: memref<1x1x32xf32, #tpu.memory_space<vmem>>, %arg19: memref<1x32x128xf32, #tpu.memory_space<vmem>>, %arg20: memref<1x1x128xf32, #tpu.memory_space<vmem>>, %arg21: memref<1x128x32xf32, #tpu.memory_space<vmem>>, %arg22: memref<1x1x32xf32, #tpu.memory_space<vmem>>, %arg23: memref<1x32xf32, #tpu.memory_space<vmem>>, %arg24: memref<1x32xf32, #tpu.memory_space<vmem>>, %arg25: memref<16x32xf32, #tpu.memory_space<vmem>>, %arg26: memref<16x32xf32, #tpu.memory_space<vmem>>) attributes {dimension_semantics = [#tpu.dimension_semantics<arbitrary>], iteration_bounds = array<i64: 2>, scalar_prefetch = 0 : i64, scratch_operands = 1 : i64, tpu.core_type = #tpu.core_type<tc>, window_params = [{pipeline_mode = #tpu.pipeline_mode<synchronous>, transform_indices = @transform_0, window_bounds = array<i64: 8, 192>}, {pipeline_mode = #tpu.pipeline_mode<synchronous>, transform_indices = @transform_1, window_bounds = array<i64: 192, 32>}, {pipeline_mode = #tpu.pipeline_mode<synchronous>, transform_indices = @transform_2, window_bounds = array<i64: 1, 32>}, {pipeline_mode = #tpu.pipeline_mode<synchronous>, transform_indices = @transform_3, window_bounds = array<i64: 16, 8>}, {pipeline_mode = #tpu.pipeline_mode<synchronous>, transform_indices = @transform_4, window_bounds = array<i64: 16, 32>}, {pipeline_mode = #tpu.pipeline_mode<synchronous>, transform_indices = @transform_5, window_bounds = array<i64: 2, 1, 8>}, {transform_indices = @transform_6, window_bounds = array<i64: 1, 1, 32>}, {transform_indices = @transform_7, window_bounds = array<i64: 1, 1, 32>}, {transform_indices = @transform_8, window_bounds = array<i64: 1, 4, 32, 8>}, {transform_indices = @transform_9, window_bounds = array<i64: 1, 4, 1, 8>}, {transform_indices = @transform_10, window_bounds = array<i64: 1, 4, 32, 8>}, {transform_indices = @transform_11, window_bounds = array<i64: 1, 4, 1, 8>}, {transform_indices = @transform_12, window_bounds = array<i64: 1, 4, 32, 8>}, {transform_indices = @transform_13, window_bounds = array<i64: 1, 4, 1, 8>}, {transform_indices = @transform_14, window_bounds = array<i64: 1, 4, 8, 32>}, {transform_indices = @transform_15, window_bounds = array<i64: 1, 1, 32>}, {transform_indices = @transform_16, window_bounds = array<i64: 1, 1, 32>}, {transform_indices = @transform_17, window_bounds = array<i64: 1, 1, 32>}, {transform_indices = @transform_18, window_bounds = array<i64: 1, 32, 128>}, {transform_indices = @transform_19, window_bounds = array<i64: 1, 1, 128>}, {transform_indices = @transform_20, window_bounds = array<i64: 1, 128, 32>}, {transform_indices = @transform_21, window_bounds = array<i64: 1, 1, 32>}, {pipeline_mode = #tpu.pipeline_mode<synchronous>, transform_indices = @transform_22, window_bounds = array<i64: 1, 32>}, {pipeline_mode = #tpu.pipeline_mode<synchronous>, transform_indices = @transform_23, window_bounds = array<i64: 1, 32>}, {pipeline_mode = #tpu.pipeline_mode<synchronous>, transform_indices = @transform_24, window_bounds = array<i64: 16, 32>}]} {
    %c0_i32 = arith.constant 0 : i32
    %0 = arith.cmpi eq, %arg0, %c0_i32 : i32
    %1 = arith.extui %0 : i1 to i32
    %c0_i32_0 = arith.constant 0 : i32
    %2 = arith.cmpi ne, %1, %c0_i32_0 : i32
    scf.if %2 {
      %c0_122 = arith.constant 0 : index
      %c0_123 = arith.constant 0 : index
      %308 = vector.load %arg1[%c0_122, %c0_123] : memref<8x192xf32, #tpu.memory_space<vmem>>, vector<8x192xf32>
      %c0_124 = arith.constant 0 : index
      %c0_125 = arith.constant 0 : index
      %309 = vector.load %arg2[%c0_124, %c0_125] : memref<192x32xf32, #tpu.memory_space<vmem>>, vector<192x32xf32>
      %cst_126 = arith.constant dense<0.000000e+00> : vector<8x32xf32>
      %310 = tpu.matmul %308, %309, %cst_126 {dimension_numbers = #tpu.dot_dimension_numbers<[1], [0], [0], [1], [0, 0, 1, 1], [], []>} : vector<8x192xf32>, vector<192x32xf32>, vector<8x32xf32> -> vector<8x32xf32>
      %c0_127 = arith.constant 0 : index
      %c0_128 = arith.constant 0 : index
      %311 = vector.load %arg3[%c0_127, %c0_128] : memref<1x32xf32, #tpu.memory_space<vmem>>, vector<1x32xf32>
      %312 = vector.broadcast %311 : vector<1x32xf32> to vector<8x32xf32>
      %313 = arith.addf %310, %312 : vector<8x32xf32>
      %c0_129 = arith.constant 0 : index
      %c0_130 = arith.constant 0 : index
      %314 = vector.load %arg5[%c0_129, %c0_130] : memref<16x32xf32, #tpu.memory_space<vmem>>, vector<16x32xf32>
      %c0_131 = arith.constant 0 : index
      %c0_132 = arith.constant 0 : index
      %315 = vector.load %arg4[%c0_131, %c0_132] : memref<16x8xf32, #tpu.memory_space<vmem>>, vector<16x8xf32>
      %cst_133 = arith.constant dense<0.000000e+00> : vector<16x32xf32>
      %316 = tpu.matmul %315, %313, %cst_133 {dimension_numbers = #tpu.dot_dimension_numbers<[1], [0], [0], [1], [0, 0, 1, 1], [], []>} : vector<16x8xf32>, vector<8x32xf32>, vector<16x32xf32> -> vector<16x32xf32>
      %317 = arith.addf %314, %316 : vector<16x32xf32>
      %c0_134 = arith.constant 0 : index
      %c0_135 = arith.constant 0 : index
      %318 = vector.load %arg26[%c0_134, %c0_135] : memref<16x32xf32, #tpu.memory_space<vmem>>, vector<16x32xf32>
      tpu.vector_store %arg26[%c0_134, %c0_135], %317 {strides = array<i32>} : memref<16x32xf32, #tpu.memory_space<vmem>>, vector<16x32xf32>,
    } else {
    }
    %c0 = arith.constant 0 : index
    %c0_1 = arith.constant 0 : index
    %3 = vector.load %arg26[%c0, %c0_1] : memref<16x32xf32, #tpu.memory_space<vmem>>, vector<16x32xf32>
    %c0_2 = arith.constant 0 : index
    %c0_3 = arith.constant 0 : index
    %c0_4 = arith.constant 0 : index
    %4 = vector.load %arg7[%c0_2, %c0_3, %c0_4] : memref<1x1x32xf32, #tpu.memory_space<vmem>>, vector<1x1x32xf32>
    %5 = vector.shape_cast %4 : vector<1x1x32xf32> to vector<1x32xf32>
    %c0_5 = arith.constant 0 : index
    %c0_6 = arith.constant 0 : index
    %c0_7 = arith.constant 0 : index
    %6 = vector.load %arg8[%c0_5, %c0_6, %c0_7] : memref<1x1x32xf32, #tpu.memory_space<vmem>>, vector<1x1x32xf32>
    %7 = vector.shape_cast %6 : vector<1x1x32xf32> to vector<1x32xf32>
    %cst = arith.constant dense<0.000000e+00> : vector<16xf32>
    %8 = vector.multi_reduction <add>, %3, %cst [1] : vector<16x32xf32> to vector<16xf32>
    %9 = vector.shape_cast %8 : vector<16xf32> to vector<16x1xf32>
    %cst_8 = arith.constant 3.200000e+01 : f32
    %10 = vector.broadcast %cst_8 : f32 to vector<16x1xf32>
    %11 = arith.divf %9, %10 : vector<16x1xf32>
    %12 = vector.broadcast %11 : vector<16x1xf32> to vector<16x32xf32>
    %13 = arith.subf %3, %12 : vector<16x32xf32>
    %14 = arith.mulf %13, %13 : vector<16x32xf32>
    %cst_9 = arith.constant dense<0.000000e+00> : vector<16xf32>
    %15 = vector.multi_reduction <add>, %14, %cst_9 [1] : vector<16x32xf32> to vector<16xf32>
    %16 = vector.shape_cast %15 : vector<16xf32> to vector<16x1xf32>
    %cst_10 = arith.constant 3.200000e+01 : f32
    %17 = vector.broadcast %cst_10 : f32 to vector<16x1xf32>
    %18 = arith.divf %16, %17 : vector<16x1xf32>
    %19 = vector.broadcast %11 : vector<16x1xf32> to vector<16x32xf32>
    %20 = arith.subf %3, %19 : vector<16x32xf32>
    %cst_11 = arith.constant 9.99999997E-7 : f32
    %21 = vector.broadcast %cst_11 : f32 to vector<16x1xf32>
    %22 = arith.addf %18, %21 : vector<16x1xf32>
    %23 = math.rsqrt %22 : vector<16x1xf32>
    %24 = vector.broadcast %23 : vector<16x1xf32> to vector<16x32xf32>
    %25 = arith.mulf %20, %24 : vector<16x32xf32>
    %26 = vector.broadcast %5 : vector<1x32xf32> to vector<16x32xf32>
    %27 = arith.mulf %25, %26 : vector<16x32xf32>
    %28 = vector.broadcast %7 : vector<1x32xf32> to vector<16x32xf32>
    %29 = arith.addf %27, %28 : vector<16x32xf32>
    %c0_12 = arith.constant 0 : index
    %c0_13 = arith.constant 0 : index
    %c0_14 = arith.constant 0 : index
    %c0_15 = arith.constant 0 : index
    %30 = vector.load %arg9[%c0_12, %c0_13, %c0_14, %c0_15] : memref<1x4x32x8xf32, #tpu.memory_space<vmem>>, vector<1x4x32x8xf32>
    %31 = vector.shape_cast %30 : vector<1x4x32x8xf32> to vector<4x32x8xf32>
    %c0_16 = arith.constant 0 : index
    %c0_17 = arith.constant 0 : index
    %c0_18 = arith.constant 0 : index
    %c0_19 = arith.constant 0 : index
    %32 = vector.load %arg10[%c0_16, %c0_17, %c0_18, %c0_19] : memref<1x4x1x8xf32, #tpu.memory_space<vmem>>, vector<1x4x1x8xf32>
    %33 = vector.shape_cast %32 : vector<1x4x1x8xf32> to vector<4x1x8xf32>
    %c0_20 = arith.constant 0 : index
    %c0_21 = arith.constant 0 : index
    %c0_22 = arith.constant 0 : index
    %c0_23 = arith.constant 0 : index
    %34 = vector.load %arg11[%c0_20, %c0_21, %c0_22, %c0_23] : memref<1x4x32x8xf32, #tpu.memory_space<vmem>>, vector<1x4x32x8xf32>
    %35 = vector.shape_cast %34 : vector<1x4x32x8xf32> to vector<4x32x8xf32>
    %c0_24 = arith.constant 0 : index
    %c0_25 = arith.constant 0 : index
    %c0_26 = arith.constant 0 : index
    %c0_27 = arith.constant 0 : index
    %36 = vector.load %arg12[%c0_24, %c0_25, %c0_26, %c0_27] : memref<1x4x1x8xf32, #tpu.memory_space<vmem>>, vector<1x4x1x8xf32>
    %37 = vector.shape_cast %36 : vector<1x4x1x8xf32> to vector<4x1x8xf32>
    %c0_28 = arith.constant 0 : index
    %c0_29 = arith.constant 0 : index
    %c0_30 = arith.constant 0 : index
    %c0_31 = arith.constant 0 : index
    %38 = vector.load %arg13[%c0_28, %c0_29, %c0_30, %c0_31] : memref<1x4x32x8xf32, #tpu.memory_space<vmem>>, vector<1x4x32x8xf32>
    %39 = vector.shape_cast %38 : vector<1x4x32x8xf32> to vector<4x32x8xf32>
    %c0_32 = arith.constant 0 : index
    %c0_33 = arith.constant 0 : index
    %c0_34 = arith.constant 0 : index
    %c0_35 = arith.constant 0 : index
    %40 = vector.load %arg14[%c0_32, %c0_33, %c0_34, %c0_35] : memref<1x4x1x8xf32, #tpu.memory_space<vmem>>, vector<1x4x1x8xf32>
    %41 = vector.shape_cast %40 : vector<1x4x1x8xf32> to vector<4x1x8xf32>
    %c0_36 = arith.constant 0 : index
    %c0_37 = arith.constant 0 : index
    %c0_38 = arith.constant 0 : index
    %c0_39 = arith.constant 0 : index
    %42 = vector.load %arg15[%c0_36, %c0_37, %c0_38, %c0_39] : memref<1x4x8x32xf32, #tpu.memory_space<vmem>>, vector<1x4x8x32xf32>
    %43 = vector.shape_cast %42 : vector<1x4x8x32xf32> to vector<4x8x32xf32>
    %c0_40 = arith.constant 0 : index
    %c0_41 = arith.constant 0 : index
    %c0_42 = arith.constant 0 : index
    %44 = vector.load %arg16[%c0_40, %c0_41, %c0_42] : memref<1x1x32xf32, #tpu.memory_space<vmem>>, vector<1x1x32xf32>
    %45 = vector.shape_cast %44 : vector<1x1x32xf32> to vector<1x32xf32>
    %c0_43 = arith.constant 0 : index
    %c0_44 = arith.constant 0 : index
    %c0_45 = arith.constant 0 : index
    %46 = vector.load %arg6[%c0_43, %c0_44, %c0_45] : memref<2x1x8xf32, #tpu.memory_space<vmem>>, vector<2x1x8xf32>
    %cst_46 = arith.constant 0.000000e+00 : f32
    %47 = vector.broadcast %cst_46 : f32 to vector<16x32xf32>
    %48 = vector.extract_strided_slice %31 {offsets = [0, 0, 0], sizes = [1, 32, 8], strides = [1, 1, 1]} : vector<4x32x8xf32> to vector<1x32x8xf32>
    %49 = vector.shape_cast %48 : vector<1x32x8xf32> to vector<32x8xf32>
    %cst_47 = arith.constant dense<0.000000e+00> : vector<16x8xf32>
    %50 = tpu.matmul %29, %49, %cst_47 {dimension_numbers = #tpu.dot_dimension_numbers<[1], [0], [0], [1], [0, 0, 1, 1], [], []>} : vector<16x32xf32>, vector<32x8xf32>, vector<16x8xf32> -> vector<16x8xf32>
    %51 = vector.extract_strided_slice %33 {offsets = [0, 0, 0], sizes = [1, 1, 8], strides = [1, 1, 1]} : vector<4x1x8xf32> to vector<1x1x8xf32>
    %52 = vector.shape_cast %51 : vector<1x1x8xf32> to vector<1x8xf32>
    %53 = vector.broadcast %52 : vector<1x8xf32> to vector<16x8xf32>
    %54 = arith.addf %50, %53 : vector<16x8xf32>
    %55 = vector.shape_cast %54 : vector<16x8xf32> to vector<2x8x8xf32>
    %56 = vector.extract_strided_slice %35 {offsets = [0, 0, 0], sizes = [1, 32, 8], strides = [1, 1, 1]} : vector<4x32x8xf32> to vector<1x32x8xf32>
    %57 = vector.shape_cast %56 : vector<1x32x8xf32> to vector<32x8xf32>
    %cst_48 = arith.constant dense<0.000000e+00> : vector<16x8xf32>
    %58 = tpu.matmul %29, %57, %cst_48 {dimension_numbers = #tpu.dot_dimension_numbers<[1], [0], [0], [1], [0, 0, 1, 1], [], []>} : vector<16x32xf32>, vector<32x8xf32>, vector<16x8xf32> -> vector<16x8xf32>
    %59 = vector.extract_strided_slice %37 {offsets = [0, 0, 0], sizes = [1, 1, 8], strides = [1, 1, 1]} : vector<4x1x8xf32> to vector<1x1x8xf32>
    %60 = vector.shape_cast %59 : vector<1x1x8xf32> to vector<1x8xf32>
    %61 = vector.broadcast %60 : vector<1x8xf32> to vector<16x8xf32>
    %62 = arith.addf %58, %61 : vector<16x8xf32>
    %63 = vector.shape_cast %62 : vector<16x8xf32> to vector<2x8x8xf32>
    %64 = vector.extract_strided_slice %39 {offsets = [0, 0, 0], sizes = [1, 32, 8], strides = [1, 1, 1]} : vector<4x32x8xf32> to vector<1x32x8xf32>
    %65 = vector.shape_cast %64 : vector<1x32x8xf32> to vector<32x8xf32>
    %cst_49 = arith.constant dense<0.000000e+00> : vector<16x8xf32>
    %66 = tpu.matmul %29, %65, %cst_49 {dimension_numbers = #tpu.dot_dimension_numbers<[1], [0], [0], [1], [0, 0, 1, 1], [], []>} : vector<16x32xf32>, vector<32x8xf32>, vector<16x8xf32> -> vector<16x8xf32>
    %67 = vector.extract_strided_slice %41 {offsets = [0, 0, 0], sizes = [1, 1, 8], strides = [1, 1, 1]} : vector<4x1x8xf32> to vector<1x1x8xf32>
    %68 = vector.shape_cast %67 : vector<1x1x8xf32> to vector<1x8xf32>
    %69 = vector.broadcast %68 : vector<1x8xf32> to vector<16x8xf32>
    %70 = arith.addf %66, %69 : vector<16x8xf32>
    %71 = vector.shape_cast %70 : vector<16x8xf32> to vector<2x8x8xf32>
    "tpu.trace_start"() <{level = 10 : i32, message = "bqe,bke->bqk"}> : () -> ()
    %cst_50 = arith.constant dense<0.000000e+00> : vector<2x8x8xf32>
    %72 = tpu.matmul %55, %63, %cst_50 {dimension_numbers = #tpu.dot_dimension_numbers<[2], [2], [1], [1], [0, 0, 0, 1, 1, 1], [0], [0]>} : vector<2x8x8xf32>, vector<2x8x8xf32>, vector<2x8x8xf32> -> vector<2x8x8xf32>
    "tpu.trace_stop"() : () -> ()
    %73 = vector.broadcast %46 : vector<2x1x8xf32> to vector<2x8x8xf32>
    %74 = arith.addf %72, %73 : vector<2x8x8xf32>
    %cst_51 = arith.constant dense<0xFF800000> : vector<2x8xf32>
    %75 = vector.multi_reduction <maximumf>, %74, %cst_51 [2] : vector<2x8x8xf32> to vector<2x8xf32>
    %76 = vector.shape_cast %75 : vector<2x8xf32> to vector<2x8x1xf32>
    %77 = vector.broadcast %76 : vector<2x8x1xf32> to vector<2x8x8xf32>
    %78 = arith.subf %74, %77 : vector<2x8x8xf32>
    %79 = math.exp %78 : vector<2x8x8xf32>
    %cst_52 = arith.constant dense<0.000000e+00> : vector<2x8xf32>
    %80 = vector.multi_reduction <add>, %79, %cst_52 [2] : vector<2x8x8xf32> to vector<2x8xf32>
    %81 = vector.shape_cast %80 : vector<2x8xf32> to vector<2x8x1xf32>
    %82 = tpu.reciprocal %81 {approx = true} : vector<2x8x1xf32> -> vector<2x8x1xf32>
    %83 = vector.broadcast %82 : vector<2x8x1xf32> to vector<2x8x8xf32>
    %84 = arith.mulf %79, %83 : vector<2x8x8xf32>
    "tpu.trace_start"() <{level = 10 : i32, message = "bqk,bke->bqe"}> : () -> ()
    %cst_53 = arith.constant dense<0.000000e+00> : vector<2x8x8xf32>
    %85 = tpu.matmul %84, %71, %cst_53 {dimension_numbers = #tpu.dot_dimension_numbers<[2], [1], [1], [2], [0, 0, 0, 1, 1, 2], [0], [0]>} : vector<2x8x8xf32>, vector<2x8x8xf32>, vector<2x8x8xf32> -> vector<2x8x8xf32>
    "tpu.trace_stop"() : () -> ()
    %86 = vector.shape_cast %85 : vector<2x8x8xf32> to vector<16x8xf32>
    %87 = vector.extract_strided_slice %43 {offsets = [0, 0, 0], sizes = [1, 8, 32], strides = [1, 1, 1]} : vector<4x8x32xf32> to vector<1x8x32xf32>
    %88 = vector.shape_cast %87 : vector<1x8x32xf32> to vector<8x32xf32>
    %cst_54 = arith.constant dense<0.000000e+00> : vector<16x32xf32>
    %89 = tpu.matmul %86, %88, %cst_54 {dimension_numbers = #tpu.dot_dimension_numbers<[1], [0], [0], [1], [0, 0, 1, 1], [], []>} : vector<16x8xf32>, vector<8x32xf32>, vector<16x32xf32> -> vector<16x32xf32>
    %90 = arith.addf %47, %89 : vector<16x32xf32>
    %91 = vector.extract_strided_slice %31 {offsets = [1, 0, 0], sizes = [1, 32, 8], strides = [1, 1, 1]} : vector<4x32x8xf32> to vector<1x32x8xf32>
    %92 = vector.shape_cast %91 : vector<1x32x8xf32> to vector<32x8xf32>
    %cst_55 = arith.constant dense<0.000000e+00> : vector<16x8xf32>
    %93 = tpu.matmul %29, %92, %cst_55 {dimension_numbers = #tpu.dot_dimension_numbers<[1], [0], [0], [1], [0, 0, 1, 1], [], []>} : vector<16x32xf32>, vector<32x8xf32>, vector<16x8xf32> -> vector<16x8xf32>
    %94 = vector.extract_strided_slice %33 {offsets = [1, 0, 0], sizes = [1, 1, 8], strides = [1, 1, 1]} : vector<4x1x8xf32> to vector<1x1x8xf32>
    %95 = vector.shape_cast %94 : vector<1x1x8xf32> to vector<1x8xf32>
    %96 = vector.broadcast %95 : vector<1x8xf32> to vector<16x8xf32>
    %97 = arith.addf %93, %96 : vector<16x8xf32>
    %98 = vector.shape_cast %97 : vector<16x8xf32> to vector<2x8x8xf32>
    %99 = vector.extract_strided_slice %35 {offsets = [1, 0, 0], sizes = [1, 32, 8], strides = [1, 1, 1]} : vector<4x32x8xf32> to vector<1x32x8xf32>
    %100 = vector.shape_cast %99 : vector<1x32x8xf32> to vector<32x8xf32>
    %cst_56 = arith.constant dense<0.000000e+00> : vector<16x8xf32>
    %101 = tpu.matmul %29, %100, %cst_56 {dimension_numbers = #tpu.dot_dimension_numbers<[1], [0], [0], [1], [0, 0, 1, 1], [], []>} : vector<16x32xf32>, vector<32x8xf32>, vector<16x8xf32> -> vector<16x8xf32>
    %102 = vector.extract_strided_slice %37 {offsets = [1, 0, 0], sizes = [1, 1, 8], strides = [1, 1, 1]} : vector<4x1x8xf32> to vector<1x1x8xf32>
    %103 = vector.shape_cast %102 : vector<1x1x8xf32> to vector<1x8xf32>
    %104 = vector.broadcast %103 : vector<1x8xf32> to vector<16x8xf32>
    %105 = arith.addf %101, %104 : vector<16x8xf32>
    %106 = vector.shape_cast %105 : vector<16x8xf32> to vector<2x8x8xf32>
    %107 = vector.extract_strided_slice %39 {offsets = [1, 0, 0], sizes = [1, 32, 8], strides = [1, 1, 1]} : vector<4x32x8xf32> to vector<1x32x8xf32>
    %108 = vector.shape_cast %107 : vector<1x32x8xf32> to vector<32x8xf32>
    %cst_57 = arith.constant dense<0.000000e+00> : vector<16x8xf32>
    %109 = tpu.matmul %29, %108, %cst_57 {dimension_numbers = #tpu.dot_dimension_numbers<[1], [0], [0], [1], [0, 0, 1, 1], [], []>} : vector<16x32xf32>, vector<32x8xf32>, vector<16x8xf32> -> vector<16x8xf32>
    %110 = vector.extract_strided_slice %41 {offsets = [1, 0, 0], sizes = [1, 1, 8], strides = [1, 1, 1]} : vector<4x1x8xf32> to vector<1x1x8xf32>
    %111 = vector.shape_cast %110 : vector<1x1x8xf32> to vector<1x8xf32>
    %112 = vector.broadcast %111 : vector<1x8xf32> to vector<16x8xf32>
    %113 = arith.addf %109, %112 : vector<16x8xf32>
    %114 = vector.shape_cast %113 : vector<16x8xf32> to vector<2x8x8xf32>
    "tpu.trace_start"() <{level = 10 : i32, message = "bqe,bke->bqk"}> : () -> ()
    %cst_58 = arith.constant dense<0.000000e+00> : vector<2x8x8xf32>
    %115 = tpu.matmul %98, %106, %cst_58 {dimension_numbers = #tpu.dot_dimension_numbers<[2], [2], [1], [1], [0, 0, 0, 1, 1, 1], [0], [0]>} : vector<2x8x8xf32>, vector<2x8x8xf32>, vector<2x8x8xf32> -> vector<2x8x8xf32>
    "tpu.trace_stop"() : () -> ()
    %116 = vector.broadcast %46 : vector<2x1x8xf32> to vector<2x8x8xf32>
    %117 = arith.addf %115, %116 : vector<2x8x8xf32>
    %cst_59 = arith.constant dense<0xFF800000> : vector<2x8xf32>
    %118 = vector.multi_reduction <maximumf>, %117, %cst_59 [2] : vector<2x8x8xf32> to vector<2x8xf32>
    %119 = vector.shape_cast %118 : vector<2x8xf32> to vector<2x8x1xf32>
    %120 = vector.broadcast %119 : vector<2x8x1xf32> to vector<2x8x8xf32>
    %121 = arith.subf %117, %120 : vector<2x8x8xf32>
    %122 = math.exp %121 : vector<2x8x8xf32>
    %cst_60 = arith.constant dense<0.000000e+00> : vector<2x8xf32>
    %123 = vector.multi_reduction <add>, %122, %cst_60 [2] : vector<2x8x8xf32> to vector<2x8xf32>
    %124 = vector.shape_cast %123 : vector<2x8xf32> to vector<2x8x1xf32>
    %125 = tpu.reciprocal %124 {approx = true} : vector<2x8x1xf32> -> vector<2x8x1xf32>
    %126 = vector.broadcast %125 : vector<2x8x1xf32> to vector<2x8x8xf32>
    %127 = arith.mulf %122, %126 : vector<2x8x8xf32>
    "tpu.trace_start"() <{level = 10 : i32, message = "bqk,bke->bqe"}> : () -> ()
    %cst_61 = arith.constant dense<0.000000e+00> : vector<2x8x8xf32>
    %128 = tpu.matmul %127, %114, %cst_61 {dimension_numbers = #tpu.dot_dimension_numbers<[2], [1], [1], [2], [0, 0, 0, 1, 1, 2], [0], [0]>} : vector<2x8x8xf32>, vector<2x8x8xf32>, vector<2x8x8xf32> -> vector<2x8x8xf32>
    "tpu.trace_stop"() : () -> ()
    %129 = vector.shape_cast %128 : vector<2x8x8xf32> to vector<16x8xf32>
    %130 = vector.extract_strided_slice %43 {offsets = [1, 0, 0], sizes = [1, 8, 32], strides = [1, 1, 1]} : vector<4x8x32xf32> to vector<1x8x32xf32>
    %131 = vector.shape_cast %130 : vector<1x8x32xf32> to vector<8x32xf32>
    %cst_62 = arith.constant dense<0.000000e+00> : vector<16x32xf32>
    %132 = tpu.matmul %129, %131, %cst_62 {dimension_numbers = #tpu.dot_dimension_numbers<[1], [0], [0], [1], [0, 0, 1, 1], [], []>} : vector<16x8xf32>, vector<8x32xf32>, vector<16x32xf32> -> vector<16x32xf32>
    %133 = arith.addf %90, %132 : vector<16x32xf32>
    %134 = vector.extract_strided_slice %31 {offsets = [2, 0, 0], sizes = [1, 32, 8], strides = [1, 1, 1]} : vector<4x32x8xf32> to vector<1x32x8xf32>
    %135 = vector.shape_cast %134 : vector<1x32x8xf32> to vector<32x8xf32>
    %cst_63 = arith.constant dense<0.000000e+00> : vector<16x8xf32>
    %136 = tpu.matmul %29, %135, %cst_63 {dimension_numbers = #tpu.dot_dimension_numbers<[1], [0], [0], [1], [0, 0, 1, 1], [], []>} : vector<16x32xf32>, vector<32x8xf32>, vector<16x8xf32> -> vector<16x8xf32>
    %137 = vector.extract_strided_slice %33 {offsets = [2, 0, 0], sizes = [1, 1, 8], strides = [1, 1, 1]} : vector<4x1x8xf32> to vector<1x1x8xf32>
    %138 = vector.shape_cast %137 : vector<1x1x8xf32> to vector<1x8xf32>
    %139 = vector.broadcast %138 : vector<1x8xf32> to vector<16x8xf32>
    %140 = arith.addf %136, %139 : vector<16x8xf32>
    %141 = vector.shape_cast %140 : vector<16x8xf32> to vector<2x8x8xf32>
    %142 = vector.extract_strided_slice %35 {offsets = [2, 0, 0], sizes = [1, 32, 8], strides = [1, 1, 1]} : vector<4x32x8xf32> to vector<1x32x8xf32>
    %143 = vector.shape_cast %142 : vector<1x32x8xf32> to vector<32x8xf32>
    %cst_64 = arith.constant dense<0.000000e+00> : vector<16x8xf32>
    %144 = tpu.matmul %29, %143, %cst_64 {dimension_numbers = #tpu.dot_dimension_numbers<[1], [0], [0], [1], [0, 0, 1, 1], [], []>} : vector<16x32xf32>, vector<32x8xf32>, vector<16x8xf32> -> vector<16x8xf32>
    %145 = vector.extract_strided_slice %37 {offsets = [2, 0, 0], sizes = [1, 1, 8], strides = [1, 1, 1]} : vector<4x1x8xf32> to vector<1x1x8xf32>
    %146 = vector.shape_cast %145 : vector<1x1x8xf32> to vector<1x8xf32>
    %147 = vector.broadcast %146 : vector<1x8xf32> to vector<16x8xf32>
    %148 = arith.addf %144, %147 : vector<16x8xf32>
    %149 = vector.shape_cast %148 : vector<16x8xf32> to vector<2x8x8xf32>
    %150 = vector.extract_strided_slice %39 {offsets = [2, 0, 0], sizes = [1, 32, 8], strides = [1, 1, 1]} : vector<4x32x8xf32> to vector<1x32x8xf32>
    %151 = vector.shape_cast %150 : vector<1x32x8xf32> to vector<32x8xf32>
    %cst_65 = arith.constant dense<0.000000e+00> : vector<16x8xf32>
    %152 = tpu.matmul %29, %151, %cst_65 {dimension_numbers = #tpu.dot_dimension_numbers<[1], [0], [0], [1], [0, 0, 1, 1], [], []>} : vector<16x32xf32>, vector<32x8xf32>, vector<16x8xf32> -> vector<16x8xf32>
    %153 = vector.extract_strided_slice %41 {offsets = [2, 0, 0], sizes = [1, 1, 8], strides = [1, 1, 1]} : vector<4x1x8xf32> to vector<1x1x8xf32>
    %154 = vector.shape_cast %153 : vector<1x1x8xf32> to vector<1x8xf32>
    %155 = vector.broadcast %154 : vector<1x8xf32> to vector<16x8xf32>
    %156 = arith.addf %152, %155 : vector<16x8xf32>
    %157 = vector.shape_cast %156 : vector<16x8xf32> to vector<2x8x8xf32>
    "tpu.trace_start"() <{level = 10 : i32, message = "bqe,bke->bqk"}> : () -> ()
    %cst_66 = arith.constant dense<0.000000e+00> : vector<2x8x8xf32>
    %158 = tpu.matmul %141, %149, %cst_66 {dimension_numbers = #tpu.dot_dimension_numbers<[2], [2], [1], [1], [0, 0, 0, 1, 1, 1], [0], [0]>} : vector<2x8x8xf32>, vector<2x8x8xf32>, vector<2x8x8xf32> -> vector<2x8x8xf32>
    "tpu.trace_stop"() : () -> ()
    %159 = vector.broadcast %46 : vector<2x1x8xf32> to vector<2x8x8xf32>
    %160 = arith.addf %158, %159 : vector<2x8x8xf32>
    %cst_67 = arith.constant dense<0xFF800000> : vector<2x8xf32>
    %161 = vector.multi_reduction <maximumf>, %160, %cst_67 [2] : vector<2x8x8xf32> to vector<2x8xf32>
    %162 = vector.shape_cast %161 : vector<2x8xf32> to vector<2x8x1xf32>
    %163 = vector.broadcast %162 : vector<2x8x1xf32> to vector<2x8x8xf32>
    %164 = arith.subf %160, %163 : vector<2x8x8xf32>
    %165 = math.exp %164 : vector<2x8x8xf32>
    %cst_68 = arith.constant dense<0.000000e+00> : vector<2x8xf32>
    %166 = vector.multi_reduction <add>, %165, %cst_68 [2] : vector<2x8x8xf32> to vector<2x8xf32>
    %167 = vector.shape_cast %166 : vector<2x8xf32> to vector<2x8x1xf32>
    %168 = tpu.reciprocal %167 {approx = true} : vector<2x8x1xf32> -> vector<2x8x1xf32>
    %169 = vector.broadcast %168 : vector<2x8x1xf32> to vector<2x8x8xf32>
    %170 = arith.mulf %165, %169 : vector<2x8x8xf32>
    "tpu.trace_start"() <{level = 10 : i32, message = "bqk,bke->bqe"}> : () -> ()
    %cst_69 = arith.constant dense<0.000000e+00> : vector<2x8x8xf32>
    %171 = tpu.matmul %170, %157, %cst_69 {dimension_numbers = #tpu.dot_dimension_numbers<[2], [1], [1], [2], [0, 0, 0, 1, 1, 2], [0], [0]>} : vector<2x8x8xf32>, vector<2x8x8xf32>, vector<2x8x8xf32> -> vector<2x8x8xf32>
    "tpu.trace_stop"() : () -> ()
    %172 = vector.shape_cast %171 : vector<2x8x8xf32> to vector<16x8xf32>
    %173 = vector.extract_strided_slice %43 {offsets = [2, 0, 0], sizes = [1, 8, 32], strides = [1, 1, 1]} : vector<4x8x32xf32> to vector<1x8x32xf32>
    %174 = vector.shape_cast %173 : vector<1x8x32xf32> to vector<8x32xf32>
    %cst_70 = arith.constant dense<0.000000e+00> : vector<16x32xf32>
    %175 = tpu.matmul %172, %174, %cst_70 {dimension_numbers = #tpu.dot_dimension_numbers<[1], [0], [0], [1], [0, 0, 1, 1], [], []>} : vector<16x8xf32>, vector<8x32xf32>, vector<16x32xf32> -> vector<16x32xf32>
    %176 = arith.addf %133, %175 : vector<16x32xf32>
    %177 = vector.extract_strided_slice %31 {offsets = [3, 0, 0], sizes = [1, 32, 8], strides = [1, 1, 1]} : vector<4x32x8xf32> to vector<1x32x8xf32>
    %178 = vector.shape_cast %177 : vector<1x32x8xf32> to vector<32x8xf32>
    %cst_71 = arith.constant dense<0.000000e+00> : vector<16x8xf32>
    %179 = tpu.matmul %29, %178, %cst_71 {dimension_numbers = #tpu.dot_dimension_numbers<[1], [0], [0], [1], [0, 0, 1, 1], [], []>} : vector<16x32xf32>, vector<32x8xf32>, vector<16x8xf32> -> vector<16x8xf32>
    %180 = vector.extract_strided_slice %33 {offsets = [3, 0, 0], sizes = [1, 1, 8], strides = [1, 1, 1]} : vector<4x1x8xf32> to vector<1x1x8xf32>
    %181 = vector.shape_cast %180 : vector<1x1x8xf32> to vector<1x8xf32>
    %182 = vector.broadcast %181 : vector<1x8xf32> to vector<16x8xf32>
    %183 = arith.addf %179, %182 : vector<16x8xf32>
    %184 = vector.shape_cast %183 : vector<16x8xf32> to vector<2x8x8xf32>
    %185 = vector.extract_strided_slice %35 {offsets = [3, 0, 0], sizes = [1, 32, 8], strides = [1, 1, 1]} : vector<4x32x8xf32> to vector<1x32x8xf32>
    %186 = vector.shape_cast %185 : vector<1x32x8xf32> to vector<32x8xf32>
    %cst_72 = arith.constant dense<0.000000e+00> : vector<16x8xf32>
    %187 = tpu.matmul %29, %186, %cst_72 {dimension_numbers = #tpu.dot_dimension_numbers<[1], [0], [0], [1], [0, 0, 1, 1], [], []>} : vector<16x32xf32>, vector<32x8xf32>, vector<16x8xf32> -> vector<16x8xf32>
    %188 = vector.extract_strided_slice %37 {offsets = [3, 0, 0], sizes = [1, 1, 8], strides = [1, 1, 1]} : vector<4x1x8xf32> to vector<1x1x8xf32>
    %189 = vector.shape_cast %188 : vector<1x1x8xf32> to vector<1x8xf32>
    %190 = vector.broadcast %189 : vector<1x8xf32> to vector<16x8xf32>
    %191 = arith.addf %187, %190 : vector<16x8xf32>
    %192 = vector.shape_cast %191 : vector<16x8xf32> to vector<2x8x8xf32>
    %193 = vector.extract_strided_slice %39 {offsets = [3, 0, 0], sizes = [1, 32, 8], strides = [1, 1, 1]} : vector<4x32x8xf32> to vector<1x32x8xf32>
    %194 = vector.shape_cast %193 : vector<1x32x8xf32> to vector<32x8xf32>
    %cst_73 = arith.constant dense<0.000000e+00> : vector<16x8xf32>
    %195 = tpu.matmul %29, %194, %cst_73 {dimension_numbers = #tpu.dot_dimension_numbers<[1], [0], [0], [1], [0, 0, 1, 1], [], []>} : vector<16x32xf32>, vector<32x8xf32>, vector<16x8xf32> -> vector<16x8xf32>
    %196 = vector.extract_strided_slice %41 {offsets = [3, 0, 0], sizes = [1, 1, 8], strides = [1, 1, 1]} : vector<4x1x8xf32> to vector<1x1x8xf32>
    %197 = vector.shape_cast %196 : vector<1x1x8xf32> to vector<1x8xf32>
    %198 = vector.broadcast %197 : vector<1x8xf32> to vector<16x8xf32>
    %199 = arith.addf %195, %198 : vector<16x8xf32>
    %200 = vector.shape_cast %199 : vector<16x8xf32> to vector<2x8x8xf32>
    "tpu.trace_start"() <{level = 10 : i32, message = "bqe,bke->bqk"}> : () -> ()
    %cst_74 = arith.constant dense<0.000000e+00> : vector<2x8x8xf32>
    %201 = tpu.matmul %184, %192, %cst_74 {dimension_numbers = #tpu.dot_dimension_numbers<[2], [2], [1], [1], [0, 0, 0, 1, 1, 1], [0], [0]>} : vector<2x8x8xf32>, vector<2x8x8xf32>, vector<2x8x8xf32> -> vector<2x8x8xf32>
    "tpu.trace_stop"() : () -> ()
    %202 = vector.broadcast %46 : vector<2x1x8xf32> to vector<2x8x8xf32>
    %203 = arith.addf %201, %202 : vector<2x8x8xf32>
    %cst_75 = arith.constant dense<0xFF800000> : vector<2x8xf32>
    %204 = vector.multi_reduction <maximumf>, %203, %cst_75 [2] : vector<2x8x8xf32> to vector<2x8xf32>
    %205 = vector.shape_cast %204 : vector<2x8xf32> to vector<2x8x1xf32>
    %206 = vector.broadcast %205 : vector<2x8x1xf32> to vector<2x8x8xf32>
    %207 = arith.subf %203, %206 : vector<2x8x8xf32>
    %208 = math.exp %207 : vector<2x8x8xf32>
    %cst_76 = arith.constant dense<0.000000e+00> : vector<2x8xf32>
    %209 = vector.multi_reduction <add>, %208, %cst_76 [2] : vector<2x8x8xf32> to vector<2x8xf32>
    %210 = vector.shape_cast %209 : vector<2x8xf32> to vector<2x8x1xf32>
    %211 = tpu.reciprocal %210 {approx = true} : vector<2x8x1xf32> -> vector<2x8x1xf32>
    %212 = vector.broadcast %211 : vector<2x8x1xf32> to vector<2x8x8xf32>
    %213 = arith.mulf %208, %212 : vector<2x8x8xf32>
    "tpu.trace_start"() <{level = 10 : i32, message = "bqk,bke->bqe"}> : () -> ()
    %cst_77 = arith.constant dense<0.000000e+00> : vector<2x8x8xf32>
    %214 = tpu.matmul %213, %200, %cst_77 {dimension_numbers = #tpu.dot_dimension_numbers<[2], [1], [1], [2], [0, 0, 0, 1, 1, 2], [0], [0]>} : vector<2x8x8xf32>, vector<2x8x8xf32>, vector<2x8x8xf32> -> vector<2x8x8xf32>
    "tpu.trace_stop"() : () -> ()
    %215 = vector.shape_cast %214 : vector<2x8x8xf32> to vector<16x8xf32>
    %216 = vector.extract_strided_slice %43 {offsets = [3, 0, 0], sizes = [1, 8, 32], strides = [1, 1, 1]} : vector<4x8x32xf32> to vector<1x8x32xf32>
    %217 = vector.shape_cast %216 : vector<1x8x32xf32> to vector<8x32xf32>
    %cst_78 = arith.constant dense<0.000000e+00> : vector<16x32xf32>
    %218 = tpu.matmul %215, %217, %cst_78 {dimension_numbers = #tpu.dot_dimension_numbers<[1], [0], [0], [1], [0, 0, 1, 1], [], []>} : vector<16x8xf32>, vector<8x32xf32>, vector<16x32xf32> -> vector<16x32xf32>
    %219 = arith.addf %176, %218 : vector<16x32xf32>
    %220 = vector.broadcast %45 : vector<1x32xf32> to vector<16x32xf32>
    %221 = arith.addf %219, %220 : vector<16x32xf32>
    %222 = arith.addf %3, %221 : vector<16x32xf32>
    %c0_79 = arith.constant 0 : index
    %c0_80 = arith.constant 0 : index
    %c0_81 = arith.constant 0 : index
    %223 = vector.load %arg17[%c0_79, %c0_80, %c0_81] : memref<1x1x32xf32, #tpu.memory_space<vmem>>, vector<1x1x32xf32>
    %224 = vector.shape_cast %223 : vector<1x1x32xf32> to vector<1x32xf32>
    %c0_82 = arith.constant 0 : index
    %c0_83 = arith.constant 0 : index
    %c0_84 = arith.constant 0 : index
    %225 = vector.load %arg18[%c0_82, %c0_83, %c0_84] : memref<1x1x32xf32, #tpu.memory_space<vmem>>, vector<1x1x32xf32>
    %226 = vector.shape_cast %225 : vector<1x1x32xf32> to vector<1x32xf32>
    %cst_85 = arith.constant dense<0.000000e+00> : vector<16xf32>
    %227 = vector.multi_reduction <add>, %222, %cst_85 [1] : vector<16x32xf32> to vector<16xf32>
    %228 = vector.shape_cast %227 : vector<16xf32> to vector<16x1xf32>
    %cst_86 = arith.constant 3.200000e+01 : f32
    %229 = vector.broadcast %cst_86 : f32 to vector<16x1xf32>
    %230 = arith.divf %228, %229 : vector<16x1xf32>
    %231 = vector.broadcast %230 : vector<16x1xf32> to vector<16x32xf32>
    %232 = arith.subf %222, %231 : vector<16x32xf32>
    %233 = arith.mulf %232, %232 : vector<16x32xf32>
    %cst_87 = arith.constant dense<0.000000e+00> : vector<16xf32>
    %234 = vector.multi_reduction <add>, %233, %cst_87 [1] : vector<16x32xf32> to vector<16xf32>
    %235 = vector.shape_cast %234 : vector<16xf32> to vector<16x1xf32>
    %cst_88 = arith.constant 3.200000e+01 : f32
    %236 = vector.broadcast %cst_88 : f32 to vector<16x1xf32>
    %237 = arith.divf %235, %236 : vector<16x1xf32>
    %238 = vector.broadcast %230 : vector<16x1xf32> to vector<16x32xf32>
    %239 = arith.subf %222, %238 : vector<16x32xf32>
    %cst_89 = arith.constant 9.99999997E-7 : f32
    %240 = vector.broadcast %cst_89 : f32 to vector<16x1xf32>
    %241 = arith.addf %237, %240 : vector<16x1xf32>
    %242 = math.rsqrt %241 : vector<16x1xf32>
    %243 = vector.broadcast %242 : vector<16x1xf32> to vector<16x32xf32>
    %244 = arith.mulf %239, %243 : vector<16x32xf32>
    %245 = vector.broadcast %224 : vector<1x32xf32> to vector<16x32xf32>
    %246 = arith.mulf %244, %245 : vector<16x32xf32>
    %247 = vector.broadcast %226 : vector<1x32xf32> to vector<16x32xf32>
    %248 = arith.addf %246, %247 : vector<16x32xf32>
    %c0_90 = arith.constant 0 : index
    %c0_91 = arith.constant 0 : index
    %c0_92 = arith.constant 0 : index
    %249 = vector.load %arg19[%c0_90, %c0_91, %c0_92] : memref<1x32x128xf32, #tpu.memory_space<vmem>>, vector<1x32x128xf32>
    %250 = vector.shape_cast %249 : vector<1x32x128xf32> to vector<32x128xf32>
    %cst_93 = arith.constant dense<0.000000e+00> : vector<16x128xf32>
    %251 = tpu.matmul %248, %250, %cst_93 {dimension_numbers = #tpu.dot_dimension_numbers<[1], [0], [0], [1], [0, 0, 1, 1], [], []>} : vector<16x32xf32>, vector<32x128xf32>, vector<16x128xf32> -> vector<16x128xf32>
    %c0_94 = arith.constant 0 : index
    %c0_95 = arith.constant 0 : index
    %c0_96 = arith.constant 0 : index
    %252 = vector.load %arg20[%c0_94, %c0_95, %c0_96] : memref<1x1x128xf32, #tpu.memory_space<vmem>>, vector<1x1x128xf32>
    %253 = vector.shape_cast %252 : vector<1x1x128xf32> to vector<1x128xf32>
    %254 = vector.broadcast %253 : vector<1x128xf32> to vector<16x128xf32>
    %255 = arith.addf %251, %254 : vector<16x128xf32>
    %cst_97 = arith.constant 5.000000e-01 : f32
    %256 = vector.broadcast %cst_97 : f32 to vector<16x128xf32>
    %257 = arith.mulf %256, %255 : vector<16x128xf32>
    %cst_98 = arith.constant 0.707106769 : f32
    %258 = vector.broadcast %cst_98 : f32 to vector<16x128xf32>
    %259 = arith.mulf %255, %258 : vector<16x128xf32>
    %260 = math.absf %259 : vector<16x128xf32>
    %cst_99 = arith.constant 0.327591091 : f32
    %261 = vector.broadcast %cst_99 : f32 to vector<16x128xf32>
    %262 = arith.mulf %261, %260 : vector<16x128xf32>
    %cst_100 = arith.constant 1.000000e+00 : f32
    %263 = vector.broadcast %cst_100 : f32 to vector<16x128xf32>
    %264 = arith.addf %263, %262 : vector<16x128xf32>
    %cst_101 = arith.constant 1.000000e+00 : f32
    %265 = vector.broadcast %cst_101 : f32 to vector<16x128xf32>
    %266 = arith.divf %265, %264 : vector<16x128xf32>
    %cst_102 = arith.constant 1.06140542 : f32
    %267 = vector.broadcast %cst_102 : f32 to vector<16x128xf32>
    %268 = arith.mulf %267, %266 : vector<16x128xf32>
    %cst_103 = arith.constant -1.45315206 : f32
    %269 = vector.broadcast %cst_103 : f32 to vector<16x128xf32>
    %270 = arith.addf %268, %269 : vector<16x128xf32>
    %271 = arith.mulf %270, %266 : vector<16x128xf32>
    %cst_104 = arith.constant 1.42141378 : f32
    %272 = vector.broadcast %cst_104 : f32 to vector<16x128xf32>
    %273 = arith.addf %271, %272 : vector<16x128xf32>
    %274 = arith.mulf %273, %266 : vector<16x128xf32>
    %cst_105 = arith.constant -0.284496725 : f32
    %275 = vector.broadcast %cst_105 : f32 to vector<16x128xf32>
    %276 = arith.addf %274, %275 : vector<16x128xf32>
    %277 = arith.mulf %276, %266 : vector<16x128xf32>
    %cst_106 = arith.constant 0.254829586 : f32
    %278 = vector.broadcast %cst_106 : f32 to vector<16x128xf32>
    %279 = arith.addf %277, %278 : vector<16x128xf32>
    %280 = arith.mulf %279, %266 : vector<16x128xf32>
    %cst_107 = arith.constant 0.000000e+00 : f32
    %281 = vector.broadcast %cst_107 : f32 to vector<16x128xf32>
    %282 = arith.subf %281, %260 : vector<16x128xf32>
    %283 = arith.mulf %282, %260 : vector<16x128xf32>
    %284 = math.exp %283 : vector<16x128xf32>
    %285 = arith.mulf %280, %284 : vector<16x128xf32>
    %cst_108 = arith.constant 1.000000e+00 : f32
    %286 = vector.broadcast %cst_108 : f32 to vector<16x128xf32>
    %287 = arith.subf %286, %285 : vector<16x128xf32>
    %cst_109 = arith.constant 0.000000e+00 : f32
    %288 = vector.broadcast %cst_109 : f32 to vector<16x128xf32>
    %289 = arith.cmpf olt, %259, %288 : vector<16x128xf32>
    %cst_110 = arith.constant 0.000000e+00 : f32
    %290 = vector.broadcast %cst_110 : f32 to vector<16x128xf32>
    %291 = arith.subf %290, %287 : vector<16x128xf32>
    %292 = arith.select %289, %291, %287 : vector<16x128xi1>, vector<16x128xf32>
    %cst_111 = arith.constant 1.000000e+00 : f32
    %293 = vector.broadcast %cst_111 : f32 to vector<16x128xf32>
    %294 = arith.addf %293, %292 : vector<16x128xf32>
    %295 = arith.mulf %257, %294 : vector<16x128xf32>
    %c0_112 = arith.constant 0 : index
    %c0_113 = arith.constant 0 : index
    %c0_114 = arith.constant 0 : index
    %296 = vector.load %arg21[%c0_112, %c0_113, %c0_114] : memref<1x128x32xf32, #tpu.memory_space<vmem>>, vector<1x128x32xf32>
    %297 = vector.shape_cast %296 : vector<1x128x32xf32> to vector<128x32xf32>
    %cst_115 = arith.constant dense<0.000000e+00> : vector<16x32xf32>
    %298 = tpu.matmul %295, %297, %cst_115 {dimension_numbers = #tpu.dot_dimension_numbers<[1], [0], [0], [1], [0, 0, 1, 1], [], []>} : vector<16x128xf32>, vector<128x32xf32>, vector<16x32xf32> -> vector<16x32xf32>
    %c0_116 = arith.constant 0 : index
    %c0_117 = arith.constant 0 : index
    %c0_118 = arith.constant 0 : index
    %299 = vector.load %arg22[%c0_116, %c0_117, %c0_118] : memref<1x1x32xf32, #tpu.memory_space<vmem>>, vector<1x1x32xf32>
    %300 = vector.shape_cast %299 : vector<1x1x32xf32> to vector<1x32xf32>
    %301 = vector.broadcast %300 : vector<1x32xf32> to vector<16x32xf32>
    %302 = arith.addf %298, %301 : vector<16x32xf32>
    %303 = arith.addf %222, %302 : vector<16x32xf32>
    %c0_119 = arith.constant 0 : index
    %c0_120 = arith.constant 0 : index
    %304 = vector.load %arg26[%c0_119, %c0_120] : memref<16x32xf32, #tpu.memory_space<vmem>>, vector<16x32xf32>
    tpu.vector_store %arg26[%c0_119, %c0_120], %303 {strides = array<i32>} : memref<16x32xf32, #tpu.memory_space<vmem>>, vector<16x32xf32>,
    %c1_i32 = arith.constant 1 : i32
    %305 = arith.cmpi eq, %arg0, %c1_i32 : i32
    %306 = arith.extui %305 : i1 to i32
    %c0_i32_121 = arith.constant 0 : i32
    %307 = arith.cmpi ne, %306, %c0_i32_121 : i32
    scf.if %307 {
      %c0_122 = arith.constant 0 : index
      %c0_123 = arith.constant 0 : index
      %308 = vector.load %arg23[%c0_122, %c0_123] : memref<1x32xf32, #tpu.memory_space<vmem>>, vector<1x32xf32>
      %c0_124 = arith.constant 0 : index
      %c0_125 = arith.constant 0 : index
      %309 = vector.load %arg24[%c0_124, %c0_125] : memref<1x32xf32, #tpu.memory_space<vmem>>, vector<1x32xf32>
      %cst_126 = arith.constant dense<0.000000e+00> : vector<16xf32>
      %310 = vector.multi_reduction <add>, %303, %cst_126 [1] : vector<16x32xf32> to vector<16xf32>
      %311 = vector.shape_cast %310 : vector<16xf32> to vector<16x1xf32>
      %cst_127 = arith.constant 3.200000e+01 : f32
      %312 = vector.broadcast %cst_127 : f32 to vector<16x1xf32>
      %313 = arith.divf %311, %312 : vector<16x1xf32>
      %314 = vector.broadcast %313 : vector<16x1xf32> to vector<16x32xf32>
      %315 = arith.subf %303, %314 : vector<16x32xf32>
      %316 = arith.mulf %315, %315 : vector<16x32xf32>
      %cst_128 = arith.constant dense<0.000000e+00> : vector<16xf32>
      %317 = vector.multi_reduction <add>, %316, %cst_128 [1] : vector<16x32xf32> to vector<16xf32>
      %318 = vector.shape_cast %317 : vector<16xf32> to vector<16x1xf32>
      %cst_129 = arith.constant 3.200000e+01 : f32
      %319 = vector.broadcast %cst_129 : f32 to vector<16x1xf32>
      %320 = arith.divf %318, %319 : vector<16x1xf32>
      %321 = vector.broadcast %313 : vector<16x1xf32> to vector<16x32xf32>
      %322 = arith.subf %303, %321 : vector<16x32xf32>
      %cst_130 = arith.constant 9.99999997E-7 : f32
      %323 = vector.broadcast %cst_130 : f32 to vector<16x1xf32>
      %324 = arith.addf %320, %323 : vector<16x1xf32>
      %325 = math.rsqrt %324 : vector<16x1xf32>
      %326 = vector.broadcast %325 : vector<16x1xf32> to vector<16x32xf32>
      %327 = arith.mulf %322, %326 : vector<16x32xf32>
      %328 = vector.broadcast %308 : vector<1x32xf32> to vector<16x32xf32>
      %329 = arith.mulf %327, %328 : vector<16x32xf32>
      %330 = vector.broadcast %309 : vector<1x32xf32> to vector<16x32xf32>
      %331 = arith.addf %329, %330 : vector<16x32xf32>
      %c0_131 = arith.constant 0 : index
      %c0_132 = arith.constant 0 : index
      %332 = vector.load %arg25[%c0_131, %c0_132] : memref<16x32xf32, #tpu.memory_space<vmem>>, vector<16x32xf32>
      tpu.vector_store %arg25[%c0_131, %c0_132], %331 {strides = array<i32>} : memref<16x32xf32, #tpu.memory_space<vmem>>, vector<16x32xf32>,
    } else {
    }
    return
  }
  func.func @transform_0(%arg0: i32) -> (i32, i32) {
    %c0_i32 = arith.constant 0 : i32
    %c0_i32_0 = arith.constant 0 : i32
    %c0_i32_1 = arith.constant 0 : i32
    return %c0_i32, %c0_i32_0 : i32, i32
  }
  func.func @transform_1(%arg0: i32) -> (i32, i32) {
    %c0_i32 = arith.constant 0 : i32
    %c0_i32_0 = arith.constant 0 : i32
    %c0_i32_1 = arith.constant 0 : i32
    return %c0_i32, %c0_i32_0 : i32, i32
  }
  func.func @transform_2(%arg0: i32) -> (i32, i32) {
    %c0_i32 = arith.constant 0 : i32
    %c0_i32_0 = arith.constant 0 : i32
    %c0_i32_1 = arith.constant 0 : i32
    return %c0_i32, %c0_i32_0 : i32, i32
  }
  func.func @transform_3(%arg0: i32) -> (i32, i32) {
    %c0_i32 = arith.constant 0 : i32
    %c0_i32_0 = arith.constant 0 : i32
    %c0_i32_1 = arith.constant 0 : i32
    return %c0_i32, %c0_i32_0 : i32, i32
  }
  func.func @transform_4(%arg0: i32) -> (i32, i32) {
    %c0_i32 = arith.constant 0 : i32
    %c0_i32_0 = arith.constant 0 : i32
    %c0_i32_1 = arith.constant 0 : i32
    return %c0_i32, %c0_i32_0 : i32, i32
  }
  func.func @transform_5(%arg0: i32) -> (i32, i32, i32) {
    %c0_i32 = arith.constant 0 : i32
    %c0_i32_0 = arith.constant 0 : i32
    %c0_i32_1 = arith.constant 0 : i32
    %c0_i32_2 = arith.constant 0 : i32
    return %c0_i32, %c0_i32_0, %c0_i32_1 : i32, i32, i32
  }
  func.func @transform_6(%arg0: i32) -> (i32, i32, i32) {
    %c0_i32 = arith.constant 0 : i32
    %c0_i32_0 = arith.constant 0 : i32
    %c0_i32_1 = arith.constant 0 : i32
    return %arg0, %c0_i32, %c0_i32_0 : i32, i32, i32
  }
  func.func @transform_7(%arg0: i32) -> (i32, i32, i32) {
    %c0_i32 = arith.constant 0 : i32
    %c0_i32_0 = arith.constant 0 : i32
    %c0_i32_1 = arith.constant 0 : i32
    return %arg0, %c0_i32, %c0_i32_0 : i32, i32, i32
  }
  func.func @transform_8(%arg0: i32) -> (i32, i32, i32, i32) {
    %c0_i32 = arith.constant 0 : i32
    %c0_i32_0 = arith.constant 0 : i32
    %c0_i32_1 = arith.constant 0 : i32
    %c0_i32_2 = arith.constant 0 : i32
    return %arg0, %c0_i32, %c0_i32_0, %c0_i32_1 : i32, i32, i32, i32
  }
  func.func @transform_9(%arg0: i32) -> (i32, i32, i32, i32) {
    %c0_i32 = arith.constant 0 : i32
    %c0_i32_0 = arith.constant 0 : i32
    %c0_i32_1 = arith.constant 0 : i32
    %c0_i32_2 = arith.constant 0 : i32
    return %arg0, %c0_i32, %c0_i32_0, %c0_i32_1 : i32, i32, i32, i32
  }
  func.func @transform_10(%arg0: i32) -> (i32, i32, i32, i32) {
    %c0_i32 = arith.constant 0 : i32
    %c0_i32_0 = arith.constant 0 : i32
    %c0_i32_1 = arith.constant 0 : i32
    %c0_i32_2 = arith.constant 0 : i32
    return %arg0, %c0_i32, %c0_i32_0, %c0_i32_1 : i32, i32, i32, i32
  }
  func.func @transform_11(%arg0: i32) -> (i32, i32, i32, i32) {
    %c0_i32 = arith.constant 0 : i32
    %c0_i32_0 = arith.constant 0 : i32
    %c0_i32_1 = arith.constant 0 : i32
    %c0_i32_2 = arith.constant 0 : i32
    return %arg0, %c0_i32, %c0_i32_0, %c0_i32_1 : i32, i32, i32, i32
  }
  func.func @transform_12(%arg0: i32) -> (i32, i32, i32, i32) {
    %c0_i32 = arith.constant 0 : i32
    %c0_i32_0 = arith.constant 0 : i32
    %c0_i32_1 = arith.constant 0 : i32
    %c0_i32_2 = arith.constant 0 : i32
    return %arg0, %c0_i32, %c0_i32_0, %c0_i32_1 : i32, i32, i32, i32
  }
  func.func @transform_13(%arg0: i32) -> (i32, i32, i32, i32) {
    %c0_i32 = arith.constant 0 : i32
    %c0_i32_0 = arith.constant 0 : i32
    %c0_i32_1 = arith.constant 0 : i32
    %c0_i32_2 = arith.constant 0 : i32
    return %arg0, %c0_i32, %c0_i32_0, %c0_i32_1 : i32, i32, i32, i32
  }
  func.func @transform_14(%arg0: i32) -> (i32, i32, i32, i32) {
    %c0_i32 = arith.constant 0 : i32
    %c0_i32_0 = arith.constant 0 : i32
    %c0_i32_1 = arith.constant 0 : i32
    %c0_i32_2 = arith.constant 0 : i32
    return %arg0, %c0_i32, %c0_i32_0, %c0_i32_1 : i32, i32, i32, i32
  }
  func.func @transform_15(%arg0: i32) -> (i32, i32, i32) {
    %c0_i32 = arith.constant 0 : i32
    %c0_i32_0 = arith.constant 0 : i32
    %c0_i32_1 = arith.constant 0 : i32
    return %arg0, %c0_i32, %c0_i32_0 : i32, i32, i32
  }
  func.func @transform_16(%arg0: i32) -> (i32, i32, i32) {
    %c0_i32 = arith.constant 0 : i32
    %c0_i32_0 = arith.constant 0 : i32
    %c0_i32_1 = arith.constant 0 : i32
    return %arg0, %c0_i32, %c0_i32_0 : i32, i32, i32
  }
  func.func @transform_17(%arg0: i32) -> (i32, i32, i32) {
    %c0_i32 = arith.constant 0 : i32
    %c0_i32_0 = arith.constant 0 : i32
    %c0_i32_1 = arith.constant 0 : i32
    return %arg0, %c0_i32, %c0_i32_0 : i32, i32, i32
  }
  func.func @transform_18(%arg0: i32) -> (i32, i32, i32) {
    %c0_i32 = arith.constant 0 : i32
    %c0_i32_0 = arith.constant 0 : i32
    %c0_i32_1 = arith.constant 0 : i32
    return %arg0, %c0_i32, %c0_i32_0 : i32, i32, i32
  }
  func.func @transform_19(%arg0: i32) -> (i32, i32, i32) {
    %c0_i32 = arith.constant 0 : i32
    %c0_i32_0 = arith.constant 0 : i32
    %c0_i32_1 = arith.constant 0 : i32
    return %arg0, %c0_i32, %c0_i32_0 : i32, i32, i32
  }
  func.func @transform_20(%arg0: i32) -> (i32, i32, i32) {
    %c0_i32 = arith.constant 0 : i32
    %c0_i32_0 = arith.constant 0 : i32
    %c0_i32_1 = arith.constant 0 : i32
    return %arg0, %c0_i32, %c0_i32_0 : i32, i32, i32
  }
  func.func @transform_21(%arg0: i32) -> (i32, i32, i32) {
    %c0_i32 = arith.constant 0 : i32
    %c0_i32_0 = arith.constant 0 : i32
    %c0_i32_1 = arith.constant 0 : i32
    return %arg0, %c0_i32, %c0_i32_0 : i32, i32, i32
  }
  func.func @transform_22(%arg0: i32) -> (i32, i32) {
    %c0_i32 = arith.constant 0 : i32
    %c0_i32_0 = arith.constant 0 : i32
    %c0_i32_1 = arith.constant 0 : i32
    return %c0_i32, %c0_i32_0 : i32, i32
  }
  func.func @transform_23(%arg0: i32) -> (i32, i32) {
    %c0_i32 = arith.constant 0 : i32
    %c0_i32_0 = arith.constant 0 : i32
    %c0_i32_1 = arith.constant 0 : i32
    return %c0_i32, %c0_i32_0 : i32, i32
  }
  func.func @transform_24(%arg0: i32) -> (i32, i32) {
    %c0_i32 = arith.constant 0 : i32
    %c0_i32_0 = arith.constant 0 : i32
    %c0_i32_1 = arith.constant 0 : i32
    return %c0_i32, %c0_i32_0 : i32, i32
  }
}

module attributes {stable_mosaic.version = 11 : i64} {
  func.func @_text_encoder_kernel(%arg0: i32, %arg1: memref<16x32xf32, #tpu.memory_space<vmem>>, %arg2: memref<1x32xf32, #tpu.memory_space<vmem>>, %arg3: memref<1x32xf32, #tpu.memory_space<vmem>>, %arg4: memref<16x32xf32, #tpu.memory_space<vmem>>, %arg5: memref<2x1x8xf32, #tpu.memory_space<vmem>>, %arg6: memref<2x1x8xf32, #tpu.memory_space<vmem>>, %arg7: memref<2x16xf32, #tpu.memory_space<vmem>>, %arg8: memref<32x1xf32, #tpu.memory_space<vmem>>, %arg9: memref<1x1xf32, #tpu.memory_space<vmem>>, %arg10: memref<1x4x32x8xf32, #tpu.memory_space<vmem>>, %arg11: memref<1x4x1x8xf32, #tpu.memory_space<vmem>>, %arg12: memref<1x4x32x8xf32, #tpu.memory_space<vmem>>, %arg13: memref<1x4x1x8xf32, #tpu.memory_space<vmem>>, %arg14: memref<1x4x32x8xf32, #tpu.memory_space<vmem>>, %arg15: memref<1x4x1x8xf32, #tpu.memory_space<vmem>>, %arg16: memref<1x4x8x32xf32, #tpu.memory_space<vmem>>, %arg17: memref<1x1x32xf32, #tpu.memory_space<vmem>>, %arg18: memref<1x1x32xf32, #tpu.memory_space<vmem>>, %arg19: memref<1x1x32xf32, #tpu.memory_space<vmem>>, %arg20: memref<1x4x32x8xf32, #tpu.memory_space<vmem>>, %arg21: memref<1x4x1x8xf32, #tpu.memory_space<vmem>>, %arg22: memref<1x4x32x8xf32, #tpu.memory_space<vmem>>, %arg23: memref<1x4x1x8xf32, #tpu.memory_space<vmem>>, %arg24: memref<1x4x32x8xf32, #tpu.memory_space<vmem>>, %arg25: memref<1x4x1x8xf32, #tpu.memory_space<vmem>>, %arg26: memref<1x4x8x32xf32, #tpu.memory_space<vmem>>, %arg27: memref<1x1x32xf32, #tpu.memory_space<vmem>>, %arg28: memref<1x1x32xf32, #tpu.memory_space<vmem>>, %arg29: memref<1x1x32xf32, #tpu.memory_space<vmem>>, %arg30: memref<1x32x128xf32, #tpu.memory_space<vmem>>, %arg31: memref<1x1x128xf32, #tpu.memory_space<vmem>>, %arg32: memref<1x128x32xf32, #tpu.memory_space<vmem>>, %arg33: memref<1x1x32xf32, #tpu.memory_space<vmem>>, %arg34: memref<1x1x32xf32, #tpu.memory_space<vmem>>, %arg35: memref<1x1x32xf32, #tpu.memory_space<vmem>>, %arg36: memref<2x1xf32, #tpu.memory_space<vmem>>, %arg37: memref<16x32xf32, #tpu.memory_space<vmem>>) attributes {dimension_semantics = [#tpu.dimension_semantics<arbitrary>], iteration_bounds = array<i64: 2>, scalar_prefetch = 0 : i64, scratch_operands = 1 : i64, tpu.core_type = #tpu.core_type<tc>, window_params = [{pipeline_mode = #tpu.pipeline_mode<synchronous>, transform_indices = @transform_0, window_bounds = array<i64: 16, 32>}, {pipeline_mode = #tpu.pipeline_mode<synchronous>, transform_indices = @transform_1, window_bounds = array<i64: 1, 32>}, {pipeline_mode = #tpu.pipeline_mode<synchronous>, transform_indices = @transform_2, window_bounds = array<i64: 1, 32>}, {pipeline_mode = #tpu.pipeline_mode<synchronous>, transform_indices = @transform_3, window_bounds = array<i64: 16, 32>}, {pipeline_mode = #tpu.pipeline_mode<synchronous>, transform_indices = @transform_4, window_bounds = array<i64: 2, 1, 8>}, {pipeline_mode = #tpu.pipeline_mode<synchronous>, transform_indices = @transform_5, window_bounds = array<i64: 2, 1, 8>}, {pipeline_mode = #tpu.pipeline_mode<synchronous>, transform_indices = @transform_6, window_bounds = array<i64: 2, 16>}, {pipeline_mode = #tpu.pipeline_mode<synchronous>, transform_indices = @transform_7, window_bounds = array<i64: 32, 1>}, {pipeline_mode = #tpu.pipeline_mode<synchronous>, transform_indices = @transform_8, window_bounds = array<i64: 1, 1>}, {transform_indices = @transform_9, window_bounds = array<i64: 1, 4, 32, 8>}, {transform_indices = @transform_10, window_bounds = array<i64: 1, 4, 1, 8>}, {transform_indices = @transform_11, window_bounds = array<i64: 1, 4, 32, 8>}, {transform_indices = @transform_12, window_bounds = array<i64: 1, 4, 1, 8>}, {transform_indices = @transform_13, window_bounds = array<i64: 1, 4, 32, 8>}, {transform_indices = @transform_14, window_bounds = array<i64: 1, 4, 1, 8>}, {transform_indices = @transform_15, window_bounds = array<i64: 1, 4, 8, 32>}, {transform_indices = @transform_16, window_bounds = array<i64: 1, 1, 32>}, {transform_indices = @transform_17, window_bounds = array<i64: 1, 1, 32>}, {transform_indices = @transform_18, window_bounds = array<i64: 1, 1, 32>}, {transform_indices = @transform_19, window_bounds = array<i64: 1, 4, 32, 8>}, {transform_indices = @transform_20, window_bounds = array<i64: 1, 4, 1, 8>}, {transform_indices = @transform_21, window_bounds = array<i64: 1, 4, 32, 8>}, {transform_indices = @transform_22, window_bounds = array<i64: 1, 4, 1, 8>}, {transform_indices = @transform_23, window_bounds = array<i64: 1, 4, 32, 8>}, {transform_indices = @transform_24, window_bounds = array<i64: 1, 4, 1, 8>}, {transform_indices = @transform_25, window_bounds = array<i64: 1, 4, 8, 32>}, {transform_indices = @transform_26, window_bounds = array<i64: 1, 1, 32>}, {transform_indices = @transform_27, window_bounds = array<i64: 1, 1, 32>}, {transform_indices = @transform_28, window_bounds = array<i64: 1, 1, 32>}, {transform_indices = @transform_29, window_bounds = array<i64: 1, 32, 128>}, {transform_indices = @transform_30, window_bounds = array<i64: 1, 1, 128>}, {transform_indices = @transform_31, window_bounds = array<i64: 1, 128, 32>}, {transform_indices = @transform_32, window_bounds = array<i64: 1, 1, 32>}, {transform_indices = @transform_33, window_bounds = array<i64: 1, 1, 32>}, {transform_indices = @transform_34, window_bounds = array<i64: 1, 1, 32>}, {pipeline_mode = #tpu.pipeline_mode<synchronous>, transform_indices = @transform_35, window_bounds = array<i64: 2, 1>}]} {
    %c0_i32 = arith.constant 0 : i32
    %0 = arith.cmpi eq, %arg0, %c0_i32 : i32
    %1 = arith.extui %0 : i1 to i32
    %c0_i32_0 = arith.constant 0 : i32
    %2 = arith.cmpi ne, %1, %c0_i32_0 : i32
    scf.if %2 {
      %c0_202 = arith.constant 0 : index
      %c0_203 = arith.constant 0 : index
      %528 = vector.load %arg1[%c0_202, %c0_203] : memref<16x32xf32, #tpu.memory_space<vmem>>, vector<16x32xf32>
      %c0_204 = arith.constant 0 : index
      %c0_205 = arith.constant 0 : index
      %529 = vector.load %arg2[%c0_204, %c0_205] : memref<1x32xf32, #tpu.memory_space<vmem>>, vector<1x32xf32>
      %c0_206 = arith.constant 0 : index
      %c0_207 = arith.constant 0 : index
      %530 = vector.load %arg3[%c0_206, %c0_207] : memref<1x32xf32, #tpu.memory_space<vmem>>, vector<1x32xf32>
      %cst_208 = arith.constant dense<0.000000e+00> : vector<16xf32>
      %531 = vector.multi_reduction <add>, %528, %cst_208 [1] : vector<16x32xf32> to vector<16xf32>
      %532 = vector.shape_cast %531 : vector<16xf32> to vector<16x1xf32>
      %cst_209 = arith.constant 3.200000e+01 : f32
      %533 = vector.broadcast %cst_209 : f32 to vector<16x1xf32>
      %534 = arith.divf %532, %533 : vector<16x1xf32>
      %535 = vector.broadcast %534 : vector<16x1xf32> to vector<16x32xf32>
      %536 = arith.subf %528, %535 : vector<16x32xf32>
      %537 = arith.mulf %536, %536 : vector<16x32xf32>
      %cst_210 = arith.constant dense<0.000000e+00> : vector<16xf32>
      %538 = vector.multi_reduction <add>, %537, %cst_210 [1] : vector<16x32xf32> to vector<16xf32>
      %539 = vector.shape_cast %538 : vector<16xf32> to vector<16x1xf32>
      %cst_211 = arith.constant 3.200000e+01 : f32
      %540 = vector.broadcast %cst_211 : f32 to vector<16x1xf32>
      %541 = arith.divf %539, %540 : vector<16x1xf32>
      %542 = vector.broadcast %534 : vector<16x1xf32> to vector<16x32xf32>
      %543 = arith.subf %528, %542 : vector<16x32xf32>
      %cst_212 = arith.constant 9.99999996E-13 : f32
      %544 = vector.broadcast %cst_212 : f32 to vector<16x1xf32>
      %545 = arith.addf %541, %544 : vector<16x1xf32>
      %546 = math.rsqrt %545 : vector<16x1xf32>
      %547 = vector.broadcast %546 : vector<16x1xf32> to vector<16x32xf32>
      %548 = arith.mulf %543, %547 : vector<16x32xf32>
      %549 = vector.broadcast %529 : vector<1x32xf32> to vector<16x32xf32>
      %550 = arith.mulf %548, %549 : vector<16x32xf32>
      %551 = vector.broadcast %530 : vector<1x32xf32> to vector<16x32xf32>
      %552 = arith.addf %550, %551 : vector<16x32xf32>
      %c0_213 = arith.constant 0 : index
      %c0_214 = arith.constant 0 : index
      %553 = vector.load %arg37[%c0_213, %c0_214] : memref<16x32xf32, #tpu.memory_space<vmem>>, vector<16x32xf32>
      tpu.vector_store %arg37[%c0_213, %c0_214], %552 {strides = array<i32>} : memref<16x32xf32, #tpu.memory_space<vmem>>, vector<16x32xf32>,
    } else {
    }
    %c0 = arith.constant 0 : index
    %c0_1 = arith.constant 0 : index
    %3 = vector.load %arg37[%c0, %c0_1] : memref<16x32xf32, #tpu.memory_space<vmem>>, vector<16x32xf32>
    %c0_2 = arith.constant 0 : index
    %c0_3 = arith.constant 0 : index
    %4 = vector.load %arg4[%c0_2, %c0_3] : memref<16x32xf32, #tpu.memory_space<vmem>>, vector<16x32xf32>
    %c0_4 = arith.constant 0 : index
    %c0_5 = arith.constant 0 : index
    %c0_6 = arith.constant 0 : index
    %c0_7 = arith.constant 0 : index
    %5 = vector.load %arg10[%c0_4, %c0_5, %c0_6, %c0_7] : memref<1x4x32x8xf32, #tpu.memory_space<vmem>>, vector<1x4x32x8xf32>
    %6 = vector.shape_cast %5 : vector<1x4x32x8xf32> to vector<4x32x8xf32>
    %c0_8 = arith.constant 0 : index
    %c0_9 = arith.constant 0 : index
    %c0_10 = arith.constant 0 : index
    %c0_11 = arith.constant 0 : index
    %7 = vector.load %arg11[%c0_8, %c0_9, %c0_10, %c0_11] : memref<1x4x1x8xf32, #tpu.memory_space<vmem>>, vector<1x4x1x8xf32>
    %8 = vector.shape_cast %7 : vector<1x4x1x8xf32> to vector<4x1x8xf32>
    %c0_12 = arith.constant 0 : index
    %c0_13 = arith.constant 0 : index
    %c0_14 = arith.constant 0 : index
    %c0_15 = arith.constant 0 : index
    %9 = vector.load %arg12[%c0_12, %c0_13, %c0_14, %c0_15] : memref<1x4x32x8xf32, #tpu.memory_space<vmem>>, vector<1x4x32x8xf32>
    %10 = vector.shape_cast %9 : vector<1x4x32x8xf32> to vector<4x32x8xf32>
    %c0_16 = arith.constant 0 : index
    %c0_17 = arith.constant 0 : index
    %c0_18 = arith.constant 0 : index
    %c0_19 = arith.constant 0 : index
    %11 = vector.load %arg13[%c0_16, %c0_17, %c0_18, %c0_19] : memref<1x4x1x8xf32, #tpu.memory_space<vmem>>, vector<1x4x1x8xf32>
    %12 = vector.shape_cast %11 : vector<1x4x1x8xf32> to vector<4x1x8xf32>
    %c0_20 = arith.constant 0 : index
    %c0_21 = arith.constant 0 : index
    %c0_22 = arith.constant 0 : index
    %c0_23 = arith.constant 0 : index
    %13 = vector.load %arg14[%c0_20, %c0_21, %c0_22, %c0_23] : memref<1x4x32x8xf32, #tpu.memory_space<vmem>>, vector<1x4x32x8xf32>
    %14 = vector.shape_cast %13 : vector<1x4x32x8xf32> to vector<4x32x8xf32>
    %c0_24 = arith.constant 0 : index
    %c0_25 = arith.constant 0 : index
    %c0_26 = arith.constant 0 : index
    %c0_27 = arith.constant 0 : index
    %15 = vector.load %arg15[%c0_24, %c0_25, %c0_26, %c0_27] : memref<1x4x1x8xf32, #tpu.memory_space<vmem>>, vector<1x4x1x8xf32>
    %16 = vector.shape_cast %15 : vector<1x4x1x8xf32> to vector<4x1x8xf32>
    %c0_28 = arith.constant 0 : index
    %c0_29 = arith.constant 0 : index
    %c0_30 = arith.constant 0 : index
    %c0_31 = arith.constant 0 : index
    %17 = vector.load %arg16[%c0_28, %c0_29, %c0_30, %c0_31] : memref<1x4x8x32xf32, #tpu.memory_space<vmem>>, vector<1x4x8x32xf32>
    %18 = vector.shape_cast %17 : vector<1x4x8x32xf32> to vector<4x8x32xf32>
    %c0_32 = arith.constant 0 : index
    %c0_33 = arith.constant 0 : index
    %c0_34 = arith.constant 0 : index
    %19 = vector.load %arg17[%c0_32, %c0_33, %c0_34] : memref<1x1x32xf32, #tpu.memory_space<vmem>>, vector<1x1x32xf32>
    %20 = vector.shape_cast %19 : vector<1x1x32xf32> to vector<1x32xf32>
    %c0_35 = arith.constant 0 : index
    %c0_36 = arith.constant 0 : index
    %c0_37 = arith.constant 0 : index
    %21 = vector.load %arg5[%c0_35, %c0_36, %c0_37] : memref<2x1x8xf32, #tpu.memory_space<vmem>>, vector<2x1x8xf32>
    %cst = arith.constant 0.000000e+00 : f32
    %22 = vector.broadcast %cst : f32 to vector<16x32xf32>
    %23 = vector.extract_strided_slice %6 {offsets = [0, 0, 0], sizes = [1, 32, 8], strides = [1, 1, 1]} : vector<4x32x8xf32> to vector<1x32x8xf32>
    %24 = vector.shape_cast %23 : vector<1x32x8xf32> to vector<32x8xf32>
    %cst_38 = arith.constant dense<0.000000e+00> : vector<16x8xf32>
    %25 = tpu.matmul %3, %24, %cst_38 {dimension_numbers = #tpu.dot_dimension_numbers<[1], [0], [0], [1], [0, 0, 1, 1], [], []>} : vector<16x32xf32>, vector<32x8xf32>, vector<16x8xf32> -> vector<16x8xf32>
    %26 = vector.extract_strided_slice %8 {offsets = [0, 0, 0], sizes = [1, 1, 8], strides = [1, 1, 1]} : vector<4x1x8xf32> to vector<1x1x8xf32>
    %27 = vector.shape_cast %26 : vector<1x1x8xf32> to vector<1x8xf32>
    %28 = vector.broadcast %27 : vector<1x8xf32> to vector<16x8xf32>
    %29 = arith.addf %25, %28 : vector<16x8xf32>
    %30 = vector.shape_cast %29 : vector<16x8xf32> to vector<2x8x8xf32>
    %31 = vector.extract_strided_slice %10 {offsets = [0, 0, 0], sizes = [1, 32, 8], strides = [1, 1, 1]} : vector<4x32x8xf32> to vector<1x32x8xf32>
    %32 = vector.shape_cast %31 : vector<1x32x8xf32> to vector<32x8xf32>
    %cst_39 = arith.constant dense<0.000000e+00> : vector<16x8xf32>
    %33 = tpu.matmul %3, %32, %cst_39 {dimension_numbers = #tpu.dot_dimension_numbers<[1], [0], [0], [1], [0, 0, 1, 1], [], []>} : vector<16x32xf32>, vector<32x8xf32>, vector<16x8xf32> -> vector<16x8xf32>
    %34 = vector.extract_strided_slice %12 {offsets = [0, 0, 0], sizes = [1, 1, 8], strides = [1, 1, 1]} : vector<4x1x8xf32> to vector<1x1x8xf32>
    %35 = vector.shape_cast %34 : vector<1x1x8xf32> to vector<1x8xf32>
    %36 = vector.broadcast %35 : vector<1x8xf32> to vector<16x8xf32>
    %37 = arith.addf %33, %36 : vector<16x8xf32>
    %38 = vector.shape_cast %37 : vector<16x8xf32> to vector<2x8x8xf32>
    %39 = vector.extract_strided_slice %14 {offsets = [0, 0, 0], sizes = [1, 32, 8], strides = [1, 1, 1]} : vector<4x32x8xf32> to vector<1x32x8xf32>
    %40 = vector.shape_cast %39 : vector<1x32x8xf32> to vector<32x8xf32>
    %cst_40 = arith.constant dense<0.000000e+00> : vector<16x8xf32>
    %41 = tpu.matmul %3, %40, %cst_40 {dimension_numbers = #tpu.dot_dimension_numbers<[1], [0], [0], [1], [0, 0, 1, 1], [], []>} : vector<16x32xf32>, vector<32x8xf32>, vector<16x8xf32> -> vector<16x8xf32>
    %42 = vector.extract_strided_slice %16 {offsets = [0, 0, 0], sizes = [1, 1, 8], strides = [1, 1, 1]} : vector<4x1x8xf32> to vector<1x1x8xf32>
    %43 = vector.shape_cast %42 : vector<1x1x8xf32> to vector<1x8xf32>
    %44 = vector.broadcast %43 : vector<1x8xf32> to vector<16x8xf32>
    %45 = arith.addf %41, %44 : vector<16x8xf32>
    %46 = vector.shape_cast %45 : vector<16x8xf32> to vector<2x8x8xf32>
    "tpu.trace_start"() <{level = 10 : i32, message = "bqe,bke->bqk"}> : () -> ()
    %cst_41 = arith.constant dense<0.000000e+00> : vector<2x8x8xf32>
    %47 = tpu.matmul %30, %38, %cst_41 {dimension_numbers = #tpu.dot_dimension_numbers<[2], [2], [1], [1], [0, 0, 0, 1, 1, 1], [0], [0]>} : vector<2x8x8xf32>, vector<2x8x8xf32>, vector<2x8x8xf32> -> vector<2x8x8xf32>
    "tpu.trace_stop"() : () -> ()
    %48 = vector.broadcast %21 : vector<2x1x8xf32> to vector<2x8x8xf32>
    %49 = arith.addf %47, %48 : vector<2x8x8xf32>
    %cst_42 = arith.constant dense<0xFF800000> : vector<2x8xf32>
    %50 = vector.multi_reduction <maximumf>, %49, %cst_42 [2] : vector<2x8x8xf32> to vector<2x8xf32>
    %51 = vector.shape_cast %50 : vector<2x8xf32> to vector<2x8x1xf32>
    %52 = vector.broadcast %51 : vector<2x8x1xf32> to vector<2x8x8xf32>
    %53 = arith.subf %49, %52 : vector<2x8x8xf32>
    %54 = math.exp %53 : vector<2x8x8xf32>
    %cst_43 = arith.constant dense<0.000000e+00> : vector<2x8xf32>
    %55 = vector.multi_reduction <add>, %54, %cst_43 [2] : vector<2x8x8xf32> to vector<2x8xf32>
    %56 = vector.shape_cast %55 : vector<2x8xf32> to vector<2x8x1xf32>
    %57 = tpu.reciprocal %56 {approx = true} : vector<2x8x1xf32> -> vector<2x8x1xf32>
    %58 = vector.broadcast %57 : vector<2x8x1xf32> to vector<2x8x8xf32>
    %59 = arith.mulf %54, %58 : vector<2x8x8xf32>
    "tpu.trace_start"() <{level = 10 : i32, message = "bqk,bke->bqe"}> : () -> ()
    %cst_44 = arith.constant dense<0.000000e+00> : vector<2x8x8xf32>
    %60 = tpu.matmul %59, %46, %cst_44 {dimension_numbers = #tpu.dot_dimension_numbers<[2], [1], [1], [2], [0, 0, 0, 1, 1, 2], [0], [0]>} : vector<2x8x8xf32>, vector<2x8x8xf32>, vector<2x8x8xf32> -> vector<2x8x8xf32>
    "tpu.trace_stop"() : () -> ()
    %61 = vector.shape_cast %60 : vector<2x8x8xf32> to vector<16x8xf32>
    %62 = vector.extract_strided_slice %18 {offsets = [0, 0, 0], sizes = [1, 8, 32], strides = [1, 1, 1]} : vector<4x8x32xf32> to vector<1x8x32xf32>
    %63 = vector.shape_cast %62 : vector<1x8x32xf32> to vector<8x32xf32>
    %cst_45 = arith.constant dense<0.000000e+00> : vector<16x32xf32>
    %64 = tpu.matmul %61, %63, %cst_45 {dimension_numbers = #tpu.dot_dimension_numbers<[1], [0], [0], [1], [0, 0, 1, 1], [], []>} : vector<16x8xf32>, vector<8x32xf32>, vector<16x32xf32> -> vector<16x32xf32>
    %65 = arith.addf %22, %64 : vector<16x32xf32>
    %66 = vector.extract_strided_slice %6 {offsets = [1, 0, 0], sizes = [1, 32, 8], strides = [1, 1, 1]} : vector<4x32x8xf32> to vector<1x32x8xf32>
    %67 = vector.shape_cast %66 : vector<1x32x8xf32> to vector<32x8xf32>
    %cst_46 = arith.constant dense<0.000000e+00> : vector<16x8xf32>
    %68 = tpu.matmul %3, %67, %cst_46 {dimension_numbers = #tpu.dot_dimension_numbers<[1], [0], [0], [1], [0, 0, 1, 1], [], []>} : vector<16x32xf32>, vector<32x8xf32>, vector<16x8xf32> -> vector<16x8xf32>
    %69 = vector.extract_strided_slice %8 {offsets = [1, 0, 0], sizes = [1, 1, 8], strides = [1, 1, 1]} : vector<4x1x8xf32> to vector<1x1x8xf32>
    %70 = vector.shape_cast %69 : vector<1x1x8xf32> to vector<1x8xf32>
    %71 = vector.broadcast %70 : vector<1x8xf32> to vector<16x8xf32>
    %72 = arith.addf %68, %71 : vector<16x8xf32>
    %73 = vector.shape_cast %72 : vector<16x8xf32> to vector<2x8x8xf32>
    %74 = vector.extract_strided_slice %10 {offsets = [1, 0, 0], sizes = [1, 32, 8], strides = [1, 1, 1]} : vector<4x32x8xf32> to vector<1x32x8xf32>
    %75 = vector.shape_cast %74 : vector<1x32x8xf32> to vector<32x8xf32>
    %cst_47 = arith.constant dense<0.000000e+00> : vector<16x8xf32>
    %76 = tpu.matmul %3, %75, %cst_47 {dimension_numbers = #tpu.dot_dimension_numbers<[1], [0], [0], [1], [0, 0, 1, 1], [], []>} : vector<16x32xf32>, vector<32x8xf32>, vector<16x8xf32> -> vector<16x8xf32>
    %77 = vector.extract_strided_slice %12 {offsets = [1, 0, 0], sizes = [1, 1, 8], strides = [1, 1, 1]} : vector<4x1x8xf32> to vector<1x1x8xf32>
    %78 = vector.shape_cast %77 : vector<1x1x8xf32> to vector<1x8xf32>
    %79 = vector.broadcast %78 : vector<1x8xf32> to vector<16x8xf32>
    %80 = arith.addf %76, %79 : vector<16x8xf32>
    %81 = vector.shape_cast %80 : vector<16x8xf32> to vector<2x8x8xf32>
    %82 = vector.extract_strided_slice %14 {offsets = [1, 0, 0], sizes = [1, 32, 8], strides = [1, 1, 1]} : vector<4x32x8xf32> to vector<1x32x8xf32>
    %83 = vector.shape_cast %82 : vector<1x32x8xf32> to vector<32x8xf32>
    %cst_48 = arith.constant dense<0.000000e+00> : vector<16x8xf32>
    %84 = tpu.matmul %3, %83, %cst_48 {dimension_numbers = #tpu.dot_dimension_numbers<[1], [0], [0], [1], [0, 0, 1, 1], [], []>} : vector<16x32xf32>, vector<32x8xf32>, vector<16x8xf32> -> vector<16x8xf32>
    %85 = vector.extract_strided_slice %16 {offsets = [1, 0, 0], sizes = [1, 1, 8], strides = [1, 1, 1]} : vector<4x1x8xf32> to vector<1x1x8xf32>
    %86 = vector.shape_cast %85 : vector<1x1x8xf32> to vector<1x8xf32>
    %87 = vector.broadcast %86 : vector<1x8xf32> to vector<16x8xf32>
    %88 = arith.addf %84, %87 : vector<16x8xf32>
    %89 = vector.shape_cast %88 : vector<16x8xf32> to vector<2x8x8xf32>
    "tpu.trace_start"() <{level = 10 : i32, message = "bqe,bke->bqk"}> : () -> ()
    %cst_49 = arith.constant dense<0.000000e+00> : vector<2x8x8xf32>
    %90 = tpu.matmul %73, %81, %cst_49 {dimension_numbers = #tpu.dot_dimension_numbers<[2], [2], [1], [1], [0, 0, 0, 1, 1, 1], [0], [0]>} : vector<2x8x8xf32>, vector<2x8x8xf32>, vector<2x8x8xf32> -> vector<2x8x8xf32>
    "tpu.trace_stop"() : () -> ()
    %91 = vector.broadcast %21 : vector<2x1x8xf32> to vector<2x8x8xf32>
    %92 = arith.addf %90, %91 : vector<2x8x8xf32>
    %cst_50 = arith.constant dense<0xFF800000> : vector<2x8xf32>
    %93 = vector.multi_reduction <maximumf>, %92, %cst_50 [2] : vector<2x8x8xf32> to vector<2x8xf32>
    %94 = vector.shape_cast %93 : vector<2x8xf32> to vector<2x8x1xf32>
    %95 = vector.broadcast %94 : vector<2x8x1xf32> to vector<2x8x8xf32>
    %96 = arith.subf %92, %95 : vector<2x8x8xf32>
    %97 = math.exp %96 : vector<2x8x8xf32>
    %cst_51 = arith.constant dense<0.000000e+00> : vector<2x8xf32>
    %98 = vector.multi_reduction <add>, %97, %cst_51 [2] : vector<2x8x8xf32> to vector<2x8xf32>
    %99 = vector.shape_cast %98 : vector<2x8xf32> to vector<2x8x1xf32>
    %100 = tpu.reciprocal %99 {approx = true} : vector<2x8x1xf32> -> vector<2x8x1xf32>
    %101 = vector.broadcast %100 : vector<2x8x1xf32> to vector<2x8x8xf32>
    %102 = arith.mulf %97, %101 : vector<2x8x8xf32>
    "tpu.trace_start"() <{level = 10 : i32, message = "bqk,bke->bqe"}> : () -> ()
    %cst_52 = arith.constant dense<0.000000e+00> : vector<2x8x8xf32>
    %103 = tpu.matmul %102, %89, %cst_52 {dimension_numbers = #tpu.dot_dimension_numbers<[2], [1], [1], [2], [0, 0, 0, 1, 1, 2], [0], [0]>} : vector<2x8x8xf32>, vector<2x8x8xf32>, vector<2x8x8xf32> -> vector<2x8x8xf32>
    "tpu.trace_stop"() : () -> ()
    %104 = vector.shape_cast %103 : vector<2x8x8xf32> to vector<16x8xf32>
    %105 = vector.extract_strided_slice %18 {offsets = [1, 0, 0], sizes = [1, 8, 32], strides = [1, 1, 1]} : vector<4x8x32xf32> to vector<1x8x32xf32>
    %106 = vector.shape_cast %105 : vector<1x8x32xf32> to vector<8x32xf32>
    %cst_53 = arith.constant dense<0.000000e+00> : vector<16x32xf32>
    %107 = tpu.matmul %104, %106, %cst_53 {dimension_numbers = #tpu.dot_dimension_numbers<[1], [0], [0], [1], [0, 0, 1, 1], [], []>} : vector<16x8xf32>, vector<8x32xf32>, vector<16x32xf32> -> vector<16x32xf32>
    %108 = arith.addf %65, %107 : vector<16x32xf32>
    %109 = vector.extract_strided_slice %6 {offsets = [2, 0, 0], sizes = [1, 32, 8], strides = [1, 1, 1]} : vector<4x32x8xf32> to vector<1x32x8xf32>
    %110 = vector.shape_cast %109 : vector<1x32x8xf32> to vector<32x8xf32>
    %cst_54 = arith.constant dense<0.000000e+00> : vector<16x8xf32>
    %111 = tpu.matmul %3, %110, %cst_54 {dimension_numbers = #tpu.dot_dimension_numbers<[1], [0], [0], [1], [0, 0, 1, 1], [], []>} : vector<16x32xf32>, vector<32x8xf32>, vector<16x8xf32> -> vector<16x8xf32>
    %112 = vector.extract_strided_slice %8 {offsets = [2, 0, 0], sizes = [1, 1, 8], strides = [1, 1, 1]} : vector<4x1x8xf32> to vector<1x1x8xf32>
    %113 = vector.shape_cast %112 : vector<1x1x8xf32> to vector<1x8xf32>
    %114 = vector.broadcast %113 : vector<1x8xf32> to vector<16x8xf32>
    %115 = arith.addf %111, %114 : vector<16x8xf32>
    %116 = vector.shape_cast %115 : vector<16x8xf32> to vector<2x8x8xf32>
    %117 = vector.extract_strided_slice %10 {offsets = [2, 0, 0], sizes = [1, 32, 8], strides = [1, 1, 1]} : vector<4x32x8xf32> to vector<1x32x8xf32>
    %118 = vector.shape_cast %117 : vector<1x32x8xf32> to vector<32x8xf32>
    %cst_55 = arith.constant dense<0.000000e+00> : vector<16x8xf32>
    %119 = tpu.matmul %3, %118, %cst_55 {dimension_numbers = #tpu.dot_dimension_numbers<[1], [0], [0], [1], [0, 0, 1, 1], [], []>} : vector<16x32xf32>, vector<32x8xf32>, vector<16x8xf32> -> vector<16x8xf32>
    %120 = vector.extract_strided_slice %12 {offsets = [2, 0, 0], sizes = [1, 1, 8], strides = [1, 1, 1]} : vector<4x1x8xf32> to vector<1x1x8xf32>
    %121 = vector.shape_cast %120 : vector<1x1x8xf32> to vector<1x8xf32>
    %122 = vector.broadcast %121 : vector<1x8xf32> to vector<16x8xf32>
    %123 = arith.addf %119, %122 : vector<16x8xf32>
    %124 = vector.shape_cast %123 : vector<16x8xf32> to vector<2x8x8xf32>
    %125 = vector.extract_strided_slice %14 {offsets = [2, 0, 0], sizes = [1, 32, 8], strides = [1, 1, 1]} : vector<4x32x8xf32> to vector<1x32x8xf32>
    %126 = vector.shape_cast %125 : vector<1x32x8xf32> to vector<32x8xf32>
    %cst_56 = arith.constant dense<0.000000e+00> : vector<16x8xf32>
    %127 = tpu.matmul %3, %126, %cst_56 {dimension_numbers = #tpu.dot_dimension_numbers<[1], [0], [0], [1], [0, 0, 1, 1], [], []>} : vector<16x32xf32>, vector<32x8xf32>, vector<16x8xf32> -> vector<16x8xf32>
    %128 = vector.extract_strided_slice %16 {offsets = [2, 0, 0], sizes = [1, 1, 8], strides = [1, 1, 1]} : vector<4x1x8xf32> to vector<1x1x8xf32>
    %129 = vector.shape_cast %128 : vector<1x1x8xf32> to vector<1x8xf32>
    %130 = vector.broadcast %129 : vector<1x8xf32> to vector<16x8xf32>
    %131 = arith.addf %127, %130 : vector<16x8xf32>
    %132 = vector.shape_cast %131 : vector<16x8xf32> to vector<2x8x8xf32>
    "tpu.trace_start"() <{level = 10 : i32, message = "bqe,bke->bqk"}> : () -> ()
    %cst_57 = arith.constant dense<0.000000e+00> : vector<2x8x8xf32>
    %133 = tpu.matmul %116, %124, %cst_57 {dimension_numbers = #tpu.dot_dimension_numbers<[2], [2], [1], [1], [0, 0, 0, 1, 1, 1], [0], [0]>} : vector<2x8x8xf32>, vector<2x8x8xf32>, vector<2x8x8xf32> -> vector<2x8x8xf32>
    "tpu.trace_stop"() : () -> ()
    %134 = vector.broadcast %21 : vector<2x1x8xf32> to vector<2x8x8xf32>
    %135 = arith.addf %133, %134 : vector<2x8x8xf32>
    %cst_58 = arith.constant dense<0xFF800000> : vector<2x8xf32>
    %136 = vector.multi_reduction <maximumf>, %135, %cst_58 [2] : vector<2x8x8xf32> to vector<2x8xf32>
    %137 = vector.shape_cast %136 : vector<2x8xf32> to vector<2x8x1xf32>
    %138 = vector.broadcast %137 : vector<2x8x1xf32> to vector<2x8x8xf32>
    %139 = arith.subf %135, %138 : vector<2x8x8xf32>
    %140 = math.exp %139 : vector<2x8x8xf32>
    %cst_59 = arith.constant dense<0.000000e+00> : vector<2x8xf32>
    %141 = vector.multi_reduction <add>, %140, %cst_59 [2] : vector<2x8x8xf32> to vector<2x8xf32>
    %142 = vector.shape_cast %141 : vector<2x8xf32> to vector<2x8x1xf32>
    %143 = tpu.reciprocal %142 {approx = true} : vector<2x8x1xf32> -> vector<2x8x1xf32>
    %144 = vector.broadcast %143 : vector<2x8x1xf32> to vector<2x8x8xf32>
    %145 = arith.mulf %140, %144 : vector<2x8x8xf32>
    "tpu.trace_start"() <{level = 10 : i32, message = "bqk,bke->bqe"}> : () -> ()
    %cst_60 = arith.constant dense<0.000000e+00> : vector<2x8x8xf32>
    %146 = tpu.matmul %145, %132, %cst_60 {dimension_numbers = #tpu.dot_dimension_numbers<[2], [1], [1], [2], [0, 0, 0, 1, 1, 2], [0], [0]>} : vector<2x8x8xf32>, vector<2x8x8xf32>, vector<2x8x8xf32> -> vector<2x8x8xf32>
    "tpu.trace_stop"() : () -> ()
    %147 = vector.shape_cast %146 : vector<2x8x8xf32> to vector<16x8xf32>
    %148 = vector.extract_strided_slice %18 {offsets = [2, 0, 0], sizes = [1, 8, 32], strides = [1, 1, 1]} : vector<4x8x32xf32> to vector<1x8x32xf32>
    %149 = vector.shape_cast %148 : vector<1x8x32xf32> to vector<8x32xf32>
    %cst_61 = arith.constant dense<0.000000e+00> : vector<16x32xf32>
    %150 = tpu.matmul %147, %149, %cst_61 {dimension_numbers = #tpu.dot_dimension_numbers<[1], [0], [0], [1], [0, 0, 1, 1], [], []>} : vector<16x8xf32>, vector<8x32xf32>, vector<16x32xf32> -> vector<16x32xf32>
    %151 = arith.addf %108, %150 : vector<16x32xf32>
    %152 = vector.extract_strided_slice %6 {offsets = [3, 0, 0], sizes = [1, 32, 8], strides = [1, 1, 1]} : vector<4x32x8xf32> to vector<1x32x8xf32>
    %153 = vector.shape_cast %152 : vector<1x32x8xf32> to vector<32x8xf32>
    %cst_62 = arith.constant dense<0.000000e+00> : vector<16x8xf32>
    %154 = tpu.matmul %3, %153, %cst_62 {dimension_numbers = #tpu.dot_dimension_numbers<[1], [0], [0], [1], [0, 0, 1, 1], [], []>} : vector<16x32xf32>, vector<32x8xf32>, vector<16x8xf32> -> vector<16x8xf32>
    %155 = vector.extract_strided_slice %8 {offsets = [3, 0, 0], sizes = [1, 1, 8], strides = [1, 1, 1]} : vector<4x1x8xf32> to vector<1x1x8xf32>
    %156 = vector.shape_cast %155 : vector<1x1x8xf32> to vector<1x8xf32>
    %157 = vector.broadcast %156 : vector<1x8xf32> to vector<16x8xf32>
    %158 = arith.addf %154, %157 : vector<16x8xf32>
    %159 = vector.shape_cast %158 : vector<16x8xf32> to vector<2x8x8xf32>
    %160 = vector.extract_strided_slice %10 {offsets = [3, 0, 0], sizes = [1, 32, 8], strides = [1, 1, 1]} : vector<4x32x8xf32> to vector<1x32x8xf32>
    %161 = vector.shape_cast %160 : vector<1x32x8xf32> to vector<32x8xf32>
    %cst_63 = arith.constant dense<0.000000e+00> : vector<16x8xf32>
    %162 = tpu.matmul %3, %161, %cst_63 {dimension_numbers = #tpu.dot_dimension_numbers<[1], [0], [0], [1], [0, 0, 1, 1], [], []>} : vector<16x32xf32>, vector<32x8xf32>, vector<16x8xf32> -> vector<16x8xf32>
    %163 = vector.extract_strided_slice %12 {offsets = [3, 0, 0], sizes = [1, 1, 8], strides = [1, 1, 1]} : vector<4x1x8xf32> to vector<1x1x8xf32>
    %164 = vector.shape_cast %163 : vector<1x1x8xf32> to vector<1x8xf32>
    %165 = vector.broadcast %164 : vector<1x8xf32> to vector<16x8xf32>
    %166 = arith.addf %162, %165 : vector<16x8xf32>
    %167 = vector.shape_cast %166 : vector<16x8xf32> to vector<2x8x8xf32>
    %168 = vector.extract_strided_slice %14 {offsets = [3, 0, 0], sizes = [1, 32, 8], strides = [1, 1, 1]} : vector<4x32x8xf32> to vector<1x32x8xf32>
    %169 = vector.shape_cast %168 : vector<1x32x8xf32> to vector<32x8xf32>
    %cst_64 = arith.constant dense<0.000000e+00> : vector<16x8xf32>
    %170 = tpu.matmul %3, %169, %cst_64 {dimension_numbers = #tpu.dot_dimension_numbers<[1], [0], [0], [1], [0, 0, 1, 1], [], []>} : vector<16x32xf32>, vector<32x8xf32>, vector<16x8xf32> -> vector<16x8xf32>
    %171 = vector.extract_strided_slice %16 {offsets = [3, 0, 0], sizes = [1, 1, 8], strides = [1, 1, 1]} : vector<4x1x8xf32> to vector<1x1x8xf32>
    %172 = vector.shape_cast %171 : vector<1x1x8xf32> to vector<1x8xf32>
    %173 = vector.broadcast %172 : vector<1x8xf32> to vector<16x8xf32>
    %174 = arith.addf %170, %173 : vector<16x8xf32>
    %175 = vector.shape_cast %174 : vector<16x8xf32> to vector<2x8x8xf32>
    "tpu.trace_start"() <{level = 10 : i32, message = "bqe,bke->bqk"}> : () -> ()
    %cst_65 = arith.constant dense<0.000000e+00> : vector<2x8x8xf32>
    %176 = tpu.matmul %159, %167, %cst_65 {dimension_numbers = #tpu.dot_dimension_numbers<[2], [2], [1], [1], [0, 0, 0, 1, 1, 1], [0], [0]>} : vector<2x8x8xf32>, vector<2x8x8xf32>, vector<2x8x8xf32> -> vector<2x8x8xf32>
    "tpu.trace_stop"() : () -> ()
    %177 = vector.broadcast %21 : vector<2x1x8xf32> to vector<2x8x8xf32>
    %178 = arith.addf %176, %177 : vector<2x8x8xf32>
    %cst_66 = arith.constant dense<0xFF800000> : vector<2x8xf32>
    %179 = vector.multi_reduction <maximumf>, %178, %cst_66 [2] : vector<2x8x8xf32> to vector<2x8xf32>
    %180 = vector.shape_cast %179 : vector<2x8xf32> to vector<2x8x1xf32>
    %181 = vector.broadcast %180 : vector<2x8x1xf32> to vector<2x8x8xf32>
    %182 = arith.subf %178, %181 : vector<2x8x8xf32>
    %183 = math.exp %182 : vector<2x8x8xf32>
    %cst_67 = arith.constant dense<0.000000e+00> : vector<2x8xf32>
    %184 = vector.multi_reduction <add>, %183, %cst_67 [2] : vector<2x8x8xf32> to vector<2x8xf32>
    %185 = vector.shape_cast %184 : vector<2x8xf32> to vector<2x8x1xf32>
    %186 = tpu.reciprocal %185 {approx = true} : vector<2x8x1xf32> -> vector<2x8x1xf32>
    %187 = vector.broadcast %186 : vector<2x8x1xf32> to vector<2x8x8xf32>
    %188 = arith.mulf %183, %187 : vector<2x8x8xf32>
    "tpu.trace_start"() <{level = 10 : i32, message = "bqk,bke->bqe"}> : () -> ()
    %cst_68 = arith.constant dense<0.000000e+00> : vector<2x8x8xf32>
    %189 = tpu.matmul %188, %175, %cst_68 {dimension_numbers = #tpu.dot_dimension_numbers<[2], [1], [1], [2], [0, 0, 0, 1, 1, 2], [0], [0]>} : vector<2x8x8xf32>, vector<2x8x8xf32>, vector<2x8x8xf32> -> vector<2x8x8xf32>
    "tpu.trace_stop"() : () -> ()
    %190 = vector.shape_cast %189 : vector<2x8x8xf32> to vector<16x8xf32>
    %191 = vector.extract_strided_slice %18 {offsets = [3, 0, 0], sizes = [1, 8, 32], strides = [1, 1, 1]} : vector<4x8x32xf32> to vector<1x8x32xf32>
    %192 = vector.shape_cast %191 : vector<1x8x32xf32> to vector<8x32xf32>
    %cst_69 = arith.constant dense<0.000000e+00> : vector<16x32xf32>
    %193 = tpu.matmul %190, %192, %cst_69 {dimension_numbers = #tpu.dot_dimension_numbers<[1], [0], [0], [1], [0, 0, 1, 1], [], []>} : vector<16x8xf32>, vector<8x32xf32>, vector<16x32xf32> -> vector<16x32xf32>
    %194 = arith.addf %151, %193 : vector<16x32xf32>
    %195 = vector.broadcast %20 : vector<1x32xf32> to vector<16x32xf32>
    %196 = arith.addf %194, %195 : vector<16x32xf32>
    %197 = arith.addf %3, %196 : vector<16x32xf32>
    %c0_70 = arith.constant 0 : index
    %c0_71 = arith.constant 0 : index
    %c0_72 = arith.constant 0 : index
    %198 = vector.load %arg18[%c0_70, %c0_71, %c0_72] : memref<1x1x32xf32, #tpu.memory_space<vmem>>, vector<1x1x32xf32>
    %199 = vector.shape_cast %198 : vector<1x1x32xf32> to vector<1x32xf32>
    %c0_73 = arith.constant 0 : index
    %c0_74 = arith.constant 0 : index
    %c0_75 = arith.constant 0 : index
    %200 = vector.load %arg19[%c0_73, %c0_74, %c0_75] : memref<1x1x32xf32, #tpu.memory_space<vmem>>, vector<1x1x32xf32>
    %201 = vector.shape_cast %200 : vector<1x1x32xf32> to vector<1x32xf32>
    %cst_76 = arith.constant dense<0.000000e+00> : vector<16xf32>
    %202 = vector.multi_reduction <add>, %197, %cst_76 [1] : vector<16x32xf32> to vector<16xf32>
    %203 = vector.shape_cast %202 : vector<16xf32> to vector<16x1xf32>
    %cst_77 = arith.constant 3.200000e+01 : f32
    %204 = vector.broadcast %cst_77 : f32 to vector<16x1xf32>
    %205 = arith.divf %203, %204 : vector<16x1xf32>
    %206 = vector.broadcast %205 : vector<16x1xf32> to vector<16x32xf32>
    %207 = arith.subf %197, %206 : vector<16x32xf32>
    %208 = arith.mulf %207, %207 : vector<16x32xf32>
    %cst_78 = arith.constant dense<0.000000e+00> : vector<16xf32>
    %209 = vector.multi_reduction <add>, %208, %cst_78 [1] : vector<16x32xf32> to vector<16xf32>
    %210 = vector.shape_cast %209 : vector<16xf32> to vector<16x1xf32>
    %cst_79 = arith.constant 3.200000e+01 : f32
    %211 = vector.broadcast %cst_79 : f32 to vector<16x1xf32>
    %212 = arith.divf %210, %211 : vector<16x1xf32>
    %213 = vector.broadcast %205 : vector<16x1xf32> to vector<16x32xf32>
    %214 = arith.subf %197, %213 : vector<16x32xf32>
    %cst_80 = arith.constant 9.99999996E-13 : f32
    %215 = vector.broadcast %cst_80 : f32 to vector<16x1xf32>
    %216 = arith.addf %212, %215 : vector<16x1xf32>
    %217 = math.rsqrt %216 : vector<16x1xf32>
    %218 = vector.broadcast %217 : vector<16x1xf32> to vector<16x32xf32>
    %219 = arith.mulf %214, %218 : vector<16x32xf32>
    %220 = vector.broadcast %199 : vector<1x32xf32> to vector<16x32xf32>
    %221 = arith.mulf %219, %220 : vector<16x32xf32>
    %222 = vector.broadcast %201 : vector<1x32xf32> to vector<16x32xf32>
    %223 = arith.addf %221, %222 : vector<16x32xf32>
    %c0_81 = arith.constant 0 : index
    %c0_82 = arith.constant 0 : index
    %c0_83 = arith.constant 0 : index
    %c0_84 = arith.constant 0 : index
    %224 = vector.load %arg20[%c0_81, %c0_82, %c0_83, %c0_84] : memref<1x4x32x8xf32, #tpu.memory_space<vmem>>, vector<1x4x32x8xf32>
    %225 = vector.shape_cast %224 : vector<1x4x32x8xf32> to vector<4x32x8xf32>
    %c0_85 = arith.constant 0 : index
    %c0_86 = arith.constant 0 : index
    %c0_87 = arith.constant 0 : index
    %c0_88 = arith.constant 0 : index
    %226 = vector.load %arg21[%c0_85, %c0_86, %c0_87, %c0_88] : memref<1x4x1x8xf32, #tpu.memory_space<vmem>>, vector<1x4x1x8xf32>
    %227 = vector.shape_cast %226 : vector<1x4x1x8xf32> to vector<4x1x8xf32>
    %c0_89 = arith.constant 0 : index
    %c0_90 = arith.constant 0 : index
    %c0_91 = arith.constant 0 : index
    %c0_92 = arith.constant 0 : index
    %228 = vector.load %arg22[%c0_89, %c0_90, %c0_91, %c0_92] : memref<1x4x32x8xf32, #tpu.memory_space<vmem>>, vector<1x4x32x8xf32>
    %229 = vector.shape_cast %228 : vector<1x4x32x8xf32> to vector<4x32x8xf32>
    %c0_93 = arith.constant 0 : index
    %c0_94 = arith.constant 0 : index
    %c0_95 = arith.constant 0 : index
    %c0_96 = arith.constant 0 : index
    %230 = vector.load %arg23[%c0_93, %c0_94, %c0_95, %c0_96] : memref<1x4x1x8xf32, #tpu.memory_space<vmem>>, vector<1x4x1x8xf32>
    %231 = vector.shape_cast %230 : vector<1x4x1x8xf32> to vector<4x1x8xf32>
    %c0_97 = arith.constant 0 : index
    %c0_98 = arith.constant 0 : index
    %c0_99 = arith.constant 0 : index
    %c0_100 = arith.constant 0 : index
    %232 = vector.load %arg24[%c0_97, %c0_98, %c0_99, %c0_100] : memref<1x4x32x8xf32, #tpu.memory_space<vmem>>, vector<1x4x32x8xf32>
    %233 = vector.shape_cast %232 : vector<1x4x32x8xf32> to vector<4x32x8xf32>
    %c0_101 = arith.constant 0 : index
    %c0_102 = arith.constant 0 : index
    %c0_103 = arith.constant 0 : index
    %c0_104 = arith.constant 0 : index
    %234 = vector.load %arg25[%c0_101, %c0_102, %c0_103, %c0_104] : memref<1x4x1x8xf32, #tpu.memory_space<vmem>>, vector<1x4x1x8xf32>
    %235 = vector.shape_cast %234 : vector<1x4x1x8xf32> to vector<4x1x8xf32>
    %c0_105 = arith.constant 0 : index
    %c0_106 = arith.constant 0 : index
    %c0_107 = arith.constant 0 : index
    %c0_108 = arith.constant 0 : index
    %236 = vector.load %arg26[%c0_105, %c0_106, %c0_107, %c0_108] : memref<1x4x8x32xf32, #tpu.memory_space<vmem>>, vector<1x4x8x32xf32>
    %237 = vector.shape_cast %236 : vector<1x4x8x32xf32> to vector<4x8x32xf32>
    %c0_109 = arith.constant 0 : index
    %c0_110 = arith.constant 0 : index
    %c0_111 = arith.constant 0 : index
    %238 = vector.load %arg27[%c0_109, %c0_110, %c0_111] : memref<1x1x32xf32, #tpu.memory_space<vmem>>, vector<1x1x32xf32>
    %239 = vector.shape_cast %238 : vector<1x1x32xf32> to vector<1x32xf32>
    %c0_112 = arith.constant 0 : index
    %c0_113 = arith.constant 0 : index
    %c0_114 = arith.constant 0 : index
    %240 = vector.load %arg6[%c0_112, %c0_113, %c0_114] : memref<2x1x8xf32, #tpu.memory_space<vmem>>, vector<2x1x8xf32>
    %cst_115 = arith.constant 0.000000e+00 : f32
    %241 = vector.broadcast %cst_115 : f32 to vector<16x32xf32>
    %242 = vector.extract_strided_slice %225 {offsets = [0, 0, 0], sizes = [1, 32, 8], strides = [1, 1, 1]} : vector<4x32x8xf32> to vector<1x32x8xf32>
    %243 = vector.shape_cast %242 : vector<1x32x8xf32> to vector<32x8xf32>
    %cst_116 = arith.constant dense<0.000000e+00> : vector<16x8xf32>
    %244 = tpu.matmul %223, %243, %cst_116 {dimension_numbers = #tpu.dot_dimension_numbers<[1], [0], [0], [1], [0, 0, 1, 1], [], []>} : vector<16x32xf32>, vector<32x8xf32>, vector<16x8xf32> -> vector<16x8xf32>
    %245 = vector.extract_strided_slice %227 {offsets = [0, 0, 0], sizes = [1, 1, 8], strides = [1, 1, 1]} : vector<4x1x8xf32> to vector<1x1x8xf32>
    %246 = vector.shape_cast %245 : vector<1x1x8xf32> to vector<1x8xf32>
    %247 = vector.broadcast %246 : vector<1x8xf32> to vector<16x8xf32>
    %248 = arith.addf %244, %247 : vector<16x8xf32>
    %249 = vector.shape_cast %248 : vector<16x8xf32> to vector<2x8x8xf32>
    %250 = vector.extract_strided_slice %229 {offsets = [0, 0, 0], sizes = [1, 32, 8], strides = [1, 1, 1]} : vector<4x32x8xf32> to vector<1x32x8xf32>
    %251 = vector.shape_cast %250 : vector<1x32x8xf32> to vector<32x8xf32>
    %cst_117 = arith.constant dense<0.000000e+00> : vector<16x8xf32>
    %252 = tpu.matmul %4, %251, %cst_117 {dimension_numbers = #tpu.dot_dimension_numbers<[1], [0], [0], [1], [0, 0, 1, 1], [], []>} : vector<16x32xf32>, vector<32x8xf32>, vector<16x8xf32> -> vector<16x8xf32>
    %253 = vector.extract_strided_slice %231 {offsets = [0, 0, 0], sizes = [1, 1, 8], strides = [1, 1, 1]} : vector<4x1x8xf32> to vector<1x1x8xf32>
    %254 = vector.shape_cast %253 : vector<1x1x8xf32> to vector<1x8xf32>
    %255 = vector.broadcast %254 : vector<1x8xf32> to vector<16x8xf32>
    %256 = arith.addf %252, %255 : vector<16x8xf32>
    %257 = vector.shape_cast %256 : vector<16x8xf32> to vector<2x8x8xf32>
    %258 = vector.extract_strided_slice %233 {offsets = [0, 0, 0], sizes = [1, 32, 8], strides = [1, 1, 1]} : vector<4x32x8xf32> to vector<1x32x8xf32>
    %259 = vector.shape_cast %258 : vector<1x32x8xf32> to vector<32x8xf32>
    %cst_118 = arith.constant dense<0.000000e+00> : vector<16x8xf32>
    %260 = tpu.matmul %4, %259, %cst_118 {dimension_numbers = #tpu.dot_dimension_numbers<[1], [0], [0], [1], [0, 0, 1, 1], [], []>} : vector<16x32xf32>, vector<32x8xf32>, vector<16x8xf32> -> vector<16x8xf32>
    %261 = vector.extract_strided_slice %235 {offsets = [0, 0, 0], sizes = [1, 1, 8], strides = [1, 1, 1]} : vector<4x1x8xf32> to vector<1x1x8xf32>
    %262 = vector.shape_cast %261 : vector<1x1x8xf32> to vector<1x8xf32>
    %263 = vector.broadcast %262 : vector<1x8xf32> to vector<16x8xf32>
    %264 = arith.addf %260, %263 : vector<16x8xf32>
    %265 = vector.shape_cast %264 : vector<16x8xf32> to vector<2x8x8xf32>
    "tpu.trace_start"() <{level = 10 : i32, message = "bqe,bke->bqk"}> : () -> ()
    %cst_119 = arith.constant dense<0.000000e+00> : vector<2x8x8xf32>
    %266 = tpu.matmul %249, %257, %cst_119 {dimension_numbers = #tpu.dot_dimension_numbers<[2], [2], [1], [1], [0, 0, 0, 1, 1, 1], [0], [0]>} : vector<2x8x8xf32>, vector<2x8x8xf32>, vector<2x8x8xf32> -> vector<2x8x8xf32>
    "tpu.trace_stop"() : () -> ()
    %267 = vector.broadcast %240 : vector<2x1x8xf32> to vector<2x8x8xf32>
    %268 = arith.addf %266, %267 : vector<2x8x8xf32>
    %cst_120 = arith.constant dense<0xFF800000> : vector<2x8xf32>
    %269 = vector.multi_reduction <maximumf>, %268, %cst_120 [2] : vector<2x8x8xf32> to vector<2x8xf32>
    %270 = vector.shape_cast %269 : vector<2x8xf32> to vector<2x8x1xf32>
    %271 = vector.broadcast %270 : vector<2x8x1xf32> to vector<2x8x8xf32>
    %272 = arith.subf %268, %271 : vector<2x8x8xf32>
    %273 = math.exp %272 : vector<2x8x8xf32>
    %cst_121 = arith.constant dense<0.000000e+00> : vector<2x8xf32>
    %274 = vector.multi_reduction <add>, %273, %cst_121 [2] : vector<2x8x8xf32> to vector<2x8xf32>
    %275 = vector.shape_cast %274 : vector<2x8xf32> to vector<2x8x1xf32>
    %276 = tpu.reciprocal %275 {approx = true} : vector<2x8x1xf32> -> vector<2x8x1xf32>
    %277 = vector.broadcast %276 : vector<2x8x1xf32> to vector<2x8x8xf32>
    %278 = arith.mulf %273, %277 : vector<2x8x8xf32>
    "tpu.trace_start"() <{level = 10 : i32, message = "bqk,bke->bqe"}> : () -> ()
    %cst_122 = arith.constant dense<0.000000e+00> : vector<2x8x8xf32>
    %279 = tpu.matmul %278, %265, %cst_122 {dimension_numbers = #tpu.dot_dimension_numbers<[2], [1], [1], [2], [0, 0, 0, 1, 1, 2], [0], [0]>} : vector<2x8x8xf32>, vector<2x8x8xf32>, vector<2x8x8xf32> -> vector<2x8x8xf32>
    "tpu.trace_stop"() : () -> ()
    %280 = vector.shape_cast %279 : vector<2x8x8xf32> to vector<16x8xf32>
    %281 = vector.extract_strided_slice %237 {offsets = [0, 0, 0], sizes = [1, 8, 32], strides = [1, 1, 1]} : vector<4x8x32xf32> to vector<1x8x32xf32>
    %282 = vector.shape_cast %281 : vector<1x8x32xf32> to vector<8x32xf32>
    %cst_123 = arith.constant dense<0.000000e+00> : vector<16x32xf32>
    %283 = tpu.matmul %280, %282, %cst_123 {dimension_numbers = #tpu.dot_dimension_numbers<[1], [0], [0], [1], [0, 0, 1, 1], [], []>} : vector<16x8xf32>, vector<8x32xf32>, vector<16x32xf32> -> vector<16x32xf32>
    %284 = arith.addf %241, %283 : vector<16x32xf32>
    %285 = vector.extract_strided_slice %225 {offsets = [1, 0, 0], sizes = [1, 32, 8], strides = [1, 1, 1]} : vector<4x32x8xf32> to vector<1x32x8xf32>
    %286 = vector.shape_cast %285 : vector<1x32x8xf32> to vector<32x8xf32>
    %cst_124 = arith.constant dense<0.000000e+00> : vector<16x8xf32>
    %287 = tpu.matmul %223, %286, %cst_124 {dimension_numbers = #tpu.dot_dimension_numbers<[1], [0], [0], [1], [0, 0, 1, 1], [], []>} : vector<16x32xf32>, vector<32x8xf32>, vector<16x8xf32> -> vector<16x8xf32>
    %288 = vector.extract_strided_slice %227 {offsets = [1, 0, 0], sizes = [1, 1, 8], strides = [1, 1, 1]} : vector<4x1x8xf32> to vector<1x1x8xf32>
    %289 = vector.shape_cast %288 : vector<1x1x8xf32> to vector<1x8xf32>
    %290 = vector.broadcast %289 : vector<1x8xf32> to vector<16x8xf32>
    %291 = arith.addf %287, %290 : vector<16x8xf32>
    %292 = vector.shape_cast %291 : vector<16x8xf32> to vector<2x8x8xf32>
    %293 = vector.extract_strided_slice %229 {offsets = [1, 0, 0], sizes = [1, 32, 8], strides = [1, 1, 1]} : vector<4x32x8xf32> to vector<1x32x8xf32>
    %294 = vector.shape_cast %293 : vector<1x32x8xf32> to vector<32x8xf32>
    %cst_125 = arith.constant dense<0.000000e+00> : vector<16x8xf32>
    %295 = tpu.matmul %4, %294, %cst_125 {dimension_numbers = #tpu.dot_dimension_numbers<[1], [0], [0], [1], [0, 0, 1, 1], [], []>} : vector<16x32xf32>, vector<32x8xf32>, vector<16x8xf32> -> vector<16x8xf32>
    %296 = vector.extract_strided_slice %231 {offsets = [1, 0, 0], sizes = [1, 1, 8], strides = [1, 1, 1]} : vector<4x1x8xf32> to vector<1x1x8xf32>
    %297 = vector.shape_cast %296 : vector<1x1x8xf32> to vector<1x8xf32>
    %298 = vector.broadcast %297 : vector<1x8xf32> to vector<16x8xf32>
    %299 = arith.addf %295, %298 : vector<16x8xf32>
    %300 = vector.shape_cast %299 : vector<16x8xf32> to vector<2x8x8xf32>
    %301 = vector.extract_strided_slice %233 {offsets = [1, 0, 0], sizes = [1, 32, 8], strides = [1, 1, 1]} : vector<4x32x8xf32> to vector<1x32x8xf32>
    %302 = vector.shape_cast %301 : vector<1x32x8xf32> to vector<32x8xf32>
    %cst_126 = arith.constant dense<0.000000e+00> : vector<16x8xf32>
    %303 = tpu.matmul %4, %302, %cst_126 {dimension_numbers = #tpu.dot_dimension_numbers<[1], [0], [0], [1], [0, 0, 1, 1], [], []>} : vector<16x32xf32>, vector<32x8xf32>, vector<16x8xf32> -> vector<16x8xf32>
    %304 = vector.extract_strided_slice %235 {offsets = [1, 0, 0], sizes = [1, 1, 8], strides = [1, 1, 1]} : vector<4x1x8xf32> to vector<1x1x8xf32>
    %305 = vector.shape_cast %304 : vector<1x1x8xf32> to vector<1x8xf32>
    %306 = vector.broadcast %305 : vector<1x8xf32> to vector<16x8xf32>
    %307 = arith.addf %303, %306 : vector<16x8xf32>
    %308 = vector.shape_cast %307 : vector<16x8xf32> to vector<2x8x8xf32>
    "tpu.trace_start"() <{level = 10 : i32, message = "bqe,bke->bqk"}> : () -> ()
    %cst_127 = arith.constant dense<0.000000e+00> : vector<2x8x8xf32>
    %309 = tpu.matmul %292, %300, %cst_127 {dimension_numbers = #tpu.dot_dimension_numbers<[2], [2], [1], [1], [0, 0, 0, 1, 1, 1], [0], [0]>} : vector<2x8x8xf32>, vector<2x8x8xf32>, vector<2x8x8xf32> -> vector<2x8x8xf32>
    "tpu.trace_stop"() : () -> ()
    %310 = vector.broadcast %240 : vector<2x1x8xf32> to vector<2x8x8xf32>
    %311 = arith.addf %309, %310 : vector<2x8x8xf32>
    %cst_128 = arith.constant dense<0xFF800000> : vector<2x8xf32>
    %312 = vector.multi_reduction <maximumf>, %311, %cst_128 [2] : vector<2x8x8xf32> to vector<2x8xf32>
    %313 = vector.shape_cast %312 : vector<2x8xf32> to vector<2x8x1xf32>
    %314 = vector.broadcast %313 : vector<2x8x1xf32> to vector<2x8x8xf32>
    %315 = arith.subf %311, %314 : vector<2x8x8xf32>
    %316 = math.exp %315 : vector<2x8x8xf32>
    %cst_129 = arith.constant dense<0.000000e+00> : vector<2x8xf32>
    %317 = vector.multi_reduction <add>, %316, %cst_129 [2] : vector<2x8x8xf32> to vector<2x8xf32>
    %318 = vector.shape_cast %317 : vector<2x8xf32> to vector<2x8x1xf32>
    %319 = tpu.reciprocal %318 {approx = true} : vector<2x8x1xf32> -> vector<2x8x1xf32>
    %320 = vector.broadcast %319 : vector<2x8x1xf32> to vector<2x8x8xf32>
    %321 = arith.mulf %316, %320 : vector<2x8x8xf32>
    "tpu.trace_start"() <{level = 10 : i32, message = "bqk,bke->bqe"}> : () -> ()
    %cst_130 = arith.constant dense<0.000000e+00> : vector<2x8x8xf32>
    %322 = tpu.matmul %321, %308, %cst_130 {dimension_numbers = #tpu.dot_dimension_numbers<[2], [1], [1], [2], [0, 0, 0, 1, 1, 2], [0], [0]>} : vector<2x8x8xf32>, vector<2x8x8xf32>, vector<2x8x8xf32> -> vector<2x8x8xf32>
    "tpu.trace_stop"() : () -> ()
    %323 = vector.shape_cast %322 : vector<2x8x8xf32> to vector<16x8xf32>
    %324 = vector.extract_strided_slice %237 {offsets = [1, 0, 0], sizes = [1, 8, 32], strides = [1, 1, 1]} : vector<4x8x32xf32> to vector<1x8x32xf32>
    %325 = vector.shape_cast %324 : vector<1x8x32xf32> to vector<8x32xf32>
    %cst_131 = arith.constant dense<0.000000e+00> : vector<16x32xf32>
    %326 = tpu.matmul %323, %325, %cst_131 {dimension_numbers = #tpu.dot_dimension_numbers<[1], [0], [0], [1], [0, 0, 1, 1], [], []>} : vector<16x8xf32>, vector<8x32xf32>, vector<16x32xf32> -> vector<16x32xf32>
    %327 = arith.addf %284, %326 : vector<16x32xf32>
    %328 = vector.extract_strided_slice %225 {offsets = [2, 0, 0], sizes = [1, 32, 8], strides = [1, 1, 1]} : vector<4x32x8xf32> to vector<1x32x8xf32>
    %329 = vector.shape_cast %328 : vector<1x32x8xf32> to vector<32x8xf32>
    %cst_132 = arith.constant dense<0.000000e+00> : vector<16x8xf32>
    %330 = tpu.matmul %223, %329, %cst_132 {dimension_numbers = #tpu.dot_dimension_numbers<[1], [0], [0], [1], [0, 0, 1, 1], [], []>} : vector<16x32xf32>, vector<32x8xf32>, vector<16x8xf32> -> vector<16x8xf32>
    %331 = vector.extract_strided_slice %227 {offsets = [2, 0, 0], sizes = [1, 1, 8], strides = [1, 1, 1]} : vector<4x1x8xf32> to vector<1x1x8xf32>
    %332 = vector.shape_cast %331 : vector<1x1x8xf32> to vector<1x8xf32>
    %333 = vector.broadcast %332 : vector<1x8xf32> to vector<16x8xf32>
    %334 = arith.addf %330, %333 : vector<16x8xf32>
    %335 = vector.shape_cast %334 : vector<16x8xf32> to vector<2x8x8xf32>
    %336 = vector.extract_strided_slice %229 {offsets = [2, 0, 0], sizes = [1, 32, 8], strides = [1, 1, 1]} : vector<4x32x8xf32> to vector<1x32x8xf32>
    %337 = vector.shape_cast %336 : vector<1x32x8xf32> to vector<32x8xf32>
    %cst_133 = arith.constant dense<0.000000e+00> : vector<16x8xf32>
    %338 = tpu.matmul %4, %337, %cst_133 {dimension_numbers = #tpu.dot_dimension_numbers<[1], [0], [0], [1], [0, 0, 1, 1], [], []>} : vector<16x32xf32>, vector<32x8xf32>, vector<16x8xf32> -> vector<16x8xf32>
    %339 = vector.extract_strided_slice %231 {offsets = [2, 0, 0], sizes = [1, 1, 8], strides = [1, 1, 1]} : vector<4x1x8xf32> to vector<1x1x8xf32>
    %340 = vector.shape_cast %339 : vector<1x1x8xf32> to vector<1x8xf32>
    %341 = vector.broadcast %340 : vector<1x8xf32> to vector<16x8xf32>
    %342 = arith.addf %338, %341 : vector<16x8xf32>
    %343 = vector.shape_cast %342 : vector<16x8xf32> to vector<2x8x8xf32>
    %344 = vector.extract_strided_slice %233 {offsets = [2, 0, 0], sizes = [1, 32, 8], strides = [1, 1, 1]} : vector<4x32x8xf32> to vector<1x32x8xf32>
    %345 = vector.shape_cast %344 : vector<1x32x8xf32> to vector<32x8xf32>
    %cst_134 = arith.constant dense<0.000000e+00> : vector<16x8xf32>
    %346 = tpu.matmul %4, %345, %cst_134 {dimension_numbers = #tpu.dot_dimension_numbers<[1], [0], [0], [1], [0, 0, 1, 1], [], []>} : vector<16x32xf32>, vector<32x8xf32>, vector<16x8xf32> -> vector<16x8xf32>
    %347 = vector.extract_strided_slice %235 {offsets = [2, 0, 0], sizes = [1, 1, 8], strides = [1, 1, 1]} : vector<4x1x8xf32> to vector<1x1x8xf32>
    %348 = vector.shape_cast %347 : vector<1x1x8xf32> to vector<1x8xf32>
    %349 = vector.broadcast %348 : vector<1x8xf32> to vector<16x8xf32>
    %350 = arith.addf %346, %349 : vector<16x8xf32>
    %351 = vector.shape_cast %350 : vector<16x8xf32> to vector<2x8x8xf32>
    "tpu.trace_start"() <{level = 10 : i32, message = "bqe,bke->bqk"}> : () -> ()
    %cst_135 = arith.constant dense<0.000000e+00> : vector<2x8x8xf32>
    %352 = tpu.matmul %335, %343, %cst_135 {dimension_numbers = #tpu.dot_dimension_numbers<[2], [2], [1], [1], [0, 0, 0, 1, 1, 1], [0], [0]>} : vector<2x8x8xf32>, vector<2x8x8xf32>, vector<2x8x8xf32> -> vector<2x8x8xf32>
    "tpu.trace_stop"() : () -> ()
    %353 = vector.broadcast %240 : vector<2x1x8xf32> to vector<2x8x8xf32>
    %354 = arith.addf %352, %353 : vector<2x8x8xf32>
    %cst_136 = arith.constant dense<0xFF800000> : vector<2x8xf32>
    %355 = vector.multi_reduction <maximumf>, %354, %cst_136 [2] : vector<2x8x8xf32> to vector<2x8xf32>
    %356 = vector.shape_cast %355 : vector<2x8xf32> to vector<2x8x1xf32>
    %357 = vector.broadcast %356 : vector<2x8x1xf32> to vector<2x8x8xf32>
    %358 = arith.subf %354, %357 : vector<2x8x8xf32>
    %359 = math.exp %358 : vector<2x8x8xf32>
    %cst_137 = arith.constant dense<0.000000e+00> : vector<2x8xf32>
    %360 = vector.multi_reduction <add>, %359, %cst_137 [2] : vector<2x8x8xf32> to vector<2x8xf32>
    %361 = vector.shape_cast %360 : vector<2x8xf32> to vector<2x8x1xf32>
    %362 = tpu.reciprocal %361 {approx = true} : vector<2x8x1xf32> -> vector<2x8x1xf32>
    %363 = vector.broadcast %362 : vector<2x8x1xf32> to vector<2x8x8xf32>
    %364 = arith.mulf %359, %363 : vector<2x8x8xf32>
    "tpu.trace_start"() <{level = 10 : i32, message = "bqk,bke->bqe"}> : () -> ()
    %cst_138 = arith.constant dense<0.000000e+00> : vector<2x8x8xf32>
    %365 = tpu.matmul %364, %351, %cst_138 {dimension_numbers = #tpu.dot_dimension_numbers<[2], [1], [1], [2], [0, 0, 0, 1, 1, 2], [0], [0]>} : vector<2x8x8xf32>, vector<2x8x8xf32>, vector<2x8x8xf32> -> vector<2x8x8xf32>
    "tpu.trace_stop"() : () -> ()
    %366 = vector.shape_cast %365 : vector<2x8x8xf32> to vector<16x8xf32>
    %367 = vector.extract_strided_slice %237 {offsets = [2, 0, 0], sizes = [1, 8, 32], strides = [1, 1, 1]} : vector<4x8x32xf32> to vector<1x8x32xf32>
    %368 = vector.shape_cast %367 : vector<1x8x32xf32> to vector<8x32xf32>
    %cst_139 = arith.constant dense<0.000000e+00> : vector<16x32xf32>
    %369 = tpu.matmul %366, %368, %cst_139 {dimension_numbers = #tpu.dot_dimension_numbers<[1], [0], [0], [1], [0, 0, 1, 1], [], []>} : vector<16x8xf32>, vector<8x32xf32>, vector<16x32xf32> -> vector<16x32xf32>
    %370 = arith.addf %327, %369 : vector<16x32xf32>
    %371 = vector.extract_strided_slice %225 {offsets = [3, 0, 0], sizes = [1, 32, 8], strides = [1, 1, 1]} : vector<4x32x8xf32> to vector<1x32x8xf32>
    %372 = vector.shape_cast %371 : vector<1x32x8xf32> to vector<32x8xf32>
    %cst_140 = arith.constant dense<0.000000e+00> : vector<16x8xf32>
    %373 = tpu.matmul %223, %372, %cst_140 {dimension_numbers = #tpu.dot_dimension_numbers<[1], [0], [0], [1], [0, 0, 1, 1], [], []>} : vector<16x32xf32>, vector<32x8xf32>, vector<16x8xf32> -> vector<16x8xf32>
    %374 = vector.extract_strided_slice %227 {offsets = [3, 0, 0], sizes = [1, 1, 8], strides = [1, 1, 1]} : vector<4x1x8xf32> to vector<1x1x8xf32>
    %375 = vector.shape_cast %374 : vector<1x1x8xf32> to vector<1x8xf32>
    %376 = vector.broadcast %375 : vector<1x8xf32> to vector<16x8xf32>
    %377 = arith.addf %373, %376 : vector<16x8xf32>
    %378 = vector.shape_cast %377 : vector<16x8xf32> to vector<2x8x8xf32>
    %379 = vector.extract_strided_slice %229 {offsets = [3, 0, 0], sizes = [1, 32, 8], strides = [1, 1, 1]} : vector<4x32x8xf32> to vector<1x32x8xf32>
    %380 = vector.shape_cast %379 : vector<1x32x8xf32> to vector<32x8xf32>
    %cst_141 = arith.constant dense<0.000000e+00> : vector<16x8xf32>
    %381 = tpu.matmul %4, %380, %cst_141 {dimension_numbers = #tpu.dot_dimension_numbers<[1], [0], [0], [1], [0, 0, 1, 1], [], []>} : vector<16x32xf32>, vector<32x8xf32>, vector<16x8xf32> -> vector<16x8xf32>
    %382 = vector.extract_strided_slice %231 {offsets = [3, 0, 0], sizes = [1, 1, 8], strides = [1, 1, 1]} : vector<4x1x8xf32> to vector<1x1x8xf32>
    %383 = vector.shape_cast %382 : vector<1x1x8xf32> to vector<1x8xf32>
    %384 = vector.broadcast %383 : vector<1x8xf32> to vector<16x8xf32>
    %385 = arith.addf %381, %384 : vector<16x8xf32>
    %386 = vector.shape_cast %385 : vector<16x8xf32> to vector<2x8x8xf32>
    %387 = vector.extract_strided_slice %233 {offsets = [3, 0, 0], sizes = [1, 32, 8], strides = [1, 1, 1]} : vector<4x32x8xf32> to vector<1x32x8xf32>
    %388 = vector.shape_cast %387 : vector<1x32x8xf32> to vector<32x8xf32>
    %cst_142 = arith.constant dense<0.000000e+00> : vector<16x8xf32>
    %389 = tpu.matmul %4, %388, %cst_142 {dimension_numbers = #tpu.dot_dimension_numbers<[1], [0], [0], [1], [0, 0, 1, 1], [], []>} : vector<16x32xf32>, vector<32x8xf32>, vector<16x8xf32> -> vector<16x8xf32>
    %390 = vector.extract_strided_slice %235 {offsets = [3, 0, 0], sizes = [1, 1, 8], strides = [1, 1, 1]} : vector<4x1x8xf32> to vector<1x1x8xf32>
    %391 = vector.shape_cast %390 : vector<1x1x8xf32> to vector<1x8xf32>
    %392 = vector.broadcast %391 : vector<1x8xf32> to vector<16x8xf32>
    %393 = arith.addf %389, %392 : vector<16x8xf32>
    %394 = vector.shape_cast %393 : vector<16x8xf32> to vector<2x8x8xf32>
    "tpu.trace_start"() <{level = 10 : i32, message = "bqe,bke->bqk"}> : () -> ()
    %cst_143 = arith.constant dense<0.000000e+00> : vector<2x8x8xf32>
    %395 = tpu.matmul %378, %386, %cst_143 {dimension_numbers = #tpu.dot_dimension_numbers<[2], [2], [1], [1], [0, 0, 0, 1, 1, 1], [0], [0]>} : vector<2x8x8xf32>, vector<2x8x8xf32>, vector<2x8x8xf32> -> vector<2x8x8xf32>
    "tpu.trace_stop"() : () -> ()
    %396 = vector.broadcast %240 : vector<2x1x8xf32> to vector<2x8x8xf32>
    %397 = arith.addf %395, %396 : vector<2x8x8xf32>
    %cst_144 = arith.constant dense<0xFF800000> : vector<2x8xf32>
    %398 = vector.multi_reduction <maximumf>, %397, %cst_144 [2] : vector<2x8x8xf32> to vector<2x8xf32>
    %399 = vector.shape_cast %398 : vector<2x8xf32> to vector<2x8x1xf32>
    %400 = vector.broadcast %399 : vector<2x8x1xf32> to vector<2x8x8xf32>
    %401 = arith.subf %397, %400 : vector<2x8x8xf32>
    %402 = math.exp %401 : vector<2x8x8xf32>
    %cst_145 = arith.constant dense<0.000000e+00> : vector<2x8xf32>
    %403 = vector.multi_reduction <add>, %402, %cst_145 [2] : vector<2x8x8xf32> to vector<2x8xf32>
    %404 = vector.shape_cast %403 : vector<2x8xf32> to vector<2x8x1xf32>
    %405 = tpu.reciprocal %404 {approx = true} : vector<2x8x1xf32> -> vector<2x8x1xf32>
    %406 = vector.broadcast %405 : vector<2x8x1xf32> to vector<2x8x8xf32>
    %407 = arith.mulf %402, %406 : vector<2x8x8xf32>
    "tpu.trace_start"() <{level = 10 : i32, message = "bqk,bke->bqe"}> : () -> ()
    %cst_146 = arith.constant dense<0.000000e+00> : vector<2x8x8xf32>
    %408 = tpu.matmul %407, %394, %cst_146 {dimension_numbers = #tpu.dot_dimension_numbers<[2], [1], [1], [2], [0, 0, 0, 1, 1, 2], [0], [0]>} : vector<2x8x8xf32>, vector<2x8x8xf32>, vector<2x8x8xf32> -> vector<2x8x8xf32>
    "tpu.trace_stop"() : () -> ()
    %409 = vector.shape_cast %408 : vector<2x8x8xf32> to vector<16x8xf32>
    %410 = vector.extract_strided_slice %237 {offsets = [3, 0, 0], sizes = [1, 8, 32], strides = [1, 1, 1]} : vector<4x8x32xf32> to vector<1x8x32xf32>
    %411 = vector.shape_cast %410 : vector<1x8x32xf32> to vector<8x32xf32>
    %cst_147 = arith.constant dense<0.000000e+00> : vector<16x32xf32>
    %412 = tpu.matmul %409, %411, %cst_147 {dimension_numbers = #tpu.dot_dimension_numbers<[1], [0], [0], [1], [0, 0, 1, 1], [], []>} : vector<16x8xf32>, vector<8x32xf32>, vector<16x32xf32> -> vector<16x32xf32>
    %413 = arith.addf %370, %412 : vector<16x32xf32>
    %414 = vector.broadcast %239 : vector<1x32xf32> to vector<16x32xf32>
    %415 = arith.addf %413, %414 : vector<16x32xf32>
    %416 = arith.addf %223, %415 : vector<16x32xf32>
    %c0_148 = arith.constant 0 : index
    %c0_149 = arith.constant 0 : index
    %c0_150 = arith.constant 0 : index
    %417 = vector.load %arg28[%c0_148, %c0_149, %c0_150] : memref<1x1x32xf32, #tpu.memory_space<vmem>>, vector<1x1x32xf32>
    %418 = vector.shape_cast %417 : vector<1x1x32xf32> to vector<1x32xf32>
    %c0_151 = arith.constant 0 : index
    %c0_152 = arith.constant 0 : index
    %c0_153 = arith.constant 0 : index
    %419 = vector.load %arg29[%c0_151, %c0_152, %c0_153] : memref<1x1x32xf32, #tpu.memory_space<vmem>>, vector<1x1x32xf32>
    %420 = vector.shape_cast %419 : vector<1x1x32xf32> to vector<1x32xf32>
    %cst_154 = arith.constant dense<0.000000e+00> : vector<16xf32>
    %421 = vector.multi_reduction <add>, %416, %cst_154 [1] : vector<16x32xf32> to vector<16xf32>
    %422 = vector.shape_cast %421 : vector<16xf32> to vector<16x1xf32>
    %cst_155 = arith.constant 3.200000e+01 : f32
    %423 = vector.broadcast %cst_155 : f32 to vector<16x1xf32>
    %424 = arith.divf %422, %423 : vector<16x1xf32>
    %425 = vector.broadcast %424 : vector<16x1xf32> to vector<16x32xf32>
    %426 = arith.subf %416, %425 : vector<16x32xf32>
    %427 = arith.mulf %426, %426 : vector<16x32xf32>
    %cst_156 = arith.constant dense<0.000000e+00> : vector<16xf32>
    %428 = vector.multi_reduction <add>, %427, %cst_156 [1] : vector<16x32xf32> to vector<16xf32>
    %429 = vector.shape_cast %428 : vector<16xf32> to vector<16x1xf32>
    %cst_157 = arith.constant 3.200000e+01 : f32
    %430 = vector.broadcast %cst_157 : f32 to vector<16x1xf32>
    %431 = arith.divf %429, %430 : vector<16x1xf32>
    %432 = vector.broadcast %424 : vector<16x1xf32> to vector<16x32xf32>
    %433 = arith.subf %416, %432 : vector<16x32xf32>
    %cst_158 = arith.constant 9.99999996E-13 : f32
    %434 = vector.broadcast %cst_158 : f32 to vector<16x1xf32>
    %435 = arith.addf %431, %434 : vector<16x1xf32>
    %436 = math.rsqrt %435 : vector<16x1xf32>
    %437 = vector.broadcast %436 : vector<16x1xf32> to vector<16x32xf32>
    %438 = arith.mulf %433, %437 : vector<16x32xf32>
    %439 = vector.broadcast %418 : vector<1x32xf32> to vector<16x32xf32>
    %440 = arith.mulf %438, %439 : vector<16x32xf32>
    %441 = vector.broadcast %420 : vector<1x32xf32> to vector<16x32xf32>
    %442 = arith.addf %440, %441 : vector<16x32xf32>
    %c0_159 = arith.constant 0 : index
    %c0_160 = arith.constant 0 : index
    %c0_161 = arith.constant 0 : index
    %443 = vector.load %arg30[%c0_159, %c0_160, %c0_161] : memref<1x32x128xf32, #tpu.memory_space<vmem>>, vector<1x32x128xf32>
    %444 = vector.shape_cast %443 : vector<1x32x128xf32> to vector<32x128xf32>
    %cst_162 = arith.constant dense<0.000000e+00> : vector<16x128xf32>
    %445 = tpu.matmul %442, %444, %cst_162 {dimension_numbers = #tpu.dot_dimension_numbers<[1], [0], [0], [1], [0, 0, 1, 1], [], []>} : vector<16x32xf32>, vector<32x128xf32>, vector<16x128xf32> -> vector<16x128xf32>
    %c0_163 = arith.constant 0 : index
    %c0_164 = arith.constant 0 : index
    %c0_165 = arith.constant 0 : index
    %446 = vector.load %arg31[%c0_163, %c0_164, %c0_165] : memref<1x1x128xf32, #tpu.memory_space<vmem>>, vector<1x1x128xf32>
    %447 = vector.shape_cast %446 : vector<1x1x128xf32> to vector<1x128xf32>
    %448 = vector.broadcast %447 : vector<1x128xf32> to vector<16x128xf32>
    %449 = arith.addf %445, %448 : vector<16x128xf32>
    %cst_166 = arith.constant 5.000000e-01 : f32
    %450 = vector.broadcast %cst_166 : f32 to vector<16x128xf32>
    %451 = arith.mulf %450, %449 : vector<16x128xf32>
    %cst_167 = arith.constant 0.707106769 : f32
    %452 = vector.broadcast %cst_167 : f32 to vector<16x128xf32>
    %453 = arith.mulf %449, %452 : vector<16x128xf32>
    %454 = math.absf %453 : vector<16x128xf32>
    %cst_168 = arith.constant 0.327591091 : f32
    %455 = vector.broadcast %cst_168 : f32 to vector<16x128xf32>
    %456 = arith.mulf %455, %454 : vector<16x128xf32>
    %cst_169 = arith.constant 1.000000e+00 : f32
    %457 = vector.broadcast %cst_169 : f32 to vector<16x128xf32>
    %458 = arith.addf %457, %456 : vector<16x128xf32>
    %cst_170 = arith.constant 1.000000e+00 : f32
    %459 = vector.broadcast %cst_170 : f32 to vector<16x128xf32>
    %460 = arith.divf %459, %458 : vector<16x128xf32>
    %cst_171 = arith.constant 1.06140542 : f32
    %461 = vector.broadcast %cst_171 : f32 to vector<16x128xf32>
    %462 = arith.mulf %461, %460 : vector<16x128xf32>
    %cst_172 = arith.constant -1.45315206 : f32
    %463 = vector.broadcast %cst_172 : f32 to vector<16x128xf32>
    %464 = arith.addf %462, %463 : vector<16x128xf32>
    %465 = arith.mulf %464, %460 : vector<16x128xf32>
    %cst_173 = arith.constant 1.42141378 : f32
    %466 = vector.broadcast %cst_173 : f32 to vector<16x128xf32>
    %467 = arith.addf %465, %466 : vector<16x128xf32>
    %468 = arith.mulf %467, %460 : vector<16x128xf32>
    %cst_174 = arith.constant -0.284496725 : f32
    %469 = vector.broadcast %cst_174 : f32 to vector<16x128xf32>
    %470 = arith.addf %468, %469 : vector<16x128xf32>
    %471 = arith.mulf %470, %460 : vector<16x128xf32>
    %cst_175 = arith.constant 0.254829586 : f32
    %472 = vector.broadcast %cst_175 : f32 to vector<16x128xf32>
    %473 = arith.addf %471, %472 : vector<16x128xf32>
    %474 = arith.mulf %473, %460 : vector<16x128xf32>
    %cst_176 = arith.constant 0.000000e+00 : f32
    %475 = vector.broadcast %cst_176 : f32 to vector<16x128xf32>
    %476 = arith.subf %475, %454 : vector<16x128xf32>
    %477 = arith.mulf %476, %454 : vector<16x128xf32>
    %478 = math.exp %477 : vector<16x128xf32>
    %479 = arith.mulf %474, %478 : vector<16x128xf32>
    %cst_177 = arith.constant 1.000000e+00 : f32
    %480 = vector.broadcast %cst_177 : f32 to vector<16x128xf32>
    %481 = arith.subf %480, %479 : vector<16x128xf32>
    %cst_178 = arith.constant 0.000000e+00 : f32
    %482 = vector.broadcast %cst_178 : f32 to vector<16x128xf32>
    %483 = arith.cmpf olt, %453, %482 : vector<16x128xf32>
    %cst_179 = arith.constant 0.000000e+00 : f32
    %484 = vector.broadcast %cst_179 : f32 to vector<16x128xf32>
    %485 = arith.subf %484, %481 : vector<16x128xf32>
    %486 = arith.select %483, %485, %481 : vector<16x128xi1>, vector<16x128xf32>
    %cst_180 = arith.constant 1.000000e+00 : f32
    %487 = vector.broadcast %cst_180 : f32 to vector<16x128xf32>
    %488 = arith.addf %487, %486 : vector<16x128xf32>
    %489 = arith.mulf %451, %488 : vector<16x128xf32>
    %c0_181 = arith.constant 0 : index
    %c0_182 = arith.constant 0 : index
    %c0_183 = arith.constant 0 : index
    %490 = vector.load %arg32[%c0_181, %c0_182, %c0_183] : memref<1x128x32xf32, #tpu.memory_space<vmem>>, vector<1x128x32xf32>
    %491 = vector.shape_cast %490 : vector<1x128x32xf32> to vector<128x32xf32>
    %cst_184 = arith.constant dense<0.000000e+00> : vector<16x32xf32>
    %492 = tpu.matmul %489, %491, %cst_184 {dimension_numbers = #tpu.dot_dimension_numbers<[1], [0], [0], [1], [0, 0, 1, 1], [], []>} : vector<16x128xf32>, vector<128x32xf32>, vector<16x32xf32> -> vector<16x32xf32>
    %c0_185 = arith.constant 0 : index
    %c0_186 = arith.constant 0 : index
    %c0_187 = arith.constant 0 : index
    %493 = vector.load %arg33[%c0_185, %c0_186, %c0_187] : memref<1x1x32xf32, #tpu.memory_space<vmem>>, vector<1x1x32xf32>
    %494 = vector.shape_cast %493 : vector<1x1x32xf32> to vector<1x32xf32>
    %495 = vector.broadcast %494 : vector<1x32xf32> to vector<16x32xf32>
    %496 = arith.addf %492, %495 : vector<16x32xf32>
    %497 = arith.addf %442, %496 : vector<16x32xf32>
    %c0_188 = arith.constant 0 : index
    %c0_189 = arith.constant 0 : index
    %c0_190 = arith.constant 0 : index
    %498 = vector.load %arg34[%c0_188, %c0_189, %c0_190] : memref<1x1x32xf32, #tpu.memory_space<vmem>>, vector<1x1x32xf32>
    %499 = vector.shape_cast %498 : vector<1x1x32xf32> to vector<1x32xf32>
    %c0_191 = arith.constant 0 : index
    %c0_192 = arith.constant 0 : index
    %c0_193 = arith.constant 0 : index
    %500 = vector.load %arg35[%c0_191, %c0_192, %c0_193] : memref<1x1x32xf32, #tpu.memory_space<vmem>>, vector<1x1x32xf32>
    %501 = vector.shape_cast %500 : vector<1x1x32xf32> to vector<1x32xf32>
    %cst_194 = arith.constant dense<0.000000e+00> : vector<16xf32>
    %502 = vector.multi_reduction <add>, %497, %cst_194 [1] : vector<16x32xf32> to vector<16xf32>
    %503 = vector.shape_cast %502 : vector<16xf32> to vector<16x1xf32>
    %cst_195 = arith.constant 3.200000e+01 : f32
    %504 = vector.broadcast %cst_195 : f32 to vector<16x1xf32>
    %505 = arith.divf %503, %504 : vector<16x1xf32>
    %506 = vector.broadcast %505 : vector<16x1xf32> to vector<16x32xf32>
    %507 = arith.subf %497, %506 : vector<16x32xf32>
    %508 = arith.mulf %507, %507 : vector<16x32xf32>
    %cst_196 = arith.constant dense<0.000000e+00> : vector<16xf32>
    %509 = vector.multi_reduction <add>, %508, %cst_196 [1] : vector<16x32xf32> to vector<16xf32>
    %510 = vector.shape_cast %509 : vector<16xf32> to vector<16x1xf32>
    %cst_197 = arith.constant 3.200000e+01 : f32
    %511 = vector.broadcast %cst_197 : f32 to vector<16x1xf32>
    %512 = arith.divf %510, %511 : vector<16x1xf32>
    %513 = vector.broadcast %505 : vector<16x1xf32> to vector<16x32xf32>
    %514 = arith.subf %497, %513 : vector<16x32xf32>
    %cst_198 = arith.constant 9.99999996E-13 : f32
    %515 = vector.broadcast %cst_198 : f32 to vector<16x1xf32>
    %516 = arith.addf %512, %515 : vector<16x1xf32>
    %517 = math.rsqrt %516 : vector<16x1xf32>
    %518 = vector.broadcast %517 : vector<16x1xf32> to vector<16x32xf32>
    %519 = arith.mulf %514, %518 : vector<16x32xf32>
    %520 = vector.broadcast %499 : vector<1x32xf32> to vector<16x32xf32>
    %521 = arith.mulf %519, %520 : vector<16x32xf32>
    %522 = vector.broadcast %501 : vector<1x32xf32> to vector<16x32xf32>
    %523 = arith.addf %521, %522 : vector<16x32xf32>
    %c0_199 = arith.constant 0 : index
    %c0_200 = arith.constant 0 : index
    %524 = vector.load %arg37[%c0_199, %c0_200] : memref<16x32xf32, #tpu.memory_space<vmem>>, vector<16x32xf32>
    tpu.vector_store %arg37[%c0_199, %c0_200], %523 {strides = array<i32>} : memref<16x32xf32, #tpu.memory_space<vmem>>, vector<16x32xf32>,
    %c1_i32 = arith.constant 1 : i32
    %525 = arith.cmpi eq, %arg0, %c1_i32 : i32
    %526 = arith.extui %525 : i1 to i32
    %c0_i32_201 = arith.constant 0 : i32
    %527 = arith.cmpi ne, %526, %c0_i32_201 : i32
    scf.if %527 {
      %c0_202 = arith.constant 0 : index
      %c0_203 = arith.constant 0 : index
      %528 = vector.load %arg7[%c0_202, %c0_203] : memref<2x16xf32, #tpu.memory_space<vmem>>, vector<2x16xf32>
      %cst_204 = arith.constant dense<0.000000e+00> : vector<2x32xf32>
      %529 = tpu.matmul %528, %523, %cst_204 {dimension_numbers = #tpu.dot_dimension_numbers<[1], [0], [0], [1], [0, 0, 1, 1], [], []>} : vector<2x16xf32>, vector<16x32xf32>, vector<2x32xf32> -> vector<2x32xf32>
      %c0_205 = arith.constant 0 : index
      %c0_206 = arith.constant 0 : index
      %530 = vector.load %arg8[%c0_205, %c0_206] : memref<32x1xf32, #tpu.memory_space<vmem>>, vector<32x1xf32>
      %cst_207 = arith.constant dense<0.000000e+00> : vector<2x1xf32>
      %531 = tpu.matmul %529, %530, %cst_207 {dimension_numbers = #tpu.dot_dimension_numbers<[1], [0], [0], [1], [0, 0, 1, 1], [], []>} : vector<2x32xf32>, vector<32x1xf32>, vector<2x1xf32> -> vector<2x1xf32>
      %c0_208 = arith.constant 0 : index
      %c0_209 = arith.constant 0 : index
      %532 = vector.load %arg9[%c0_208, %c0_209] : memref<1x1xf32, #tpu.memory_space<vmem>>, vector<1x1xf32>
      %533 = vector.broadcast %532 : vector<1x1xf32> to vector<2x1xf32>
      %534 = arith.addf %531, %533 : vector<2x1xf32>
      %c0_210 = arith.constant 0 : index
      %c0_211 = arith.constant 0 : index
      %535 = vector.load %arg36[%c0_210, %c0_211] : memref<2x1xf32, #tpu.memory_space<vmem>>, vector<2x1xf32>
      tpu.vector_store %arg36[%c0_210, %c0_211], %534 {strides = array<i32>} : memref<2x1xf32, #tpu.memory_space<vmem>>, vector<2x1xf32>,
    } else {
    }
    return
  }
  func.func @transform_0(%arg0: i32) -> (i32, i32) {
    %c0_i32 = arith.constant 0 : i32
    %c0_i32_0 = arith.constant 0 : i32
    %c0_i32_1 = arith.constant 0 : i32
    return %c0_i32, %c0_i32_0 : i32, i32
  }
  func.func @transform_1(%arg0: i32) -> (i32, i32) {
    %c0_i32 = arith.constant 0 : i32
    %c0_i32_0 = arith.constant 0 : i32
    %c0_i32_1 = arith.constant 0 : i32
    return %c0_i32, %c0_i32_0 : i32, i32
  }
  func.func @transform_2(%arg0: i32) -> (i32, i32) {
    %c0_i32 = arith.constant 0 : i32
    %c0_i32_0 = arith.constant 0 : i32
    %c0_i32_1 = arith.constant 0 : i32
    return %c0_i32, %c0_i32_0 : i32, i32
  }
  func.func @transform_3(%arg0: i32) -> (i32, i32) {
    %c0_i32 = arith.constant 0 : i32
    %c0_i32_0 = arith.constant 0 : i32
    %c0_i32_1 = arith.constant 0 : i32
    return %c0_i32, %c0_i32_0 : i32, i32
  }
  func.func @transform_4(%arg0: i32) -> (i32, i32, i32) {
    %c0_i32 = arith.constant 0 : i32
    %c0_i32_0 = arith.constant 0 : i32
    %c0_i32_1 = arith.constant 0 : i32
    %c0_i32_2 = arith.constant 0 : i32
    return %c0_i32, %c0_i32_0, %c0_i32_1 : i32, i32, i32
  }
  func.func @transform_5(%arg0: i32) -> (i32, i32, i32) {
    %c0_i32 = arith.constant 0 : i32
    %c0_i32_0 = arith.constant 0 : i32
    %c0_i32_1 = arith.constant 0 : i32
    %c0_i32_2 = arith.constant 0 : i32
    return %c0_i32, %c0_i32_0, %c0_i32_1 : i32, i32, i32
  }
  func.func @transform_6(%arg0: i32) -> (i32, i32) {
    %c0_i32 = arith.constant 0 : i32
    %c0_i32_0 = arith.constant 0 : i32
    %c0_i32_1 = arith.constant 0 : i32
    return %c0_i32, %c0_i32_0 : i32, i32
  }
  func.func @transform_7(%arg0: i32) -> (i32, i32) {
    %c0_i32 = arith.constant 0 : i32
    %c0_i32_0 = arith.constant 0 : i32
    %c0_i32_1 = arith.constant 0 : i32
    return %c0_i32, %c0_i32_0 : i32, i32
  }
  func.func @transform_8(%arg0: i32) -> (i32, i32) {
    %c0_i32 = arith.constant 0 : i32
    %c0_i32_0 = arith.constant 0 : i32
    %c0_i32_1 = arith.constant 0 : i32
    return %c0_i32, %c0_i32_0 : i32, i32
  }
  func.func @transform_9(%arg0: i32) -> (i32, i32, i32, i32) {
    %c0_i32 = arith.constant 0 : i32
    %c0_i32_0 = arith.constant 0 : i32
    %c0_i32_1 = arith.constant 0 : i32
    %c0_i32_2 = arith.constant 0 : i32
    return %arg0, %c0_i32, %c0_i32_0, %c0_i32_1 : i32, i32, i32, i32
  }
  func.func @transform_10(%arg0: i32) -> (i32, i32, i32, i32) {
    %c0_i32 = arith.constant 0 : i32
    %c0_i32_0 = arith.constant 0 : i32
    %c0_i32_1 = arith.constant 0 : i32
    %c0_i32_2 = arith.constant 0 : i32
    return %arg0, %c0_i32, %c0_i32_0, %c0_i32_1 : i32, i32, i32, i32
  }
  func.func @transform_11(%arg0: i32) -> (i32, i32, i32, i32) {
    %c0_i32 = arith.constant 0 : i32
    %c0_i32_0 = arith.constant 0 : i32
    %c0_i32_1 = arith.constant 0 : i32
    %c0_i32_2 = arith.constant 0 : i32
    return %arg0, %c0_i32, %c0_i32_0, %c0_i32_1 : i32, i32, i32, i32
  }
  func.func @transform_12(%arg0: i32) -> (i32, i32, i32, i32) {
    %c0_i32 = arith.constant 0 : i32
    %c0_i32_0 = arith.constant 0 : i32
    %c0_i32_1 = arith.constant 0 : i32
    %c0_i32_2 = arith.constant 0 : i32
    return %arg0, %c0_i32, %c0_i32_0, %c0_i32_1 : i32, i32, i32, i32
  }
  func.func @transform_13(%arg0: i32) -> (i32, i32, i32, i32) {
    %c0_i32 = arith.constant 0 : i32
    %c0_i32_0 = arith.constant 0 : i32
    %c0_i32_1 = arith.constant 0 : i32
    %c0_i32_2 = arith.constant 0 : i32
    return %arg0, %c0_i32, %c0_i32_0, %c0_i32_1 : i32, i32, i32, i32
  }
  func.func @transform_14(%arg0: i32) -> (i32, i32, i32, i32) {
    %c0_i32 = arith.constant 0 : i32
    %c0_i32_0 = arith.constant 0 : i32
    %c0_i32_1 = arith.constant 0 : i32
    %c0_i32_2 = arith.constant 0 : i32
    return %arg0, %c0_i32, %c0_i32_0, %c0_i32_1 : i32, i32, i32, i32
  }
  func.func @transform_15(%arg0: i32) -> (i32, i32, i32, i32) {
    %c0_i32 = arith.constant 0 : i32
    %c0_i32_0 = arith.constant 0 : i32
    %c0_i32_1 = arith.constant 0 : i32
    %c0_i32_2 = arith.constant 0 : i32
    return %arg0, %c0_i32, %c0_i32_0, %c0_i32_1 : i32, i32, i32, i32
  }
  func.func @transform_16(%arg0: i32) -> (i32, i32, i32) {
    %c0_i32 = arith.constant 0 : i32
    %c0_i32_0 = arith.constant 0 : i32
    %c0_i32_1 = arith.constant 0 : i32
    return %arg0, %c0_i32, %c0_i32_0 : i32, i32, i32
  }
  func.func @transform_17(%arg0: i32) -> (i32, i32, i32) {
    %c0_i32 = arith.constant 0 : i32
    %c0_i32_0 = arith.constant 0 : i32
    %c0_i32_1 = arith.constant 0 : i32
    return %arg0, %c0_i32, %c0_i32_0 : i32, i32, i32
  }
  func.func @transform_18(%arg0: i32) -> (i32, i32, i32) {
    %c0_i32 = arith.constant 0 : i32
    %c0_i32_0 = arith.constant 0 : i32
    %c0_i32_1 = arith.constant 0 : i32
    return %arg0, %c0_i32, %c0_i32_0 : i32, i32, i32
  }
  func.func @transform_19(%arg0: i32) -> (i32, i32, i32, i32) {
    %c0_i32 = arith.constant 0 : i32
    %c0_i32_0 = arith.constant 0 : i32
    %c0_i32_1 = arith.constant 0 : i32
    %c0_i32_2 = arith.constant 0 : i32
    return %arg0, %c0_i32, %c0_i32_0, %c0_i32_1 : i32, i32, i32, i32
  }
  func.func @transform_20(%arg0: i32) -> (i32, i32, i32, i32) {
    %c0_i32 = arith.constant 0 : i32
    %c0_i32_0 = arith.constant 0 : i32
    %c0_i32_1 = arith.constant 0 : i32
    %c0_i32_2 = arith.constant 0 : i32
    return %arg0, %c0_i32, %c0_i32_0, %c0_i32_1 : i32, i32, i32, i32
  }
  func.func @transform_21(%arg0: i32) -> (i32, i32, i32, i32) {
    %c0_i32 = arith.constant 0 : i32
    %c0_i32_0 = arith.constant 0 : i32
    %c0_i32_1 = arith.constant 0 : i32
    %c0_i32_2 = arith.constant 0 : i32
    return %arg0, %c0_i32, %c0_i32_0, %c0_i32_1 : i32, i32, i32, i32
  }
  func.func @transform_22(%arg0: i32) -> (i32, i32, i32, i32) {
    %c0_i32 = arith.constant 0 : i32
    %c0_i32_0 = arith.constant 0 : i32
    %c0_i32_1 = arith.constant 0 : i32
    %c0_i32_2 = arith.constant 0 : i32
    return %arg0, %c0_i32, %c0_i32_0, %c0_i32_1 : i32, i32, i32, i32
  }
  func.func @transform_23(%arg0: i32) -> (i32, i32, i32, i32) {
    %c0_i32 = arith.constant 0 : i32
    %c0_i32_0 = arith.constant 0 : i32
    %c0_i32_1 = arith.constant 0 : i32
    %c0_i32_2 = arith.constant 0 : i32
    return %arg0, %c0_i32, %c0_i32_0, %c0_i32_1 : i32, i32, i32, i32
  }
  func.func @transform_24(%arg0: i32) -> (i32, i32, i32, i32) {
    %c0_i32 = arith.constant 0 : i32
    %c0_i32_0 = arith.constant 0 : i32
    %c0_i32_1 = arith.constant 0 : i32
    %c0_i32_2 = arith.constant 0 : i32
    return %arg0, %c0_i32, %c0_i32_0, %c0_i32_1 : i32, i32, i32, i32
  }
  func.func @transform_25(%arg0: i32) -> (i32, i32, i32, i32) {
    %c0_i32 = arith.constant 0 : i32
    %c0_i32_0 = arith.constant 0 : i32
    %c0_i32_1 = arith.constant 0 : i32
    %c0_i32_2 = arith.constant 0 : i32
    return %arg0, %c0_i32, %c0_i32_0, %c0_i32_1 : i32, i32, i32, i32
  }
  func.func @transform_26(%arg0: i32) -> (i32, i32, i32) {
    %c0_i32 = arith.constant 0 : i32
    %c0_i32_0 = arith.constant 0 : i32
    %c0_i32_1 = arith.constant 0 : i32
    return %arg0, %c0_i32, %c0_i32_0 : i32, i32, i32
  }
  func.func @transform_27(%arg0: i32) -> (i32, i32, i32) {
    %c0_i32 = arith.constant 0 : i32
    %c0_i32_0 = arith.constant 0 : i32
    %c0_i32_1 = arith.constant 0 : i32
    return %arg0, %c0_i32, %c0_i32_0 : i32, i32, i32
  }
  func.func @transform_28(%arg0: i32) -> (i32, i32, i32) {
    %c0_i32 = arith.constant 0 : i32
    %c0_i32_0 = arith.constant 0 : i32
    %c0_i32_1 = arith.constant 0 : i32
    return %arg0, %c0_i32, %c0_i32_0 : i32, i32, i32
  }
  func.func @transform_29(%arg0: i32) -> (i32, i32, i32) {
    %c0_i32 = arith.constant 0 : i32
    %c0_i32_0 = arith.constant 0 : i32
    %c0_i32_1 = arith.constant 0 : i32
    return %arg0, %c0_i32, %c0_i32_0 : i32, i32, i32
  }
  func.func @transform_30(%arg0: i32) -> (i32, i32, i32) {
    %c0_i32 = arith.constant 0 : i32
    %c0_i32_0 = arith.constant 0 : i32
    %c0_i32_1 = arith.constant 0 : i32
    return %arg0, %c0_i32, %c0_i32_0 : i32, i32, i32
  }
  func.func @transform_31(%arg0: i32) -> (i32, i32, i32) {
    %c0_i32 = arith.constant 0 : i32
    %c0_i32_0 = arith.constant 0 : i32
    %c0_i32_1 = arith.constant 0 : i32
    return %arg0, %c0_i32, %c0_i32_0 : i32, i32, i32
  }
  func.func @transform_32(%arg0: i32) -> (i32, i32, i32) {
    %c0_i32 = arith.constant 0 : i32
    %c0_i32_0 = arith.constant 0 : i32
    %c0_i32_1 = arith.constant 0 : i32
    return %arg0, %c0_i32, %c0_i32_0 : i32, i32, i32
  }
  func.func @transform_33(%arg0: i32) -> (i32, i32, i32) {
    %c0_i32 = arith.constant 0 : i32
    %c0_i32_0 = arith.constant 0 : i32
    %c0_i32_1 = arith.constant 0 : i32
    return %arg0, %c0_i32, %c0_i32_0 : i32, i32, i32
  }
  func.func @transform_34(%arg0: i32) -> (i32, i32, i32) {
    %c0_i32 = arith.constant 0 : i32
    %c0_i32_0 = arith.constant 0 : i32
    %c0_i32_1 = arith.constant 0 : i32
    return %arg0, %c0_i32, %c0_i32_0 : i32, i32, i32
  }
  func.func @transform_35(%arg0: i32) -> (i32, i32) {
    %c0_i32 = arith.constant 0 : i32
    %c0_i32_0 = arith.constant 0 : i32
    %c0_i32_1 = arith.constant 0 : i32
    return %c0_i32, %c0_i32_0 : i32, i32
  }
}

</mosaic_0001>

<bundles_post_ra>
// kernel: image_reward_forward.2
= control target key start
LH: loop header
LB: loop body
LE: loop exit
PB: predicated region body
PF: predicated region fallthrough
CT: control target
= control target key end

     0   :  { %s5873_s0 = inlined_call_operand.vmem [shape: f32[8,192], index: 0, kind: input, shape index: {}]   ;;  %s5874_s1 = inlined_call_operand.vmem [shape: f32[192,32], index: 1, kind: input, shape index: {}]   ;;  %s5875_s2 = inlined_call_operand.vmem [shape: f32[1,32], index: 2, kind: input, shape index: {}]   ;;  %s5876_s3 = inlined_call_operand.vmem [shape: f32[16,8], index: 3, kind: input, shape index: {}]   ;;  %s5877_s4 = inlined_call_operand.vmem [shape: f32[16,32], index: 4, kind: input, shape index: {}]   ;;  %s5878_s5 = inlined_call_operand.vmem [shape: f32[2,1,8], index: 5, kind: input, shape index: {}]   ;;  %s5879_s6 = inlined_call_operand.vmem [shape: f32[2,1,32], index: 6, kind: input, shape index: {}]   ;;  %s5880_s7 = inlined_call_operand.vmem [shape: f32[2,1,32], index: 7, kind: input, shape index: {}]   ;;  %s5881_s8 = inlined_call_operand.vmem [shape: f32[2,4,32,8], index: 8, kind: input, shape index: {}]   ;;  %s5882_s9 = inlined_call_operand.vmem [shape: f32[2,4,1,8], index: 9, kind: input, shape index: {}]   ;;  %s5883_s10 = inlined_call_operand.vmem [shape: f32[2,4,32,8], index: 10, kind: input, shape index: {}]   ;;  %s5884_s11 = inlined_call_operand.vmem [shape: f32[2,4,1,8], index: 11, kind: input, shape index: {}]   ;;  %s5885_s12 = inlined_call_operand.vmem [shape: f32[2,4,32,8], index: 12, kind: input, shape index: {}]   ;;  %s5886_s13 = inlined_call_operand.vmem [shape: f32[2,4,1,8], index: 13, kind: input, shape index: {}]   ;;  %s5887_s14 = inlined_call_operand.vmem [shape: f32[2,4,8,32], index: 14, kind: input, shape index: {}]   ;;  %s5888_s15 = inlined_call_operand.vmem [shape: f32[2,1,32], index: 15, kind: input, shape index: {}]   ;;  %s5889_s16 = inlined_call_operand.vmem [shape: f32[2,1,32], index: 16, kind: input, shape index: {}]   ;;  %s5890_s17 = inlined_call_operand.vmem [shape: f32[2,1,32], index: 17, kind: input, shape index: {}]   ;;  %s5891_s18 = inlined_call_operand.vmem [shape: f32[2,32,128], index: 18, kind: input, shape index: {}]   ;;  %s5892_s19 = inlined_call_operand.vmem [shape: f32[2,1,128], index: 19, kind: input, shape index: {}]   ;;  %s5893_s20 = inlined_call_operand.vmem [shape: f32[2,128,32], index: 20, kind: input, shape index: {}]   ;;  %s5894_s21 = inlined_call_operand.vmem [shape: f32[2,1,32], index: 21, kind: input, shape index: {}]   ;;  %s5895_s22 = inlined_call_operand.vmem [shape: f32[1,32], index: 22, kind: input, shape index: {}]   ;;  %s5896_s23 = inlined_call_operand.vmem [shape: f32[1,32], index: 23, kind: input, shape index: {}]   ;;  %s5897_s24 = inlined_call_operand.vmem [shape: f32[16,32], index: 24, kind: output, shape index: {}]  }
   0x1   :  { %5907 = sst [smem:[#allocation6_spill]] %s5873_s0 }
   0x2   :  { %5908 = sst [smem:[#allocation7_spill]] %s5874_s1 }
   0x3   :  { %5909 = sst [smem:[#allocation8_spill]] %s5875_s2 }
   0x4   :  { %5910 = sst [smem:[#allocation9_spill]] %s5876_s3 }
   0x5   :  { %5911 = sst [smem:[#allocation10_spill]] %s5877_s4 }
   0x6   :  { %5912 = sst [smem:[#allocation11_spill]] %s5878_s5  ;;  %s5344_s5 = smov 0  }
   0x7   :  { %5913 = sst [smem:[#allocation12_spill]] %s5879_s6 }
   0x8   :  { %5914 = sst [smem:[#allocation13_spill]] %s5880_s7 }
   0x9   :  { %5915 = sst [smem:[#allocation14_spill]] %s5881_s8 }
   0xa   :  { %5916 = sst [smem:[#allocation15_spill]] %s5882_s9 }
   0xb   :  { %5917 = sst [smem:[#allocation16_spill]] %s5883_s10 }
   0xc   :  { %5918 = sst [smem:[#allocation17_spill]] %s5884_s11 }
   0xd   :  { %5919 = sst [smem:[#allocation18_spill]] %s5885_s12 }
   0xe   :  { %5920 = sst [smem:[#allocation19_spill]] %s5886_s13 }
   0xf   :  { %5921 = sst [smem:[#allocation20_spill]] %s5887_s14 }
  0x10   :  { %5922 = sst [smem:[#allocation21_spill]] %s5895_s22 }
  0x11   :  { %5923 = sst [smem:[#allocation22_spill]] %s5896_s23 }
  0x12   :  { %5924 = sst [smem:[#allocation23_spill]] %s5897_s24 }
  0x13 LB: > { %5925 = sst [smem:[#allocation3_spill]] %s5214_s5  ;;  %s5350_s26 = sadd.s32 4294967295, %s5214_s5   ;;  %s5214_s5 = sphi %s5344_s5, %s34_s5  }
  0x14   : > { %5926 = sst [smem:[#allocation4_spill]] %s5350_s26  ;;  %p4430_p0 = scmp.ge.s32.totalorder %s5214_s5, 1 }
  0x15   : > { %p790_p1 = scmp.lt.s32.totalorder %s5214_s5, 3 }
  0x17   : > { %p791_p2 = pnand %p4430_p0, %p790_p1 }
  0x19   : > { %794 = sbr.rel (%p791_p2) target bundleno = 5864 (0x16e8), region = 116 }
  0x20   : > { %p909_p3 = scmp.lt.s32.totalorder %s5350_s26, 1  ;;  %s5929_s5 = sld [smem:[#allocation14_spill]] }
  0x21   : > { %s5930_s9 = sld [smem:[#allocation15_spill]]  ;;  %s5932_s10 = sld [smem:[#allocation16_spill]] }
  0x22   : > { %s5356_s27 = scalar_select %p909_p3, %s5350_s26, 1 }
  0x23   : > { %s5933_s11 = sld [smem:[#allocation17_spill]]  ;;  %s5934_s12 = sld [smem:[#allocation18_spill]] }
  0x24   : > { %s4535_s25 = sshll.u32 %s5356_s27, 7  ;;  %s4433_s8 = sshll.u32 %s5356_s27, 2 }
  0x25   : > { %s5935_s13 = sld [smem:[#allocation19_spill]]  ;;  %s4538_s6 = sshll.u32 %s5356_s27, 5 }
  0x26   : > { %s5371_s28 = scalar_lea.vmem %s5929_s5, %s4535_s25  ;;  %s5936_s14 = sld [smem:[#allocation20_spill]] }
  0x27   : > { %s5376_s23 = scalar_lea.vmem %s5930_s9, %s4433_s8  ;;  %s5381_s29 = scalar_lea.vmem %s5932_s10, %s4535_s25 }
  0x28   : > { %5931 = sst [smem:[#allocation5_spill]] %s5376_s23  ;;  %s963_s2 = scalar_lea.vmem %s5892_s19, %s5356_s27 }
  0x29   : > { %s5386_s30 = scalar_lea.vmem %s5933_s11, %s4433_s8  ;;  %s5391_s5 = scalar_lea.vmem %s5934_s12, %s4535_s25 }
  0x2a   : > { %s971_s26 = scalar_lea.vmem %s5894_s21, %s5356_s27  ;;  %s5937_s12 = sld [smem:[#allocation4_spill]] }
  0x2b   : > { %s5396_s24 = scalar_lea.vmem %s5935_s13, %s4433_s8  ;;  %s5419_s13 = scalar_lea.vmem %s5891_s18, %s4538_s6 }
  0x2c   : > { %s5406_s0 = scalar_lea.vmem %s5936_s14, %s4538_s6  ;;  %s5428_s14 = scalar_lea.vmem %s5893_s20, %s4535_s25 }
  0x30   : > { %p4446_p4 = scmp.ne.s32.totalorder %s5937_s12, 0 }
  0x31   : > { %s5938_s6 = sld [smem:[#allocation7_spill]] (!%p4446_p4)  ;;  %v5216_v3 = vmov (!%p4446_p4), 0.0|0.0   ;;  %vm1009_vm0 = vcmask (!%p4446_p4), 523264   ;;  %s5939_s25 = sld [smem:[#allocation6_spill]] (!%p4446_p4)  ;;  %vm1087_vm1 = vcmask (!%p4446_p4), 64512   ;;  %vm1171_vm2 = vcmask (!%p4446_p4), 261120  }
  0x32   : > { %975 = sbr.rel (%p4446_p4) target bundleno = 537 (0x219), region = 120  ;;  %4967 = vmatprep.subr.bf16.mxu0 (!%p4446_p4), %v5216_v3  ;;  %s5940_s4 = sld [smem:[#allocation9_spill]] (!%p4446_p4) }
  0x33   : > { %s5941_s3 = sld [smem:[#allocation8_spill]] (!%p4446_p4)  ;;  %s5942_s10 = sld [smem:[#allocation10_spill]] (!%p4446_p4) }
  0x37   : > { %v978_v0 = vld [vmem:[%s5938_s6] sm:$0xff] (!%p4446_p4)  ;;  %v979_v1 = vld [vmem:[%s5938_s6 + $0x8] sm:$0xff] (!%p4446_p4)  ;;  %v980_v2 = vld [vmem:[%s5938_s6 + $0x10] sm:$0xff] (!%p4446_p4) }
  0x38   : > { %v4968_v4 = vpack.c.bf16 (!%p4446_p4), %v979_v1, %v978_v0  ;;  %v981_v5 = vld [vmem:[%s5938_s6 + $0x18] sm:$0xff] (!%p4446_p4)  ;;  %v982_v7 = vld [vmem:[%s5938_s6 + $0x20] sm:$0xff] (!%p4446_p4)  ;;  %v983_v8 = vld [vmem:[%s5938_s6 + $0x28] sm:$0xff] (!%p4446_p4) }
  0x39   : > { %v4971_v6 = vpack.c.bf16 %v981_v5, %v980_v2  ;;  %v4974_v9 = vpack.c.bf16 %v983_v8, %v982_v7  ;;  %v984_v10 = vld [vmem:[%s5938_s6 + $0x30] sm:$0xff]  ;;  %v985_v11 = vld [vmem:[%s5938_s6 + $0x38] sm:$0xff]  ;;  %v977_v12 = vld [vmem:[%s5939_s25 + $0x8] sm:$0xff] }
  0x3a   : > { %4969 = vmatpush1.bf16.msra.mxu0 %v4968_v4  ;;  %4448 = vmatprep.mubr.msk.f32.mxu0 %vm1009_vm0, %v977_v12  ;;  %v4977_v13 = vpack.c.bf16 %v985_v11, %v984_v10  ;;  %v986_v14 = vld [vmem:[%s5938_s6 + $0x40] sm:$0xff]  ;;  %v987_v15 = vld [vmem:[%s5938_s6 + $0x48] sm:$0xff]  ;;  %v988_v17 = vld [vmem:[%s5938_s6 + $0x50] sm:$0xff] }
  0x3b   : > { %4970 = vmatprep.subr.bf16.mxu0 %v5216_v3  ;;  %v4980_v16 = vpack.c.bf16 %v987_v15, %v986_v14  ;;  %v989_v18 = vld [vmem:[%s5938_s6 + $0x58] sm:$0xff]  ;;  %v990_v20 = vld [vmem:[%s5938_s6 + $0x60] sm:$0xff]  ;;  %v991_v21 = vld [vmem:[%s5938_s6 + $0x68] sm:$0xff] }
  0x3c   : > { %v4983_v19 = vpack.c.bf16 %v989_v18, %v988_v17  ;;  %v4986_v22 = vpack.c.bf16 %v991_v21, %v990_v20  ;;  %v992_v23 = vld [vmem:[%s5938_s6 + $0x70] sm:$0xff]  ;;  %v993_v24 = vld [vmem:[%s5938_s6 + $0x78] sm:$0xff]  ;;  %v994_v26 = vld [vmem:[%s5938_s6 + $0x80] sm:$0xff] }
  0x3d   : > { %v4989_v25 = vpack.c.bf16 %v993_v24, %v992_v23  ;;  %v995_v27 = vld [vmem:[%s5938_s6 + $0x88] sm:$0xff]  ;;  %v996_v29 = vld [vmem:[%s5938_s6 + $0x90] sm:$0xff]  ;;  %v997_v30 = vld [vmem:[%s5938_s6 + $0x98] sm:$0xff] }
  0x3e   : > { %4972 = vmatpush1.bf16.msra.mxu0 %v4971_v6  ;;  %v4992_v28 = vpack.c.bf16 %v995_v27, %v994_v26  ;;  %v4995_v31 = vpack.c.bf16 %v997_v30, %v996_v29  ;;  %v998_v32 = vld [vmem:[%s5938_s6 + $0xa0] sm:$0xff]  ;;  %v999_v33 = vld [vmem:[%s5938_s6 + $0xa8] sm:$0xff]  ;;  %v1000_v35 = vld [vmem:[%s5938_s6 + $0xb0] sm:$0xff] }
  0x3f   : > { %4973 = vmatprep.subr.bf16.mxu0 %v5216_v3  ;;  %v4998_v34 = vpack.c.bf16 %v999_v33, %v998_v32  ;;  %v1001_v36 = vld [vmem:[%s5938_s6 + $0xb8] sm:$0xff]  ;;  %v976_v38 = vld [vmem:[%s5939_s25] sm:$0xff]  ;;  %v1086_v44 = vld [vmem:[%s5940_s4 + $0x8] sm:$0xff] }
  0x40   : > { %v5001_v37 = vpack.c.bf16 %v1001_v36, %v1000_v35  ;;  %v1085_v39 = vld [vmem:[%s5940_s4] sm:$0xff]  ;;  %v1084_v45 = vld [vmem:[%s5942_s10 + $0x8] sm:$0xff] }
  0x41   : > { %4686 = vmatprep.mubr.msk.f32.mxu1 %vm1087_vm1, %v1085_v39  ;;  %v4447_v40 = vld [vmem:[%s5941_s3] ss:$0 sm:$0xff] }
  0x42   : > { %4975 = vmatpush1.bf16.msra.mxu0 %v4974_v9  ;;  %v1083_v46 = vld [vmem:[%s5942_s10] sm:$0xff] }
  0x43   : > { %4976 = vmatprep.subr.bf16.mxu0 %v5216_v3 }
  0x46   : > { %4978 = vmatpush1.bf16.msra.mxu0 %v4977_v13 }
  0x47   : > { %4979 = vmatprep.subr.bf16.mxu0 %v5216_v3 }
  0x4a   : > { %4981 = vmatpush1.bf16.msra.mxu0 %v4980_v16 }
  0x4b   : > { %4982 = vmatprep.subr.bf16.mxu0 %v5216_v3 }
  0x4e   : > { %4984 = vmatpush1.bf16.msra.mxu0 %v4983_v19 }
  0x4f   : > { %4985 = vmatprep.subr.bf16.mxu0 %v5216_v3 }
  0x52   : > { %4987 = vmatpush1.bf16.msra.mxu0 %v4986_v22 }
  0x53   : > { %4988 = vmatprep.subr.bf16.mxu0 %v5216_v3 }
  0x56   : > { %4990 = vmatpush1.bf16.msra.mxu0 %v4989_v25 }
  0x57   : > { %4991 = vmatprep.subr.bf16.mxu0 %v5216_v3 }
  0x5a   : > { %4993 = vmatpush1.bf16.msra.mxu0 %v4992_v28 }
  0x5b   : > { %4994 = vmatprep.subr.bf16.mxu0 %v5216_v3 }
  0x5e   : > { %4996 = vmatpush1.bf16.msra.mxu0 %v4995_v31 }
  0x5f   : > { %4997 = vmatprep.subr.bf16.mxu0 %v5216_v3 }
  0x62   : > { %4999 = vmatpush1.bf16.msra.mxu0 %v4998_v34 }
  0x63   : > { %5000 = vmatprep.subr.bf16.mxu0 %v5216_v3 }
  0x66   : > { %5002 = vmatpush1.bf16.msra.mxu0 %v5001_v37 }
  0x69   : > { %1078 = vmatmul.mubr.f32.vlgmr.msra.gmra.mrb[0].mxu0 %v976_v38 }
 0x13c   : > { %v1079_v41 = vpop.f32.mrb[0].mxu0 }
 0x13d   : > { %v1080_v42 = vadd.f32 %v4447_v40, %v1079_v41  ;;  %v1081_v43 = vpop.f32.mrb[1].mxu0 }
 0x13f   : > { %4684 = vmatprep.subr.mxu1 %v1080_v42 }
 0x140   : > { %4685 = vmatpush3.msra.mxu1 %v1080_v42 }
 0x141   : > { %4687 = vmatmul.mubr.msk.f32.vlgmr.msra.gmra.mrb[0].mxu1 %vm1087_vm1, %v1086_v44 }
 0x214   : > { %v4688_v47 = vpop.f32.mrb[0].mxu1 }
 0x215   : > { %v1170_v48 = vadd.f32 %v4688_v47, %v1084_v45  ;;  %v1160_v49 = vpop.f32.mrb[1].mxu1 }
 0x216   : > { %v1169_v50 = vadd.f32 %v1160_v49, %v1083_v46 }
 0x217   : > { %1173 = vst.msk [vmem:[#allocation2 + $0x8] sm:$0xff] %vm1171_vm2, %v1170_v48 }
 0x218   : > { %1172 = vst.msk [vmem:[#allocation2] sm:$0xff] %vm1171_vm2, %v1169_v50 }
 0x219 PF: > { %vm1178_vm3 = vcmask 261120   ;;  %v1222_v1 = vld [vmem:[%s5371_s28] sm:$0xff]  ;;  %v1223_v2 = vld [vmem:[%s5371_s28 + $0x8] sm:$0xff]  ;;  %v1224_v4 = vld [vmem:[%s5371_s28 + $0x10] sm:$0xff]  ;;  %s5943_s3 = sld [smem:[#allocation12_spill]]  ;;  %s5945_s22 = sld [smem:[#allocation13_spill]] }
 0x21a   : > { %v5003_v3 = vpack.c.bf16 %v1223_v2, %v1222_v1  ;;  %v1225_v5 = vld [vmem:[%s5371_s28 + $0x18] sm:$0xff]  ;;  %v1242_v7 = vld [vmem:[%s5381_s29] sm:$0xff]  ;;  %v1243_v8 = vld [vmem:[%s5381_s29 + $0x8] sm:$0xff]  ;;  %s5947_s11 = sld [smem:[#allocation5_spill]]  ;;  %v5217_v35 = vmov 0.0   ;;  %vm5218_vm4 = vmmov 0  }
 0x21b   : > { %v5007_v6 = vpack.c.bf16 %v1225_v5, %v1224_v4  ;;  %v5011_v9 = vpack.c.bf16 %v1243_v8, %v1242_v7  ;;  %v1244_v24 = vld [vmem:[%s5381_s29 + $0x10] sm:$0xff]  ;;  %v1245_v25 = vld [vmem:[%s5381_s29 + $0x18] sm:$0xff]  ;;  %v1262_v29 = vld [vmem:[%s5391_s5] sm:$0xff]  ;;  %4732 = vmatprep.subr.mxu0 %v5217_v35  ;;  %4734 = vmatprep.mubr.msk.f32.mxu0 %vm5218_vm4, %v5217_v35  ;;  %vm1550_vm5 = vcmask 64512   ;;  %s5952_s7 = sld [smem:[#allocation4_spill]] }
 0x21c   : > { %5004 = vmatprep.subr.bf16.mxu1 %v5003_v3  ;;  %v5015_v28 = vpack.c.bf16 %v1245_v25, %v1244_v24  ;;  %v1263_v30 = vld [vmem:[%s5391_s5 + $0x8] sm:$0xff]  ;;  %v1264_v32 = vld [vmem:[%s5391_s5 + $0x10] sm:$0xff]  ;;  %v1265_v33 = vld [vmem:[%s5391_s5 + $0x18] sm:$0xff] }
 0x21d   : > { %5006 = vmatpush3.bf16.msra.mxu1 %v5003_v3  ;;  %v5019_v31 = vpack.c.bf16 %v1263_v30, %v1262_v29  ;;  %v5023_v34 = vpack.c.bf16 %v1265_v33, %v1264_v32  ;;  %v4456_v38 = vld [vmem:[%s5386_s30] ss:$0 sm:$0xff]  ;;  %v1249_v24 = vld [vmem:[%s5381_s29 + $0x38] sm:$0xff]  ;;  %v1268_v32 = vld [vmem:[%s5391_s5 + $0x30] sm:$0xff] }
 0x21e   : > { %v5530_v52 = vld [vmem:[#allocation2 + $0x8] sm:$0xff]  ;;  %5008 = vmatprep.subr.bf16.mxu1 %v5007_v6  ;;  %v4459_v45 = vld [vmem:[%s5396_s24] ss:$0 sm:$0xff]  ;;  %v1269_v33 = vld [vmem:[%s5391_s5 + $0x38] sm:$0xff] }
 0x21f   : > { %v5528_v51 = vld [vmem:[#allocation2] sm:$0xff]  ;;  %v1182_v54 = vsel %vm1178_vm3, %v5530_v52, 0.0  ;;  %s5944_s8 = scalar_lea.vmem %s5943_s3, %s5356_s27  ;;  %s5946_s23 = scalar_lea.vmem %s5945_s22, %s5356_s27 }
 0x220   : > { %v1179_v53 = vsel %vm1178_vm3, %v5528_v51, 0.0  ;;  %v4451_v17 = vld [vmem:[%s5944_s8] ss:$0 sm:$0xff]  ;;  %s5948_s3 = sld [smem:[#allocation11_spill]]  ;;  %s5951_s22 = scalar_lea.vmem %s5890_s17, %s5356_s27 }
 0x221   : > { %1180 = vadd.xlane.f32.xlu0 %v1179_v53  ;;  %5010 = vmatpush3.bf16.msra.mxu1 %v5007_v6  ;;  %v4452_v19 = vld [vmem:[%s5946_s23] ss:$0 sm:$0xff]  ;;  %p4530_p5 = scmp.ne.s32.totalorder %s5952_s7, 1 }
 0x222   : > { %5012 = vmatprep.subr.bf16.mxu1 %v5011_v9  ;;  %v4453_v41 = vld [vmem:[%s5947_s11] ss:$0 sm:$0xff]  ;;  %s5953_s12 = sld [smem:[#allocation21_spill]] (!%p4530_p5) }
 0x223   : > { %v1266_v25 = vld [vmem:[%s5391_s5 + $0x20] sm:$0xff] }
 0x225   : > { %1183 = vadd.xlane.f32.xlu0 %v1182_v54 }
 0x226   : > { %v5600_v53 = vld [vmem:[%s5948_s3] ss:$0 sm:$0xff] }
 0x2ae   : > { %v1181_v55 = vpop.xlane.xlu0 %1180 }
 0x2af   : > { %v1186_v56 = vmul.f32 0.03125, %v1181_v55 }
 0x2b1   : > { %v1188_v57 = vsub.f32 %v5528_v51, %v1186_v56 }
 0x2b2   : > { %v1184_v58 = vpop.xlane.xlu0 %1183 }
 0x2b3   : > { %v1187_v59 = vmul.f32 0.03125, %v1184_v58  ;;  %v1190_v60 = vmul.f32 %v1188_v57, %v1188_v57 }
 0x2b5   : > { %v1189_v61 = vsub.f32 %v5530_v52, %v1187_v59  ;;  %v1192_v62 = vsel %vm1178_vm3, %v1190_v60, 0.0 }
 0x2b6   : > { %1193 = vadd.xlane.f32.xlu1 %v1192_v62 }
 0x2b7   : > { %v1191_v63 = vmul.f32 %v1189_v61, %v1189_v61 }
 0x2b9   : > { %v1195_v0 = vsel %vm1178_vm3, %v1191_v63, 0.0 }
 0x2ba   : > { %1196 = vadd.xlane.f32.xlu1 %v1195_v0 }
 0x343   : > { %v1194_v10 = vpop.xlane.xlu1 %1193 }
 0x344   : > { %v1198_v11 = vmul.f32 0.03125, %v1194_v10  ;;  %v1227_v10 = vld [vmem:[%s5371_s28 + $0x28] sm:$0xff] }
 0x346   : > { %v1200_v12 = vadd.f32 1e-06, %v1198_v11 }
 0x347   : > { %v1197_v13 = vpop.xlane.xlu1 %1196 }
 0x348   : > { %5156 = vrsqrt.f32 %v1200_v12  ;;  %v1199_v14 = vmul.f32 0.03125, %v1197_v13  ;;  %v1246_v12 = vld [vmem:[%s5381_s29 + $0x20] sm:$0xff]  ;;  %v1247_v13 = vld [vmem:[%s5381_s29 + $0x28] sm:$0xff] }
 0x34a   : > { %v1201_v15 = vadd.f32 1e-06, %v1199_v14  ;;  %v5035_v14 = vpack.c.bf16 %v1247_v13, %v1246_v12  ;;  %v1230_v13 = vld [vmem:[%s5371_s28 + $0x40] sm:$0xff] }
 0x34c   : > { %5158 = vrsqrt.f32 %v1201_v15 }
 0x352   : > { %v5157_v16 = vpop.eup %5156 }
 0x353   : > { %v1204_v18 = vmul.f32 %v5157_v16, %v1188_v57  ;;  %v5606_v57 = vld [vmem:[%s5948_s3 + $0x1] ss:$0 sm:$0xff] }
 0x355   : > { %v1212_v20 = vmul.f32 %v4451_v17, %v1204_v18  ;;  %v1229_v18 = vld [vmem:[%s5371_s28 + $0x38] sm:$0xff] }
 0x356   : > { %v5159_v21 = vpop.eup %5158 }
 0x357   : > { %v5556_v22 = vadd.f32 %v4452_v19, %v1212_v20  ;;  %v1205_v23 = vmul.f32 %v5159_v21, %v1189_v61 }
 0x359   : > { %v1213_v26 = vmul.f32 %v4451_v17, %v1205_v23  ;;  %4697 = vmatprep.mubr.msk.f32.mxu1 %vm1178_vm3, %v5556_v22  ;;  %v1228_v17 = vld [vmem:[%s5371_s28 + $0x30] sm:$0xff] }
 0x35a   : > { %v5031_v21 = vpack.c.bf16 %v1229_v18, %v1228_v17  ;;  %v1248_v23 = vld [vmem:[%s5381_s29 + $0x30] sm:$0xff] }
 0x35b   : > { %v5562_v27 = vadd.f32 %v4452_v19, %v1213_v26  ;;  %v1267_v26 = vld [vmem:[%s5391_s5 + $0x28] sm:$0xff]  ;;  %v5039_v30 = vpack.c.bf16 %v1249_v24, %v1248_v23 }
 0x35d   : > { %4698 = vmatmul.mubr.msk.f32.vlgmr.msra.gmra.mrb[0].mxu1 %vm1178_vm3, %v5562_v27 }
 0x35e   : > { %5014 = vmatpush3.bf16.msra.mxu1 %v5011_v9  ;;  %4708 = vmatprep.mubr.msk.f32.mxu1 %vm1178_vm3, %v5556_v22  ;;  %v1226_v9 = vld [vmem:[%s5371_s28 + $0x20] sm:$0xff] }
 0x35f   : > { %5016 = vmatprep.subr.bf16.mxu1 %v5015_v28  ;;  %v5027_v11 = vpack.c.bf16 %v1227_v10, %v1226_v9 }
 0x362   : > { %5018 = vmatpush3.bf16.msra.mxu1 %v5015_v28 }
 0x363   : > { %5020 = vmatprep.subr.bf16.mxu1 %v5019_v31 }
 0x365   : > { %4709 = vmatmul.mubr.msk.f32.vlgmr.msra.gmra.mrb[2].mxu1 %vm1178_vm3, %v5562_v27 }
 0x366   : > { %5022 = vmatpush3.bf16.msra.mxu1 %v5019_v31  ;;  %4719 = vmatprep.mubr.msk.f32.mxu1 %vm1178_vm3, %v5556_v22  ;;  %v5043_v31 = vpack.c.bf16 %v1267_v26, %v1266_v25  ;;  %v1270_v26 = vld [vmem:[%s5391_s5 + $0x40] sm:$0xff] }
 0x367   : > { %5024 = vmatprep.subr.bf16.mxu1 %v5023_v34 }
 0x36a   : > { %5026 = vmatpush3.bf16.msra.mxu1 %v5023_v34  ;;  %v5047_v34 = vpack.c.bf16 %v1269_v33, %v1268_v32  ;;  %v1283_v33 = vld [vmem:[%s5406_s0 + $0x8] sm:$0xff] }
 0x36b   : > { %4722 = vmatprep.subr.mxu1 %v5217_v35 }
 0x36d   : > { %4720 = vmatmul.mubr.msk.f32.vlgmr.msra.gmra.mrb[4].mxu1 %vm1178_vm3, %v5562_v27 }
 0x36e   : > { %4724 = vmatprep.mubr.msk.f32.mxu1 %vm5218_vm4, %v5217_v35 }
 0x430   : > { %v4699_v36 = vpop.f32.mrb[0].mxu1 }
 0x431   : > { %v1367_v37 = vpop.f32.mrb[1].mxu1  ;;  %v1373_v47 = vadd.f32 %v4699_v36, %v4453_v41 }
 0x432   : > { %v1368_v43 = vadd.f32 %v4453_v41, %v1367_v37 }
 0x438   : > { %v4710_v39 = vpop.f32.mrb[2].mxu1 }
 0x439   : > { %v1448_v40 = vpop.f32.mrb[3].mxu1  ;;  %v1454_v44 = vadd.f32 %v4710_v39, %v4456_v38 }
 0x43a   : > { %v1449_v42 = vadd.f32 %v4456_v38, %v1448_v40 }
 0x43c   : > { %4723 = vmatpush3.xpose.msk.msra.mxu1 %vm1550_vm5, %v1449_v42  ;;  %v4473_v42 = vld [vmem:[%s5386_s30 + $0x1] ss:$0 sm:$0xff] }
 0x43d   : > { %4727 = vmatprep.subr.mxu1 %v5217_v35 }
 0x43f   : > { %4725 = vmatmul.mubr.msk.f32.vlgmr.msra.gmra.mrb[6].mxu1 %vm1550_vm5, %v1368_v43 }
 0x440   : > { %v4721_v46 = vpop.f32.mrb[4].mxu1  ;;  %4728 = vmatpush3.xpose.msk.msra.mxu1 %vm1550_vm5, %v1454_v44  ;;  %4729 = vmatprep.mubr.msk.f32.mxu1 %vm5218_vm4, %v5217_v35 }
 0x441   : > { %v1535_v48 = vadd.f32 %v4721_v46, %v4459_v45  ;;  %v1529_v49 = vpop.f32.mrb[5].mxu1  ;;  %4737 = vmatprep.subr.mxu1 %v5217_v35 }
 0x442   : > { %v1530_v50 = vadd.f32 %v4459_v45, %v1529_v49  ;;  %v4470_v45 = vld [vmem:[%s5947_s11 + $0x1] ss:$0 sm:$0xff] }
 0x443   : > { %4730 = vmatmul.mubr.msk.f32.vlgmr.msra.gmra.mrb[8].mxu1 %vm1550_vm5, %v1373_v47  ;;  %v4476_v47 = vld [vmem:[%s5396_s24 + $0x1] ss:$0 sm:$0xff] }
 0x444   : > { %4733 = vmatpush3.msra.mxu0 %v1530_v50  ;;  %4738 = vmatpush3.msra.mxu1 %v1535_v48 }
 0x445   : > { %4739 = vmatprep.mubr.msk.f32.mxu1 %vm5218_vm4, %v5217_v35  ;;  %5028 = vmatprep.subr.bf16.mxu0 %v5027_v11 }
 0x446   : > { %5036 = vmatprep.subr.bf16.mxu1 %v5035_v14 }
 0x512   : > { %v1623_v54 = vpop.f32.mrb[6].mxu1 }
 0x513   : > { %v1624_v55 = vadd.f32 %v5600_v53, %v1623_v54  ;;  %v4726_v56 = vpop.f32.mrb[7].mxu1 }
 0x515   : > { %v1703_v58 = vsel %vm1550_vm5, %v1624_v55, -inf }
 0x516   : > { %1704 = vmax.xlane.f32.xlu1 %v1703_v58  ;;  %v1699_v59 = vpop.f32.mrb[8].mxu1 }
 0x517   : > { %v1700_v60 = vadd.f32 %v5606_v57, %v1699_v59  ;;  %v4731_v61 = vpop.f32.mrb[9].mxu1 }
 0x519   : > { %v1706_v62 = vsel %vm1550_vm5, %v1700_v60, -inf }
 0x51a   : > { %1707 = vmax.xlane.f32.xlu0 %v1706_v62 }
 0x5a3   : > { %v1705_v63 = vpop.xlane.xlu1 %1704 }
 0x5a4   : > { %v1709_v0 = vsub.f32 %v1624_v55, %v1705_v63 }
 0x5a6   : > { %v1711_v1 = vmul.f32 1.442695, %v1709_v0 }
 0x5a7   : > { %v1708_v2 = vpop.xlane.xlu0 %1707 }
 0x5a8   : > { %5160 = vpow2.f32 %v1711_v1  ;;  %v1710_v3 = vsub.f32 %v1700_v60, %v1708_v2 }
 0x5aa   : > { %v1713_v4 = vmul.f32 1.442695, %v1710_v3 }
 0x5ac   : > { %5162 = vpow2.f32 %v1713_v4 }
 0x5b2   : > { %v5161_v5 = vpop.eup %5160 }
 0x5b3   : > { %v1715_v6 = vsel %vm1550_vm5, %v5161_v5, 0.0 }
 0x5b4   : > { %1716 = vadd.xlane.f32.xlu1 %v1715_v6 }
 0x5b6   : > { %v5163_v7 = vpop.eup %5162 }
 0x5b7   : > { %v1718_v8 = vsel %vm1550_vm5, %v5163_v7, 0.0 }
 0x5b8   : > { %1719 = vadd.xlane.f32.xlu0 %v1718_v8 }
 0x641   : > { %v1717_v15 = vpop.xlane.xlu1 %1716 }
 0x642   : > { %5164 = vrcp.f32 %v1717_v15 }
 0x645   : > { %v1720_v16 = vpop.xlane.xlu0 %1719 }
 0x646   : > { %5166 = vrcp.f32 %v1720_v16 }
 0x64c   : > { %v5165_v19 = vpop.eup %5164 }
 0x64d   : > { %v1723_v20 = vmul.f32 %v5165_v19, %v5161_v5 }
 0x64f   : > { %4735 = vmatmul.mubr.msk.f32.vlgmr.msra.gmra.mrb[0].mxu0 %vm1550_vm5, %v1723_v20  ;;  %v1232_v20 = vld [vmem:[%s5371_s28 + $0x50] sm:$0xff] }
 0x650   : > { %v5167_v28 = vpop.eup %5166  ;;  %5030 = vmatpush3.bf16.msra.mxu0 %v5027_v11  ;;  %4750 = vmatprep.mubr.msk.f32.mxu0 %vm1178_vm3, %v5556_v22 }
 0x651   : > { %v1724_v29 = vmul.f32 %v5167_v28, %v5163_v7  ;;  %5032 = vmatprep.subr.bf16.mxu0 %v5031_v21  ;;  %v1271_v28 = vld [vmem:[%s5391_s5 + $0x48] sm:$0xff] }
 0x653   : > { %4740 = vmatmul.mubr.msk.f32.vlgmr.msra.gmra.mrb[10].mxu1 %vm1550_vm5, %v1724_v29  ;;  %v5067_v29 = vpack.c.bf16 %v1271_v28, %v1270_v26  ;;  %v1236_v26 = vld [vmem:[%s5371_s28 + $0x70] sm:$0xff]  ;;  %v1237_v28 = vld [vmem:[%s5371_s28 + $0x78] sm:$0xff] }
 0x654   : > { %5034 = vmatpush3.bf16.msra.mxu0 %v5031_v21  ;;  %5038 = vmatpush3.bf16.msra.mxu1 %v5035_v14  ;;  %v1231_v14 = vld [vmem:[%s5371_s28 + $0x48] sm:$0xff]  ;;  %v1233_v21 = vld [vmem:[%s5371_s28 + $0x58] sm:$0xff] }
 0x655   : > { %4761 = vmatprep.mubr.msk.f32.mxu1 %vm1178_vm3, %v5556_v22  ;;  %5040 = vmatprep.subr.bf16.mxu1 %v5039_v30  ;;  %v5051_v15 = vpack.c.bf16 %v1231_v14, %v1230_v13  ;;  %v5055_v25 = vpack.c.bf16 %v1233_v21, %v1232_v20  ;;  %v1235_v20 = vld [vmem:[%s5371_s28 + $0x68] sm:$0xff] }
 0x656   : > { %5044 = vmatprep.subr.bf16.mxu0 %v5043_v31 }
 0x657   : > { %4751 = vmatmul.mubr.msk.f32.vlgmr.msra.gmra.mrb[2].mxu0 %vm1178_vm3, %v5562_v27 }
 0x658   : > { %5042 = vmatpush3.bf16.msra.mxu1 %v5039_v30  ;;  %5046 = vmatpush3.bf16.msra.mxu0 %v5043_v31  ;;  %v1272_v30 = vld [vmem:[%s5391_s5 + $0x50] sm:$0xff]  ;;  %v1273_v31 = vld [vmem:[%s5391_s5 + $0x58] sm:$0xff] }
 0x659   : > { %4772 = vmatprep.mubr.msk.f32.mxu0 %vm1178_vm3, %v5556_v22  ;;  %5048 = vmatprep.subr.bf16.mxu0 %v5047_v34  ;;  %v5071_v32 = vpack.c.bf16 %v1273_v31, %v1272_v30 }
 0x65a   : > { %4775 = vmatprep.subr.mxu1 %v5217_v35 }
 0x65b   : > { %4762 = vmatmul.mubr.msk.f32.vlgmr.msra.gmra.mrb[12].mxu1 %vm1178_vm3, %v5562_v27 }
 0x65c   : > { %5050 = vmatpush3.bf16.msra.mxu0 %v5047_v34  ;;  %4777 = vmatprep.mubr.msk.f32.mxu1 %vm5218_vm4, %v5217_v35  ;;  %v1282_v34 = vld [vmem:[%s5406_s0] sm:$0xff] }
 0x65d   : > { %4785 = vmatprep.subr.mxu0 %v5217_v35 }
 0x65f   : > { %4773 = vmatmul.mubr.msk.f32.vlgmr.msra.gmra.mrb[4].mxu0 %vm1178_vm3, %v5562_v27 }
 0x660   : > { %4787 = vmatprep.mubr.msk.f32.mxu0 %vm5218_vm4, %v5217_v35 }
 0x722   : > { %v5645_v36 = vpop.f32.mrb[0].mxu0 }
 0x723   : > { %v4736_v37 = vpop.f32.mrb[1].mxu0 }
 0x726   : > { %v5647_v38 = vpop.f32.mrb[10].mxu1 }
 0x727   : > { %v4741_v39 = vpop.f32.mrb[11].mxu1 }
 0x728   : > { %v1250_v39 = vld [vmem:[%s5381_s29 + $0x40] sm:$0xff] }
 0x72a   : > { %v4752_v40 = vpop.f32.mrb[2].mxu0 }
 0x72b   : > { %v1943_v41 = vpop.f32.mrb[3].mxu0  ;;  %v1949_v56 = vadd.f32 %v4752_v40, %v4470_v45  ;;  %v1251_v40 = vld [vmem:[%s5381_s29 + $0x48] sm:$0xff] }
 0x72c   : > { %v1944_v49 = vadd.f32 %v4470_v45, %v1943_v41  ;;  %v1252_v45 = vld [vmem:[%s5381_s29 + $0x50] sm:$0xff] }
 0x72e   : > { %v4763_v43 = vpop.f32.mrb[12].mxu1 }
 0x72f   : > { %v2024_v44 = vpop.f32.mrb[13].mxu1  ;;  %v2030_v54 = vadd.f32 %v4763_v43, %v4473_v42 }
 0x730   : > { %v2025_v46 = vadd.f32 %v4473_v42, %v2024_v44  ;;  %v5059_v42 = vpack.c.bf16 %v1251_v40, %v1250_v39  ;;  %v1276_v40 = vld [vmem:[%s5391_s5 + $0x70] sm:$0xff] }
 0x732   : > { %v4774_v48 = vpop.f32.mrb[4].mxu0  ;;  %4776 = vmatpush3.xpose.msk.msra.mxu1 %vm1550_vm5, %v2025_v46  ;;  %v1253_v46 = vld [vmem:[%s5381_s29 + $0x58] sm:$0xff] }
 0x733   : > { %v2105_v50 = vpop.f32.mrb[5].mxu0  ;;  %4780 = vmatprep.subr.mxu1 %v5217_v35  ;;  %v2111_v58 = vadd.f32 %v4774_v48, %v4476_v47 }
 0x734   : > { %v2106_v55 = vadd.f32 %v4476_v47, %v2105_v50  ;;  %v5063_v47 = vpack.c.bf16 %v1253_v46, %v1252_v45  ;;  %v1256_v46 = vld [vmem:[%s5381_s29 + $0x70] sm:$0xff] }
 0x735   : > { %4778 = vmatmul.mubr.msk.f32.vlgmr.msra.gmra.mrb[14].mxu1 %vm1550_vm5, %v1944_v49 }
 0x736   : > { %4781 = vmatpush3.xpose.msk.msra.mxu1 %vm1550_vm5, %v2030_v54  ;;  %4786 = vmatpush3.msra.mxu0 %v2106_v55  ;;  %v4492_v54 = vld [vmem:[%s5386_s30 + $0x2] ss:$0 sm:$0xff] }
 0x737   : > { %4782 = vmatprep.mubr.msk.f32.mxu1 %vm5218_vm4, %v5217_v35  ;;  %4790 = vmatprep.subr.mxu1 %v5217_v35 }
 0x738   : > { %4795 = vmatprep.subr.mxu0 %v1283_v33 }
 0x739   : > { %4783 = vmatmul.mubr.msk.f32.vlgmr.msra.gmra.mrb[16].mxu1 %vm1550_vm5, %v1949_v56  ;;  %v4489_v56 = vld [vmem:[%s5947_s11 + $0x2] ss:$0 sm:$0xff] }
 0x73a   : > { %4791 = vmatpush3.msra.mxu1 %v2111_v58  ;;  %4792 = vmatprep.mubr.msk.f32.mxu1 %vm5218_vm4, %v5217_v35 }
 0x73b   : > { %5052 = vmatprep.subr.bf16.mxu1 %v5051_v15 }
 0x808   : > { %v2186_v59 = vpop.f32.mrb[14].mxu1 }
 0x809   : > { %v2187_v60 = vadd.f32 %v5600_v53, %v2186_v59  ;;  %v4779_v61 = vpop.f32.mrb[15].mxu1  ;;  %v4495_v59 = vld [vmem:[%s5396_s24 + $0x2] ss:$0 sm:$0xff] }
 0x80b   : > { %v2266_v62 = vsel %vm1550_vm5, %v2187_v60, -inf }
 0x80c   : > { %2267 = vmax.xlane.f32.xlu0 %v2266_v62  ;;  %v2262_v63 = vpop.f32.mrb[16].mxu1 }
 0x80d   : > { %v2263_v0 = vadd.f32 %v5606_v57, %v2262_v63  ;;  %v4784_v1 = vpop.f32.mrb[17].mxu1 }
 0x80f   : > { %v2269_v2 = vsel %vm1550_vm5, %v2263_v0, -inf }
 0x810   : > { %2270 = vmax.xlane.f32.xlu1 %v2269_v2 }
 0x899   : > { %v2268_v3 = vpop.xlane.xlu0 %2267 }
 0x89a   : > { %v2272_v4 = vsub.f32 %v2187_v60, %v2268_v3 }
 0x89c   : > { %v2274_v5 = vmul.f32 1.442695, %v2272_v4 }
 0x89d   : > { %v2271_v6 = vpop.xlane.xlu1 %2270 }
 0x89e   : > { %5168 = vpow2.f32 %v2274_v5  ;;  %v2273_v7 = vsub.f32 %v2263_v0, %v2271_v6 }
 0x8a0   : > { %v2276_v8 = vmul.f32 1.442695, %v2273_v7 }
 0x8a2   : > { %5170 = vpow2.f32 %v2276_v8 }
 0x8a8   : > { %v5169_v9 = vpop.eup %5168 }
 0x8a9   : > { %v2278_v10 = vsel %vm1550_vm5, %v5169_v9, 0.0 }
 0x8aa   : > { %2279 = vadd.xlane.f32.xlu0 %v2278_v10 }
 0x8ac   : > { %v5171_v11 = vpop.eup %5170 }
 0x8ad   : > { %v2281_v12 = vsel %vm1550_vm5, %v5171_v11, 0.0 }
 0x8ae   : > { %2282 = vadd.xlane.f32.xlu1 %v2281_v12 }
 0x937   : > { %v2280_v16 = vpop.xlane.xlu0 %2279 }
 0x938   : > { %5172 = vrcp.f32 %v2280_v16 }
 0x93b   : > { %v2283_v17 = vpop.xlane.xlu1 %2282 }
 0x93c   : > { %5174 = vrcp.f32 %v2283_v17 }
 0x942   : > { %v5173_v18 = vpop.eup %5172 }
 0x943   : > { %v2286_v19 = vmul.f32 %v5173_v18, %v5169_v9 }
 0x945   : > { %4788 = vmatmul.mubr.msk.f32.vlgmr.msra.gmra.mrb[6].mxu0 %vm1550_vm5, %v2286_v19  ;;  %v1234_v19 = vld [vmem:[%s5371_s28 + $0x60] sm:$0xff] }
 0x946   : > { %v5175_v23 = vpop.eup %5174  ;;  %4796 = vmatpush3.msra.mxu0 %v1283_v33  ;;  %v5075_v21 = vpack.c.bf16 %v1235_v20, %v1234_v19 }
 0x947   : > { %v2287_v24 = vmul.f32 %v5175_v23, %v5171_v11  ;;  %4800 = vmatprep.subr.mxu0 %v1282_v34  ;;  %v1284_v23 = vld [vmem:[%s5406_s0 + $0x10] sm:$0xff] }
 0x949   : > { %4793 = vmatmul.mubr.msk.f32.vlgmr.msra.gmra.mrb[18].mxu1 %vm1550_vm5, %v2287_v24 }
 0x94a   : > { %5054 = vmatpush3.bf16.msra.mxu1 %v5051_v15  ;;  %4813 = vmatprep.mubr.msk.f32.mxu1 %vm1178_vm3, %v5556_v22 }
 0x94b   : > { %5056 = vmatprep.subr.bf16.mxu1 %v5055_v25 }
 0x94e   : > { %5058 = vmatpush3.bf16.msra.mxu1 %v5055_v25 }
 0x94f   : > { %5068 = vmatprep.subr.bf16.mxu1 %v5067_v29 }
 0x951   : > { %4814 = vmatmul.mubr.msk.f32.vlgmr.msra.gmra.mrb[20].mxu1 %vm1178_vm3, %v5562_v27 }
 0x952   : > { %5070 = vmatpush3.bf16.msra.mxu1 %v5067_v29  ;;  %4835 = vmatprep.mubr.msk.f32.mxu1 %vm1178_vm3, %v5556_v22 }
 0x953   : > { %5072 = vmatprep.subr.bf16.mxu1 %v5071_v32 }
 0x956   : > { %5074 = vmatpush3.bf16.msra.mxu1 %v5071_v32  ;;  %v5079_v32 = vpack.c.bf16 %v1237_v28, %v1236_v26  ;;  %v1285_v26 = vld [vmem:[%s5406_s0 + $0x18] sm:$0xff] }
 0x957   : > { %4843 = vmatprep.subr.mxu1 %v5217_v35 }
 0x959   : > { %4836 = vmatmul.mubr.msk.f32.vlgmr.msra.gmra.mrb[22].mxu1 %vm1178_vm3, %v5562_v27 }
 0x95a   : > { %4845 = vmatprep.mubr.msk.f32.mxu1 %vm5218_vm4, %v5217_v35 }
 0xa18   : > { %v2357_v37 = vpop.f32.mrb[6].mxu0 }
 0xa19   : > { %v4789_v41 = vpop.f32.mrb[7].mxu0  ;;  %4797 = vmatprep.mubr.msk.f32.mxu0 %vm1550_vm5, %v2357_v37  ;;  %v1275_v37 = vld [vmem:[%s5391_s5 + $0x68] sm:$0xff] }
 0xa1a   : > { %v1277_v41 = vld [vmem:[%s5391_s5 + $0x78] sm:$0xff] }
 0xa1c   : > { %v2430_v43 = vpop.f32.mrb[18].mxu1 }
 0xa1d   : > { %v4794_v44 = vpop.f32.mrb[19].mxu1  ;;  %4798 = vmatmul.mubr.msk.f32.vlgmr.msra.gmra.mrb[8].mxu0 %vm1550_vm5, %v2430_v43  ;;  %v1254_v43 = vld [vmem:[%s5381_s29 + $0x60] sm:$0xff] }
 0xa1e   : > { %4801 = vmatpush3.msra.mxu0 %v1282_v34  ;;  %4802 = vmatprep.mubr.msk.f32.mxu0 %vm1550_vm5, %v5645_v36  ;;  %v1274_v34 = vld [vmem:[%s5391_s5 + $0x60] sm:$0xff]  ;;  %v1255_v44 = vld [vmem:[%s5381_s29 + $0x68] sm:$0xff]  ;;  %s5955_s5 = sld [smem:[#allocation23_spill]] (!%p4530_p5) }
 0xa1f   : > { %5060 = vmatprep.subr.bf16.mxu0 %v5059_v42  ;;  %v5091_v39 = vpack.c.bf16 %v1275_v37, %v1274_v34  ;;  %v5083_v45 = vpack.c.bf16 %v1255_v44, %v1254_v43 }
 0xa24   : > { %v4815_v48 = vpop.f32.mrb[20].mxu1 }
 0xa25   : > { %v2668_v49 = vpop.f32.mrb[21].mxu1  ;;  %4803 = vmatmul.mubr.msk.f32.vlgmr.msra.gmra.mrb[8].mxu0 %vm1550_vm5, %v5647_v38  ;;  %v2674_v61 = vadd.f32 %v4815_v48, %v4489_v56 }
 0xa26   : > { %5062 = vmatpush3.bf16.msra.mxu0 %v5059_v42  ;;  %4824 = vmatprep.mubr.msk.f32.mxu0 %vm1178_vm3, %v5556_v22  ;;  %v2669_v62 = vadd.f32 %v4489_v56, %v2668_v49  ;;  %v5095_v42 = vpack.c.bf16 %v1277_v41, %v1276_v40 }
 0xa27   : > { %5064 = vmatprep.subr.bf16.mxu0 %v5063_v47 }
 0xa2a   : > { %5066 = vmatpush3.bf16.msra.mxu0 %v5063_v47  ;;  %v1257_v47 = vld [vmem:[%s5381_s29 + $0x78] sm:$0xff]  ;;  %s5954_s29 = sld [smem:[#allocation22_spill]] (!%p4530_p5) }
 0xa2b   : > { %4838 = vmatprep.subr.mxu0 %v5217_v35 }
 0xa2c   : > { %v4837_v36 = vpop.f32.mrb[22].mxu1 }
 0xa2d   : > { %4825 = vmatmul.mubr.msk.f32.vlgmr.msra.gmra.mrb[10].mxu0 %vm1178_vm3, %v5562_v27  ;;  %v2830_v50 = vpop.f32.mrb[23].mxu1  ;;  %v2836_v63 = vadd.f32 %v4837_v36, %v4495_v59 }
 0xa2e   : > { %4840 = vmatprep.mubr.msk.f32.mxu0 %vm5218_vm4, %v5217_v35  ;;  %v2831_v0 = vadd.f32 %v4495_v59, %v2830_v50  ;;  %v5087_v50 = vpack.c.bf16 %v1257_v47, %v1256_v46 }
 0xb00   : > { %v4826_v55 = vpop.f32.mrb[10].mxu0 }
 0xb01   : > { %v2755_v38 = vadd.f32 %v4826_v55, %v4492_v54  ;;  %v2749_v58 = vpop.f32.mrb[11].mxu0 }
 0xb02   : > { %v2750_v60 = vadd.f32 %v4492_v54, %v2749_v58 }
 0xb03   : > { %4844 = vmatpush3.xpose.msk.msra.mxu1 %vm1550_vm5, %v2755_v38  ;;  %v4512_v38 = vld [vmem:[%s5396_s24 + $0x3] ss:$0 sm:$0xff]  ;;  %s5956_s24 = smov (!%p4530_p5), %s5955_s5 }
 0xb04   : > { %4839 = vmatpush3.xpose.msk.msra.mxu0 %vm1550_vm5, %v2750_v60  ;;  %4853 = vmatprep.subr.mxu1 %v5217_v35 }
 0xb05   : > { %4848 = vmatprep.subr.mxu0 %v5217_v35 }
 0xb06   : > { %4846 = vmatmul.mubr.msk.f32.vlgmr.msra.gmra.mrb[24].mxu1 %vm1550_vm5, %v2674_v61 }
 0xb07   : > { %4841 = vmatmul.mubr.msk.f32.vlgmr.msra.gmra.mrb[12].mxu0 %vm1550_vm5, %v2669_v62  ;;  %4854 = vmatpush3.msra.mxu1 %v2836_v63 }
 0xb08   : > { %4849 = vmatpush3.msra.mxu0 %v2831_v0  ;;  %4855 = vmatprep.mubr.msk.f32.mxu1 %vm5218_vm4, %v5217_v35  ;;  %v4506_v0 = vld [vmem:[%s5947_s11 + $0x3] ss:$0 sm:$0xff] }
 0xb09   : > { %4850 = vmatprep.mubr.msk.f32.mxu0 %vm5218_vm4, %v5217_v35  ;;  %5076 = vmatprep.subr.bf16.mxu1 %v5075_v21 }
 0xb0a   : > { %4858 = vmatprep.subr.mxu0 %v1284_v23 }
 0xbd9   : > { %v2987_v1 = vpop.f32.mrb[24].mxu1 }
 0xbda   : > { %v2988_v2 = vadd.f32 %v5606_v57, %v2987_v1  ;;  %v2911_v3 = vpop.f32.mrb[12].mxu0  ;;  %v4847_v4 = vpop.f32.mrb[25].mxu1 }
 0xbdb   : > { %v2912_v5 = vadd.f32 %v5600_v53, %v2911_v3  ;;  %v4842_v6 = vpop.f32.mrb[13].mxu0 }
 0xbdc   : > { %v2994_v7 = vsel %vm1550_vm5, %v2988_v2, -inf }
 0xbdd   : > { %2995 = vmax.xlane.f32.xlu1 %v2994_v7  ;;  %v2991_v8 = vsel %vm1550_vm5, %v2912_v5, -inf }
 0xbde   : > { %2992 = vmax.xlane.f32.xlu0 %v2991_v8 }
 0xc6a   : > { %v2996_v9 = vpop.xlane.xlu1 %2995 }
 0xc6b   : > { %v2998_v10 = vsub.f32 %v2988_v2, %v2996_v9  ;;  %v2993_v11 = vpop.xlane.xlu0 %2992 }
 0xc6c   : > { %v2997_v12 = vsub.f32 %v2912_v5, %v2993_v11 }
 0xc6d   : > { %v3001_v13 = vmul.f32 1.442695, %v2998_v10 }
 0xc6e   : > { %v2999_v14 = vmul.f32 1.442695, %v2997_v12 }
 0xc6f   : > { %5176 = vpow2.f32 %v3001_v13 }
 0xc70   : > { %5178 = vpow2.f32 %v2999_v14 }
 0xc79   : > { %v5177_v15 = vpop.eup %5176 }
 0xc7a   : > { %v5179_v16 = vpop.eup %5178  ;;  %v3006_v17 = vsel %vm1550_vm5, %v5177_v15, 0.0 }
 0xc7b   : > { %3007 = vadd.xlane.f32.xlu1 %v3006_v17  ;;  %v3003_v18 = vsel %vm1550_vm5, %v5179_v16, 0.0 }
 0xc7c   : > { %3004 = vadd.xlane.f32.xlu0 %v3003_v18 }
 0xd08   : > { %v3008_v24 = vpop.xlane.xlu1 %3007 }
 0xd09   : > { %5180 = vrcp.f32 %v3008_v24  ;;  %v3005_v25 = vpop.xlane.xlu0 %3004 }
 0xd0a   : > { %5182 = vrcp.f32 %v3005_v25 }
 0xd13   : > { %v5181_v29 = vpop.eup %5180 }
 0xd14   : > { %v5183_v30 = vpop.eup %5182  ;;  %v3012_v31 = vmul.f32 %v5181_v29, %v5177_v15 }
 0xd15   : > { %v3011_v33 = vmul.f32 %v5183_v30, %v5179_v16 }
 0xd16   : > { %4856 = vmatmul.mubr.msk.f32.vlgmr.msra.gmra.mrb[26].mxu1 %vm1550_vm5, %v3012_v31 }
 0xd17   : > { %5078 = vmatpush3.bf16.msra.mxu1 %v5075_v21  ;;  %4851 = vmatmul.mubr.msk.f32.vlgmr.msra.gmra.mrb[14].mxu0 %vm1550_vm5, %v3011_v33 }
 0xd18   : > { %4871 = vmatprep.mubr.msk.f32.mxu1 %vm1178_vm3, %v5556_v22  ;;  %5080 = vmatprep.subr.bf16.mxu1 %v5079_v32 }
 0xd19   : > { %4859 = vmatpush3.msra.mxu0 %v1284_v23 }
 0xd1a   : > { %5084 = vmatprep.subr.bf16.mxu0 %v5083_v45 }
 0xd1b   : > { %5082 = vmatpush3.bf16.msra.mxu1 %v5079_v32 }
 0xd1c   : > { %5092 = vmatprep.subr.bf16.mxu1 %v5091_v39 }
 0xd1e   : > { %4872 = vmatmul.mubr.msk.f32.vlgmr.msra.gmra.mrb[28].mxu1 %vm1178_vm3, %v5562_v27 }
 0xd1f   : > { %5094 = vmatpush3.bf16.msra.mxu1 %v5091_v39  ;;  %4893 = vmatprep.mubr.msk.f32.mxu1 %vm1178_vm3, %v5556_v22 }
 0xd20   : > { %5096 = vmatprep.subr.bf16.mxu1 %v5095_v42 }
 0xd23   : > { %5098 = vmatpush3.bf16.msra.mxu1 %v5095_v42 }
 0xd24   : > { %4906 = vmatprep.subr.mxu1 %v5217_v35 }
 0xd26   : > { %4894 = vmatmul.mubr.msk.f32.vlgmr.msra.gmra.mrb[30].mxu1 %vm1178_vm3, %v5562_v27 }
 0xd27   : > { %4908 = vmatprep.mubr.msk.f32.mxu1 %vm5218_vm4, %v5217_v35 }
 0xde9   : > { %v3155_v48 = vpop.f32.mrb[26].mxu1 }
 0xdea   : > { %v3082_v49 = vpop.f32.mrb[14].mxu0  ;;  %v4857_v36 = vpop.f32.mrb[27].mxu1 }
 0xdeb   : > { %v4852_v54 = vpop.f32.mrb[15].mxu0  ;;  %4860 = vmatprep.mubr.msk.f32.mxu0 %vm1550_vm5, %v3082_v49 }
 0xdec   : > { %4861 = vmatmul.mubr.msk.f32.vlgmr.msra.gmra.mrb[8].mxu0 %vm1550_vm5, %v3155_v48  ;;  %v3942_v54 = vld [vmem:[%s5419_s13] sm:$0xff] }
 0xded   : > { %5086 = vmatpush3.bf16.msra.mxu0 %v5083_v45  ;;  %4882 = vmatprep.mubr.msk.f32.mxu0 %vm1178_vm3, %v5556_v22  ;;  %v4509_v22 = vld [vmem:[%s5386_s30 + $0x3] ss:$0 sm:$0xff]  ;;  %s5949_s30 = scalar_lea.vmem %s5888_s15, %s5356_s27 }
 0xdee   : > { %5088 = vmatprep.subr.bf16.mxu0 %v5087_v50  ;;  %v4523_v32 = vld [vmem:[%s5949_s30] ss:$0 sm:$0xff] }
 0xdf1   : > { %v4873_v55 = vpop.f32.mrb[28].mxu1  ;;  %5090 = vmatpush3.bf16.msra.mxu0 %v5087_v50 }
 0xdf2   : > { %v3314_v56 = vpop.f32.mrb[29].mxu1  ;;  %4896 = vmatprep.subr.mxu0 %v5217_v35  ;;  %v3320_v3 = vadd.f32 %v4873_v55, %v4506_v0  ;;  %v3943_v55 = vld [vmem:[%s5419_s13 + $0x8] sm:$0xff] }
 0xdf3   : > { %v3315_v2 = vadd.f32 %v4506_v0, %v3314_v56  ;;  %v5099_v56 = vpack.c.bf16 %v3943_v55, %v3942_v54 }
 0xdf4   : > { %4883 = vmatmul.mubr.msk.f32.vlgmr.msra.gmra.mrb[16].mxu0 %vm1178_vm3, %v5562_v27 }
 0xdf5   : > { %4898 = vmatprep.mubr.msk.f32.mxu0 %vm5218_vm4, %v5217_v35 }
 0xdf9   : > { %v4895_v58 = vpop.f32.mrb[30].mxu1 }
 0xdfa   : > { %v3482_v59 = vadd.f32 %v4895_v58, %v4512_v38  ;;  %v3476_v60 = vpop.f32.mrb[31].mxu1  ;;  %v3945_v58 = vld [vmem:[%s5419_s13 + $0x18] sm:$0xff] }
 0xdfb   : > { %v3477_v61 = vadd.f32 %v4512_v38, %v3476_v60  ;;  %v3944_v38 = vld [vmem:[%s5419_s13 + $0x10] sm:$0xff]  ;;  %s5950_s13 = scalar_lea.vmem %s5889_s16, %s5356_s27 }
 0xdfd   : > { %4907 = vmatpush3.msra.mxu1 %v3477_v61 }
 0xdfe   : > { %5100 = vmatprep.subr.bf16.mxu1 %v5099_v56 }
 0xec7   : > { %v4884_v62 = vpop.f32.mrb[16].mxu0 }
 0xec8   : > { %v3395_v63 = vpop.f32.mrb[17].mxu0  ;;  %v3401_v27 = vadd.f32 %v4884_v62, %v4509_v22 }
 0xec9   : > { %v3396_v1 = vadd.f32 %v4509_v22, %v3395_v63 }
 0xecb   : > { %4897 = vmatpush3.xpose.msk.msra.mxu0 %vm1550_vm5, %v3396_v1 }
 0xecc   : > { %4901 = vmatprep.subr.mxu0 %v5217_v35 }
 0xece   : > { %4899 = vmatmul.mubr.msk.f32.vlgmr.msra.gmra.mrb[18].mxu0 %vm1550_vm5, %v3315_v2  ;;  %v4524_v2 = vld [vmem:[%s5950_s13] ss:$0 sm:$0xff] }
 0xecf   : > { %4902 = vmatpush3.xpose.msk.msra.mxu0 %vm1550_vm5, %v3401_v27  ;;  %4903 = vmatprep.mubr.msk.f32.mxu0 %vm5218_vm4, %v5217_v35 }
 0xed0   : > { %4911 = vmatprep.subr.mxu0 %v5217_v35 }
 0xed2   : > { %4904 = vmatmul.mubr.msk.f32.vlgmr.msra.gmra.mrb[20].mxu0 %vm1550_vm5, %v3320_v3 }
 0xed3   : > { %4912 = vmatpush3.msra.mxu0 %v3482_v59  ;;  %4913 = vmatprep.mubr.msk.f32.mxu0 %vm5218_vm4, %v5217_v35  ;;  %v5103_v59 = vpack.c.bf16 %v3945_v58, %v3944_v38 }
 0xed4   : > { %4916 = vmatprep.subr.mxu0 %v1285_v26 }
 0xfa1   : > { %v3557_v4 = vpop.f32.mrb[18].mxu0 }
 0xfa2   : > { %v3558_v5 = vadd.f32 %v5600_v53, %v3557_v4  ;;  %v4900_v6 = vpop.f32.mrb[19].mxu0 }
 0xfa4   : > { %v3637_v7 = vsel %vm1550_vm5, %v3558_v5, -inf }
 0xfa5   : > { %3638 = vmax.xlane.f32.xlu0 %v3637_v7  ;;  %v3633_v8 = vpop.f32.mrb[20].mxu0 }
 0xfa6   : > { %v3634_v9 = vadd.f32 %v5606_v57, %v3633_v8  ;;  %v4905_v10 = vpop.f32.mrb[21].mxu0 }
 0xfa7   : > { %v4088_v10 = vld [vmem:[%s5428_s14] sm:$0xff] }
 0xfa8   : > { %v3640_v11 = vsel %vm1550_vm5, %v3634_v9, -inf }
 0xfa9   : > { %3641 = vmax.xlane.f32.xlu1 %v3640_v11  ;;  %v4089_v11 = vld [vmem:[%s5428_s14 + $0x8] sm:$0xff] }
0x1032   : > { %v3639_v12 = vpop.xlane.xlu0 %3638 }
0x1033   : > { %v3643_v13 = vsub.f32 %v3558_v5, %v3639_v12  ;;  %v4525_v5 = vld [vmem:[%s5951_s22] ss:$0 sm:$0xff]  ;;  %v5107_v12 = vpack.c.bf16 %v4089_v11, %v4088_v10 }
0x1035   : > { %v3645_v14 = vmul.f32 1.442695, %v3643_v13  ;;  %v4090_v13 = vld [vmem:[%s5428_s14 + $0x10] sm:$0xff] }
0x1036   : > { %v3642_v15 = vpop.xlane.xlu1 %3641 }
0x1037   : > { %5184 = vpow2.f32 %v3645_v14  ;;  %v3644_v35 = vsub.f32 %v3634_v9, %v3642_v15  ;;  %v4091_v14 = vld [vmem:[%s5428_s14 + $0x18] sm:$0xff] }
0x1038   : > { %v5111_v15 = vpack.c.bf16 %v4091_v14, %v4090_v13 }
0x1039   : > { %v3647_v16 = vmul.f32 1.442695, %v3644_v35  ;;  %v4092_v35 = vld [vmem:[%s5428_s14 + $0x20] sm:$0xff] }
0x103b   : > { %5186 = vpow2.f32 %v3647_v16  ;;  %v4093_v16 = vld [vmem:[%s5428_s14 + $0x28] sm:$0xff] }
0x1041   : > { %v5185_v53 = vpop.eup %5184 }
0x1042   : > { %v3649_v17 = vsel %vm1550_vm5, %v5185_v53, 0.0 }
0x1043   : > { %3650 = vadd.xlane.f32.xlu0 %v3649_v17  ;;  %v4094_v17 = vld [vmem:[%s5428_s14 + $0x30] sm:$0xff] }
0x1045   : > { %v5187_v18 = vpop.eup %5186 }
0x1046   : > { %v3652_v57 = vsel %vm1550_vm5, %v5187_v18, 0.0 }
0x1047   : > { %3653 = vadd.xlane.f32.xlu1 %v3652_v57 }
0x10d0   : > { %v3651_v19 = vpop.xlane.xlu0 %3650 }
0x10d1   : > { %5188 = vrcp.f32 %v3651_v19  ;;  %v4096_v19 = vld [vmem:[%s5428_s14 + $0x40] sm:$0xff] }
0x10d4   : > { %v3654_v20 = vpop.xlane.xlu1 %3653 }
0x10d5   : > { %5190 = vrcp.f32 %v3654_v20  ;;  %v4097_v20 = vld [vmem:[%s5428_s14 + $0x48] sm:$0xff] }
0x10db   : > { %v5189_v21 = vpop.eup %5188 }
0x10dc   : > { %v3657_v23 = vmul.f32 %v5189_v21, %v5185_v53  ;;  %v5115_v53 = vpack.c.bf16 %v4093_v16, %v4092_v35  ;;  %v5123_v21 = vpack.c.bf16 %v4097_v20, %v4096_v19 }
0x10de   : > { %4909 = vmatmul.mubr.msk.f32.vlgmr.msra.gmra.mrb[32].mxu1 %vm1550_vm5, %v3657_v23  ;;  %v4098_v23 = vld [vmem:[%s5428_s14 + $0x50] sm:$0xff] }
0x10df   : > { %v5191_v24 = vpop.eup %5190  ;;  %5102 = vmatpush3.bf16.msra.mxu1 %v5099_v56 }
0x10e0   : > { %v3658_v25 = vmul.f32 %v5191_v24, %v5187_v18  ;;  %5104 = vmatprep.subr.bf16.mxu1 %v5103_v59  ;;  %v4095_v18 = vld [vmem:[%s5428_s14 + $0x38] sm:$0xff] }
0x10e1   : > { %v5119_v57 = vpack.c.bf16 %v4095_v18, %v4094_v17  ;;  %v4099_v24 = vld [vmem:[%s5428_s14 + $0x58] sm:$0xff] }
0x10e2   : > { %4914 = vmatmul.mubr.msk.f32.vlgmr.msra.gmra.mrb[22].mxu0 %vm1550_vm5, %v3658_v25  ;;  %v5127_v25 = vpack.c.bf16 %v4099_v24, %v4098_v23 }
0x10e3   : > { %4917 = vmatpush3.msra.mxu0 %v1285_v26  ;;  %5106 = vmatpush3.bf16.msra.mxu1 %v5103_v59  ;;  %v4100_v26 = vld [vmem:[%s5428_s14 + $0x60] sm:$0xff] }
0x10e4   : > { %5108 = vmatprep.subr.bf16.mxu0 %v5107_v12 }
0x11b1   : > { %v3728_v28 = vpop.f32.mrb[32].mxu1 }
0x11b2   : > { %v4910_v29 = vpop.f32.mrb[33].mxu1  ;;  %4918 = vmatprep.mubr.msk.f32.mxu0 %vm1550_vm5, %v3728_v28  ;;  %v4101_v28 = vld [vmem:[%s5428_s14 + $0x68] sm:$0xff] }
0x11b3   : > { %v5131_v29 = vpack.c.bf16 %v4101_v28, %v4100_v26 }
0x11b5   : > { %v3801_v30 = vpop.f32.mrb[22].mxu0 }
0x11b6   : > { %v4915_v31 = vpop.f32.mrb[23].mxu0  ;;  %4919 = vmatmul.mubr.msk.f32.vlgmr.msra.gmra.mrb[8].mxu0 %vm1550_vm5, %v3801_v30  ;;  %v4102_v30 = vld [vmem:[%s5428_s14 + $0x70] sm:$0xff] }
0x11b7   : > { %5110 = vmatpush3.bf16.msra.mxu0 %v5107_v12  ;;  %v4103_v31 = vld [vmem:[%s5428_s14 + $0x78] sm:$0xff] }
0x11b8   : > { %5112 = vmatprep.subr.bf16.mxu0 %v5111_v15 }
0x11bb   : > { %5114 = vmatpush3.bf16.msra.mxu0 %v5111_v15 }
0x11bc   : > { %5116 = vmatprep.subr.bf16.mxu0 %v5115_v53 }
0x11bf   : > { %5118 = vmatpush3.bf16.msra.mxu0 %v5115_v53 }
0x11c0   : > { %5120 = vmatprep.subr.bf16.mxu0 %v5119_v57 }
0x11c3   : > { %5122 = vmatpush3.bf16.msra.mxu0 %v5119_v57 }
0x11c4   : > { %5124 = vmatprep.subr.bf16.mxu0 %v5123_v21 }
0x11c7   : > { %5126 = vmatpush3.bf16.msra.mxu0 %v5123_v21 }
0x11c8   : > { %5128 = vmatprep.subr.bf16.mxu0 %v5127_v25 }
0x11cb   : > { %5130 = vmatpush3.bf16.msra.mxu0 %v5127_v25  ;;  %v4529_v25 = vld [vmem:[%s971_s26] ss:$0 sm:$0xff] }
0x11cc   : > { %5132 = vmatprep.subr.bf16.mxu0 %v5131_v29 }
0x11cf   : > { %5134 = vmatpush3.bf16.msra.mxu0 %v5131_v29 }
0x1289   : > { %v4920_v33 = vpop.f32.mrb[8].mxu0 }
0x128a   : > { %v3895_v34 = vadd.f32 %v4920_v33, %v4523_v32  ;;  %v3877_v37 = vpop.f32.mrb[9].mxu0  ;;  %v4526_v33 = vld [vmem:[%s963_s2] ss:$0 sm:$0xff] }
0x128b   : > { %v3894_v39 = vadd.f32 %v4523_v32, %v3877_v37  ;;  %v5135_v32 = vpack.c.bf16 %v4103_v31, %v4102_v30 }
0x128c   : > { %v5792_v40 = vadd.f32 %v3895_v34, %v5530_v52 }
0x128d   : > { %v5795_v41 = vadd.f32 %v3894_v39, %v5528_v51  ;;  %5136 = vmatprep.subr.bf16.mxu0 %v5135_v32 }
0x128e   : > { %v3903_v42 = vsel %vm1178_vm3, %v5792_v40, 0.0  ;;  %5138 = vmatpush3.bf16.msra.mxu0 %v5135_v32 }
0x128f   : > { %3904 = vadd.xlane.f32.xlu1 %v3903_v42  ;;  %v3900_v43 = vsel %vm1178_vm3, %v5795_v41, 0.0 }
0x1290   : > { %3901 = vadd.xlane.f32.xlu0 %v3900_v43 }
0x131c   : > { %v3905_v44 = vpop.xlane.xlu1 %3904 }
0x131d   : > { %v3907_v45 = vmul.f32 0.03125, %v3905_v44  ;;  %v3902_v46 = vpop.xlane.xlu0 %3901 }
0x131e   : > { %v3906_v52 = vmul.f32 0.03125, %v3902_v46 }
0x131f   : > { %v3909_v47 = vsub.f32 %v5792_v40, %v3907_v45 }
0x1320   : > { %v3908_v51 = vsub.f32 %v5795_v41, %v3906_v52 }
0x1321   : > { %v3911_v48 = vmul.f32 %v3909_v47, %v3909_v47 }
0x1322   : > { %v3910_v49 = vmul.f32 %v3908_v51, %v3908_v51 }
0x1323   : > { %v3915_v36 = vsel %vm1178_vm3, %v3911_v48, 0.0 }
0x1324   : > { %3916 = vadd.xlane.f32.xlu1 %v3915_v36  ;;  %v3912_v50 = vsel %vm1178_vm3, %v3910_v49, 0.0 }
0x1325   : > { %3913 = vadd.xlane.f32.xlu0 %v3912_v50 }
0x13b1   : > { %v3917_v60 = vpop.xlane.xlu1 %3916 }
0x13b2   : > { %v3919_v61 = vmul.f32 0.03125, %v3917_v60  ;;  %v3914_v22 = vpop.xlane.xlu0 %3913 }
0x13b3   : > { %v3918_v62 = vmul.f32 0.03125, %v3914_v22 }
0x13b4   : > { %v3921_v63 = vadd.f32 1e-06, %v3919_v61 }
0x13b5   : > { %v3920_v0 = vadd.f32 1e-06, %v3918_v62 }
0x13b6   : > { %5192 = vrsqrt.f32 %v3921_v63 }
0x13b7   : > { %5194 = vrsqrt.f32 %v3920_v0 }
0x13c0   : > { %v5193_v1 = vpop.eup %5192 }
0x13c1   : > { %v5195_v27 = vpop.eup %5194  ;;  %v3925_v3 = vmul.f32 %v5193_v1, %v3909_v47 }
0x13c2   : > { %v3924_v4 = vmul.f32 %v5195_v27, %v3908_v51 }
0x13c3   : > { %v3933_v6 = vmul.f32 %v4524_v2, %v3925_v3 }
0x13c4   : > { %v3932_v7 = vmul.f32 %v4524_v2, %v3924_v4 }
0x13c5   : > { %v3941_v9 = vadd.f32 %v4525_v5, %v3933_v6 }
0x13c6   : > { %v3940_v8 = vadd.f32 %v4525_v5, %v3932_v7 }
0x13c8   : > { %4929 = vmatprep.mubr.msk.f32.mxu1 %vm1178_vm3, %v3940_v8 }
0x13c9   : > { %4930 = vmatmul.mubr.msk.f32.vlgmr.msra.gmra.mrb[34].mxu1 %vm1178_vm3, %v3941_v9 }
0x149c   : > { %v4931_v34 = vpop.f32.mrb[34].mxu1 }
0x149d   : > { %v4031_v37 = vadd.f32 %v4931_v34, %v4526_v33  ;;  %v4025_v39 = vpop.f32.mrb[35].mxu1 }
0x149e   : > { %v4026_v42 = vadd.f32 %v4526_v33, %v4025_v39 }
0x149f   : > { %v4037_v43 = vmul.f32 0.70710677, %v4031_v37  ;;  %v4035_v21 = vmul.f32 0.5, %v4031_v37 }
0x14a0   : > { %v4036_v44 = vmul.f32 0.70710677, %v4026_v42  ;;  %v4034_v19 = vmul.f32 0.5, %v4026_v42 }
0x14a1   : > { %v4039_v45 = vand.u32 2147483647, %v4037_v43  ;;  %vm4079_vm6 = vcmp.lt.f32.partialorder %v4037_v43, 0.0 }
0x14a2   : > { %v4038_v46 = vand.u32 2147483647, %v4036_v44  ;;  %vm4078_vm7 = vcmp.lt.f32.partialorder %v4036_v44, 0.0 }
0x14a3   : > { %v4041_v52 = vmul.f32 0.3275911, %v4039_v45  ;;  %v4067_v49 = vsub.f32 0.0, %v4039_v45 }
0x14a4   : > { %v4040_v47 = vmul.f32 0.3275911, %v4038_v46  ;;  %v4066_v36 = vsub.f32 0.0, %v4038_v46 }
0x14a5   : > { %v4043_v51 = vadd.f32 1.0, %v4041_v52  ;;  %v4069_v54 = vmul.f32 %v4067_v49, %v4039_v45 }
0x14a6   : > { %v4042_v48 = vadd.f32 1.0, %v4040_v47  ;;  %v4068_v38 = vmul.f32 %v4066_v36, %v4038_v46 }
0x14a7   : > { %5196 = vrcp.f32 %v4043_v51  ;;  %v4072_v60 = vmul.f32 1.442695, %v4069_v54 }
0x14a8   : > { %5198 = vrcp.f32 %v4042_v48  ;;  %v4070_v62 = vmul.f32 1.442695, %v4068_v38  ;;  %v4532_v38 = vld [vmem:[%s5954_s29] ss:$0 sm:$0xff] (!%p4530_p5) }
0x14a9   : > { %5200 = vpow2.f32 %v4072_v60 }
0x14aa   : > { %5202 = vpow2.f32 %v4070_v62 }
0x14b1   : > { %v5197_v50 = vpop.eup %5196 }
0x14b2   : > { %v5199_v55 = vpop.eup %5198  ;;  %v4049_v56 = vmul.f32 1.0614054, %v5197_v50 }
0x14b3   : > { %v4048_v58 = vmul.f32 1.0614054, %v5199_v55  ;;  %v5201_v10 = vpop.eup %5200 }
0x14b4   : > { %v4051_v59 = vadd.f32 -1.4531521, %v4049_v56  ;;  %v5203_v12 = vpop.eup %5202 }
0x14b5   : > { %v4050_v61 = vadd.f32 -1.4531521, %v4048_v58 }
0x14b6   : > { %v4053_v22 = vmul.f32 %v5197_v50, %v4051_v59 }
0x14b7   : > { %v4052_v63 = vmul.f32 %v5199_v55, %v4050_v61 }
0x14b8   : > { %v4055_v0 = vadd.f32 1.4214138, %v4053_v22 }
0x14b9   : > { %v4054_v1 = vadd.f32 1.4214138, %v4052_v63 }
0x14ba   : > { %v4057_v2 = vmul.f32 %v5197_v50, %v4055_v0 }
0x14bb   : > { %v4056_v27 = vmul.f32 %v5199_v55, %v4054_v1 }
0x14bc   : > { %v4059_v3 = vadd.f32 -0.28449672, %v4057_v2 }
0x14bd   : > { %v4058_v4 = vadd.f32 -0.28449672, %v4056_v27 }
0x14be   : > { %v4061_v5 = vmul.f32 %v5197_v50, %v4059_v3 }
0x14bf   : > { %v4060_v6 = vmul.f32 %v5199_v55, %v4058_v4 }
0x14c0   : > { %v4063_v7 = vadd.f32 0.2548296, %v4061_v5 }
0x14c1   : > { %v4062_v8 = vadd.f32 0.2548296, %v4060_v6 }
0x14c2   : > { %v4065_v9 = vmul.f32 %v5197_v50, %v4063_v7 }
0x14c3   : > { %v4064_v11 = vmul.f32 %v5199_v55, %v4062_v8  ;;  %v4531_v55 = vld [vmem:[%s5953_s12] ss:$0 sm:$0xff] (!%p4530_p5) }
0x14c4   : > { %v4075_v13 = vmul.f32 %v5201_v10, %v4065_v9 }
0x14c5   : > { %v4074_v14 = vmul.f32 %v5203_v12, %v4064_v11 }
0x14c6   : > { %v4077_v15 = vsub.f32 1.0, %v4075_v13 }
0x14c7   : > { %v4076_v35 = vsub.f32 1.0, %v4074_v14 }
0x14c8   : > { %v4081_v16 = vsub.f32 0.0, %v4077_v15 }
0x14c9   : > { %v4080_v53 = vsub.f32 0.0, %v4076_v35 }
0x14ca   : > { %v4083_v17 = vsel %vm4079_vm6, %v4081_v16, %v4077_v15 }
0x14cb   : > { %v4085_v18 = vadd.f32 1.0, %v4083_v17  ;;  %v4082_v57 = vsel %vm4078_vm7, %v4080_v53, %v4076_v35 }
0x14cc   : > { %v4084_v20 = vadd.f32 1.0, %v4082_v57 }
0x14cd   : > { %v4087_v24 = vmul.f32 %v4085_v18, %v4035_v21 }
0x14ce   : > { %v4086_v23 = vmul.f32 %v4084_v20, %v4034_v19 }
0x14d0   : > { %4964 = vmatprep.mubr.f32.mxu0 %v4086_v23 }
0x14d1   : > { %4965 = vmatmul.mubr.f32.vlgmr.msra.gmra.mrb[24].mxu0 %v4087_v24 }
0x15a4   : > { %v4966_v26 = vpop.f32.mrb[24].mxu0  ;;  %4193 = sbr.rel (%p4530_p5) target bundleno = 5864 (0x16e8), region = 124 }
0x15a5   : > { %v4183_v28 = vadd.f32 %v4966_v26, %v4529_v25  ;;  %v4177_v29 = vpop.f32.mrb[25].mxu0 }
0x15a6   : > { %v4178_v30 = vadd.f32 %v4529_v25, %v4177_v29 }
0x15a7   : > { %v4187_v31 = vadd.f32 %v4183_v28, %v5792_v40 }
0x15a8   : > { %v4186_v32 = vadd.f32 %v4178_v30, %v5795_v41 }
0x15a9   : > { %4189 = vst.msk [vmem:[#allocation2 + $0x8] sm:$0xff] %vm1178_vm3, %v4187_v31  ;;  %v4199_v34 = vsel (!%p4530_p5), %vm1178_vm3, %v4187_v31, 0.0 }
0x15aa   : > { %4188 = vst.msk [vmem:[#allocation2] sm:$0xff] %vm1178_vm3, %v4186_v32  ;;  %v4196_v33 = vsel (!%p4530_p5), %vm1178_vm3, %v4186_v32, 0.0 }
0x15ab   : > { %4197 = vadd.xlane.f32.xlu0 %v4196_v33 }
0x15af   : > { %4200 = vadd.xlane.f32.xlu0 %v4199_v34 }
0x1638   : > { %v4198_v37 = vpop.xlane.xlu0 %4197 }
0x1639   : > { %v4202_v39 = vmul.f32 0.03125, %v4198_v37 }
0x163b   : > { %v4204_v42 = vsub.f32 %v4186_v32, %v4202_v39 }
0x163c   : > { %v4201_v43 = vpop.xlane.xlu0 %4200 }
0x163d   : > { %v4203_v40 = vmul.f32 0.03125, %v4201_v43  ;;  %v4206_v44 = vmul.f32 %v4204_v42, %v4204_v42 }
0x163f   : > { %v4205_v41 = vsub.f32 %v4187_v31, %v4203_v40  ;;  %v4208_v45 = vsel %vm1178_vm3, %v4206_v44, 0.0 }
0x1640   : > { %4209 = vadd.xlane.f32.xlu1 %v4208_v45 }
0x1641   : > { %v4207_v46 = vmul.f32 %v4205_v41, %v4205_v41 }
0x1643   : > { %v4211_v52 = vsel %vm1178_vm3, %v4207_v46, 0.0 }
0x1644   : > { %4212 = vadd.xlane.f32.xlu1 %v4211_v52 }
0x16cd   : > { %v4210_v47 = vpop.xlane.xlu1 %4209 }
0x16ce   : > { %v4214_v51 = vmul.f32 0.03125, %v4210_v47 }
0x16d0   : > { %v4216_v48 = vadd.f32 1e-06, %v4214_v51 }
0x16d1   : > { %v4213_v49 = vpop.xlane.xlu1 %4212 }
0x16d2   : > { %5204 = vrsqrt.f32 %v4216_v48  ;;  %v4215_v36 = vmul.f32 0.03125, %v4213_v49 }
0x16d4   : > { %v4217_v50 = vadd.f32 1e-06, %v4215_v36 }
0x16d6   : > { %5206 = vrsqrt.f32 %v4217_v50 }
0x16dc   : > { %v5205_v54 = vpop.eup %5204 }
0x16dd   : > { %v4220_v56 = vmul.f32 %v5205_v54, %v4204_v42 }
0x16df   : > { %v4228_v58 = vmul.f32 %v4531_v55, %v4220_v56 }
0x16e0   : > { %v5207_v59 = vpop.eup %5206 }
0x16e1   : > { %v4236_v60 = vadd.f32 %v4532_v38, %v4228_v58  ;;  %v4221_v61 = vmul.f32 %v5207_v59, %v4205_v41 }
0x16e3   : > { %4238 = vst.msk [vmem:[%s5955_s5] sm:$0xff] %vm1178_vm3, %v4236_v60  ;;  %v4229_v22 = vmul.f32 %v4531_v55, %v4221_v61 }
0x16e5   : > { %v4237_v62 = vadd.f32 %v4532_v38, %v4229_v22 }
0x16e7   : > { %4239 = vst.msk [vmem:[%s5956_s24 + $0x8] sm:$0xff] %vm1178_vm3, %v4237_v62 }
0x16e8 PF: > { %s5957_s9 = sld [smem:[#allocation3_spill]] }
0x16ee   : > { %s34_s5 = sadd.s32 1, %s5957_s9  }
0x16ef   : > { %p31_p6 = scmp.ge.s32.totalorder %s34_s5, 4  }
0x16f1   :  { %33 = sbr.rel (!%p31_p6) target bundleno = 19 (0x13), region = 195 }

// kernel: image_reward_forward.3
= control target key start
LH: loop header
LB: loop body
LE: loop exit
PB: predicated region body
PF: predicated region fallthrough
CT: control target
= control target key end

     0   :  { %s9165_s6 = smov 1   ;;  %s9166_s10 = smov 2   ;;  %s10043_s0 = inlined_call_operand.smem [shape: u32[36], index: -1, kind: input, shape index: {}] }
   0x1   :  { %s9213_s5 = sld [smem:[%s10043_s0]]   ;;  %s9167_s14 = smov 3  }
   0x2   :  { %s9218_s9 = sld [smem:[%s10043_s0 + %s9165_s6]]   ;;  %s9168_s18 = smov 4  }
   0x3   :  { %s9223_s13 = sld [smem:[%s10043_s0 + %s9166_s10]]   ;;  %s9169_s22 = smov 5  }
   0x4   :  { %s9228_s17 = sld [smem:[%s10043_s0 + %s9167_s14]]   ;;  %s9170_s26 = smov 6  }
   0x5   :  { %s9233_s21 = sld [smem:[%s10043_s0 + %s9168_s18]]   ;;  %s9171_s30 = smov 7  }
   0x6   :  { %s9238_s25 = sld [smem:[%s10043_s0 + %s9169_s22]]   ;;  %s9172_s4 = smov 8  }
   0x7   :  { %10061 = sst [smem:[#allocation4_spill]] %s9213_s5  ;;  %s9173_s10 = smov 9  }
   0x8   :  { %10062 = sst [smem:[#allocation5_spill]] %s9218_s9  ;;  %s9174_s15 = smov 10  }
   0x9   :  { %10063 = sst [smem:[#allocation6_spill]] %s9223_s13  ;;  %s9175_s20 = smov 11  }
   0xa   :  { %10064 = sst [smem:[#allocation7_spill]] %s9228_s17  ;;  %s9177_s1 = smov 13  }
   0xb   :  { %10065 = sst [smem:[#allocation8_spill]] %s9233_s21  ;;  %s9178_s7 = smov 14  }
   0xc   :  { %10066 = sst [smem:[#allocation9_spill]] %s9238_s25  ;;  %s9180_s22 = smov 16  }
   0xd   :  { %s9243_s29 = sld [smem:[%s10043_s0 + %s9170_s26]]   ;;  %s9176_s26 = smov 12  }
   0xe   :  { %s9248_s3 = sld [smem:[%s10043_s0 + %s9171_s30]]   ;;  %s9181_s28 = smov 17  }
   0xf   :  { %s7747_s8 = sld [smem:[%s10043_s0 + %s9172_s4]]  }
  0x10   :  { %s9256_s14 = sld [smem:[%s10043_s0 + %s9173_s10]]  }
  0x11   :  { %s9261_s19 = sld [smem:[%s10043_s0 + %s9174_s15]]   ;;  %s9179_s15 = smov 15  }
  0x12   :  { %s9266_s24 = sld [smem:[%s10043_s0 + %s9175_s20]]  }
  0x13   :  { %10067 = sst [smem:[#allocation10_spill]] %s9243_s29 }
  0x14   :  { %10068 = sst [smem:[#allocation11_spill]] %s9248_s3 }
  0x15   :  { %s9271_s30 = sld [smem:[%s10043_s0 + %s9176_s26]]   ;;  %v76_v0 = vstv %s7747_s8  ;;  %s9182_s8 = smov 18  }
  0x16   :  { %10069 = sst [smem:[#allocation12_spill]] %s9256_s14  ;;  %77 = vst [vmem:[#allocation3] sm:$0x1] %v76_v0 }
  0x17   :  { %10070 = sst [smem:[#allocation13_spill]] %s9261_s19 }
  0x18   :  { %10071 = sst [smem:[#allocation14_spill]] %s9266_s24 }
  0x19   :  { %s9276_s6 = sld [smem:[%s10043_s0 + %s9177_s1]]  }
  0x1a   :  { %s9281_s12 = sld [smem:[%s10043_s0 + %s9178_s7]]  }
  0x1b   :  { %10072 = sst [smem:[#allocation15_spill]] %s9271_s30 }
  0x1c   :  { %s9286_s20 = sld [smem:[%s10043_s0 + %s9179_s15]]   ;;  %s9183_s15 = smov 19  }
  0x1d   :  { %s9291_s27 = sld [smem:[%s10043_s0 + %s9180_s22]]   ;;  %s9184_s22 = smov 20  }
  0x1e   :  { %s9296_s4 = sld [smem:[%s10043_s0 + %s9181_s28]]   ;;  %s9185_s28 = smov 21  }
  0x1f   :  { %10073 = sst [smem:[#allocation16_spill]] %s9276_s6 }
  0x20   :  { %10074 = sst [smem:[#allocation17_spill]] %s9281_s12 }
  0x21   :  { %s9301_s11 = sld [smem:[%s10043_s0 + %s9182_s8]]   ;;  %s9186_s8 = smov 22  }
  0x22   :  { %10075 = sst [smem:[#allocation18_spill]] %s9286_s20 }
  0x23   :  { %10076 = sst [smem:[#allocation19_spill]] %s9291_s27 }
  0x24   :  { %10077 = sst [smem:[#allocation20_spill]] %s9296_s4 }
  0x25   :  { %s9306_s29 = sld [smem:[%s10043_s0 + %s9183_s15]]   ;;  %s9187_s15 = smov 23  }
  0x26   :  { %s9311_s3 = sld [smem:[%s10043_s0 + %s9184_s22]]   ;;  %s9188_s22 = smov 24  }
  0x27   :  { %10078 = sst [smem:[#allocation21_spill]] %s9301_s11 }
  0x28   :  { %s9316_s25 = sld [smem:[%s10043_s0 + %s9185_s28]]   ;;  %s9189_s28 = smov 25  }
  0x29   :  { %s9321_s17 = sld [smem:[%s10043_s0 + %s9186_s8]]   ;;  %s9190_s8 = smov 26  }
  0x2a   :  { %s9326_s21 = sld [smem:[%s10043_s0 + %s9187_s15]]   ;;  %s9191_s15 = smov 27  }
  0x2b   :  { %10079 = sst [smem:[#allocation22_spill]] %s9306_s29 }
  0x2c   :  { %10080 = sst [smem:[#allocation23_spill]] %s9311_s3 }
  0x2d   :  { %s9331_s13 = sld [smem:[%s10043_s0 + %s9188_s22]]   ;;  %s9192_s22 = smov 28  }
  0x2e   :  { %10081 = sst [smem:[#allocation24_spill]] %s9316_s25 }
  0x2f   :  { %s9336_s9 = sld [smem:[%s10043_s0 + %s9189_s28]]   ;;  %s9193_s28 = smov 29  }
  0x30   :  { %10082 = sst [smem:[#allocation25_spill]] %s9326_s21 }
  0x31   :  { %s9341_s5 = sld [smem:[%s10043_s0 + %s9190_s8]]   ;;  %s9194_s8 = smov 30  }
  0x32   :  { %s9346_s21 = sld [smem:[%s10043_s0 + %s9191_s15]]   ;;  %s9195_s15 = smov 31  }
  0x33   :  { %10083 = sst [smem:[#allocation26_spill]] %s9331_s13 }
  0x34   :  { %s9351_s13 = sld [smem:[%s10043_s0 + %s9192_s22]]   ;;  %s9196_s22 = smov 32  }
  0x35   :  { %10084 = sst [smem:[#allocation27_spill]] %s9336_s9 }
  0x36   :  { %s9356_s9 = sld [smem:[%s10043_s0 + %s9193_s28]]   ;;  %s9197_s28 = smov 33  }
  0x37   :  { %10085 = sst [smem:[#allocation28_spill]] %s9341_s5 }
  0x38   :  { %10086 = sst [smem:[#allocation29_spill]] %s9346_s21 }
  0x39   :  { %s9361_s5 = sld [smem:[%s10043_s0 + %s9194_s8]]   ;;  %s9198_s8 = smov 34  }
  0x3a   :  { %10087 = sst [smem:[#allocation30_spill]] %s9351_s13 }
  0x3b   :  { %s9366_s21 = sld [smem:[%s10043_s0 + %s9195_s15]]   ;;  %s9199_s15 = smov 35  }
  0x3c   :  { %10088 = sst [smem:[#allocation31_spill]] %s9356_s9 }
  0x3d   :  { %s9371_s13 = sld [smem:[%s10043_s0 + %s9196_s22]]   ;;  %s9388_s22 = smov 0  }
  0x3e   :  { %s9376_s9 = sld [smem:[%s10043_s0 + %s9197_s28]]  }
  0x3f   :  { %10089 = sst [smem:[#allocation32_spill]] %s9361_s5 }
  0x40   :  { %s9381_s5 = sld [smem:[%s10043_s0 + %s9198_s8]]  }
  0x41   :  { %10090 = sst [smem:[#allocation33_spill]] %s9366_s21 }
  0x42   :  { %s9386_s21 = sld [smem:[%s10043_s0 + %s9199_s15]]  }
  0x44   :  { %10091 = sst [smem:[#allocation34_spill]] %s9376_s9 }
  0x46   :  { %10092 = sst [smem:[#allocation35_spill]] %s9381_s5 }
  0x48   :  { %10093 = sst [smem:[#allocation36_spill]] %s9386_s21 }
  0x49 LB: > { %10094 = sst [smem:[#allocation37_spill]] %s9163_s22  ;;  %s9394_s23 = sadd.s32 4294967295, %s9163_s22   ;;  %s9163_s22 = sphi %s9388_s22, %s83_s22  }
  0x4a   : > { %10095 = sst [smem:[#allocation38_spill]] %s9394_s23  ;;  %p7778_p0 = scmp.ge.s32.totalorder %s9163_s22, 1 }
  0x4b   : > { %p1194_p1 = scmp.lt.s32.totalorder %s9163_s22, 3 }
  0x4d   : > { %p1195_p2 = pnand %p7778_p0, %p1194_p1 }
  0x4f   : > { %1198 = sbr.rel (%p1195_p2) target bundleno = 10084 (0x2764), region = 160 }
  0x56   : > { %s10096_s14 = sld [smem:[#allocation12_spill]]  ;;  %s10097_s19 = sld [smem:[#allocation13_spill]] }
  0x57   : > { %s10098_s24 = sld [smem:[#allocation14_spill]]  ;;  %s10099_s30 = sld [smem:[#allocation15_spill]] }
  0x58   : > { %s10100_s6 = sld [smem:[#allocation16_spill]]  ;;  %s10101_s12 = sld [smem:[#allocation17_spill]] }
  0x59   : > { %s10103_s20 = sld [smem:[#allocation18_spill]]  ;;  %s10106_s29 = sld [smem:[#allocation22_spill]] }
  0x5a   : > { %p1376_p3 = scmp.lt.s32.totalorder %s9394_s23, 1  ;;  %s10107_s3 = sld [smem:[#allocation23_spill]] }
  0x5b   : > { %s10108_s25 = sld [smem:[#allocation24_spill]]  ;;  %s10109_s1 = sld [smem:[#allocation25_spill]] }
  0x5c   : > { %s9400_s0 = scalar_select %p1376_p3, %s9394_s23, 1 }
  0x5d   : > { %s10111_s8 = sld [smem:[#allocation26_spill]]  ;;  %s10113_s10 = sld [smem:[#allocation27_spill]] }
  0x5e   : > { %s7966_s26 = sshll.u32 %s9400_s0, 7  ;;  %s7781_s28 = sshll.u32 %s9400_s0, 2 }
  0x5f   : > { %s9405_s2 = scalar_lea.vmem %s10096_s14, %s7966_s26  ;;  %s9408_s7 = scalar_lea.vmem %s10097_s19, %s7781_s28 }
  0x60   : > { %10110 = sst [smem:[#allocation39_spill]] %s9405_s2  ;;  %s9411_s15 = scalar_lea.vmem %s10098_s24, %s7966_s26 }
  0x61   : > { %10112 = sst [smem:[#allocation40_spill]] %s9408_s7  ;;  %s10115_s16 = sld [smem:[#allocation28_spill]] }
  0x62   : > { %10114 = sst [smem:[#allocation41_spill]] %s9411_s15  ;;  %s9414_s18 = scalar_lea.vmem %s10099_s30, %s7781_s28 }
  0x63   : > { %10116 = sst [smem:[#allocation42_spill]] %s9414_s18  ;;  %s10117_s22 = sld [smem:[#allocation29_spill]] }
  0x64   : > { %s9417_s21 = scalar_lea.vmem %s10100_s6, %s7966_s26  ;;  %s10119_s23 = sld [smem:[#allocation30_spill]] }
  0x65   : > { %10118 = sst [smem:[#allocation43_spill]] %s9417_s21  ;;  %s9420_s5 = scalar_lea.vmem %s10101_s12, %s7781_s28 }
  0x66   : > { %10120 = sst [smem:[#allocation44_spill]] %s9420_s5  ;;  %s10121_s14 = sld [smem:[#allocation31_spill]] }
  0x67   : > { %s7969_s2 = sshll.u32 %s9400_s0, 5  ;;  %s10122_s19 = sld [smem:[#allocation32_spill]] }
  0x68   : > { %s10123_s9 = sld [smem:[#allocation33_spill]]  ;;  %s9426_s24 = scalar_lea.vmem %s10103_s20, %s7969_s2 }
  0x69   : > { %10124 = sst [smem:[#allocation45_spill]] %s9426_s24  ;;  %s10125_s18 = sld [smem:[#allocation34_spill]] }
  0x6a   : > { %s10126_s6 = sld [smem:[#allocation35_spill]]  ;;  %s9433_s21 = scalar_lea.vmem %s10106_s29, %s7966_s26 }
  0x6b   : > { %10127 = sst [smem:[#allocation46_spill]] %s9433_s21  ;;  %s9436_s12 = scalar_lea.vmem %s10107_s3, %s7781_s28 }
  0x6c   : > { %10128 = sst [smem:[#allocation47_spill]] %s9436_s12  ;;  %s9439_s5 = scalar_lea.vmem %s10108_s25, %s7966_s26 }
  0x6d   : > { %10129 = sst [smem:[#allocation48_spill]] %s9439_s5  ;;  %s9442_s7 = scalar_lea.vmem %s9321_s17, %s7781_s28 }
  0x6e   : > { %s9445_s27 = scalar_lea.vmem %s10109_s1, %s7966_s26  ;;  %s9448_s20 = scalar_lea.vmem %s10111_s8, %s7781_s28 }
  0x6f   : > { %s9451_s24 = scalar_lea.vmem %s10113_s10, %s7969_s2  ;;  %s1451_s30 = scalar_lea.vmem %s10115_s16, %s9400_s0 }
  0x70   : > { %s1454_s4 = scalar_lea.vmem %s10117_s22, %s9400_s0  ;;  %s1457_s11 = scalar_lea.vmem %s10119_s23, %s9400_s0 }
  0x71   : > { %s9460_s15 = scalar_lea.vmem %s10121_s14, %s7969_s2  ;;  %s1465_s29 = scalar_lea.vmem %s10122_s19, %s9400_s0 }
  0x72   : > { %s9465_s21 = scalar_lea.vmem %s10123_s9, %s7966_s26  ;;  %s1473_s3 = scalar_lea.vmem %s9371_s13, %s9400_s0 }
  0x73   : > { %s1476_s12 = scalar_lea.vmem %s10125_s18, %s9400_s0  ;;  %s1479_s25 = scalar_lea.vmem %s10126_s6, %s9400_s0 }
  0x74   : > { %s10130_s5 = sld [smem:[#allocation38_spill]] }
  0x7a   : > { %p7805_p4 = scmp.ne.s32.totalorder %s10130_s5, 0 }
  0x7b   : > { %s10131_s1 = sld [smem:[#allocation4_spill]] (!%p7805_p4)  ;;  %vm1488_vm0 = vcmask (!%p7805_p4), 261120   ;;  %s10132_s9 = sld [smem:[#allocation5_spill]] (!%p7805_p4) }
  0x7c   : > { %1483 = sbr.rel (%p7805_p4) target bundleno = 448 (0x1c0), region = 164  ;;  %s10133_s5 = sld [smem:[#allocation6_spill]] (!%p7805_p4) }
  0x81   : > { %v1484_v1 = vld [vmem:[%s10131_s1] sm:$0xff] (!%p7805_p4)  ;;  %v1485_v2 = vld [vmem:[%s10131_s1 + $0x8] sm:$0xff] (!%p7805_p4) }
  0x82   : > { %v1489_v3 = vsel (!%p7805_p4), %vm1488_vm0, %v1484_v1, 0.0  ;;  %v1492_v4 = vsel (!%p7805_p4), %vm1488_vm0, %v1485_v2, 0.0  ;;  %v7806_v22 = vld [vmem:[%s10132_s9] ss:$0 sm:$0xff] (!%p7805_p4) }
  0x83   : > { %1490 = vadd.xlane.f32.xlu0 %v1489_v3  ;;  %v7807_v24 = vld [vmem:[%s10133_s5] ss:$0 sm:$0xff] }
  0x87   : > { %1493 = vadd.xlane.f32.xlu0 %v1492_v4 }
 0x110   : > { %v1491_v5 = vpop.xlane.xlu0 %1490 }
 0x111   : > { %v1496_v6 = vmul.f32 0.03125, %v1491_v5 }
 0x113   : > { %v1498_v7 = vsub.f32 %v1484_v1, %v1496_v6 }
 0x114   : > { %v1494_v8 = vpop.xlane.xlu0 %1493 }
 0x115   : > { %v1497_v9 = vmul.f32 0.03125, %v1494_v8  ;;  %v1500_v10 = vmul.f32 %v1498_v7, %v1498_v7 }
 0x117   : > { %v1499_v11 = vsub.f32 %v1485_v2, %v1497_v9  ;;  %v1502_v12 = vsel %vm1488_vm0, %v1500_v10, 0.0 }
 0x118   : > { %1503 = vadd.xlane.f32.xlu1 %v1502_v12 }
 0x119   : > { %v1501_v13 = vmul.f32 %v1499_v11, %v1499_v11 }
 0x11b   : > { %v1505_v14 = vsel %vm1488_vm0, %v1501_v13, 0.0 }
 0x11c   : > { %1506 = vadd.xlane.f32.xlu1 %v1505_v14 }
 0x1a5   : > { %v1504_v15 = vpop.xlane.xlu1 %1503 }
 0x1a6   : > { %v1508_v16 = vmul.f32 0.03125, %v1504_v15 }
 0x1a8   : > { %v1510_v17 = vadd.f32 1e-12, %v1508_v16 }
 0x1a9   : > { %v1507_v18 = vpop.xlane.xlu1 %1506 }
 0x1aa   : > { %9069 = vrsqrt.f32 %v1510_v17  ;;  %v1509_v19 = vmul.f32 0.03125, %v1507_v18 }
 0x1ac   : > { %v1511_v20 = vadd.f32 1e-12, %v1509_v19 }
 0x1ae   : > { %9071 = vrsqrt.f32 %v1511_v20 }
 0x1b4   : > { %v9070_v21 = vpop.eup %9069 }
 0x1b5   : > { %v1514_v23 = vmul.f32 %v9070_v21, %v1498_v7 }
 0x1b7   : > { %v1522_v25 = vmul.f32 %v7806_v22, %v1514_v23 }
 0x1b8   : > { %v9072_v26 = vpop.eup %9071 }
 0x1b9   : > { %v1530_v27 = vadd.f32 %v7807_v24, %v1522_v25  ;;  %v1515_v28 = vmul.f32 %v9072_v26, %v1499_v11 }
 0x1bb   : > { %1532 = vst.msk [vmem:[#allocation2] sm:$0xff] %vm1488_vm0, %v1530_v27  ;;  %v1523_v29 = vmul.f32 %v7806_v22, %v1515_v28 }
 0x1bd   : > { %v1531_v30 = vadd.f32 %v7807_v24, %v1523_v29 }
 0x1bf   : > { %1533 = vst.msk [vmem:[#allocation2 + $0x8] sm:$0xff] %vm1488_vm0, %v1531_v30 }
 0x1c0 PF: > { %s10134_s14 = sld [smem:[#allocation39_spill]]  ;;  %s10135_s19 = sld [smem:[#allocation41_spill]]  ;;  %vm1611_vm1 = vcmask 261120   ;;  %v9200_v51 = vmov 0.0   ;;  %vm9201_vm2 = vmmov 0   ;;  %vm1867_vm3 = vcmask 64512  }
 0x1c1   : > { %s10136_s6 = sld [smem:[#allocation43_spill]]  ;;  %s10137_s22 = sld [smem:[#allocation42_spill]]  ;;  %8283 = vmatprep.subr.mxu0 %v9200_v51  ;;  %8285 = vmatprep.mubr.msk.f32.mxu0 %vm9201_vm2, %v9200_v51 }
 0x1c2   : > { %v9488_v36 = vld [vmem:[#allocation2] sm:$0xff]  ;;  %s10138_s23 = sld [smem:[#allocation40_spill]]  ;;  %s10139_s26 = sld [smem:[#allocation44_spill]] }
 0x1c3   : > { %8248 = vmatprep.mubr.msk.f32.mxu1 %vm1611_vm1, %v9488_v36  ;;  %s10140_s28 = sld [smem:[#allocation8_spill]]  ;;  %s10141_s2 = sld [smem:[#allocation45_spill]] }
 0x1c4   : > { %s10142_s8 = sld [smem:[#allocation19_spill]]  ;;  %s10144_s16 = sld [smem:[#allocation48_spill]] }
 0x1c5   : > { %s10145_s18 = sld [smem:[#allocation46_spill]]  ;;  %s10146_s9 = sld [smem:[#allocation7_spill]] }
 0x1c6   : > { %v1538_v31 = vld [vmem:[%s10134_s14] sm:$0xff]  ;;  %v1539_v32 = vld [vmem:[%s10134_s14 + $0x8] sm:$0xff]  ;;  %v1540_v33 = vld [vmem:[%s10134_s14 + $0x10] sm:$0xff]  ;;  %s10147_s5 = sld [smem:[#allocation20_spill]] }
 0x1c7   : > { %v8768_v34 = vpack.c.bf16 %v1539_v32, %v1538_v31  ;;  %v1541_v35 = vld [vmem:[%s10134_s14 + $0x18] sm:$0xff]  ;;  %v1558_v38 = vld [vmem:[%s10135_s19] sm:$0xff]  ;;  %v1559_v39 = vld [vmem:[%s10135_s19 + $0x8] sm:$0xff] }
 0x1c8   : > { %v8772_v37 = vpack.c.bf16 %v1541_v35, %v1540_v33  ;;  %v8776_v40 = vpack.c.bf16 %v1559_v39, %v1558_v38  ;;  %v1560_v41 = vld [vmem:[%s10135_s19 + $0x10] sm:$0xff]  ;;  %v1561_v42 = vld [vmem:[%s10135_s19 + $0x18] sm:$0xff]  ;;  %v9496_v43 = vld [vmem:[#allocation2 + $0x8] sm:$0xff] }
 0x1c9   : > { %8769 = vmatprep.subr.bf16.mxu1 %v8768_v34  ;;  %v8780_v44 = vpack.c.bf16 %v1561_v42, %v1560_v41  ;;  %v1578_v45 = vld [vmem:[%s10136_s6] sm:$0xff]  ;;  %v1579_v46 = vld [vmem:[%s10136_s6 + $0x8] sm:$0xff]  ;;  %v1580_v48 = vld [vmem:[%s10136_s6 + $0x10] sm:$0xff] }
 0x1ca   : > { %8771 = vmatpush3.bf16.msra.mxu1 %v8768_v34  ;;  %v8784_v47 = vpack.c.bf16 %v1579_v46, %v1578_v45  ;;  %v1581_v49 = vld [vmem:[%s10136_s6 + $0x18] sm:$0xff]  ;;  %v7811_v54 = vld [vmem:[%s10137_s22] ss:$0 sm:$0xff]  ;;  %v9532_v5 = vld [vmem:[%s10140_s28 + $0x1] ss:$0 sm:$0xff]  ;;  %s10143_s10 = scalar_lea.vmem %s10142_s8, %s9400_s0 }
 0x1cb   : > { %8773 = vmatprep.subr.bf16.mxu1 %v8772_v37  ;;  %v8788_v50 = vpack.c.bf16 %v1581_v49, %v1580_v48  ;;  %v7808_v57 = vld [vmem:[%s10138_s23] ss:$0 sm:$0xff]  ;;  %v1563_v24 = vld [vmem:[%s10135_s19 + $0x28] sm:$0xff]  ;;  %v1564_v31 = vld [vmem:[%s10135_s19 + $0x30] sm:$0xff] }
 0x1cc   : > { %v7814_v62 = vld [vmem:[%s10139_s26] ss:$0 sm:$0xff]  ;;  %v1543_v27 = vld [vmem:[%s10134_s14 + $0x28] sm:$0xff]  ;;  %v1565_v32 = vld [vmem:[%s10135_s19 + $0x38] sm:$0xff] }
 0x1cd   : > { %v9535_v6 = vld [vmem:[%s10140_s28] ss:$0 sm:$0xff]  ;;  %v8804_v35 = vpack.c.bf16 %v1565_v32, %v1564_v31  ;;  %v1545_v38 = vld [vmem:[%s10134_s14 + $0x38] sm:$0xff]  ;;  %v1599_v31 = vld [vmem:[%s10141_s2 + $0x8] sm:$0xff] }
 0x1ce   : > { %8775 = vmatpush3.bf16.msra.mxu1 %v8772_v37  ;;  %v1562_v23 = vld [vmem:[%s10135_s19 + $0x20] sm:$0xff]  ;;  %v1544_v37 = vld [vmem:[%s10134_s14 + $0x30] sm:$0xff] }
 0x1cf   : > { %8777 = vmatprep.subr.bf16.mxu1 %v8776_v40  ;;  %v8800_v25 = vpack.c.bf16 %v1563_v24, %v1562_v23  ;;  %v1542_v26 = vld [vmem:[%s10134_s14 + $0x20] sm:$0xff]  ;;  %v8796_v41 = vpack.c.bf16 %v1545_v38, %v1544_v37  ;;  %v1548_v37 = vld [vmem:[%s10134_s14 + $0x50] sm:$0xff]  ;;  %v1549_v38 = vld [vmem:[%s10134_s14 + $0x58] sm:$0xff] }
 0x1d0   : > { %v8792_v28 = vpack.c.bf16 %v1543_v27, %v1542_v26  ;;  %v1598_v32 = vld [vmem:[%s10141_s2] sm:$0xff] }
 0x1d1   : > { %8249 = vmatmul.mubr.msk.f32.vlgmr.msra.gmra.mrb[0].mxu1 %vm1611_vm1, %v9496_v43 }
 0x1d2   : > { %8779 = vmatpush3.bf16.msra.mxu1 %v8776_v40  ;;  %8259 = vmatprep.mubr.msk.f32.mxu1 %vm1611_vm1, %v9488_v36 }
 0x1d3   : > { %8781 = vmatprep.subr.bf16.mxu1 %v8780_v44 }
 0x1d6   : > { %8783 = vmatpush3.bf16.msra.mxu1 %v8780_v44 }
 0x1d7   : > { %8785 = vmatprep.subr.bf16.mxu1 %v8784_v47 }
 0x1d9   : > { %8260 = vmatmul.mubr.msk.f32.vlgmr.msra.gmra.mrb[2].mxu1 %vm1611_vm1, %v9496_v43 }
 0x1da   : > { %8787 = vmatpush3.bf16.msra.mxu1 %v8784_v47  ;;  %8270 = vmatprep.mubr.msk.f32.mxu1 %vm1611_vm1, %v9488_v36  ;;  %v7828_v47 = vld [vmem:[%s10137_s22 + $0x1] ss:$0 sm:$0xff] }
 0x1db   : > { %8789 = vmatprep.subr.bf16.mxu1 %v8788_v50 }
 0x1de   : > { %8791 = vmatpush3.bf16.msra.mxu1 %v8788_v50 }
 0x1df   : > { %8273 = vmatprep.subr.mxu1 %v9200_v51 }
 0x1e1   : > { %8271 = vmatmul.mubr.msk.f32.vlgmr.msra.gmra.mrb[4].mxu1 %vm1611_vm1, %v9496_v43 }
 0x1e2   : > { %8275 = vmatprep.mubr.msk.f32.mxu1 %vm9201_vm2, %v9200_v51 }
 0x2a4   : > { %v8250_v52 = vpop.f32.mrb[0].mxu1 }
 0x2a5   : > { %v1684_v53 = vpop.f32.mrb[1].mxu1  ;;  %v1690_v61 = vadd.f32 %v8250_v52, %v7808_v57  ;;  %v7825_v52 = vld [vmem:[%s10138_s23 + $0x1] ss:$0 sm:$0xff] }
 0x2a6   : > { %v1685_v59 = vadd.f32 %v7808_v57, %v1684_v53 }
 0x2ac   : > { %v8261_v55 = vpop.f32.mrb[2].mxu1 }
 0x2ad   : > { %v1765_v56 = vpop.f32.mrb[3].mxu1  ;;  %v1771_v60 = vadd.f32 %v8261_v55, %v7811_v54 }
 0x2ae   : > { %v1766_v58 = vadd.f32 %v7811_v54, %v1765_v56 }
 0x2b0   : > { %8274 = vmatpush3.xpose.msk.msra.mxu1 %vm1867_vm3, %v1766_v58  ;;  %v1582_v58 = vld [vmem:[%s10136_s6 + $0x20] sm:$0xff] }
 0x2b1   : > { %8278 = vmatprep.subr.mxu1 %v9200_v51 }
 0x2b3   : > { %8276 = vmatmul.mubr.msk.f32.vlgmr.msra.gmra.mrb[6].mxu1 %vm1867_vm3, %v1685_v59  ;;  %v1583_v59 = vld [vmem:[%s10136_s6 + $0x28] sm:$0xff] }
 0x2b4   : > { %8279 = vmatpush3.xpose.msk.msra.mxu1 %vm1867_vm3, %v1771_v60  ;;  %8280 = vmatprep.mubr.msk.f32.mxu1 %vm9201_vm2, %v9200_v51  ;;  %v8272_v63 = vpop.f32.mrb[4].mxu1  ;;  %v1584_v60 = vld [vmem:[%s10136_s6 + $0x30] sm:$0xff] }
 0x2b5   : > { %8288 = vmatprep.subr.mxu1 %v9200_v51  ;;  %v1852_v0 = vadd.f32 %v8272_v63, %v7814_v62  ;;  %v1846_v1 = vpop.f32.mrb[5].mxu1 }
 0x2b6   : > { %v1847_v2 = vadd.f32 %v7814_v62, %v1846_v1  ;;  %v1585_v62 = vld [vmem:[%s10136_s6 + $0x38] sm:$0xff] }
 0x2b7   : > { %8281 = vmatmul.mubr.msk.f32.vlgmr.msra.gmra.mrb[8].mxu1 %vm1867_vm3, %v1690_v61  ;;  %v8808_v61 = vpack.c.bf16 %v1583_v59, %v1582_v58  ;;  %v8812_v63 = vpack.c.bf16 %v1585_v62, %v1584_v60  ;;  %v1569_v58 = vld [vmem:[%s10135_s19 + $0x58] sm:$0xff] }
 0x2b8   : > { %8290 = vmatprep.mubr.msk.f32.mxu1 %vm9201_vm2, %v9200_v51  ;;  %8289 = vmatpush3.msra.mxu1 %v1852_v0 }
 0x2b9   : > { %8284 = vmatpush3.msra.mxu0 %v1847_v2  ;;  %8801 = vmatprep.subr.bf16.mxu1 %v8800_v25 }
 0x2ba   : > { %8793 = vmatprep.subr.bf16.mxu0 %v8792_v28 }
 0x386   : > { %v1940_v3 = vpop.f32.mrb[6].mxu1 }
 0x387   : > { %v8277_v4 = vpop.f32.mrb[7].mxu1  ;;  %v1941_v10 = vadd.f32 %v9535_v6, %v1940_v3 }
 0x389   : > { %v2020_v12 = vsel %vm1867_vm3, %v1941_v10, -inf }
 0x38a   : > { %v2016_v7 = vpop.f32.mrb[8].mxu1 }
 0x38b   : > { %v2017_v8 = vadd.f32 %v9532_v5, %v2016_v7  ;;  %v8282_v9 = vpop.f32.mrb[9].mxu1 }
 0x38d   : > { %v2023_v11 = vsel %vm1867_vm3, %v2017_v8, -inf }
 0x38e   : > { %2024 = vmax.xlane.f32.xlu0 %v2023_v11 }
 0x392   : > { %2021 = vmax.xlane.f32.xlu0 %v2020_v12 }
 0x41b   : > { %v2025_v13 = vpop.xlane.xlu0 %2024 }
 0x41c   : > { %v2027_v14 = vsub.f32 %v2017_v8, %v2025_v13 }
 0x41e   : > { %v2030_v15 = vmul.f32 1.442695, %v2027_v14 }
 0x41f   : > { %v2022_v16 = vpop.xlane.xlu0 %2021 }
 0x420   : > { %9073 = vpow2.f32 %v2030_v15  ;;  %v2026_v17 = vsub.f32 %v1941_v10, %v2022_v16 }
 0x422   : > { %v2028_v18 = vmul.f32 1.442695, %v2026_v17 }
 0x424   : > { %9075 = vpow2.f32 %v2028_v18 }
 0x42a   : > { %v9074_v19 = vpop.eup %9073 }
 0x42b   : > { %v2035_v20 = vsel %vm1867_vm3, %v9074_v19, 0.0 }
 0x42c   : > { %2036 = vadd.xlane.f32.xlu1 %v2035_v20 }
 0x42e   : > { %v9076_v21 = vpop.eup %9075 }
 0x42f   : > { %v2032_v22 = vsel %vm1867_vm3, %v9076_v21, 0.0 }
 0x430   : > { %2033 = vadd.xlane.f32.xlu1 %v2032_v22 }
 0x4b9   : > { %v2037_v29 = vpop.xlane.xlu1 %2036 }
 0x4ba   : > { %9077 = vrcp.f32 %v2037_v29 }
 0x4bd   : > { %v2034_v30 = vpop.xlane.xlu1 %2033 }
 0x4be   : > { %9079 = vrcp.f32 %v2034_v30 }
 0x4c4   : > { %v9078_v33 = vpop.eup %9077 }
 0x4c5   : > { %v2041_v34 = vmul.f32 %v9078_v33, %v9074_v19  ;;  %v1546_v33 = vld [vmem:[%s10134_s14 + $0x40] sm:$0xff] }
 0x4c7   : > { %8291 = vmatmul.mubr.msk.f32.vlgmr.msra.gmra.mrb[10].mxu1 %vm1867_vm3, %v2041_v34  ;;  %v1547_v34 = vld [vmem:[%s10134_s14 + $0x48] sm:$0xff] }
 0x4c8   : > { %v9080_v39 = vpop.eup %9079  ;;  %8803 = vmatpush3.bf16.msra.mxu1 %v8800_v25  ;;  %8312 = vmatprep.mubr.msk.f32.mxu1 %vm1611_vm1, %v9488_v36 }
 0x4c9   : > { %8805 = vmatprep.subr.bf16.mxu1 %v8804_v35  ;;  %v2040_v40 = vmul.f32 %v9080_v39, %v9076_v21  ;;  %v7831_v21 = vld [vmem:[%s10139_s26 + $0x1] ss:$0 sm:$0xff]  ;;  %v8820_v39 = vpack.c.bf16 %v1549_v38, %v1548_v37  ;;  %v1571_v38 = vld [vmem:[%s10135_s19 + $0x68] sm:$0xff] }
 0x4ca   : > { %v1570_v37 = vld [vmem:[%s10135_s19 + $0x60] sm:$0xff] }
 0x4cb   : > { %8286 = vmatmul.mubr.msk.f32.vlgmr.msra.gmra.mrb[0].mxu0 %vm1867_vm3, %v2040_v40  ;;  %v1586_v40 = vld [vmem:[%s10136_s6 + $0x40] sm:$0xff] }
 0x4cc   : > { %8795 = vmatpush3.bf16.msra.mxu0 %v8792_v28  ;;  %8807 = vmatpush3.bf16.msra.mxu1 %v8804_v35  ;;  %v8816_v35 = vpack.c.bf16 %v1547_v34, %v1546_v33 }
 0x4cd   : > { %8797 = vmatprep.subr.bf16.mxu0 %v8796_v41  ;;  %8301 = vmatprep.mubr.msk.f32.mxu0 %vm1611_vm1, %v9488_v36 }
 0x4ce   : > { %8326 = vmatprep.subr.mxu1 %v9200_v51 }
 0x4cf   : > { %8313 = vmatmul.mubr.msk.f32.vlgmr.msra.gmra.mrb[12].mxu1 %vm1611_vm1, %v9496_v43 }
 0x4d0   : > { %8799 = vmatpush3.bf16.msra.mxu0 %v8796_v41  ;;  %8328 = vmatprep.mubr.msk.f32.mxu1 %vm9201_vm2, %v9200_v51  ;;  %v1587_v41 = vld [vmem:[%s10136_s6 + $0x48] sm:$0xff] }
 0x4d1   : > { %8809 = vmatprep.subr.bf16.mxu0 %v8808_v61 }
 0x4d3   : > { %8302 = vmatmul.mubr.msk.f32.vlgmr.msra.gmra.mrb[2].mxu0 %vm1611_vm1, %v9496_v43 }
 0x4d4   : > { %8323 = vmatprep.mubr.msk.f32.mxu0 %vm1611_vm1, %v9488_v36  ;;  %8811 = vmatpush3.bf16.msra.mxu0 %v8808_v61 }
 0x4d5   : > { %8813 = vmatprep.subr.bf16.mxu0 %v8812_v63 }
 0x4d8   : > { %8815 = vmatpush3.bf16.msra.mxu0 %v8812_v63  ;;  %v7847_v63 = vld [vmem:[%s10137_s22 + $0x2] ss:$0 sm:$0xff] }
 0x4d9   : > { %8336 = vmatprep.subr.mxu0 %v9200_v51 }
 0x4db   : > { %8324 = vmatmul.mubr.msk.f32.vlgmr.msra.gmra.mrb[4].mxu0 %vm1611_vm1, %v9496_v43 }
 0x4dc   : > { %8338 = vmatprep.mubr.msk.f32.mxu0 %vm9201_vm2, %v9200_v51 }
 0x59a   : > { %v9566_v42 = vpop.f32.mrb[10].mxu1 }
 0x59b   : > { %v8292_v44 = vpop.f32.mrb[11].mxu1 }
 0x59c   : > { %v1588_v44 = vld [vmem:[%s10136_s6 + $0x50] sm:$0xff] }
 0x59e   : > { %v9568_v45 = vpop.f32.mrb[0].mxu0 }
 0x59f   : > { %v8287_v46 = vpop.f32.mrb[1].mxu0 }
 0x5a0   : > { %v8832_v46 = vpack.c.bf16 %v1587_v41, %v1586_v40  ;;  %v1550_v40 = vld [vmem:[%s10134_s14 + $0x60] sm:$0xff]  ;;  %v1551_v41 = vld [vmem:[%s10134_s14 + $0x68] sm:$0xff] }
 0x5a2   : > { %v8314_v48 = vpop.f32.mrb[12].mxu1 }
 0x5a3   : > { %v2341_v49 = vpop.f32.mrb[13].mxu1  ;;  %v2347_v56 = vadd.f32 %v8314_v48, %v7828_v47 }
 0x5a4   : > { %v2342_v50 = vadd.f32 %v7828_v47, %v2341_v49  ;;  %v1589_v47 = vld [vmem:[%s10136_s6 + $0x58] sm:$0xff] }
 0x5a5   : > { %v8836_v48 = vpack.c.bf16 %v1589_v47, %v1588_v44  ;;  %v8840_v44 = vpack.c.bf16 %v1551_v41, %v1550_v40  ;;  %v1553_v47 = vld [vmem:[%s10134_s14 + $0x78] sm:$0xff] }
 0x5a6   : > { %v8303_v53 = vpop.f32.mrb[2].mxu0  ;;  %8327 = vmatpush3.xpose.msk.msra.mxu1 %vm1867_vm3, %v2342_v50  ;;  %v1566_v50 = vld [vmem:[%s10135_s19 + $0x40] sm:$0xff] }
 0x5a7   : > { %v2260_v54 = vpop.f32.mrb[3].mxu0  ;;  %8331 = vmatprep.subr.mxu1 %v9200_v51  ;;  %v2266_v57 = vadd.f32 %v8303_v53, %v7825_v52 }
 0x5a8   : > { %v2261_v55 = vadd.f32 %v7825_v52, %v2260_v54  ;;  %v1567_v52 = vld [vmem:[%s10135_s19 + $0x48] sm:$0xff] }
 0x5a9   : > { %v8824_v54 = vpack.c.bf16 %v1567_v52, %v1566_v50  ;;  %v1573_v50 = vld [vmem:[%s10135_s19 + $0x78] sm:$0xff] }
 0x5aa   : > { %8329 = vmatmul.mubr.msk.f32.vlgmr.msra.gmra.mrb[14].mxu1 %vm1867_vm3, %v2261_v55 }
 0x5ab   : > { %8332 = vmatpush3.xpose.msk.msra.mxu1 %vm1867_vm3, %v2347_v56  ;;  %8333 = vmatprep.mubr.msk.f32.mxu1 %vm9201_vm2, %v9200_v51 }
 0x5ac   : > { %8341 = vmatprep.subr.mxu1 %v9200_v51 }
 0x5ae   : > { %8334 = vmatmul.mubr.msk.f32.vlgmr.msra.gmra.mrb[16].mxu1 %vm1867_vm3, %v2266_v57  ;;  %v8325_v20 = vpop.f32.mrb[4].mxu0  ;;  %v1568_v57 = vld [vmem:[%s10135_s19 + $0x50] sm:$0xff] }
 0x5af   : > { %8343 = vmatprep.mubr.msk.f32.mxu1 %vm9201_vm2, %v9200_v51  ;;  %v2422_v22 = vpop.f32.mrb[5].mxu0  ;;  %v2428_v24 = vadd.f32 %v8325_v20, %v7831_v21  ;;  %v8828_v59 = vpack.c.bf16 %v1569_v58, %v1568_v57 }
 0x5b0   : > { %v2423_v23 = vadd.f32 %v7831_v21, %v2422_v22 }
 0x5b1   : > { %8342 = vmatpush3.msra.mxu1 %v2428_v24 }
 0x5b2   : > { %8337 = vmatpush3.msra.mxu0 %v2423_v23  ;;  %8817 = vmatprep.subr.bf16.mxu1 %v8816_v35 }
 0x5b3   : > { %8346 = vmatprep.subr.mxu0 %v1599_v31 }
 0x67d   : > { %v2503_v0 = vpop.f32.mrb[14].mxu1 }
 0x67e   : > { %v2504_v1 = vadd.f32 %v9535_v6, %v2503_v0  ;;  %v8330_v2 = vpop.f32.mrb[15].mxu1 }
 0x680   : > { %v2583_v3 = vsel %vm1867_vm3, %v2504_v1, -inf }
 0x681   : > { %2584 = vmax.xlane.f32.xlu0 %v2583_v3  ;;  %v2579_v4 = vpop.f32.mrb[16].mxu1 }
 0x682   : > { %v2580_v7 = vadd.f32 %v9532_v5, %v2579_v4  ;;  %v8335_v8 = vpop.f32.mrb[17].mxu1 }
 0x684   : > { %v2586_v9 = vsel %vm1867_vm3, %v2580_v7, -inf }
 0x685   : > { %2587 = vmax.xlane.f32.xlu1 %v2586_v9 }
 0x70e   : > { %v2585_v10 = vpop.xlane.xlu0 %2584 }
 0x70f   : > { %v2589_v11 = vsub.f32 %v2504_v1, %v2585_v10  ;;  %v7850_v1 = vld [vmem:[%s10139_s26 + $0x2] ss:$0 sm:$0xff] }
 0x711   : > { %v2591_v12 = vmul.f32 1.442695, %v2589_v11 }
 0x712   : > { %v2588_v13 = vpop.xlane.xlu1 %2587 }
 0x713   : > { %9081 = vpow2.f32 %v2591_v12  ;;  %v2590_v14 = vsub.f32 %v2580_v7, %v2588_v13 }
 0x715   : > { %v2593_v15 = vmul.f32 1.442695, %v2590_v14 }
 0x717   : > { %9083 = vpow2.f32 %v2593_v15 }
 0x71d   : > { %v9082_v16 = vpop.eup %9081 }
 0x71e   : > { %v2595_v17 = vsel %vm1867_vm3, %v9082_v16, 0.0 }
 0x71f   : > { %2596 = vadd.xlane.f32.xlu0 %v2595_v17 }
 0x721   : > { %v9084_v18 = vpop.eup %9083 }
 0x722   : > { %v2598_v19 = vsel %vm1867_vm3, %v9084_v18, 0.0 }
 0x723   : > { %2599 = vadd.xlane.f32.xlu1 %v2598_v19 }
 0x7ac   : > { %v2597_v25 = vpop.xlane.xlu0 %2596 }
 0x7ad   : > { %9085 = vrcp.f32 %v2597_v25 }
 0x7b0   : > { %v2600_v26 = vpop.xlane.xlu1 %2599 }
 0x7b1   : > { %9087 = vrcp.f32 %v2600_v26 }
 0x7b7   : > { %v9086_v27 = vpop.eup %9085 }
 0x7b8   : > { %v2603_v28 = vmul.f32 %v9086_v27, %v9082_v16 }
 0x7ba   : > { %8339 = vmatmul.mubr.msk.f32.vlgmr.msra.gmra.mrb[6].mxu0 %vm1867_vm3, %v2603_v28 }
 0x7bb   : > { %v9088_v29 = vpop.eup %9087  ;;  %8347 = vmatpush3.msra.mxu0 %v1599_v31 }
 0x7bc   : > { %v2604_v30 = vmul.f32 %v9088_v29, %v9084_v18  ;;  %8351 = vmatprep.subr.mxu0 %v1598_v32  ;;  %v1600_v29 = vld [vmem:[%s10141_s2 + $0x10] sm:$0xff] }
 0x7be   : > { %8344 = vmatmul.mubr.msk.f32.vlgmr.msra.gmra.mrb[18].mxu1 %vm1867_vm3, %v2604_v30 }
 0x7bf   : > { %8364 = vmatprep.mubr.msk.f32.mxu1 %vm1611_vm1, %v9488_v36  ;;  %8819 = vmatpush3.bf16.msra.mxu1 %v8816_v35 }
 0x7c0   : > { %8821 = vmatprep.subr.bf16.mxu1 %v8820_v39 }
 0x7c3   : > { %8823 = vmatpush3.bf16.msra.mxu1 %v8820_v39  ;;  %v8848_v39 = vpack.c.bf16 %v1571_v38, %v1570_v37  ;;  %v1601_v37 = vld [vmem:[%s10141_s2 + $0x18] sm:$0xff] }
 0x7c4   : > { %8833 = vmatprep.subr.bf16.mxu1 %v8832_v46 }
 0x7c6   : > { %8365 = vmatmul.mubr.msk.f32.vlgmr.msra.gmra.mrb[20].mxu1 %vm1611_vm1, %v9496_v43 }
 0x7c7   : > { %8386 = vmatprep.mubr.msk.f32.mxu1 %vm1611_vm1, %v9488_v36  ;;  %8835 = vmatpush3.bf16.msra.mxu1 %v8832_v46  ;;  %v1552_v46 = vld [vmem:[%s10134_s14 + $0x70] sm:$0xff]  ;;  %s10148_s14 = sld [smem:[#allocation21_spill]] }
 0x7c8   : > { %8837 = vmatprep.subr.bf16.mxu1 %v8836_v48 }
 0x7cb   : > { %8839 = vmatpush3.bf16.msra.mxu1 %v8836_v48  ;;  %v8844_v48 = vpack.c.bf16 %v1553_v47, %v1552_v46 }
 0x7cc   : > { %8394 = vmatprep.subr.mxu1 %v9200_v51 }
 0x7ce   : > { %8387 = vmatmul.mubr.msk.f32.vlgmr.msra.gmra.mrb[22].mxu1 %vm1611_vm1, %v9496_v43 }
 0x7cf   : > { %8396 = vmatprep.mubr.msk.f32.mxu1 %vm9201_vm2, %v9200_v51 }
 0x88d   : > { %v2674_v49 = vpop.f32.mrb[6].mxu0 }
 0x88e   : > { %v8340_v53 = vpop.f32.mrb[7].mxu0  ;;  %8348 = vmatprep.mubr.msk.f32.mxu0 %vm1867_vm3, %v2674_v49  ;;  %v1572_v49 = vld [vmem:[%s10135_s19 + $0x70] sm:$0xff]  ;;  %s10149_s19 = scalar_lea.vmem %s10147_s5, %s9400_s0 }
 0x891   : > { %v2747_v55 = vpop.f32.mrb[18].mxu1 }
 0x892   : > { %v8345_v56 = vpop.f32.mrb[19].mxu1  ;;  %8349 = vmatmul.mubr.msk.f32.vlgmr.msra.gmra.mrb[8].mxu0 %vm1867_vm3, %v2747_v55  ;;  %v8852_v55 = vpack.c.bf16 %v1573_v50, %v1572_v49 }
 0x893   : > { %8352 = vmatpush3.msra.mxu0 %v1598_v32  ;;  %8353 = vmatprep.mubr.msk.f32.mxu0 %vm1867_vm3, %v9568_v45 }
 0x894   : > { %8825 = vmatprep.subr.bf16.mxu0 %v8824_v54 }
 0x899   : > { %v8366_v45 = vpop.f32.mrb[20].mxu1 }
 0x89a   : > { %8354 = vmatmul.mubr.msk.f32.vlgmr.msra.gmra.mrb[8].mxu0 %vm1867_vm3, %v9566_v42  ;;  %v2985_v60 = vpop.f32.mrb[21].mxu1  ;;  %v7844_v42 = vld [vmem:[%s10138_s23 + $0x2] ss:$0 sm:$0xff] }
 0x89b   : > { %8827 = vmatpush3.bf16.msra.mxu0 %v8824_v54  ;;  %8375 = vmatprep.mubr.msk.f32.mxu0 %vm1611_vm1, %v9488_v36  ;;  %v2991_v7 = vadd.f32 %v8366_v45, %v7844_v42  ;;  %v2986_v8 = vadd.f32 %v7844_v42, %v2985_v60  ;;  %v7861_v60 = vld [vmem:[%s10138_s23 + $0x3] ss:$0 sm:$0xff]  ;;  %s10152_s23 = sld [smem:[#allocation9_spill]] }
 0x89c   : > { %8829 = vmatprep.subr.bf16.mxu0 %v8828_v59 }
 0x89f   : > { %8831 = vmatpush3.bf16.msra.mxu0 %v8828_v59  ;;  %v7864_v59 = vld [vmem:[%s10137_s22 + $0x3] ss:$0 sm:$0xff]  ;;  %s10151_s22 = sld [smem:[#allocation47_spill]] }
 0x8a0   : > { %8389 = vmatprep.subr.mxu0 %v9200_v51 }
 0x8a1   : > { %v8388_v61 = vpop.f32.mrb[22].mxu1 }
 0x8a2   : > { %8376 = vmatmul.mubr.msk.f32.vlgmr.msra.gmra.mrb[10].mxu0 %vm1611_vm1, %v9496_v43  ;;  %v3147_v62 = vpop.f32.mrb[23].mxu1  ;;  %v3153_v9 = vadd.f32 %v8388_v61, %v7850_v1 }
 0x8a3   : > { %8391 = vmatprep.mubr.msk.f32.mxu0 %vm9201_vm2, %v9200_v51  ;;  %v3148_v10 = vadd.f32 %v7850_v1, %v3147_v62  ;;  %v1590_v1 = vld [vmem:[%s10136_s6 + $0x60] sm:$0xff] }
 0x975   : > { %v8377_v0 = vpop.f32.mrb[10].mxu0 }
 0x976   : > { %v3072_v2 = vadd.f32 %v8377_v0, %v7847_v63  ;;  %v3066_v3 = vpop.f32.mrb[11].mxu0 }
 0x977   : > { %v3067_v4 = vadd.f32 %v7847_v63, %v3066_v3  ;;  %v1592_v3 = vld [vmem:[%s10136_s6 + $0x70] sm:$0xff] }
 0x978   : > { %8395 = vmatpush3.xpose.msk.msra.mxu1 %vm1867_vm3, %v3072_v2  ;;  %v1591_v2 = vld [vmem:[%s10136_s6 + $0x68] sm:$0xff] }
 0x979   : > { %8390 = vmatpush3.xpose.msk.msra.mxu0 %vm1867_vm3, %v3067_v4  ;;  %8404 = vmatprep.subr.mxu1 %v9200_v51  ;;  %v8856_v4 = vpack.c.bf16 %v1591_v2, %v1590_v1  ;;  %v4261_v1 = vld [vmem:[%s10145_s18 + $0x8] sm:$0xff]  ;;  %v4282_v2 = vld [vmem:[%s10144_s16 + $0x10] sm:$0xff] }
 0x97a   : > { %8399 = vmatprep.subr.mxu0 %v9200_v51 }
 0x97b   : > { %8397 = vmatmul.mubr.msk.f32.vlgmr.msra.gmra.mrb[24].mxu1 %vm1867_vm3, %v2991_v7  ;;  %v1593_v7 = vld [vmem:[%s10136_s6 + $0x78] sm:$0xff]  ;;  %s10150_s6 = scalar_lea.vmem %s10148_s14, %s9400_s0 }
 0x97c   : > { %8392 = vmatmul.mubr.msk.f32.vlgmr.msra.gmra.mrb[12].mxu0 %vm1867_vm3, %v2986_v8  ;;  %8405 = vmatpush3.msra.mxu1 %v3153_v9  ;;  %v8860_v8 = vpack.c.bf16 %v1593_v7, %v1592_v3 }
 0x97d   : > { %8400 = vmatpush3.msra.mxu0 %v3148_v10  ;;  %8406 = vmatprep.mubr.msk.f32.mxu1 %vm9201_vm2, %v9200_v51 }
 0x97e   : > { %8401 = vmatprep.mubr.msk.f32.mxu0 %vm9201_vm2, %v9200_v51  ;;  %8409 = vmatprep.subr.mxu0 %v1600_v29 }
 0x97f   : > { %8841 = vmatprep.subr.bf16.mxu1 %v8840_v44 }
 0xa4e   : > { %v3304_v11 = vpop.f32.mrb[24].mxu1 }
 0xa4f   : > { %v3305_v12 = vadd.f32 %v9532_v5, %v3304_v11  ;;  %v3228_v13 = vpop.f32.mrb[12].mxu0  ;;  %v8398_v14 = vpop.f32.mrb[25].mxu1 }
 0xa50   : > { %v3229_v15 = vadd.f32 %v9535_v6, %v3228_v13  ;;  %v8393_v16 = vpop.f32.mrb[13].mxu0 }
 0xa51   : > { %v3311_v17 = vsel %vm1867_vm3, %v3305_v12, -inf }
 0xa52   : > { %3312 = vmax.xlane.f32.xlu1 %v3311_v17  ;;  %v3308_v18 = vsel %vm1867_vm3, %v3229_v15, -inf }
 0xa53   : > { %3309 = vmax.xlane.f32.xlu0 %v3308_v18 }
 0xadf   : > { %v3313_v19 = vpop.xlane.xlu1 %3312 }
 0xae0   : > { %v3315_v20 = vsub.f32 %v3305_v12, %v3313_v19  ;;  %v3310_v21 = vpop.xlane.xlu0 %3309 }
 0xae1   : > { %v3314_v22 = vsub.f32 %v3229_v15, %v3310_v21 }
 0xae2   : > { %v3318_v23 = vmul.f32 1.442695, %v3315_v20 }
 0xae3   : > { %v3316_v24 = vmul.f32 1.442695, %v3314_v22 }
 0xae4   : > { %9089 = vpow2.f32 %v3318_v23 }
 0xae5   : > { %9091 = vpow2.f32 %v3316_v24 }
 0xaee   : > { %v9090_v25 = vpop.eup %9089 }
 0xaef   : > { %v9092_v26 = vpop.eup %9091  ;;  %v3323_v27 = vsel %vm1867_vm3, %v9090_v25, 0.0 }
 0xaf0   : > { %3324 = vadd.xlane.f32.xlu1 %v3323_v27  ;;  %v3320_v28 = vsel %vm1867_vm3, %v9092_v26, 0.0 }
 0xaf1   : > { %3321 = vadd.xlane.f32.xlu0 %v3320_v28 }
 0xb7d   : > { %v3325_v30 = vpop.xlane.xlu1 %3324 }
 0xb7e   : > { %9093 = vrcp.f32 %v3325_v30  ;;  %v3322_v31 = vpop.xlane.xlu0 %3321 }
 0xb7f   : > { %9095 = vrcp.f32 %v3322_v31 }
 0xb88   : > { %v9094_v32 = vpop.eup %9093 }
 0xb89   : > { %v9096_v33 = vpop.eup %9095  ;;  %v3329_v34 = vmul.f32 %v9094_v32, %v9090_v25 }
 0xb8a   : > { %v3328_v35 = vmul.f32 %v9096_v33, %v9092_v26  ;;  %v7867_v26 = vld [vmem:[%s10139_s26 + $0x3] ss:$0 sm:$0xff] }
 0xb8b   : > { %8407 = vmatmul.mubr.msk.f32.vlgmr.msra.gmra.mrb[26].mxu1 %vm1867_vm3, %v3329_v34 }
 0xb8c   : > { %8402 = vmatmul.mubr.msk.f32.vlgmr.msra.gmra.mrb[14].mxu0 %vm1867_vm3, %v3328_v35  ;;  %8422 = vmatprep.mubr.msk.f32.mxu1 %vm1611_vm1, %v9488_v36 }
 0xb8d   : > { %8410 = vmatpush3.msra.mxu0 %v1600_v29  ;;  %8843 = vmatpush3.bf16.msra.mxu1 %v8840_v44  ;;  %v7878_v44 = vld [vmem:[%s10143_s10] ss:$0 sm:$0xff] }
 0xb8e   : > { %8849 = vmatprep.subr.bf16.mxu0 %v8848_v39  ;;  %8845 = vmatprep.subr.bf16.mxu1 %v8844_v48 }
 0xb91   : > { %8847 = vmatpush3.bf16.msra.mxu1 %v8844_v48 }
 0xb92   : > { %8857 = vmatprep.subr.bf16.mxu1 %v8856_v4 }
 0xb94   : > { %8423 = vmatmul.mubr.msk.f32.vlgmr.msra.gmra.mrb[28].mxu1 %vm1611_vm1, %v9496_v43 }
 0xb95   : > { %8444 = vmatprep.mubr.msk.f32.mxu1 %vm1611_vm1, %v9488_v36  ;;  %8859 = vmatpush3.bf16.msra.mxu1 %v8856_v4  ;;  %v4283_v4 = vld [vmem:[%s10144_s16 + $0x18] sm:$0xff] }
 0xb96   : > { %8861 = vmatprep.subr.bf16.mxu1 %v8860_v8  ;;  %v8876_v7 = vpack.c.bf16 %v4283_v4, %v4282_v2 }
 0xb99   : > { %8863 = vmatpush3.bf16.msra.mxu1 %v8860_v8  ;;  %v9732_v8 = vld [vmem:[%s10146_s9] sm:$0xff] }
 0xb9a   : > { %8457 = vmatprep.subr.mxu1 %v9200_v51 }
 0xb9c   : > { %8445 = vmatmul.mubr.msk.f32.vlgmr.msra.gmra.mrb[30].mxu1 %vm1611_vm1, %v9496_v43 }
 0xb9d   : > { %8459 = vmatprep.mubr.msk.f32.mxu1 %vm9201_vm2, %v9200_v51 }
 0xc5e   : > { %v3472_v52 = vpop.f32.mrb[26].mxu1 }
 0xc5f   : > { %v3399_v53 = vpop.f32.mrb[14].mxu0  ;;  %v8408_v54 = vpop.f32.mrb[27].mxu1 }
 0xc60   : > { %v8403_v56 = vpop.f32.mrb[15].mxu0  ;;  %8411 = vmatprep.mubr.msk.f32.mxu0 %vm1867_vm3, %v3399_v53 }
 0xc61   : > { %8412 = vmatmul.mubr.msk.f32.vlgmr.msra.gmra.mrb[8].mxu0 %vm1867_vm3, %v3472_v52 }
 0xc62   : > { %8851 = vmatpush3.bf16.msra.mxu0 %v8848_v39  ;;  %8433 = vmatprep.mubr.msk.f32.mxu0 %vm1611_vm1, %v9488_v36 }
 0xc63   : > { %8853 = vmatprep.subr.bf16.mxu0 %v8852_v55 }
 0xc66   : > { %8855 = vmatpush3.bf16.msra.mxu0 %v8852_v55 }
 0xc67   : > { %8447 = vmatprep.subr.mxu0 %v9200_v51  ;;  %v8424_v57 = vpop.f32.mrb[28].mxu1 }
 0xc68   : > { %v3631_v58 = vpop.f32.mrb[29].mxu1  ;;  %v3637_v0 = vadd.f32 %v8424_v57, %v7861_v60 }
 0xc69   : > { %8434 = vmatmul.mubr.msk.f32.vlgmr.msra.gmra.mrb[16].mxu0 %vm1611_vm1, %v9496_v43  ;;  %v3632_v63 = vadd.f32 %v7861_v60, %v3631_v58 }
 0xc6a   : > { %8449 = vmatprep.mubr.msk.f32.mxu0 %vm9201_vm2, %v9200_v51 }
 0xc6f   : > { %v8446_v25 = vpop.f32.mrb[30].mxu1 }
 0xc70   : > { %v3793_v27 = vpop.f32.mrb[31].mxu1  ;;  %v3799_v29 = vadd.f32 %v8446_v25, %v7867_v26  ;;  %v7880_v25 = vld [vmem:[%s10150_s6] ss:$0 sm:$0xff] }
 0xc71   : > { %v3794_v28 = vadd.f32 %v7867_v26, %v3793_v27 }
 0xc73   : > { %8458 = vmatpush3.msra.mxu1 %v3794_v28  ;;  %v4302_v28 = vld [vmem:[%s9445_s27 + $0x10] sm:$0xff] }
 0xd3c   : > { %v8435_v45 = vpop.f32.mrb[16].mxu0 }
 0xd3d   : > { %v3712_v61 = vpop.f32.mrb[17].mxu0  ;;  %v3718_v42 = vadd.f32 %v8435_v45, %v7864_v59 }
 0xd3e   : > { %v3713_v62 = vadd.f32 %v7864_v59, %v3712_v61 }
 0xd40   : > { %8448 = vmatpush3.xpose.msk.msra.mxu0 %vm1867_vm3, %v3713_v62  ;;  %v4280_v62 = vld [vmem:[%s10144_s16] sm:$0xff] }
 0xd41   : > { %8452 = vmatprep.subr.mxu0 %v9200_v51 }
 0xd43   : > { %8450 = vmatmul.mubr.msk.f32.vlgmr.msra.gmra.mrb[18].mxu0 %vm1867_vm3, %v3632_v63  ;;  %v4281_v63 = vld [vmem:[%s10144_s16 + $0x8] sm:$0xff] }
 0xd44   : > { %8453 = vmatpush3.xpose.msk.msra.mxu0 %vm1867_vm3, %v3718_v42  ;;  %8454 = vmatprep.mubr.msk.f32.mxu0 %vm9201_vm2, %v9200_v51  ;;  %v8872_v42 = vpack.c.bf16 %v4281_v63, %v4280_v62 }
 0xd45   : > { %8462 = vmatprep.subr.mxu0 %v9200_v51 }
 0xd47   : > { %8455 = vmatmul.mubr.msk.f32.vlgmr.msra.gmra.mrb[20].mxu0 %vm1867_vm3, %v3637_v0  ;;  %v4260_v0 = vld [vmem:[%s10145_s18] sm:$0xff] }
 0xd48   : > { %8464 = vmatprep.mubr.msk.f32.mxu0 %vm9201_vm2, %v9200_v51  ;;  %8463 = vmatpush3.msra.mxu0 %v3799_v29  ;;  %v8864_v3 = vpack.c.bf16 %v4261_v1, %v4260_v0  ;;  %v4303_v29 = vld [vmem:[%s9445_s27 + $0x18] sm:$0xff] }
 0xd49   : > { %8467 = vmatprep.subr.mxu0 %v1601_v37 }
 0xd4a   : > { %8865 = vmatprep.subr.bf16.mxu1 %v8864_v3 }
 0xe16   : > { %v3874_v9 = vpop.f32.mrb[18].mxu0 }
 0xe17   : > { %v3875_v10 = vadd.f32 %v9535_v6, %v3874_v9  ;;  %v8451_v11 = vpop.f32.mrb[19].mxu0  ;;  %v4262_v9 = vld [vmem:[%s10145_s18 + $0x10] sm:$0xff] }
 0xe19   : > { %v3954_v12 = vsel %vm1867_vm3, %v3875_v10, -inf }
 0xe1a   : > { %3955 = vmax.xlane.f32.xlu0 %v3954_v12  ;;  %v3950_v13 = vpop.f32.mrb[20].mxu0  ;;  %v9739_v12 = vld [vmem:[%s10146_s9 + $0x8] sm:$0xff] }
 0xe1b   : > { %v3951_v14 = vadd.f32 %v9532_v5, %v3950_v13  ;;  %v8456_v15 = vpop.f32.mrb[21].mxu0  ;;  %v4300_v13 = vld [vmem:[%s9445_s27] sm:$0xff] }
 0xe1d   : > { %v3957_v16 = vsel %vm1867_vm3, %v3951_v14, -inf }
 0xe1e   : > { %3958 = vmax.xlane.f32.xlu1 %v3957_v16 }
 0xea7   : > { %v3956_v17 = vpop.xlane.xlu0 %3955 }
 0xea8   : > { %v3960_v18 = vsub.f32 %v3875_v10, %v3956_v17  ;;  %v4263_v10 = vld [vmem:[%s10145_s18 + $0x18] sm:$0xff] }
 0xea9   : > { %v8868_v11 = vpack.c.bf16 %v4263_v10, %v4262_v9  ;;  %v4285_v9 = vld [vmem:[%s10144_s16 + $0x28] sm:$0xff] }
 0xeaa   : > { %v3962_v19 = vmul.f32 1.442695, %v3960_v18 }
 0xeab   : > { %v3959_v20 = vpop.xlane.xlu1 %3958 }
 0xeac   : > { %9097 = vpow2.f32 %v3962_v19  ;;  %v3961_v21 = vsub.f32 %v3951_v14, %v3959_v20  ;;  %v4301_v14 = vld [vmem:[%s9445_s27 + $0x8] sm:$0xff] }
 0xead   : > { %v8880_v15 = vpack.c.bf16 %v4301_v14, %v4300_v13  ;;  %v4265_v13 = vld [vmem:[%s10145_s18 + $0x28] sm:$0xff] }
 0xeae   : > { %v3964_v22 = vmul.f32 1.442695, %v3961_v21 }
 0xeb0   : > { %9099 = vpow2.f32 %v3964_v22 }
 0xeb6   : > { %v9098_v6 = vpop.eup %9097 }
 0xeb7   : > { %v3966_v23 = vsel %vm1867_vm3, %v9098_v6, 0.0 }
 0xeb8   : > { %3967 = vadd.xlane.f32.xlu0 %v3966_v23 }
 0xeba   : > { %v9100_v24 = vpop.eup %9099 }
 0xebb   : > { %v3969_v5 = vsel %vm1867_vm3, %v9100_v24, 0.0 }
 0xebc   : > { %3970 = vadd.xlane.f32.xlu1 %v3969_v5 }
 0xf45   : > { %v3968_v30 = vpop.xlane.xlu0 %3967 }
 0xf46   : > { %9101 = vrcp.f32 %v3968_v30 }
 0xf49   : > { %v3971_v31 = vpop.xlane.xlu1 %3970 }
 0xf4a   : > { %9103 = vrcp.f32 %v3971_v31 }
 0xf50   : > { %v9102_v32 = vpop.eup %9101 }
 0xf51   : > { %v3974_v33 = vmul.f32 %v9102_v32, %v9098_v6  ;;  %v7879_v6 = vld [vmem:[%s10149_s19] ss:$0 sm:$0xff]  ;;  %v8884_v32 = vpack.c.bf16 %v4303_v29, %v4302_v28  ;;  %v7901_v29 = vld [vmem:[%s9442_s7 + $0x1] ss:$0 sm:$0xff] }
 0xf53   : > { %8460 = vmatmul.mubr.msk.f32.vlgmr.msra.gmra.mrb[32].mxu1 %vm1867_vm3, %v3974_v33  ;;  %v7884_v33 = vld [vmem:[%s9442_s7] ss:$0 sm:$0xff] }
 0xf54   : > { %v9104_v34 = vpop.eup %9103  ;;  %8867 = vmatpush3.bf16.msra.mxu1 %v8864_v3 }
 0xf55   : > { %v3975_v35 = vmul.f32 %v9104_v34, %v9100_v24  ;;  %8869 = vmatprep.subr.bf16.mxu1 %v8868_v11 }
 0xf57   : > { %8465 = vmatmul.mubr.msk.f32.vlgmr.msra.gmra.mrb[22].mxu0 %vm1867_vm3, %v3975_v35 }
 0xf58   : > { %8468 = vmatpush3.msra.mxu0 %v1601_v37  ;;  %8871 = vmatpush3.bf16.msra.mxu1 %v8868_v11  ;;  %v4264_v11 = vld [vmem:[%s10145_s18 + $0x20] sm:$0xff] }
 0xf59   : > { %8873 = vmatprep.subr.bf16.mxu0 %v8872_v42  ;;  %8881 = vmatprep.subr.bf16.mxu1 %v8880_v15  ;;  %v8888_v14 = vpack.c.bf16 %v4265_v13, %v4264_v11  ;;  %v4268_v13 = vld [vmem:[%s10145_s18 + $0x40] sm:$0xff] }
0x1026   : > { %v4045_v38 = vpop.f32.mrb[32].mxu1 }
0x1027   : > { %v8461_v39 = vpop.f32.mrb[33].mxu1  ;;  %8469 = vmatprep.mubr.msk.f32.mxu0 %vm1867_vm3, %v4045_v38 }
0x1028   : > { %v7881_v39 = vld [vmem:[%s10151_s22] ss:$0 sm:$0xff] }
0x102a   : > { %v4118_v40 = vpop.f32.mrb[22].mxu0 }
0x102b   : > { %v8466_v41 = vpop.f32.mrb[23].mxu0  ;;  %8470 = vmatmul.mubr.msk.f32.vlgmr.msra.gmra.mrb[8].mxu0 %vm1867_vm3, %v4118_v40 }
0x102c   : > { %8875 = vmatpush3.bf16.msra.mxu0 %v8872_v42  ;;  %8491 = vmatprep.mubr.msk.f32.mxu0 %vm1611_vm1, %v9732_v8 }
0x102d   : > { %8877 = vmatprep.subr.bf16.mxu0 %v8876_v7 }
0x1030   : > { %8879 = vmatpush3.bf16.msra.mxu0 %v8876_v7  ;;  %v4284_v7 = vld [vmem:[%s10144_s16 + $0x20] sm:$0xff] }
0x1031   : > { %8505 = vmatprep.subr.mxu0 %v9200_v51  ;;  %v8896_v10 = vpack.c.bf16 %v4285_v9, %v4284_v7  ;;  %v7904_v7 = vld [vmem:[%s9448_s20 + $0x1] ss:$0 sm:$0xff] }
0x1033   : > { %8492 = vmatmul.mubr.msk.f32.vlgmr.msra.gmra.mrb[24].mxu0 %vm1611_vm1, %v9739_v12 }
0x1034   : > { %8507 = vmatprep.mubr.msk.f32.mxu0 %vm9201_vm2, %v9200_v51 }
0x10fe   : > { %v8471_v46 = vpop.f32.mrb[8].mxu0 }
0x10ff   : > { %v4212_v47 = vadd.f32 %v8471_v46, %v7878_v44  ;;  %v4194_v48 = vpop.f32.mrb[9].mxu0 }
0x1100   : > { %v4211_v49 = vadd.f32 %v7878_v44, %v4194_v48 }
0x1101   : > { %v4214_v50 = vadd.f32 %v4212_v47, %v9496_v43  ;;  %v7887_v47 = vld [vmem:[%s9448_s20] ss:$0 sm:$0xff] }
0x1102   : > { %v4213_v52 = vadd.f32 %v4211_v49, %v9488_v36 }
0x1103   : > { %v4220_v53 = vsel %vm1611_vm1, %v4214_v50, 0.0 }
0x1104   : > { %4221 = vadd.xlane.f32.xlu1 %v4220_v53  ;;  %v4217_v54 = vsel %vm1611_vm1, %v4213_v52, 0.0  ;;  %v9785_v53 = vld [vmem:[%s10152_s23 + $0x1] ss:$0 sm:$0xff] }
0x1105   : > { %4218 = vadd.xlane.f32.xlu0 %v4217_v54  ;;  %v9788_v54 = vld [vmem:[%s10152_s23] ss:$0 sm:$0xff] }
0x1106   : > { %v8493_v34 = vpop.f32.mrb[24].mxu0 }
0x1107   : > { %v4498_v35 = vadd.f32 %v8493_v34, %v7884_v33  ;;  %v4492_v37 = vpop.f32.mrb[25].mxu0 }
0x1108   : > { %v4493_v38 = vadd.f32 %v7884_v33, %v4492_v37 }
0x110a   : > { %8506 = vmatpush3.xpose.msk.msra.mxu0 %vm1867_vm3, %v4493_v38 }
0x110b   : > { %8515 = vmatprep.subr.mxu0 %v9200_v51 }
0x1191   : > { %v4222_v55 = vpop.xlane.xlu1 %4221 }
0x1192   : > { %v4225_v56 = vmul.f32 0.03125, %v4222_v55  ;;  %v4219_v57 = vpop.xlane.xlu0 %4218 }
0x1193   : > { %v4224_v58 = vmul.f32 0.03125, %v4219_v57 }
0x1194   : > { %v4227_v59 = vsub.f32 %v4214_v50, %v4225_v56 }
0x1195   : > { %v4226_v45 = vsub.f32 %v4213_v52, %v4224_v58 }
0x1196   : > { %v4229_v43 = vmul.f32 %v4227_v59, %v4227_v59 }
0x1197   : > { %v4228_v36 = vmul.f32 %v4226_v45, %v4226_v45 }
0x1198   : > { %v4233_v60 = vsel %vm1611_vm1, %v4229_v43, 0.0 }
0x1199   : > { %4234 = vadd.xlane.f32.xlu1 %v4233_v60  ;;  %v4230_v61 = vsel %vm1611_vm1, %v4228_v36, 0.0 }
0x119a   : > { %4231 = vadd.xlane.f32.xlu0 %v4230_v61 }
0x1226   : > { %v4235_v16 = vpop.xlane.xlu1 %4234 }
0x1227   : > { %v4237_v17 = vmul.f32 0.03125, %v4235_v16  ;;  %v4232_v18 = vpop.xlane.xlu0 %4231 }
0x1228   : > { %v4236_v19 = vmul.f32 0.03125, %v4232_v18  ;;  %v4287_v18 = vld [vmem:[%s10144_s16 + $0x38] sm:$0xff] }
0x1229   : > { %v4239_v20 = vadd.f32 1e-12, %v4237_v17  ;;  %v4286_v17 = vld [vmem:[%s10144_s16 + $0x30] sm:$0xff] }
0x122a   : > { %v4238_v21 = vadd.f32 1e-12, %v4236_v19  ;;  %v4266_v19 = vld [vmem:[%s10145_s18 + $0x30] sm:$0xff] }
0x122b   : > { %9105 = vrsqrt.f32 %v4239_v20  ;;  %v4267_v20 = vld [vmem:[%s10145_s18 + $0x38] sm:$0xff] }
0x122c   : > { %9107 = vrsqrt.f32 %v4238_v21 }
0x1235   : > { %v9106_v22 = vpop.eup %9105 }
0x1236   : > { %v9108_v23 = vpop.eup %9107  ;;  %v4243_v24 = vmul.f32 %v9106_v22, %v4227_v59 }
0x1237   : > { %v4242_v5 = vmul.f32 %v9108_v23, %v4226_v45 }
0x1238   : > { %v4251_v26 = vmul.f32 %v7879_v6, %v4243_v24  ;;  %v8900_v24 = vpack.c.bf16 %v4287_v18, %v4286_v17 }
0x1239   : > { %v4250_v27 = vmul.f32 %v7879_v6, %v4242_v5  ;;  %v8892_v5 = vpack.c.bf16 %v4267_v20, %v4266_v19  ;;  %v4270_v20 = vld [vmem:[%s10145_s18 + $0x50] sm:$0xff] }
0x123a   : > { %v9758_v31 = vadd.f32 %v7880_v25, %v4251_v26 }
0x123b   : > { %v9756_v30 = vadd.f32 %v7880_v25, %v4250_v27 }
0x123d   : > { %8480 = vmatprep.mubr.msk.f32.mxu1 %vm1611_vm1, %v9756_v30 }
0x123e   : > { %8481 = vmatmul.mubr.msk.f32.vlgmr.msra.gmra.mrb[34].mxu1 %vm1611_vm1, %v9758_v31 }
0x123f   : > { %8883 = vmatpush3.bf16.msra.mxu1 %v8880_v15  ;;  %8502 = vmatprep.mubr.msk.f32.mxu1 %vm1611_vm1, %v9732_v8 }
0x1240   : > { %8885 = vmatprep.subr.bf16.mxu1 %v8884_v32 }
0x1243   : > { %8887 = vmatpush3.bf16.msra.mxu1 %v8884_v32 }
0x1244   : > { %8510 = vmatprep.subr.mxu1 %v9200_v51 }
0x1246   : > { %8503 = vmatmul.mubr.msk.f32.vlgmr.msra.gmra.mrb[36].mxu1 %vm1611_vm1, %v9739_v12 }
0x1247   : > { %8512 = vmatprep.mubr.msk.f32.mxu1 %vm9201_vm2, %v9200_v51 }
0x124c   : > { %8511 = vmatpush3.xpose.msk.msra.mxu1 %vm1867_vm3, %v4498_v35  ;;  %v7898_v35 = vld [vmem:[%s10151_s22 + $0x1] ss:$0 sm:$0xff] }
0x124d   : > { %8520 = vmatprep.subr.mxu1 %v9200_v51 }
0x1311   : > { %v8482_v40 = vpop.f32.mrb[34].mxu1 }
0x1312   : > { %v4411_v41 = vadd.f32 %v8482_v40, %v7881_v39  ;;  %v4405_v44 = vpop.f32.mrb[35].mxu1 }
0x1313   : > { %v4406_v46 = vadd.f32 %v7881_v39, %v4405_v44  ;;  %v4304_v44 = vld [vmem:[%s9445_s27 + $0x20] sm:$0xff] }
0x1314   : > { %8513 = vmatmul.mubr.msk.f32.vlgmr.msra.gmra.mrb[38].mxu1 %vm1867_vm3, %v4411_v41 }
0x1315   : > { %8508 = vmatmul.mubr.msk.f32.vlgmr.msra.gmra.mrb[26].mxu0 %vm1867_vm3, %v4406_v46  ;;  %8522 = vmatprep.mubr.msk.f32.mxu1 %vm9201_vm2, %v9200_v51  ;;  %v4305_v46 = vld [vmem:[%s9445_s27 + $0x28] sm:$0xff] }
0x1316   : > { %8517 = vmatprep.mubr.msk.f32.mxu0 %vm9201_vm2, %v9200_v51 }
0x1319   : > { %v8504_v48 = vpop.f32.mrb[36].mxu1 }
0x131a   : > { %v4579_v49 = vadd.f32 %v8504_v48, %v7887_v47  ;;  %v4573_v50 = vpop.f32.mrb[37].mxu1  ;;  %v8904_v48 = vpack.c.bf16 %v4305_v46, %v4304_v44  ;;  %v4290_v46 = vld [vmem:[%s10144_s16 + $0x50] sm:$0xff] }
0x131b   : > { %v4574_v52 = vadd.f32 %v7887_v47, %v4573_v50  ;;  %v4306_v47 = vld [vmem:[%s9445_s27 + $0x30] sm:$0xff] }
0x131c   : > { %8521 = vmatpush3.msra.mxu1 %v4579_v49  ;;  %v4307_v49 = vld [vmem:[%s9445_s27 + $0x38] sm:$0xff] }
0x131d   : > { %8516 = vmatpush3.msra.mxu0 %v4574_v52  ;;  %8897 = vmatprep.subr.bf16.mxu1 %v8896_v10  ;;  %v8908_v50 = vpack.c.bf16 %v4307_v49, %v4306_v47  ;;  %v4291_v47 = vld [vmem:[%s10144_s16 + $0x58] sm:$0xff] }
0x131e   : > { %8889 = vmatprep.subr.bf16.mxu0 %v8888_v14 }
0x13e7   : > { %v4742_v55 = vpop.f32.mrb[38].mxu1 }
0x13e8   : > { %v4743_v56 = vadd.f32 %v9785_v53, %v4742_v55  ;;  %v4666_v57 = vpop.f32.mrb[26].mxu0  ;;  %v8514_v58 = vpop.f32.mrb[39].mxu1 }
0x13e9   : > { %v4667_v59 = vadd.f32 %v9788_v54, %v4666_v57  ;;  %v8509_v45 = vpop.f32.mrb[27].mxu0 }
0x13ea   : > { %v4749_v43 = vsel %vm1867_vm3, %v4743_v56, -inf }
0x13eb   : > { %4750 = vmax.xlane.f32.xlu0 %v4749_v43  ;;  %v4746_v36 = vsel %vm1867_vm3, %v4667_v59, -inf }
0x13ec   : > { %4747 = vmax.xlane.f32.xlu1 %v4746_v36 }
0x1478   : > { %v4751_v60 = vpop.xlane.xlu0 %4750 }
0x1479   : > { %v4753_v61 = vsub.f32 %v4743_v56, %v4751_v60  ;;  %v4748_v62 = vpop.xlane.xlu1 %4747 }
0x147a   : > { %v4752_v63 = vsub.f32 %v4667_v59, %v4748_v62 }
0x147b   : > { %v4756_v42 = vmul.f32 1.442695, %v4753_v61 }
0x147c   : > { %v4754_v0 = vmul.f32 1.442695, %v4752_v63 }
0x147d   : > { %9109 = vpow2.f32 %v4756_v42 }
0x147e   : > { %9111 = vpow2.f32 %v4754_v0 }
0x1487   : > { %v9110_v1 = vpop.eup %9109 }
0x1488   : > { %v9112_v2 = vpop.eup %9111  ;;  %v4761_v3 = vsel %vm1867_vm3, %v9110_v1, 0.0 }
0x1489   : > { %4762 = vadd.xlane.f32.xlu0 %v4761_v3  ;;  %v4758_v4 = vsel %vm1867_vm3, %v9112_v2, 0.0 }
0x148a   : > { %4759 = vadd.xlane.f32.xlu1 %v4758_v4 }
0x1516   : > { %v4763_v15 = vpop.xlane.xlu0 %4762 }
0x1517   : > { %9113 = vrcp.f32 %v4763_v15  ;;  %v4760_v16 = vpop.xlane.xlu1 %4759 }
0x1518   : > { %9115 = vrcp.f32 %v4760_v16 }
0x1521   : > { %v9114_v21 = vpop.eup %9113 }
0x1522   : > { %v9116_v22 = vpop.eup %9115  ;;  %v4767_v6 = vmul.f32 %v9114_v21, %v9110_v1  ;;  %v4271_v21 = vld [vmem:[%s10145_s18 + $0x58] sm:$0xff] }
0x1523   : > { %v4766_v23 = vmul.f32 %v9116_v22, %v9112_v2 }
0x1524   : > { %8523 = vmatmul.mubr.msk.f32.vlgmr.msra.gmra.mrb[40].mxu1 %vm1867_vm3, %v4767_v6 }
0x1525   : > { %8899 = vmatpush3.bf16.msra.mxu1 %v8896_v10  ;;  %8518 = vmatmul.mubr.msk.f32.vlgmr.msra.gmra.mrb[28].mxu0 %vm1867_vm3, %v4766_v23  ;;  %v8916_v23 = vpack.c.bf16 %v4271_v21, %v4270_v20  ;;  %v4273_v20 = vld [vmem:[%s10145_s18 + $0x68] sm:$0xff] }
0x1526   : > { %8891 = vmatpush3.bf16.msra.mxu0 %v8888_v14  ;;  %8533 = vmatprep.mubr.msk.f32.mxu0 %vm1611_vm1, %v9756_v30  ;;  %v4269_v14 = vld [vmem:[%s10145_s18 + $0x48] sm:$0xff] }
0x1527   : > { %8901 = vmatprep.subr.bf16.mxu1 %v8900_v24  ;;  %8893 = vmatprep.subr.bf16.mxu0 %v8892_v5  ;;  %v8912_v15 = vpack.c.bf16 %v4269_v14, %v4268_v13 }
0x1528   : > { %8544 = vmatprep.mubr.msk.f32.mxu1 %vm1611_vm1, %v9732_v8 }
0x1529   : > { %8903 = vmatpush3.bf16.msra.mxu1 %v8900_v24  ;;  %v4321_v24 = vld [vmem:[%s9451_s24 + $0x8] sm:$0xff] }
0x152a   : > { %8895 = vmatpush3.bf16.msra.mxu0 %v8892_v5  ;;  %8558 = vmatprep.subr.mxu1 %v9200_v51  ;;  %v4320_v5 = vld [vmem:[%s9451_s24] sm:$0xff] }
0x152b   : > { %8905 = vmatprep.subr.bf16.mxu0 %v8904_v48 }
0x152c   : > { %8545 = vmatmul.mubr.msk.f32.vlgmr.msra.gmra.mrb[42].mxu1 %vm1611_vm1, %v9739_v12 }
0x152d   : > { %8534 = vmatmul.mubr.msk.f32.vlgmr.msra.gmra.mrb[30].mxu0 %vm1611_vm1, %v9758_v31  ;;  %8560 = vmatprep.mubr.msk.f32.mxu1 %vm9201_vm2, %v9200_v51 }
0x152e   : > { %8555 = vmatprep.mubr.msk.f32.mxu0 %vm1611_vm1, %v9732_v8  ;;  %8907 = vmatpush3.bf16.msra.mxu0 %v8904_v48  ;;  %v8924_v48 = vpack.c.bf16 %v4291_v47, %v4290_v46 }
0x152f   : > { %8909 = vmatprep.subr.bf16.mxu0 %v8908_v50 }
0x1532   : > { %8911 = vmatpush3.bf16.msra.mxu0 %v8908_v50 }
0x1533   : > { %8568 = vmatprep.subr.mxu0 %v9200_v51 }
0x1535   : > { %8556 = vmatmul.mubr.msk.f32.vlgmr.msra.gmra.mrb[32].mxu0 %vm1611_vm1, %v9739_v12 }
0x1536   : > { %8570 = vmatprep.mubr.msk.f32.mxu0 %vm9201_vm2, %v9200_v51 }
0x15f7   : > { %v9819_v25 = vpop.f32.mrb[40].mxu1 }
0x15f8   : > { %v9821_v26 = vpop.f32.mrb[28].mxu0  ;;  %v8524_v27 = vpop.f32.mrb[41].mxu1 }
0x15f9   : > { %v8519_v28 = vpop.f32.mrb[29].mxu0  ;;  %v4308_v27 = vld [vmem:[%s9445_s27 + $0x40] sm:$0xff] }
0x15fa   : > { %v4309_v28 = vld [vmem:[%s9445_s27 + $0x48] sm:$0xff] }
0x15ff   : > { %v8546_v32 = vpop.f32.mrb[42].mxu1 }
0x1600   : > { %v8535_v33 = vpop.f32.mrb[30].mxu0  ;;  %v5067_v34 = vpop.f32.mrb[43].mxu1  ;;  %v5073_v40 = vadd.f32 %v8546_v32, %v7901_v29  ;;  %v8928_v32 = vpack.c.bf16 %v4309_v28, %v4308_v27 }
0x1601   : > { %v5068_v37 = vadd.f32 %v7901_v29, %v5067_v34  ;;  %v4986_v38 = vpop.f32.mrb[31].mxu0  ;;  %v4992_v41 = vadd.f32 %v8535_v33, %v7898_v35  ;;  %v4310_v29 = vld [vmem:[%s9445_s27 + $0x50] sm:$0xff]  ;;  %v4311_v33 = vld [vmem:[%s9445_s27 + $0x58] sm:$0xff] }
0x1602   : > { %v4987_v39 = vadd.f32 %v7898_v35, %v4986_v38  ;;  %v8932_v34 = vpack.c.bf16 %v4311_v33, %v4310_v29  ;;  %v4289_v38 = vld [vmem:[%s10144_s16 + $0x48] sm:$0xff] }
0x1603   : > { %8559 = vmatpush3.xpose.msk.msra.mxu1 %vm1867_vm3, %v5068_v37  ;;  %v4288_v37 = vld [vmem:[%s10144_s16 + $0x40] sm:$0xff] }
0x1604   : > { %8563 = vmatprep.subr.mxu1 %v9200_v51 }
0x1606   : > { %8561 = vmatmul.mubr.msk.f32.vlgmr.msra.gmra.mrb[44].mxu1 %vm1867_vm3, %v4987_v39 }
0x1607   : > { %8564 = vmatpush3.xpose.msk.msra.mxu1 %vm1867_vm3, %v5073_v40  ;;  %8565 = vmatprep.mubr.msk.f32.mxu1 %vm9201_vm2, %v9200_v51  ;;  %v8920_v40 = vpack.c.bf16 %v4289_v38, %v4288_v37  ;;  %v4294_v38 = vld [vmem:[%s10144_s16 + $0x70] sm:$0xff] }
0x1608   : > { %8573 = vmatprep.subr.mxu1 %v9200_v51  ;;  %v8557_v4 = vpop.f32.mrb[32].mxu0 }
0x1609   : > { %v5148_v9 = vpop.f32.mrb[33].mxu0  ;;  %v5154_v11 = vadd.f32 %v8557_v4, %v7904_v7 }
0x160a   : > { %8566 = vmatmul.mubr.msk.f32.vlgmr.msra.gmra.mrb[46].mxu1 %vm1867_vm3, %v4992_v41  ;;  %v5149_v10 = vadd.f32 %v7904_v7, %v5148_v9 }
0x160b   : > { %8575 = vmatprep.mubr.msk.f32.mxu1 %vm9201_vm2, %v9200_v51  ;;  %8574 = vmatpush3.msra.mxu1 %v5154_v11 }
0x160c   : > { %8569 = vmatpush3.msra.mxu0 %v5149_v10  ;;  %8913 = vmatprep.subr.bf16.mxu1 %v8912_v15 }
0x160d   : > { %8578 = vmatprep.subr.mxu0 %v4321_v24 }
0x16d9   : > { %v5229_v52 = vpop.f32.mrb[44].mxu1 }
0x16da   : > { %v5230_v55 = vadd.f32 %v9788_v54, %v5229_v52  ;;  %v8562_v56 = vpop.f32.mrb[45].mxu1 }
0x16dc   : > { %v5309_v57 = vsel %vm1867_vm3, %v5230_v55, -inf }
0x16dd   : > { %5310 = vmax.xlane.f32.xlu0 %v5309_v57  ;;  %v5305_v58 = vpop.f32.mrb[46].mxu1  ;;  %v7923_v57 = vld [vmem:[%s9448_s20 + $0x2] ss:$0 sm:$0xff] }
0x16de   : > { %v5306_v59 = vadd.f32 %v9785_v53, %v5305_v58  ;;  %v8567_v45 = vpop.f32.mrb[47].mxu1 }
0x16e0   : > { %v5312_v43 = vsel %vm1867_vm3, %v5306_v59, -inf }
0x16e1   : > { %5313 = vmax.xlane.f32.xlu1 %v5312_v43 }
0x176a   : > { %v5311_v36 = vpop.xlane.xlu0 %5310 }
0x176b   : > { %v5315_v60 = vsub.f32 %v5230_v55, %v5311_v36  ;;  %v7920_v55 = vld [vmem:[%s9442_s7 + $0x2] ss:$0 sm:$0xff] }
0x176d   : > { %v5317_v61 = vmul.f32 1.442695, %v5315_v60 }
0x176e   : > { %v5314_v62 = vpop.xlane.xlu1 %5313 }
0x176f   : > { %9117 = vpow2.f32 %v5317_v61  ;;  %v5316_v63 = vsub.f32 %v5306_v59, %v5314_v62 }
0x1771   : > { %v5319_v42 = vmul.f32 1.442695, %v5316_v63 }
0x1773   : > { %9119 = vpow2.f32 %v5319_v42 }
0x1779   : > { %v9118_v0 = vpop.eup %9117 }
0x177a   : > { %v5321_v1 = vsel %vm1867_vm3, %v9118_v0, 0.0 }
0x177b   : > { %5322 = vadd.xlane.f32.xlu0 %v5321_v1 }
0x177d   : > { %v9120_v2 = vpop.eup %9119 }
0x177e   : > { %v5324_v3 = vsel %vm1867_vm3, %v9120_v2, 0.0 }
0x177f   : > { %5325 = vadd.xlane.f32.xlu1 %v5324_v3 }
0x1808   : > { %v5323_v16 = vpop.xlane.xlu0 %5322 }
0x1809   : > { %9121 = vrcp.f32 %v5323_v16 }
0x180c   : > { %v5326_v17 = vpop.xlane.xlu1 %5325 }
0x180d   : > { %9123 = vrcp.f32 %v5326_v17 }
0x1813   : > { %v9122_v18 = vpop.eup %9121 }
0x1814   : > { %v5329_v19 = vmul.f32 %v9122_v18, %v9118_v0 }
0x1816   : > { %8571 = vmatmul.mubr.msk.f32.vlgmr.msra.gmra.mrb[34].mxu0 %vm1867_vm3, %v5329_v19  ;;  %v4272_v19 = vld [vmem:[%s10145_s18 + $0x60] sm:$0xff] }
0x1817   : > { %v9124_v22 = vpop.eup %9123  ;;  %8579 = vmatpush3.msra.mxu0 %v4321_v24  ;;  %v8936_v21 = vpack.c.bf16 %v4273_v20, %v4272_v19  ;;  %v4274_v24 = vld [vmem:[%s10145_s18 + $0x70] sm:$0xff] }
0x1818   : > { %v5330_v6 = vmul.f32 %v9124_v22, %v9120_v2  ;;  %8583 = vmatprep.subr.mxu0 %v4320_v5  ;;  %v4322_v22 = vld [vmem:[%s9451_s24 + $0x10] sm:$0xff] }
0x181a   : > { %8576 = vmatmul.mubr.msk.f32.vlgmr.msra.gmra.mrb[48].mxu1 %vm1867_vm3, %v5330_v6 }
0x181b   : > { %8915 = vmatpush3.bf16.msra.mxu1 %v8912_v15  ;;  %8596 = vmatprep.mubr.msk.f32.mxu1 %vm1611_vm1, %v9756_v30 }
0x181c   : > { %8917 = vmatprep.subr.bf16.mxu1 %v8916_v23 }
0x181f   : > { %8919 = vmatpush3.bf16.msra.mxu1 %v8916_v23 }
0x1820   : > { %8929 = vmatprep.subr.bf16.mxu1 %v8928_v32 }
0x1822   : > { %8597 = vmatmul.mubr.msk.f32.vlgmr.msra.gmra.mrb[50].mxu1 %vm1611_vm1, %v9758_v31 }
0x1823   : > { %8618 = vmatprep.mubr.msk.f32.mxu1 %vm1611_vm1, %v9732_v8  ;;  %8931 = vmatpush3.bf16.msra.mxu1 %v8928_v32 }
0x1824   : > { %8933 = vmatprep.subr.bf16.mxu1 %v8932_v34 }
0x1827   : > { %8935 = vmatpush3.bf16.msra.mxu1 %v8932_v34  ;;  %v4292_v34 = vld [vmem:[%s10144_s16 + $0x60] sm:$0xff] }
0x1828   : > { %8626 = vmatprep.subr.mxu1 %v9200_v51 }
0x182a   : > { %8619 = vmatmul.mubr.msk.f32.vlgmr.msra.gmra.mrb[52].mxu1 %vm1611_vm1, %v9739_v12 }
0x182b   : > { %8628 = vmatprep.mubr.msk.f32.mxu1 %vm9201_vm2, %v9200_v51 }
0x18e9   : > { %v5400_v35 = vpop.f32.mrb[34].mxu0 }
0x18ea   : > { %v8572_v39 = vpop.f32.mrb[35].mxu0  ;;  %8580 = vmatprep.mubr.msk.f32.mxu0 %vm1867_vm3, %v5400_v35  ;;  %v4293_v35 = vld [vmem:[%s10144_s16 + $0x68] sm:$0xff] }
0x18eb   : > { %v8944_v37 = vpack.c.bf16 %v4293_v35, %v4292_v34  ;;  %v4295_v39 = vld [vmem:[%s10144_s16 + $0x78] sm:$0xff] }
0x18ec   : > { %v8948_v46 = vpack.c.bf16 %v4295_v39, %v4294_v38 }
0x18ed   : > { %v5473_v41 = vpop.f32.mrb[48].mxu1 }
0x18ee   : > { %v8577_v44 = vpop.f32.mrb[49].mxu1  ;;  %8581 = vmatmul.mubr.msk.f32.vlgmr.msra.gmra.mrb[36].mxu0 %vm1867_vm3, %v5473_v41 }
0x18ef   : > { %8584 = vmatpush3.msra.mxu0 %v4320_v5  ;;  %8585 = vmatprep.mubr.msk.f32.mxu0 %vm1867_vm3, %v9821_v26  ;;  %v4275_v5 = vld [vmem:[%s10145_s18 + $0x78] sm:$0xff] }
0x18f0   : > { %8921 = vmatprep.subr.bf16.mxu0 %v8920_v40  ;;  %v8940_v32 = vpack.c.bf16 %v4275_v5, %v4274_v24  ;;  %v4323_v24 = vld [vmem:[%s9451_s24 + $0x18] sm:$0xff] }
0x18f5   : > { %v8598_v49 = vpop.f32.mrb[50].mxu1 }
0x18f6   : > { %v5711_v50 = vpop.f32.mrb[51].mxu1  ;;  %8586 = vmatmul.mubr.msk.f32.vlgmr.msra.gmra.mrb[36].mxu0 %vm1867_vm3, %v9819_v25  ;;  %v7917_v25 = vld [vmem:[%s10151_s22 + $0x2] ss:$0 sm:$0xff] }
0x18f7   : > { %8923 = vmatpush3.bf16.msra.mxu0 %v8920_v40  ;;  %8607 = vmatprep.mubr.msk.f32.mxu0 %vm1611_vm1, %v9732_v8  ;;  %v5717_v36 = vadd.f32 %v8598_v49, %v7917_v25  ;;  %v5712_v61 = vadd.f32 %v7917_v25, %v5711_v50  ;;  %v7937_v50 = vld [vmem:[%s9442_s7 + $0x3] ss:$0 sm:$0xff] }
0x18f8   : > { %8925 = vmatprep.subr.bf16.mxu0 %v8924_v48 }
0x18fb   : > { %8927 = vmatpush3.bf16.msra.mxu0 %v8924_v48 }
0x18fc   : > { %8621 = vmatprep.subr.mxu0 %v9200_v51 }
0x18fd   : > { %v8620_v26 = vpop.f32.mrb[52].mxu1 }
0x18fe   : > { %8608 = vmatmul.mubr.msk.f32.vlgmr.msra.gmra.mrb[38].mxu0 %vm1611_vm1, %v9739_v12  ;;  %v5873_v52 = vpop.f32.mrb[53].mxu1  ;;  %v5879_v43 = vadd.f32 %v8620_v26, %v7923_v57 }
0x18ff   : > { %8623 = vmatprep.mubr.msk.f32.mxu0 %vm9201_vm2, %v9200_v51  ;;  %v5874_v60 = vadd.f32 %v7923_v57, %v5873_v52 }
0x19d1   : > { %v8609_v56 = vpop.f32.mrb[38].mxu0 }
0x19d2   : > { %v5798_v58 = vadd.f32 %v8609_v56, %v7920_v55  ;;  %v5792_v59 = vpop.f32.mrb[39].mxu0 }
0x19d3   : > { %v5793_v45 = vadd.f32 %v7920_v55, %v5792_v59  ;;  %v7934_v55 = vld [vmem:[%s10151_s22 + $0x3] ss:$0 sm:$0xff]  ;;  %v4313_v59 = vld [vmem:[%s9445_s27 + $0x68] sm:$0xff] }
0x19d4   : > { %8627 = vmatpush3.xpose.msk.msra.mxu1 %vm1867_vm3, %v5798_v58  ;;  %v4312_v58 = vld [vmem:[%s9445_s27 + $0x60] sm:$0xff] }
0x19d5   : > { %8622 = vmatpush3.xpose.msk.msra.mxu0 %vm1867_vm3, %v5793_v45  ;;  %8636 = vmatprep.subr.mxu1 %v9200_v51  ;;  %v4314_v45 = vld [vmem:[%s9445_s27 + $0x70] sm:$0xff] }
0x19d6   : > { %8631 = vmatprep.subr.mxu0 %v9200_v51 }
0x19d7   : > { %8629 = vmatmul.mubr.msk.f32.vlgmr.msra.gmra.mrb[54].mxu1 %vm1867_vm3, %v5717_v36  ;;  %v4315_v36 = vld [vmem:[%s9445_s27 + $0x78] sm:$0xff] }
0x19d8   : > { %8624 = vmatmul.mubr.msk.f32.vlgmr.msra.gmra.mrb[40].mxu0 %vm1867_vm3, %v5712_v61  ;;  %8637 = vmatpush3.msra.mxu1 %v5879_v43  ;;  %v8952_v43 = vpack.c.bf16 %v4313_v59, %v4312_v58 }
0x19d9   : > { %8632 = vmatpush3.msra.mxu0 %v5874_v60  ;;  %8638 = vmatprep.mubr.msk.f32.mxu1 %vm9201_vm2, %v9200_v51  ;;  %v8956_v60 = vpack.c.bf16 %v4315_v36, %v4314_v45 }
0x19da   : > { %8633 = vmatprep.mubr.msk.f32.mxu0 %vm9201_vm2, %v9200_v51  ;;  %8937 = vmatprep.subr.bf16.mxu1 %v8936_v21 }
0x19db   : > { %8641 = vmatprep.subr.mxu0 %v4322_v22 }
0x1aaa   : > { %v6030_v62 = vpop.f32.mrb[54].mxu1 }
0x1aab   : > { %v6031_v63 = vadd.f32 %v9785_v53, %v6030_v62  ;;  %v5954_v42 = vpop.f32.mrb[40].mxu0  ;;  %v8630_v0 = vpop.f32.mrb[55].mxu1 }
0x1aac   : > { %v5955_v1 = vadd.f32 %v9788_v54, %v5954_v42  ;;  %v8625_v2 = vpop.f32.mrb[41].mxu0 }
0x1aad   : > { %v6037_v3 = vsel %vm1867_vm3, %v6031_v63, -inf }
0x1aae   : > { %6038 = vmax.xlane.f32.xlu1 %v6037_v3  ;;  %v6034_v4 = vsel %vm1867_vm3, %v5955_v1, -inf }
0x1aaf   : > { %6035 = vmax.xlane.f32.xlu0 %v6034_v4 }
0x1b3b   : > { %v6039_v7 = vpop.xlane.xlu1 %6038 }
0x1b3c   : > { %v6041_v9 = vsub.f32 %v6031_v63, %v6039_v7  ;;  %v6036_v10 = vpop.xlane.xlu0 %6035 }
0x1b3d   : > { %v6040_v11 = vsub.f32 %v5955_v1, %v6036_v10 }
0x1b3e   : > { %v6044_v13 = vmul.f32 1.442695, %v6041_v9 }
0x1b3f   : > { %v6042_v14 = vmul.f32 1.442695, %v6040_v11 }
0x1b40   : > { %9125 = vpow2.f32 %v6044_v13 }
0x1b41   : > { %9127 = vpow2.f32 %v6042_v14 }
0x1b4a   : > { %v9126_v15 = vpop.eup %9125 }
0x1b4b   : > { %v9128_v16 = vpop.eup %9127  ;;  %v6049_v17 = vsel %vm1867_vm3, %v9126_v15, 0.0 }
0x1b4c   : > { %6050 = vadd.xlane.f32.xlu1 %v6049_v17  ;;  %v6046_v18 = vsel %vm1867_vm3, %v9128_v16, 0.0 }
0x1b4d   : > { %6047 = vadd.xlane.f32.xlu0 %v6046_v18 }
0x1bd9   : > { %v6051_v6 = vpop.xlane.xlu1 %6050 }
0x1bda   : > { %9129 = vrcp.f32 %v6051_v6  ;;  %v6048_v23 = vpop.xlane.xlu0 %6047 }
0x1bdb   : > { %9131 = vrcp.f32 %v6048_v23 }
0x1be4   : > { %v9130_v27 = vpop.eup %9129 }
0x1be5   : > { %v9132_v28 = vpop.eup %9131  ;;  %v6055_v29 = vmul.f32 %v9130_v27, %v9126_v15  ;;  %v7940_v15 = vld [vmem:[%s9448_s20 + $0x3] ss:$0 sm:$0xff] }
0x1be6   : > { %v6054_v33 = vmul.f32 %v9132_v28, %v9128_v16 }
0x1be7   : > { %8639 = vmatmul.mubr.msk.f32.vlgmr.msra.gmra.mrb[56].mxu1 %vm1867_vm3, %v6055_v29 }
0x1be8   : > { %8939 = vmatpush3.bf16.msra.mxu1 %v8936_v21  ;;  %8634 = vmatmul.mubr.msk.f32.vlgmr.msra.gmra.mrb[42].mxu0 %vm1867_vm3, %v6054_v33 }
0x1be9   : > { %8654 = vmatprep.mubr.msk.f32.mxu1 %vm1611_vm1, %v9756_v30  ;;  %8941 = vmatprep.subr.bf16.mxu1 %v8940_v32 }
0x1bea   : > { %8642 = vmatpush3.msra.mxu0 %v4322_v22 }
0x1beb   : > { %8945 = vmatprep.subr.bf16.mxu0 %v8944_v37 }
0x1bec   : > { %8943 = vmatpush3.bf16.msra.mxu1 %v8940_v32  ;;  %v7951_v32 = vld [vmem:[%s1451_s30] ss:$0 sm:$0xff] }
0x1bed   : > { %8953 = vmatprep.subr.bf16.mxu1 %v8952_v43 }
0x1bef   : > { %8655 = vmatmul.mubr.msk.f32.vlgmr.msra.gmra.mrb[58].mxu1 %vm1611_vm1, %v9758_v31 }
0x1bf0   : > { %8676 = vmatprep.mubr.msk.f32.mxu1 %vm1611_vm1, %v9732_v8  ;;  %8955 = vmatpush3.bf16.msra.mxu1 %v8952_v43 }
0x1bf1   : > { %8957 = vmatprep.subr.bf16.mxu1 %v8956_v60 }
0x1bf4   : > { %8959 = vmatpush3.bf16.msra.mxu1 %v8956_v60 }
0x1bf5   : > { %8689 = vmatprep.subr.mxu1 %v9200_v51 }
0x1bf7   : > { %8677 = vmatmul.mubr.msk.f32.vlgmr.msra.gmra.mrb[60].mxu1 %vm1611_vm1, %v9739_v12 }
0x1bf8   : > { %8691 = vmatprep.mubr.msk.f32.mxu1 %vm9201_vm2, %v9200_v51 }
0x1cba   : > { %v6198_v40 = vpop.f32.mrb[56].mxu1 }
0x1cbb   : > { %v6125_v41 = vpop.f32.mrb[42].mxu0  ;;  %v8640_v44 = vpop.f32.mrb[57].mxu1 }
0x1cbc   : > { %v8635_v47 = vpop.f32.mrb[43].mxu0  ;;  %8643 = vmatprep.mubr.msk.f32.mxu0 %vm1867_vm3, %v6125_v41 }
0x1cbd   : > { %8644 = vmatmul.mubr.msk.f32.vlgmr.msra.gmra.mrb[36].mxu0 %vm1867_vm3, %v6198_v40 }
0x1cbe   : > { %8947 = vmatpush3.bf16.msra.mxu0 %v8944_v37  ;;  %8665 = vmatprep.mubr.msk.f32.mxu0 %vm1611_vm1, %v9732_v8 }
0x1cbf   : > { %8949 = vmatprep.subr.bf16.mxu0 %v8948_v46 }
0x1cc2   : > { %v8656_v48 = vpop.f32.mrb[58].mxu1  ;;  %8951 = vmatpush3.bf16.msra.mxu0 %v8948_v46 }
0x1cc3   : > { %v6357_v49 = vpop.f32.mrb[59].mxu1  ;;  %8679 = vmatprep.subr.mxu0 %v9200_v51  ;;  %v6363_v25 = vadd.f32 %v8656_v48, %v7934_v55 }
0x1cc4   : > { %v6358_v56 = vadd.f32 %v7934_v55, %v6357_v49  ;;  %v6985_v55 = vld [vmem:[%s9460_s15] sm:$0xff] }
0x1cc5   : > { %8666 = vmatmul.mubr.msk.f32.vlgmr.msra.gmra.mrb[44].mxu0 %vm1611_vm1, %v9739_v12 }
0x1cc6   : > { %8681 = vmatprep.mubr.msk.f32.mxu0 %vm9201_vm2, %v9200_v51 }
0x1cca   : > { %v8678_v14 = vpop.f32.mrb[60].mxu1 }
0x1ccb   : > { %v6519_v16 = vpop.f32.mrb[61].mxu1  ;;  %v6525_v18 = vadd.f32 %v8678_v14, %v7940_v15  ;;  %v7136_v14 = vld [vmem:[%s9465_s21 + $0x28] sm:$0xff] }
0x1ccc   : > { %v6520_v17 = vadd.f32 %v7940_v15, %v6519_v16  ;;  %v7137_v16 = vld [vmem:[%s9465_s21 + $0x30] sm:$0xff] }
0x1cce   : > { %8690 = vmatpush3.msra.mxu1 %v6520_v17  ;;  %v7138_v17 = vld [vmem:[%s9465_s21 + $0x38] sm:$0xff] }
0x1d98   : > { %v8667_v26 = vpop.f32.mrb[44].mxu0 }
0x1d99   : > { %v6438_v52 = vpop.f32.mrb[45].mxu0  ;;  %v6444_v57 = vadd.f32 %v8667_v26, %v7937_v50 }
0x1d9a   : > { %v6439_v8 = vadd.f32 %v7937_v50, %v6438_v52 }
0x1d9c   : > { %8680 = vmatpush3.xpose.msk.msra.mxu0 %vm1867_vm3, %v6439_v8  ;;  %v6986_v8 = vld [vmem:[%s9460_s15 + $0x8] sm:$0xff] }
0x1d9d   : > { %8684 = vmatprep.subr.mxu0 %v9200_v51 }
0x1d9f   : > { %8682 = vmatmul.mubr.msk.f32.vlgmr.msra.gmra.mrb[46].mxu0 %vm1867_vm3, %v6358_v56  ;;  %v8960_v56 = vpack.c.bf16 %v6986_v8, %v6985_v55 }
0x1da0   : > { %8685 = vmatpush3.xpose.msk.msra.mxu0 %vm1867_vm3, %v6444_v57  ;;  %8686 = vmatprep.mubr.msk.f32.mxu0 %vm9201_vm2, %v9200_v51  ;;  %v6987_v57 = vld [vmem:[%s9460_s15 + $0x10] sm:$0xff] }
0x1da1   : > { %8694 = vmatprep.subr.mxu0 %v9200_v51  ;;  %8961 = vmatprep.subr.bf16.mxu1 %v8960_v56 }
0x1da3   : > { %8687 = vmatmul.mubr.msk.f32.vlgmr.msra.gmra.mrb[48].mxu0 %vm1867_vm3, %v6363_v25  ;;  %v6988_v25 = vld [vmem:[%s9460_s15 + $0x18] sm:$0xff] }
0x1da4   : > { %8696 = vmatprep.mubr.msk.f32.mxu0 %vm9201_vm2, %v9200_v51  ;;  %8695 = vmatpush3.msra.mxu0 %v6525_v18  ;;  %v8964_v58 = vpack.c.bf16 %v6988_v25, %v6987_v57  ;;  %v8980_v18 = vpack.c.bf16 %v7138_v17, %v7137_v16 }
0x1da5   : > { %8699 = vmatprep.subr.mxu0 %v4323_v24 }
0x1e72   : > { %v6600_v61 = vpop.f32.mrb[46].mxu0 }
0x1e73   : > { %v6601_v62 = vadd.f32 %v9788_v54, %v6600_v61  ;;  %v8683_v63 = vpop.f32.mrb[47].mxu0 }
0x1e74   : > { %v7952_v63 = vld [vmem:[%s1454_s4] ss:$0 sm:$0xff] }
0x1e75   : > { %v6680_v42 = vsel %vm1867_vm3, %v6601_v62, -inf }
0x1e76   : > { %6681 = vmax.xlane.f32.xlu0 %v6680_v42  ;;  %v6676_v0 = vpop.f32.mrb[48].mxu0 }
0x1e77   : > { %v6677_v1 = vadd.f32 %v9785_v53, %v6676_v0  ;;  %v8688_v2 = vpop.f32.mrb[49].mxu0 }
0x1e78   : > { %v7953_v2 = vld [vmem:[%s1457_s11] ss:$0 sm:$0xff] }
0x1e79   : > { %v6683_v3 = vsel %vm1867_vm3, %v6677_v1, -inf }
0x1e7a   : > { %6684 = vmax.xlane.f32.xlu1 %v6683_v3 }
0x1f03   : > { %v6682_v4 = vpop.xlane.xlu0 %6681 }
0x1f04   : > { %v6686_v12 = vsub.f32 %v6601_v62, %v6682_v4 }
0x1f06   : > { %v6688_v7 = vmul.f32 1.442695, %v6686_v12 }
0x1f07   : > { %v6685_v9 = vpop.xlane.xlu1 %6684 }
0x1f08   : > { %9133 = vpow2.f32 %v6688_v7  ;;  %v6687_v51 = vsub.f32 %v6677_v1, %v6685_v9  ;;  %v7131_v9 = vld [vmem:[%s9465_s21] sm:$0xff] }
0x1f0a   : > { %v6690_v10 = vmul.f32 1.442695, %v6687_v51  ;;  %v7132_v51 = vld [vmem:[%s9465_s21 + $0x8] sm:$0xff] }
0x1f0c   : > { %9135 = vpow2.f32 %v6690_v10  ;;  %v8968_v10 = vpack.c.bf16 %v7132_v51, %v7131_v9 }
0x1f12   : > { %v9134_v54 = vpop.eup %9133 }
0x1f13   : > { %v6692_v11 = vsel %vm1867_vm3, %v9134_v54, 0.0 }
0x1f14   : > { %6693 = vadd.xlane.f32.xlu0 %v6692_v11  ;;  %v7134_v11 = vld [vmem:[%s9465_s21 + $0x18] sm:$0xff] }
0x1f16   : > { %v9136_v13 = vpop.eup %9135 }
0x1f17   : > { %v6695_v53 = vsel %vm1867_vm3, %v9136_v13, 0.0 }
0x1f18   : > { %6696 = vadd.xlane.f32.xlu1 %v6695_v53  ;;  %v7135_v53 = vld [vmem:[%s9465_s21 + $0x20] sm:$0xff] }
0x1f19   : > { %v8976_v15 = vpack.c.bf16 %v7136_v14, %v7135_v53 }
0x1fa1   : > { %v6694_v19 = vpop.xlane.xlu0 %6693 }
0x1fa2   : > { %9137 = vrcp.f32 %v6694_v19  ;;  %v7139_v19 = vld [vmem:[%s9465_s21 + $0x40] sm:$0xff] }
0x1fa5   : > { %v6697_v20 = vpop.xlane.xlu1 %6696 }
0x1fa6   : > { %9139 = vrcp.f32 %v6697_v20  ;;  %v7140_v20 = vld [vmem:[%s9465_s21 + $0x48] sm:$0xff] }
0x1fac   : > { %v9138_v21 = vpop.eup %9137 }
0x1fad   : > { %v6700_v22 = vmul.f32 %v9138_v21, %v9134_v54  ;;  %v7133_v54 = vld [vmem:[%s9465_s21 + $0x10] sm:$0xff]  ;;  %v8984_v21 = vpack.c.bf16 %v7140_v20, %v7139_v19 }
0x1faf   : > { %8692 = vmatmul.mubr.msk.f32.vlgmr.msra.gmra.mrb[62].mxu1 %vm1867_vm3, %v6700_v22  ;;  %v7141_v22 = vld [vmem:[%s9465_s21 + $0x50] sm:$0xff] }
0x1fb0   : > { %v9140_v6 = vpop.eup %9139  ;;  %8963 = vmatpush3.bf16.msra.mxu1 %v8960_v56 }
0x1fb1   : > { %v6701_v23 = vmul.f32 %v9140_v6, %v9136_v13  ;;  %8965 = vmatprep.subr.bf16.mxu1 %v8964_v58  ;;  %v8972_v13 = vpack.c.bf16 %v7134_v11, %v7133_v54  ;;  %v7142_v6 = vld [vmem:[%s9465_s21 + $0x58] sm:$0xff] }
0x1fb3   : > { %8697 = vmatmul.mubr.msk.f32.vlgmr.msra.gmra.mrb[50].mxu0 %vm1867_vm3, %v6701_v23  ;;  %v8988_v23 = vpack.c.bf16 %v7142_v6, %v7141_v22 }
0x1fb4   : > { %8700 = vmatpush3.msra.mxu0 %v4323_v24  ;;  %8967 = vmatpush3.bf16.msra.mxu1 %v8964_v58  ;;  %v7143_v24 = vld [vmem:[%s9465_s21 + $0x60] sm:$0xff] }
0x1fb5   : > { %8969 = vmatprep.subr.bf16.mxu0 %v8968_v10 }
0x2082   : > { %v6771_v5 = vpop.f32.mrb[62].mxu1 }
0x2083   : > { %v8693_v27 = vpop.f32.mrb[63].mxu1  ;;  %8701 = vmatprep.mubr.msk.f32.mxu0 %vm1867_vm3, %v6771_v5  ;;  %v7144_v5 = vld [vmem:[%s9465_s21 + $0x68] sm:$0xff] }
0x2084   : > { %v8992_v27 = vpack.c.bf16 %v7144_v5, %v7143_v24 }
0x2086   : > { %v6844_v28 = vpop.f32.mrb[50].mxu0 }
0x2087   : > { %v8698_v29 = vpop.f32.mrb[51].mxu0  ;;  %8702 = vmatmul.mubr.msk.f32.vlgmr.msra.gmra.mrb[36].mxu0 %vm1867_vm3, %v6844_v28  ;;  %v7145_v28 = vld [vmem:[%s9465_s21 + $0x70] sm:$0xff] }
0x2088   : > { %8971 = vmatpush3.bf16.msra.mxu0 %v8968_v10  ;;  %v7146_v29 = vld [vmem:[%s9465_s21 + $0x78] sm:$0xff] }
0x2089   : > { %8973 = vmatprep.subr.bf16.mxu0 %v8972_v13 }
0x208c   : > { %8975 = vmatpush3.bf16.msra.mxu0 %v8972_v13 }
0x208d   : > { %8977 = vmatprep.subr.bf16.mxu0 %v8976_v15 }
0x2090   : > { %8979 = vmatpush3.bf16.msra.mxu0 %v8976_v15 }
0x2091   : > { %8981 = vmatprep.subr.bf16.mxu0 %v8980_v18 }
0x2094   : > { %8983 = vmatpush3.bf16.msra.mxu0 %v8980_v18 }
0x2095   : > { %8985 = vmatprep.subr.bf16.mxu0 %v8984_v21 }
0x2098   : > { %8987 = vmatpush3.bf16.msra.mxu0 %v8984_v21 }
0x2099   : > { %8989 = vmatprep.subr.bf16.mxu0 %v8988_v23 }
0x209c   : > { %8991 = vmatpush3.bf16.msra.mxu0 %v8988_v23  ;;  %v7957_v23 = vld [vmem:[%s1473_s3] ss:$0 sm:$0xff]  ;;  %s10159_s3 = sld [smem:[#allocation38_spill]] }
0x209d   : > { %8993 = vmatprep.subr.bf16.mxu0 %v8992_v27 }
0x20a0   : > { %8995 = vmatpush3.bf16.msra.mxu0 %v8992_v27 }
0x20a2   : > { %p7960_p5 = scmp.ne.s32.totalorder %s10159_s3, 1 }
0x20a3   : > { %s10160_s4 = sld [smem:[#allocation11_spill]] (!%p7960_p5)  ;;  %vm9203_vm6 = vmmov (!%p7960_p5), 0   ;;  %vm7282_vm7 = vcmask (!%p7960_p5), 130048   ;;  %vm7440_vm8 = vcmask (!%p7960_p5), 1024  }
0x215a   : > { %v8703_v33 = vpop.f32.mrb[36].mxu0 }
0x215b   : > { %v6938_v34 = vadd.f32 %v8703_v33, %v7951_v32  ;;  %v6920_v35 = vpop.f32.mrb[37].mxu0  ;;  %v7954_v33 = vld [vmem:[%s1465_s29] ss:$0 sm:$0xff] }
0x215c   : > { %v6937_v37 = vadd.f32 %v7951_v32, %v6920_v35  ;;  %v8996_v32 = vpack.c.bf16 %v7146_v29, %v7145_v28 }
0x215d   : > { %v6940_v38 = vadd.f32 %v6938_v34, %v9758_v31 }
0x215e   : > { %v6939_v39 = vadd.f32 %v6937_v37, %v9756_v30  ;;  %8997 = vmatprep.subr.bf16.mxu0 %v8996_v32 }
0x215f   : > { %v6946_v40 = vsel %vm1611_vm1, %v6940_v38, 0.0  ;;  %8999 = vmatpush3.bf16.msra.mxu0 %v8996_v32 }
0x2160   : > { %6947 = vadd.xlane.f32.xlu1 %v6946_v40  ;;  %v6943_v41 = vsel %vm1611_vm1, %v6939_v39, 0.0 }
0x2161   : > { %6944 = vadd.xlane.f32.xlu0 %v6943_v41 }
0x21ed   : > { %v6948_v44 = vpop.xlane.xlu1 %6947 }
0x21ee   : > { %v6950_v46 = vmul.f32 0.03125, %v6948_v44  ;;  %v6945_v47 = vpop.xlane.xlu0 %6944 }
0x21ef   : > { %v6949_v48 = vmul.f32 0.03125, %v6945_v47 }
0x21f0   : > { %v6952_v49 = vsub.f32 %v6940_v38, %v6950_v46 }
0x21f1   : > { %v6951_v50 = vsub.f32 %v6939_v39, %v6949_v48 }
0x21f2   : > { %v6954_v26 = vmul.f32 %v6952_v49, %v6952_v49 }
0x21f3   : > { %v6953_v31 = vmul.f32 %v6951_v50, %v6951_v50 }
0x21f4   : > { %v6958_v30 = vsel %vm1611_vm1, %v6954_v26, 0.0 }
0x21f5   : > { %6959 = vadd.xlane.f32.xlu1 %v6958_v30  ;;  %v6955_v52 = vsel %vm1611_vm1, %v6953_v31, 0.0 }
0x21f6   : > { %6956 = vadd.xlane.f32.xlu0 %v6955_v52 }
0x2282   : > { %v6960_v59 = vpop.xlane.xlu1 %6959 }
0x2283   : > { %v6962_v45 = vmul.f32 0.03125, %v6960_v59  ;;  %v6957_v43 = vpop.xlane.xlu0 %6956 }
0x2284   : > { %v6961_v36 = vmul.f32 0.03125, %v6957_v43 }
0x2285   : > { %v6964_v60 = vadd.f32 1e-12, %v6962_v45 }
0x2286   : > { %v6963_v61 = vadd.f32 1e-12, %v6961_v36 }
0x2287   : > { %9141 = vrsqrt.f32 %v6964_v60 }
0x2288   : > { %9143 = vrsqrt.f32 %v6963_v61 }
0x2291   : > { %v9142_v62 = vpop.eup %9141 }
0x2292   : > { %v9144_v42 = vpop.eup %9143  ;;  %v6968_v0 = vmul.f32 %v9142_v62, %v6952_v49 }
0x2293   : > { %v6967_v1 = vmul.f32 %v9144_v42, %v6951_v50 }
0x2294   : > { %v6976_v3 = vmul.f32 %v7952_v63, %v6968_v0 }
0x2295   : > { %v6975_v4 = vmul.f32 %v7952_v63, %v6967_v1 }
0x2296   : > { %v9990_v7 = vadd.f32 %v7953_v2, %v6976_v3 }
0x2297   : > { %v9988_v12 = vadd.f32 %v7953_v2, %v6975_v4 }
0x2299   : > { %8712 = vmatprep.mubr.msk.f32.mxu1 %vm1611_vm1, %v9988_v12 }
0x229a   : > { %8713 = vmatmul.mubr.msk.f32.vlgmr.msra.gmra.mrb[64].mxu1 %vm1611_vm1, %v9990_v7 }
0x236d   : > { %v8714_v34 = vpop.f32.mrb[64].mxu1 }
0x236e   : > { %v7074_v35 = vadd.f32 %v8714_v34, %v7954_v33  ;;  %v7068_v37 = vpop.f32.mrb[65].mxu1 }
0x236f   : > { %v7069_v38 = vadd.f32 %v7954_v33, %v7068_v37 }
0x2370   : > { %v7080_v39 = vmul.f32 0.70710677, %v7074_v35  ;;  %v7078_v21 = vmul.f32 0.5, %v7074_v35 }
0x2371   : > { %v7079_v40 = vmul.f32 0.70710677, %v7069_v38  ;;  %v7077_v19 = vmul.f32 0.5, %v7069_v38 }
0x2372   : > { %v7082_v41 = vand.u32 2147483647, %v7080_v39  ;;  %vm7122_vm4 = vcmp.lt.f32.partialorder %v7080_v39, 0.0 }
0x2373   : > { %v7081_v44 = vand.u32 2147483647, %v7079_v40  ;;  %vm7121_vm5 = vcmp.lt.f32.partialorder %v7079_v40, 0.0 }
0x2374   : > { %v7084_v46 = vmul.f32 0.3275911, %v7082_v41  ;;  %v7110_v50 = vsub.f32 0.0, %v7082_v41 }
0x2375   : > { %v7083_v47 = vmul.f32 0.3275911, %v7081_v44  ;;  %v7109_v26 = vsub.f32 0.0, %v7081_v44 }
0x2376   : > { %v7086_v48 = vadd.f32 1.0, %v7084_v46  ;;  %v7112_v30 = vmul.f32 %v7110_v50, %v7082_v41 }
0x2377   : > { %v7085_v49 = vadd.f32 1.0, %v7083_v47  ;;  %v7111_v8 = vmul.f32 %v7109_v26, %v7081_v44 }
0x2378   : > { %9145 = vrcp.f32 %v7086_v48  ;;  %v7115_v25 = vmul.f32 1.442695, %v7112_v30 }
0x2379   : > { %9147 = vrcp.f32 %v7085_v49  ;;  %v7113_v45 = vmul.f32 1.442695, %v7111_v8 }
0x237a   : > { %9149 = vpow2.f32 %v7115_v25 }
0x237b   : > { %9151 = vpow2.f32 %v7113_v45 }
0x2382   : > { %v9146_v31 = vpop.eup %9145 }
0x2383   : > { %v9148_v52 = vpop.eup %9147  ;;  %v7092_v55 = vmul.f32 1.0614054, %v9146_v31 }
0x2384   : > { %v7091_v56 = vmul.f32 1.0614054, %v9148_v52  ;;  %v9150_v9 = vpop.eup %9149 }
0x2385   : > { %v7094_v57 = vadd.f32 -1.4531521, %v7092_v55  ;;  %v9152_v10 = vpop.eup %9151 }
0x2386   : > { %v7093_v58 = vadd.f32 -1.4531521, %v7091_v56  ;;  %v7959_v56 = vld [vmem:[%s1479_s25] ss:$0 sm:$0xff]  ;;  %s10162_s25 = sld [smem:[#allocation36_spill]] (!%p7960_p5) }
0x2387   : > { %v7096_v59 = vmul.f32 %v9146_v31, %v7094_v57 }
0x2388   : > { %v7095_v43 = vmul.f32 %v9148_v52, %v7093_v58 }
0x2389   : > { %v7098_v36 = vadd.f32 1.4214138, %v7096_v59 }
0x238a   : > { %v7097_v60 = vadd.f32 1.4214138, %v7095_v43 }
0x238b   : > { %v7100_v61 = vmul.f32 %v9146_v31, %v7098_v36  ;;  %v7356_v36 = vld [vmem:[%s10160_s4] sm:$0xff] (!%p7960_p5) }
0x238c   : > { %v7099_v62 = vmul.f32 %v9148_v52, %v7097_v60  ;;  %v9202_v60 = vmov (!%p7960_p5), 0.0|0.0  }
0x238d   : > { %v7102_v63 = vadd.f32 -0.28449672, %v7100_v61  ;;  %9000 = vmatprep.subr.bf16.mxu0 (!%p7960_p5), %v9202_v60  ;;  %v9204_v61 = vmov (!%p7960_p5), 0.0   ;;  %9003 = vmatprep.subr.bf16.mxu1 (!%p7960_p5), %v9202_v60 }
0x238e   : > { %v7101_v42 = vadd.f32 -0.28449672, %v7099_v62  ;;  %v7357_v62 = vld [vmem:[%s10160_s4 + $0x8] sm:$0xff] (!%p7960_p5)  ;;  %8765 = vmatprep.mubr.msk.f32.mxu1 (!%p7960_p5), %vm9203_vm6, %v9204_v61 }
0x238f   : > { %v7104_v0 = vmul.f32 %v9146_v31, %v7102_v63  ;;  %v7358_v63 = vld [vmem:[%s10160_s4 + $0x10] sm:$0xff] (!%p7960_p5) }
0x2390   : > { %v7103_v1 = vmul.f32 %v9148_v52, %v7101_v42  ;;  %v7359_v42 = vld [vmem:[%s10160_s4 + $0x18] sm:$0xff] (!%p7960_p5) }
0x2391   : > { %v7106_v2 = vadd.f32 0.2548296, %v7104_v0 }
0x2392   : > { %v7105_v3 = vadd.f32 0.2548296, %v7103_v1  ;;  %v9004_v1 = vpack.c.bf16 (!%p7960_p5), %v7357_v62, %v7356_v36 }
0x2393   : > { %v7108_v4 = vmul.f32 %v9146_v31, %v7106_v2  ;;  %v9007_v2 = vpack.c.bf16 (!%p7960_p5), %v7359_v42, %v7358_v63 }
0x2394   : > { %v7107_v51 = vmul.f32 %v9148_v52, %v7105_v3  ;;  %v7958_v52 = vld [vmem:[%s1476_s12] ss:$0 sm:$0xff]  ;;  %s10161_s12 = sld [smem:[#allocation10_spill]] (!%p7960_p5)  ;;  %9005 = vmatpush3.bf16.msra.mxu1 (!%p7960_p5), %v9004_v1 }
0x2395   : > { %v7118_v54 = vmul.f32 %v9150_v9, %v7108_v4  ;;  %9006 = vmatprep.subr.bf16.mxu1 (!%p7960_p5), %v9202_v60  ;;  %v7962_v9 = vld [vmem:[#allocation3] ss:$0 sm:$0xff] (!%p7960_p5) }
0x2396   : > { %v7117_v11 = vmul.f32 %v9152_v10, %v7107_v51 }
0x2397   : > { %v7120_v13 = vsub.f32 1.0, %v7118_v54 }
0x2398   : > { %v7119_v53 = vsub.f32 1.0, %v7117_v11  ;;  %9008 = vmatpush3.bf16.msra.mxu1 (!%p7960_p5), %v9007_v2 }
0x2399   : > { %v7124_v14 = vsub.f32 0.0, %v7120_v13 }
0x239a   : > { %v7123_v15 = vsub.f32 0.0, %v7119_v53  ;;  %v7281_v0 = vld [vmem:[%s10161_s12] sm:$0x3] (!%p7960_p5) }
0x239b   : > { %v7126_v16 = vsel %vm7122_vm4, %v7124_v14, %v7120_v13 }
0x239c   : > { %v7128_v17 = vadd.f32 1.0, %v7126_v16  ;;  %v7125_v18 = vsel %vm7121_vm5, %v7123_v15, %v7119_v53 }
0x239d   : > { %v7127_v20 = vadd.f32 1.0, %v7125_v18 }
0x239e   : > { %v7130_v6 = vmul.f32 %v7128_v17, %v7078_v21 }
0x239f   : > { %v7129_v22 = vmul.f32 %v7127_v20, %v7077_v19 }
0x23a1   : > { %8747 = vmatprep.mubr.f32.mxu0 %v7129_v22 }
0x23a2   : > { %8748 = vmatmul.mubr.f32.vlgmr.msra.gmra.mrb[52].mxu0 %v7130_v6 }
0x23a3   : > { %8754 = vmatprep.mubr.msk.f32.mxu0 (!%p7960_p5), %vm9203_vm6, %v9204_v61 }
0x2475   : > { %v8749_v24 = vpop.f32.mrb[52].mxu0 }
0x2476   : > { %v7226_v5 = vadd.f32 %v8749_v24, %v7957_v23  ;;  %v7220_v27 = vpop.f32.mrb[53].mxu0 }
0x2477   : > { %v7221_v28 = vadd.f32 %v7957_v23, %v7220_v27 }
0x2478   : > { %v7230_v29 = vadd.f32 %v7226_v5, %v9990_v7 }
0x2479   : > { %v7229_v32 = vadd.f32 %v7221_v28, %v9988_v12 }
0x247a   : > { %v7236_v33 = vsel %vm1611_vm1, %v7230_v29, 0.0 }
0x247b   : > { %7237 = vadd.xlane.f32.xlu1 %v7236_v33  ;;  %v7233_v34 = vsel %vm1611_vm1, %v7229_v32, 0.0 }
0x247c   : > { %7234 = vadd.xlane.f32.xlu0 %v7233_v34 }
0x2508   : > { %v7238_v35 = vpop.xlane.xlu1 %7237 }
0x2509   : > { %v7240_v37 = vmul.f32 0.03125, %v7238_v35  ;;  %v7235_v38 = vpop.xlane.xlu0 %7234 }
0x250a   : > { %v7239_v39 = vmul.f32 0.03125, %v7235_v38 }
0x250b   : > { %v7242_v40 = vsub.f32 %v7230_v29, %v7240_v37 }
0x250c   : > { %v7241_v41 = vsub.f32 %v7229_v32, %v7239_v39 }
0x250d   : > { %v7244_v44 = vmul.f32 %v7242_v40, %v7242_v40 }
0x250e   : > { %v7243_v46 = vmul.f32 %v7241_v41, %v7241_v41 }
0x250f   : > { %v7248_v7 = vsel %vm1611_vm1, %v7244_v44, 0.0 }
0x2510   : > { %7249 = vadd.xlane.f32.xlu1 %v7248_v7  ;;  %v7245_v12 = vsel %vm1611_vm1, %v7243_v46, 0.0 }
0x2511   : > { %7246 = vadd.xlane.f32.xlu0 %v7245_v12 }
0x259d   : > { %v7250_v47 = vpop.xlane.xlu1 %7249 }
0x259e   : > { %v7252_v48 = vmul.f32 0.03125, %v7250_v47  ;;  %v7247_v49 = vpop.xlane.xlu0 %7246 }
0x259f   : > { %v7251_v50 = vmul.f32 0.03125, %v7247_v49 }
0x25a0   : > { %v7254_v26 = vadd.f32 1e-12, %v7252_v48 }
0x25a1   : > { %v7253_v31 = vadd.f32 1e-12, %v7251_v50 }
0x25a2   : > { %9153 = vrsqrt.f32 %v7254_v26 }
0x25a3   : > { %9155 = vrsqrt.f32 %v7253_v31 }
0x25ac   : > { %v9154_v30 = vpop.eup %9153 }
0x25ad   : > { %v9156_v55 = vpop.eup %9155  ;;  %v7258_v8 = vmul.f32 %v9154_v30, %v7242_v40 }
0x25ae   : > { %v7257_v57 = vmul.f32 %v9156_v55, %v7241_v41  ;;  %7280 = sbr.rel (%p7960_p5) target bundleno = 10084 (0x2764), region = 168 }
0x25af   : > { %v7266_v25 = vmul.f32 %v7958_v52, %v7258_v8 }
0x25b0   : > { %v7265_v58 = vmul.f32 %v7958_v52, %v7257_v57 }
0x25b1   : > { %v7274_v59 = vadd.f32 %v7959_v56, %v7266_v25 }
0x25b2   : > { %v7273_v45 = vadd.f32 %v7959_v56, %v7265_v58 }
0x25b3   : > { %7276 = vst.msk [vmem:[#allocation2 + $0x8] sm:$0xff] %vm1611_vm1, %v7274_v59 }
0x25b4   : > { %7275 = vst.msk [vmem:[#allocation2] sm:$0xff] %vm1611_vm1, %v7273_v45  ;;  %v9001_v43 = vpack.c.bf16 (!%p7960_p5), %v7274_v59, %v7273_v45 }
0x25b6   : > { %9002 = vmatpush3.bf16.msra.mxu0 %v9001_v43 }
0x25b9   : > { %8755 = vmatmul.mubr.msk.f32.vlgmr.msra.gmra.mrb[0].mxu0 %vm7282_vm7, %v7281_v0 }
0x268c   : > { %v7352_v3 = vpop.f32.mrb[0].mxu0 }
0x268d   : > { %v8756_v4 = vpop.f32.mrb[1].mxu0  ;;  %8766 = vmatmul.mubr.msk.f32.vlgmr.msra.gmra.mrb[0].mxu1 %vm1611_vm1, %v7352_v3 }
0x2760   : > { %v7436_v51 = vpop.f32.mrb[0].mxu1 }
0x2761   : > { %v7437_v10 = vadd.f32 %v7962_v9, %v7436_v51  ;;  %v8767_v54 = vpop.f32.mrb[1].mxu1 }
0x2763   : > { %7441 = vst.msk [vmem:[%s10162_s25] sm:$0x3] %vm7440_vm8, %v7437_v10 }
0x2764 PF: > { %s10163_s11 = sld [smem:[#allocation37_spill]] }
0x276a   : > { %s83_s22 = sadd.s32 1, %s10163_s11  }
0x276b   : > { %p80_p6 = scmp.ge.s32.totalorder %s83_s22, 4  }
0x276d   :  { %82 = sbr.rel (!%p80_p6) target bundleno = 73 (0x49), region = 304 }

</bundles_post_ra>
